<compile_context>
chip_gen: v5e
topology: v5e:2x2
jax: 0.10.0
libtpu: 0.0.40
codegen_flags: <defaults>
</compile_context>

<pallas_src>
import functools
import numpy as np
import jax
import jax.numpy as jnp
from jax import lax
from jax.experimental import pallas as pl
from jax.experimental.pallas import tpu as pltpu

# ---------------------------------------------------------------------------
# Small synthetic config (same structure as cfg.RPN.SA_CONFIG / cfg.RPN.FP_MLPS)
# ---------------------------------------------------------------------------
CFG = dict(
    NPOINTS=[64, 16],
    RADIUS=[[0.2, 0.4], [0.4, 0.8]],
    NSAMPLE=[[8, 16], [8, 16]],
    MLPS=[[[8, 8, 16], [8, 8, 16]], [[16, 16, 32], [16, 16, 32]]],
    FP_MLPS=[[32, 32], [32, 32]],
)
BN_EPS = 1e-5
USE_XYZ = True
INPUT_CHANNELS = 4
VMEM_LIMIT = 32 * 1024 * 1024


# ---------------------------------------------------------------------------
# Static (python-level) channel bookkeeping
# ---------------------------------------------------------------------------
def _round8(x):
    return ((x + 7) // 8) * 8


def sa_static(k, channel_in):
    """Fused (block-diagonal over MSG scales) per-layer (K, N) dims for SA level k."""
    mlps = CFG['MLPS'][k]
    n_scales = len(mlps)
    depth = len(mlps[0])
    assert all(len(m) == depth for m in mlps), "fused MSG scales need equal MLP depth"
    c0 = channel_in + (3 if USE_XYZ else 0)
    dims, prev = [], [c0] * n_scales
    for l in range(depth):
        cur = [mlps[s][l] for s in range(n_scales)]
        dims.append((sum(prev), sum(cur)))
        prev = cur
    cout = sum(prev)
    cpad = _round8(max(max(K, N) for K, N in dims))       # one common square pad
    return c0, dims, cout, cpad


def fp_static(k, channel_out, skip):
    """Per-layer (K, N) dims for FP level k."""
    pre = CFG['FP_MLPS'][k + 1][-1] if k + 1 < len(CFG['FP_MLPS']) else channel_out
    chans = [pre + skip[k]] + CFG['FP_MLPS'][k]
    dims = [(chans[i], chans[i + 1]) for i in range(len(chans) - 1)]
    cpad = _round8(max(max(K, N) for K, N in dims))
    return dims, chans[-1], cpad


def _choose_tile(n, cap=512):
    """Largest multiple-of-128 tile (<=cap) dividing n, else the full dimension."""
    t = cap
    while t >= 128:
        if n >= t and n % t == 0:
            return t
        t //= 2
    return n


# ---------------------------------------------------------------------------
# Pallas kernels (channels in sublanes, points in lanes)
# ---------------------------------------------------------------------------
def _make_sa_kernel(depth, s_max, cout):
    """x:(S, Cpad, TP) -> per-sample fused MLP (folded BN + ReLU) -> running max
    over samples -> (Cout, TP) lane-dense store."""
    def kernel(x_ref, w_ref, b_ref, o_ref):
        ws = [w_ref[l] for l in range(depth)]          # (Cpad, Cpad) each, resident
        bs = [b_ref[l] for l in range(depth)]          # (Cpad, 1) each

        def mlp(h):                                    # h: (Cpad, TP)
            for l in range(depth):
                h = jnp.dot(ws[l], h, preferred_element_type=jnp.float32)
                h = jnp.maximum(h + bs[l], 0.0)
            return h

        m = mlp(x_ref[0])
        for s in range(1, s_max):                      # running max: small live set
            m = jnp.maximum(m, mlp(x_ref[s]))
        o_ref[...] = m[:cout]                          # lane-dense, unmasked store
    return kernel


def _make_fp_kernel(depth, cout):
    """x:(Cpad, TP) -> MLP (folded BN + ReLU) -> (Cout, TP) lane-dense store."""
    def kernel(x_ref, w_ref, b_ref, o_ref):
        h = x_ref[...]                                 # (Cpad, TP)
        for l in range(depth):
            h = jnp.dot(w_ref[l], h, preferred_element_type=jnp.float32)
            h = jnp.maximum(h + b_ref[l], 0.0)
        o_ref[...] = h[:cout]
    return kernel


def _sqdist_kernel(a_ref, b_ref, o_ref):
    """a_aug:(1,TN,5), b_aug:(1,TM,5) -> out[TN,TM] = max(a_aug @ b_aug^T, 0).
    One MXU pass, no transposes, no cross-lane moves."""
    d = lax.dot_general(a_ref[0], b_ref[0], (((1,), (1,)), ((), ())),
                        preferred_element_type=jnp.float32)
    o_ref[0] = jnp.maximum(d, 0.0)


# ---------------------------------------------------------------------------
# Pallas wrappers
# ---------------------------------------------------------------------------
def sa_mlp_maxpool(x, w_pack, b_pack, depth, cout):
    """x: (S, Cpad, NP) f32 (NP = B*npoint, batch-major)  ->  (Cout, NP) f32."""
    S, cpad, NP = x.shape
    TP = _choose_tile(NP, cap=256)
    kernel = _make_sa_kernel(depth, S, cout)
    return pl.pallas_call(
        kernel,
        out_shape=jax.ShapeDtypeStruct((cout, NP), jnp.float32),
        grid=(NP // TP,),
        in_specs=[
            pl.BlockSpec((S, cpad, TP), lambda p: (0, 0, p)),
            pl.BlockSpec(w_pack.shape, lambda p: (0, 0, 0)),
            pl.BlockSpec(b_pack.shape, lambda p: (0, 0, 0)),
        ],
        out_specs=pl.BlockSpec((cout, TP), lambda p: (0, p)),
        compiler_params=pltpu.CompilerParams(
            dimension_semantics=("parallel",),
            vmem_limit_bytes=VMEM_LIMIT),
    )(x, w_pack, b_pack)


def fp_mlp(x, w_pack, b_pack, depth, cout):
    """x: (Cpad, NP) f32 (NP = B*n, batch-major)  ->  (Cout, NP) f32."""
    cpad, NP = x.shape
    TP = _choose_tile(NP, cap=256)
    kernel = _make_fp_kernel(depth, cout)
    return pl.pallas_call(
        kernel,
        out_shape=jax.ShapeDtypeStruct((cout, NP), jnp.float32),
        grid=(NP // TP,),
        in_specs=[
            pl.BlockSpec((cpad, TP), lambda p: (0, p)),
            pl.BlockSpec(w_pack.shape, lambda p: (0, 0, 0)),
            pl.BlockSpec(b_pack.shape, lambda p: (0, 0, 0)),
        ],
        out_specs=pl.BlockSpec((cout, TP), lambda p: (0, p)),
        compiler_params=pltpu.CompilerParams(
            dimension_semantics=("parallel",),
            vmem_limit_bytes=VMEM_LIMIT),
    )(x, w_pack, b_pack)


def pairwise_sqdist(a, b):
    """a: (B, n, 3), b: (B, m, 3) -> (B, n, m) clamped squared distances.
    Augmented matmul: [-2a, |a|^2, 1] @ [b, 1, |b|^2]^T (built in XLA, tiny)."""
    B, n, _ = a.shape
    m = b.shape[1]
    a = a.astype(jnp.float32)
    b = b.astype(jnp.float32)
    a2 = jnp.sum(a * a, axis=-1, keepdims=True)
    b2 = jnp.sum(b * b, axis=-1, keepdims=True)
    a_aug = jnp.concatenate([-2.0 * a, a2, jnp.ones_like(a2)], axis=-1)   # (B, n, 5)
    b_aug = jnp.concatenate([b, jnp.ones_like(b2), b2], axis=-1)          # (B, m, 5)
    TN = _choose_tile(n, cap=512)
    TM = _choose_tile(m, cap=512)
    return pl.pallas_call(
        _sqdist_kernel,
        out_shape=jax.ShapeDtypeStruct((B, n, m), jnp.float32),
        grid=(B, n // TN, m // TM),
        in_specs=[pl.BlockSpec((1, TN, 5), lambda bi, i, j: (bi, i, 0)),
                  pl.BlockSpec((1, TM, 5), lambda bi, i, j: (bi, j, 0))],
        out_specs=pl.BlockSpec((1, TN, TM), lambda bi, i, j: (bi, i, j)),
        compiler_params=pltpu.CompilerParams(
            dimension_semantics=("parallel", "parallel", "parallel"),
            vmem_limit_bytes=VMEM_LIMIT),
    )(a_aug, b_aug)


# ---------------------------------------------------------------------------
# Plain-JAX glue: FPS, ball query (sequential / sort-based index logic)
# ---------------------------------------------------------------------------
# TODO(synk): FPS and ball-query selection are sequential / sort-based; they stay
# in plain JAX (lax.fori_loop / jnp.sort) rather than Pallas.
def farthest_point_sample(xyz, npoint):
    B, N, _ = xyz.shape

    def body(i, state):
        idxs, dists, farthest = state
        idxs = idxs.at[:, i].set(farthest)
        centroid = xyz[jnp.arange(B), farthest]                    # (B, 3)
        d = jnp.sum((xyz - centroid[:, None, :]) ** 2, axis=-1)    # (B, N)
        dists = jnp.minimum(dists, d)
        farthest = jnp.argmax(dists, axis=-1).astype(jnp.int32)
        return idxs, dists, farthest

    idxs0 = jnp.zeros((B, npoint), jnp.int32)
    dists0 = jnp.full((B, N), 1e10, jnp.float32)
    far0 = jnp.zeros((B,), jnp.int32)
    idxs, _, _ = lax.fori_loop(0, npoint, body, (idxs0, dists0, far0))
    return idxs


def ball_query(sqd, radius, nsample):
    """CUDA ball_query semantics: first `nsample` indices (ascending) with d^2 < r^2,
    padded with the first found index (0 if none)."""
    B, npoint, N = sqd.shape
    mask = sqd < jnp.float32(radius * radius)
    ar = jnp.arange(N, dtype=jnp.int32)
    key = jnp.where(mask, ar, jnp.int32(N))
    skey = jnp.sort(key, axis=-1)[:, :, :nsample]
    first = skey[:, :, :1]
    idx = jnp.where(skey >= N, first, skey)
    idx = jnp.where(idx >= N, 0, idx)
    return idx.astype(jnp.int32)


# ---------------------------------------------------------------------------
# SA / FP modules.  Features travel between levels in a channel-major canonical
# layout (C, B, n); the PyTorch (B, C, n) convention is produced once at the end.
# ---------------------------------------------------------------------------
def sa_module(xyz, xyz_t, feats_cbn, npoint, radii, nsamples,
              w_pack, b_pack, depth, c0f, cpad, cout):
    """PointnetSAModuleMSG (both scales fused): returns
    (new_xyz (B,P,3), new_xyz_t (3,B,P), new_features (Cout,B,P), fps_idx)."""
    B, N, _ = xyz.shape
    fps_idx = farthest_point_sample(xyz, npoint)                   # (B, P)
    bidx = jnp.arange(B)[:, None]
    new_xyz = xyz[bidx, fps_idx]                                   # (B, P, 3)
    new_xyz_t = xyz_t[:, bidx, fps_idx]                            # (3, B, P)
    sqd = pairwise_sqdist(new_xyz, xyz)                            # Pallas (B, P, N)

    b3 = jnp.arange(B).reshape(1, B, 1)
    s_max = max(nsamples)
    groups = []
    for radius, nsample in zip(radii, nsamples):
        idx = ball_query(sqd, radius, nsample)                     # (B, P, nsample)
        if nsample < s_max:
            # NOTE: duplicate-index padding of the shorter MSG scale is only valid
            # because the pooling over samples is a MAX (true here).
            pad = jnp.broadcast_to(idx[:, :, :1], (B, npoint, s_max - nsample))
            idx = jnp.concatenate([idx, pad], axis=-1)
        idx_t = jnp.transpose(idx, (2, 0, 1))                      # (S, B, P) (tiny)
        g_xyz = xyz_t[:, b3, idx_t] - new_xyz_t[:, None]           # (3, S, B, P)
        if feats_cbn is not None:
            g_feat = feats_cbn[:, b3, idx_t]                       # (C, S, B, P)
            g = jnp.concatenate([g_xyz, g_feat], axis=0) if USE_XYZ else g_feat
        else:
            g = g_xyz
        groups.append(g)
    x = jnp.concatenate(groups, axis=0).astype(jnp.float32)        # (C0f, S, B, P)
    if cpad > c0f:
        x = jnp.pad(x, ((0, cpad - c0f), (0, 0), (0, 0), (0, 0)))  # exact zero-pad
    # leading-dims-only transpose (minor dims unchanged), then batch-major flatten
    x = jnp.transpose(x, (1, 0, 2, 3)).reshape(s_max, cpad, B * npoint)
    feats_flat = sa_mlp_maxpool(x, w_pack, b_pack, depth, cout)    # (Cout, B*P)
    new_feats = feats_flat.reshape(cout, B, npoint)                # canonical
    return new_xyz, new_xyz_t, new_feats, fps_idx


def fp_module(unknown_xyz, known_xyz, unknown_cbn, known_cbn,
              w_pack, b_pack, depth, cpad, cout):
    """PointnetFPModule: three-NN interpolation + skip concat + shared MLP."""
    B, n, _ = unknown_xyz.shape
    sqd = pairwise_sqdist(unknown_xyz, known_xyz)                  # Pallas (B, n, m)
    # TODO(synk): three-NN selection (top_k) + gathers stay in plain JAX.
    neg, idx3 = lax.top_k(-sqd, 3)                                 # 3 smallest sq-dists
    dist = jnp.sqrt(jnp.maximum(-neg, 0.0))                        # Euclidean (matches three_nn)
    dist_recip = 1.0 / (dist + 1e-8)
    weight = dist_recip / jnp.sum(dist_recip, axis=2, keepdims=True)   # (B, n, 3)
    idx_t = jnp.transpose(idx3, (2, 0, 1))                         # (3, B, n) (tiny)
    w_t = jnp.transpose(weight, (2, 0, 1))                         # (3, B, n)
    b3 = jnp.arange(B).reshape(1, B, 1)
    gathered = known_cbn[:, b3, idx_t]                             # (C2, 3, B, n)
    interp = jnp.sum(gathered * w_t[None], axis=1)                 # (C2, B, n)
    cat = (jnp.concatenate([interp, unknown_cbn], axis=0)
           if unknown_cbn is not None else interp)                 # (Cin, B, n)
    cin = cat.shape[0]
    if cpad > cin:
        cat = jnp.pad(cat, ((0, cpad - cin), (0, 0), (0, 0)))
    x = cat.reshape(cpad, B * n).astype(jnp.float32)
    out = fp_mlp(x, w_pack, b_pack, depth, cout)                   # (Cout, B*n)
    return out.reshape(cout, B, n)                                 # canonical


# ---------------------------------------------------------------------------
# Deterministic parameter init: Conv1x1 (no bias) + eval-mode BN folded into the
# (pre-transposed) weight and a per-channel shift; packed into one square pad.
# ---------------------------------------------------------------------------
def _init_folded_layer(key, cin, cout):
    key, kw, kg, kb, km, kv = jax.random.split(key, 6)
    w = jax.random.normal(kw, (cin, cout), jnp.float32) / np.sqrt(cin)
    gamma = 1.0 + 0.1 * jax.random.normal(kg, (cout,), jnp.float32)
    beta = 0.1 * jax.random.normal(kb, (cout,), jnp.float32)
    mean = 0.1 * jax.random.normal(km, (cout,), jnp.float32)
    var = jax.random.uniform(kv, (cout,), jnp.float32, 0.5, 1.5)
    inv_std = gamma / jnp.sqrt(var + BN_EPS)
    w_folded = w * inv_std[None, :]                 # BN scale folded into the weight
    shift = beta - mean * inv_std
    return key, np.asarray(w_folded), np.asarray(shift)


def _pack_sa_level(key, k, channel_in):
    mlps = CFG['MLPS'][k]
    n_scales = len(mlps)
    depth = len(mlps[0])
    c0, _, _, cpad = sa_static(k, channel_in)
    w_pack = np.zeros((depth, cpad, cpad), np.float32)   # transposed: (out, in)
    b_pack = np.zeros((depth, cpad, 1), np.float32)
    prev = [c0] * n_scales
    for l in range(depth):
        cur = [mlps[s][l] for s in range(n_scales)]
        ko = no = 0
        for s in range(n_scales):                        # block-diagonal over scales
            key, w, sh = _init_folded_layer(key, prev[s], cur[s])
            w_pack[l, no:no + cur[s], ko:ko + prev[s]] = w.T
            b_pack[l, no:no + cur[s], 0] = sh
            ko += prev[s]
            no += cur[s]
        prev = cur
    return key, jnp.asarray(w_pack), jnp.asarray(b_pack)


def _pack_fp_level(key, dims, cpad):
    depth = len(dims)
    w_pack = np.zeros((depth, cpad, cpad), np.float32)
    b_pack = np.zeros((depth, cpad, 1), np.float32)
    for l, (K, N) in enumerate(dims):
        key, w, sh = _init_folded_layer(key, K, N)
        w_pack[l, :N, :K] = w.T
        b_pack[l, :N, 0] = sh
    return key, jnp.asarray(w_pack), jnp.asarray(b_pack)


def build_params(key, input_channels=INPUT_CHANNELS):
    sa_params, skip, channel_in = [], [input_channels], input_channels
    for k in range(len(CFG['NPOINTS'])):
        key, w_pack, b_pack = _pack_sa_level(key, k, channel_in)
        sa_params.append((w_pack, b_pack))
        _, _, cout, _ = sa_static(k, channel_in)
        skip.append(cout)
        channel_in = cout
    fp_params = []
    for k in range(len(CFG['FP_MLPS'])):
        dims, _, cpad = fp_static(k, channel_in, skip)
        key, w_pack, b_pack = _pack_fp_level(key, dims, cpad)
        fp_params.append((w_pack, b_pack))
    return dict(sa=sa_params, fp=fp_params)


# ---------------------------------------------------------------------------
# Forward = Pointnet2MSG_returnMiddleStages.forward
# ---------------------------------------------------------------------------
def forward(params, pointcloud):
    input_channels = pointcloud.shape[-1] - 3
    xyz = pointcloud[..., 0:3]                                     # (B, N, 3)
    xyz_t0 = jnp.transpose(xyz, (2, 0, 1))                         # (3, B, N)
    features0 = (jnp.transpose(pointcloud[..., 3:], (2, 0, 1))     # canonical (C,B,N)
                 if pointcloud.shape[-1] > 3 else None)

    # static channel bookkeeping (mirrors build_params)
    skip, channel_in, sa_meta = [input_channels], input_channels, []
    for k in range(len(CFG['NPOINTS'])):
        c0, dims, cout, cpad = sa_static(k, channel_in)
        n_scales = len(CFG['MLPS'][k])
        sa_meta.append(dict(depth=len(dims), c0f=n_scales * c0, cpad=cpad, cout=cout))
        skip.append(cout)
        channel_in = cout
    fp_meta = []
    for k in range(len(CFG['FP_MLPS'])):
        dims, cout, cpad = fp_static(k, channel_in, skip)
        fp_meta.append(dict(depth=len(dims), cpad=cpad, cout=cout))

    l_xyz, l_xyz_t, l_features, idxs = [xyz], [xyz_t0], [features0], []
    for k in range(len(CFG['NPOINTS'])):
        w_pack, b_pack = params['sa'][k]
        m = sa_meta[k]
        li_xyz, li_xyz_t, li_feat, idx = sa_module(
            l_xyz[k], l_xyz_t[k], l_features[k], CFG['NPOINTS'][k],
            CFG['RADIUS'][k], CFG['NSAMPLE'][k], w_pack, b_pack,
            m['depth'], m['c0f'], m['cpad'], m['cout'])
        l_xyz.append(li_xyz)
        l_xyz_t.append(li_xyz_t)
        l_features.append(li_feat)
        idxs.append(idx)

    nfp = len(CFG['FP_MLPS'])
    for i in range(-1, -(nfp + 1), -1):
        w_pack, b_pack = params['fp'][i]
        m = fp_meta[i]
        l_features[i - 1] = fp_module(
            l_xyz[i - 1], l_xyz[i], l_features[i - 1], l_features[i],
            w_pack, b_pack, m['depth'], m['cpad'], m['cout'])

    # canonical (C, B, n) -> module convention (B, C, n), once per returned map
    l_features = [None if f is None else jnp.transpose(f, (1, 0, 2))
                  for f in l_features]
    return l_xyz, l_features, idxs


if __name__ == "__main__":
    key = jax.random.PRNGKey(0)
    kparam, kdata = jax.random.split(key)
    params = build_params(kparam, input_channels=INPUT_CHANNELS)

    B, N = 2, 256
    pointcloud = jax.random.normal(kdata, (B, N, 3 + INPUT_CHANNELS), jnp.float32)

    fwd = jax.jit(functools.partial(forward, params))
    l_xyz, l_features, idxs = fwd(pointcloud)
    jax.block_until_ready((l_xyz, l_features, idxs))

    # sanity: shapes follow the PyTorch module's conventions
    sa1_out = sum(m[-1] for m in CFG['MLPS'][1])
    assert l_xyz[0].shape == (B, N, 3)
    assert l_xyz[1].shape == (B, CFG['NPOINTS'][0], 3)
    assert l_xyz[2].shape == (B, CFG['NPOINTS'][1], 3)
    assert l_features[0].shape == (B, CFG['FP_MLPS'][0][-1], N)
    assert l_features[1].shape == (B, CFG['FP_MLPS'][1][-1], CFG['NPOINTS'][0])
    assert l_features[2].shape == (B, sa1_out, CFG['NPOINTS'][1])
    assert idxs[0].shape == (B, CFG['NPOINTS'][0])
    assert all(bool(jnp.all(jnp.isfinite(f))) for f in l_features)
    print("KERNEL_OK")
</pallas_src>

<mosaic_0001>
module attributes {stable_mosaic.version = 11 : i64} {
  func.func @_sqdist_kernel(%arg0: i32, %arg1: i32, %arg2: i32, %arg3: memref<1x16x5xf32, #tpu.memory_space<vmem>>, %arg4: memref<1x64x5xf32, #tpu.memory_space<vmem>>, %arg5: memref<1x16x64xf32, #tpu.memory_space<vmem>>) attributes {dimension_semantics = [#tpu.dimension_semantics<parallel>, #tpu.dimension_semantics<parallel>, #tpu.dimension_semantics<parallel>], iteration_bounds = array<i64: 2, 1, 1>, scalar_prefetch = 0 : i64, scratch_operands = 0 : i64, tpu.core_type = #tpu.core_type<tc>, window_params = [{transform_indices = @transform_0, window_bounds = array<i64: 1, 16, 5>}, {transform_indices = @transform_1, window_bounds = array<i64: 1, 64, 5>}, {transform_indices = @transform_2, window_bounds = array<i64: 1, 16, 64>}]} {
    %c0 = arith.constant 0 : index
    %c0_0 = arith.constant 0 : index
    %c0_1 = arith.constant 0 : index
    %0 = vector.load %arg3[%c0, %c0_0, %c0_1] : memref<1x16x5xf32, #tpu.memory_space<vmem>>, vector<1x16x5xf32>
    %1 = vector.shape_cast %0 : vector<1x16x5xf32> to vector<16x5xf32>
    %c0_2 = arith.constant 0 : index
    %c0_3 = arith.constant 0 : index
    %c0_4 = arith.constant 0 : index
    %2 = vector.load %arg4[%c0_2, %c0_3, %c0_4] : memref<1x64x5xf32, #tpu.memory_space<vmem>>, vector<1x64x5xf32>
    %3 = vector.shape_cast %2 : vector<1x64x5xf32> to vector<64x5xf32>
    %cst = arith.constant dense<0.000000e+00> : vector<16x64xf32>
    %4 = tpu.matmul %1, %3, %cst {dimension_numbers = #tpu.dot_dimension_numbers<[1], [1], [0], [0], [0, 0, 1, 0], [], []>} : vector<16x5xf32>, vector<64x5xf32>, vector<16x64xf32> -> vector<16x64xf32>
    %cst_5 = arith.constant 0.000000e+00 : f32
    %5 = vector.broadcast %cst_5 : f32 to vector<16x64xf32>
    %6 = arith.maximumf %4, %5 : vector<16x64xf32>
    %c0_6 = arith.constant 0 : index
    %c0_7 = arith.constant 0 : index
    %c0_8 = arith.constant 0 : index
    %7 = vector.load %arg5[%c0_6, %c0_7, %c0_8] : memref<1x16x64xf32, #tpu.memory_space<vmem>>, vector<1x16x64xf32>
    %8 = vector.shape_cast %7 : vector<1x16x64xf32> to vector<16x64xf32>
    %9 = vector.shape_cast %6 : vector<16x64xf32> to vector<1x16x64xf32>
    tpu.vector_store %arg5[%c0_6, %c0_7, %c0_8], %9 {strides = array<i32>} : memref<1x16x64xf32, #tpu.memory_space<vmem>>, vector<1x16x64xf32>,
    return
  }
  func.func @transform_0(%arg0: i32, %arg1: i32, %arg2: i32) -> (i32, i32, i32) {
    %c0_i32 = arith.constant 0 : i32
    %c0_i32_0 = arith.constant 0 : i32
    return %arg0, %arg1, %c0_i32 : i32, i32, i32
  }
  func.func @transform_1(%arg0: i32, %arg1: i32, %arg2: i32) -> (i32, i32, i32) {
    %c0_i32 = arith.constant 0 : i32
    %c0_i32_0 = arith.constant 0 : i32
    return %arg0, %arg2, %c0_i32 : i32, i32, i32
  }
  func.func @transform_2(%arg0: i32, %arg1: i32, %arg2: i32) -> (i32, i32, i32) {
    %c0_i32 = arith.constant 0 : i32
    return %arg0, %arg1, %arg2 : i32, i32, i32
  }
}

module attributes {stable_mosaic.version = 11 : i64} {
  func.func @_sqdist_kernel(%arg0: i32, %arg1: i32, %arg2: i32, %arg3: memref<1x64x5xf32, #tpu.memory_space<vmem>>, %arg4: memref<1x256x5xf32, #tpu.memory_space<vmem>>, %arg5: memref<1x64x256xf32, #tpu.memory_space<vmem>>) attributes {dimension_semantics = [#tpu.dimension_semantics<parallel>, #tpu.dimension_semantics<parallel>, #tpu.dimension_semantics<parallel>], iteration_bounds = array<i64: 2, 1, 1>, scalar_prefetch = 0 : i64, scratch_operands = 0 : i64, tpu.core_type = #tpu.core_type<tc>, window_params = [{transform_indices = @transform_0, window_bounds = array<i64: 1, 64, 5>}, {transform_indices = @transform_1, window_bounds = array<i64: 1, 256, 5>}, {transform_indices = @transform_2, window_bounds = array<i64: 1, 64, 256>}]} {
    %c0 = arith.constant 0 : index
    %c0_0 = arith.constant 0 : index
    %c0_1 = arith.constant 0 : index
    %0 = vector.load %arg3[%c0, %c0_0, %c0_1] : memref<1x64x5xf32, #tpu.memory_space<vmem>>, vector<1x64x5xf32>
    %1 = vector.shape_cast %0 : vector<1x64x5xf32> to vector<64x5xf32>
    %c0_2 = arith.constant 0 : index
    %c0_3 = arith.constant 0 : index
    %c0_4 = arith.constant 0 : index
    %2 = vector.load %arg4[%c0_2, %c0_3, %c0_4] : memref<1x256x5xf32, #tpu.memory_space<vmem>>, vector<1x256x5xf32>
    %3 = vector.shape_cast %2 : vector<1x256x5xf32> to vector<256x5xf32>
    %cst = arith.constant dense<0.000000e+00> : vector<64x256xf32>
    %4 = tpu.matmul %1, %3, %cst {dimension_numbers = #tpu.dot_dimension_numbers<[1], [1], [0], [0], [0, 0, 1, 0], [], []>} : vector<64x5xf32>, vector<256x5xf32>, vector<64x256xf32> -> vector<64x256xf32>
    %cst_5 = arith.constant 0.000000e+00 : f32
    %5 = vector.broadcast %cst_5 : f32 to vector<64x256xf32>
    %6 = arith.maximumf %4, %5 : vector<64x256xf32>
    %c0_6 = arith.constant 0 : index
    %c0_7 = arith.constant 0 : index
    %c0_8 = arith.constant 0 : index
    %7 = vector.load %arg5[%c0_6, %c0_7, %c0_8] : memref<1x64x256xf32, #tpu.memory_space<vmem>>, vector<1x64x256xf32>
    %8 = vector.shape_cast %7 : vector<1x64x256xf32> to vector<64x256xf32>
    %9 = vector.shape_cast %6 : vector<64x256xf32> to vector<1x64x256xf32>
    tpu.vector_store %arg5[%c0_6, %c0_7, %c0_8], %9 {strides = array<i32>} : memref<1x64x256xf32, #tpu.memory_space<vmem>>, vector<1x64x256xf32>,
    return
  }
  func.func @transform_0(%arg0: i32, %arg1: i32, %arg2: i32) -> (i32, i32, i32) {
    %c0_i32 = arith.constant 0 : i32
    %c0_i32_0 = arith.constant 0 : i32
    return %arg0, %arg1, %c0_i32 : i32, i32, i32
  }
  func.func @transform_1(%arg0: i32, %arg1: i32, %arg2: i32) -> (i32, i32, i32) {
    %c0_i32 = arith.constant 0 : i32
    %c0_i32_0 = arith.constant 0 : i32
    return %arg0, %arg2, %c0_i32 : i32, i32, i32
  }
  func.func @transform_2(%arg0: i32, %arg1: i32, %arg2: i32) -> (i32, i32, i32) {
    %c0_i32 = arith.constant 0 : i32
    return %arg0, %arg1, %arg2 : i32, i32, i32
  }
}

module attributes {stable_mosaic.version = 11 : i64} {
  func.func @kernel(%arg0: i32, %arg1: memref<16x32x128xf32, #tpu.memory_space<vmem>>, %arg2: memref<3x32x32xf32, #tpu.memory_space<vmem>>, %arg3: memref<3x32x1xf32, #tpu.memory_space<vmem>>, %arg4: memref<32x128xf32, #tpu.memory_space<vmem>>) attributes {dimension_semantics = [#tpu.dimension_semantics<parallel>], iteration_bounds = array<i64: 1>, scalar_prefetch = 0 : i64, scratch_operands = 0 : i64, tpu.core_type = #tpu.core_type<tc>, window_params = [{transform_indices = @transform_0, window_bounds = array<i64: 16, 32, 128>}, {pipeline_mode = #tpu.pipeline_mode<synchronous>, transform_indices = @transform_1, window_bounds = array<i64: 3, 32, 32>}, {pipeline_mode = #tpu.pipeline_mode<synchronous>, transform_indices = @transform_2, window_bounds = array<i64: 3, 32, 1>}, {transform_indices = @transform_3, window_bounds = array<i64: 32, 128>}]} {
    %c0 = arith.constant 0 : index
    %c0_0 = arith.constant 0 : index
    %c0_1 = arith.constant 0 : index
    %0 = vector.load %arg2[%c0, %c0_0, %c0_1] : memref<3x32x32xf32, #tpu.memory_space<vmem>>, vector<1x32x32xf32>
    %1 = vector.shape_cast %0 : vector<1x32x32xf32> to vector<32x32xf32>
    %c1 = arith.constant 1 : index
    %c0_2 = arith.constant 0 : index
    %c0_3 = arith.constant 0 : index
    %2 = vector.load %arg2[%c1, %c0_2, %c0_3] : memref<3x32x32xf32, #tpu.memory_space<vmem>>, vector<1x32x32xf32>
    %3 = vector.shape_cast %2 : vector<1x32x32xf32> to vector<32x32xf32>
    %c2 = arith.constant 2 : index
    %c0_4 = arith.constant 0 : index
    %c0_5 = arith.constant 0 : index
    %4 = vector.load %arg2[%c2, %c0_4, %c0_5] : memref<3x32x32xf32, #tpu.memory_space<vmem>>, vector<1x32x32xf32>
    %5 = vector.shape_cast %4 : vector<1x32x32xf32> to vector<32x32xf32>
    %c0_6 = arith.constant 0 : index
    %c0_7 = arith.constant 0 : index
    %c0_8 = arith.constant 0 : index
    %6 = vector.load %arg3[%c0_6, %c0_7, %c0_8] : memref<3x32x1xf32, #tpu.memory_space<vmem>>, vector<1x32x1xf32>
    %7 = vector.shape_cast %6 : vector<1x32x1xf32> to vector<32x1xf32>
    %c1_9 = arith.constant 1 : index
    %c0_10 = arith.constant 0 : index
    %c0_11 = arith.constant 0 : index
    %8 = vector.load %arg3[%c1_9, %c0_10, %c0_11] : memref<3x32x1xf32, #tpu.memory_space<vmem>>, vector<1x32x1xf32>
    %9 = vector.shape_cast %8 : vector<1x32x1xf32> to vector<32x1xf32>
    %c2_12 = arith.constant 2 : index
    %c0_13 = arith.constant 0 : index
    %c0_14 = arith.constant 0 : index
    %10 = vector.load %arg3[%c2_12, %c0_13, %c0_14] : memref<3x32x1xf32, #tpu.memory_space<vmem>>, vector<1x32x1xf32>
    %11 = vector.shape_cast %10 : vector<1x32x1xf32> to vector<32x1xf32>
    %c0_15 = arith.constant 0 : index
    %c0_16 = arith.constant 0 : index
    %c0_17 = arith.constant 0 : index
    %12 = vector.load %arg1[%c0_15, %c0_16, %c0_17] : memref<16x32x128xf32, #tpu.memory_space<vmem>>, vector<1x32x128xf32>
    %13 = vector.shape_cast %12 : vector<1x32x128xf32> to vector<32x128xf32>
    %cst = arith.constant dense<0.000000e+00> : vector<32x128xf32>
    %14 = tpu.matmul %1, %13, %cst {dimension_numbers = #tpu.dot_dimension_numbers<[1], [0], [0], [1], [0, 0, 1, 1], [], []>} : vector<32x32xf32>, vector<32x128xf32>, vector<32x128xf32> -> vector<32x128xf32>
    %15 = vector.broadcast %7 : vector<32x1xf32> to vector<32x128xf32>
    %16 = arith.addf %14, %15 : vector<32x128xf32>
    %cst_18 = arith.constant 0.000000e+00 : f32
    %17 = vector.broadcast %cst_18 : f32 to vector<32x128xf32>
    %18 = arith.maximumf %16, %17 : vector<32x128xf32>
    %cst_19 = arith.constant dense<0.000000e+00> : vector<32x128xf32>
    %19 = tpu.matmul %3, %18, %cst_19 {dimension_numbers = #tpu.dot_dimension_numbers<[1], [0], [0], [1], [0, 0, 1, 1], [], []>} : vector<32x32xf32>, vector<32x128xf32>, vector<32x128xf32> -> vector<32x128xf32>
    %20 = vector.broadcast %9 : vector<32x1xf32> to vector<32x128xf32>
    %21 = arith.addf %19, %20 : vector<32x128xf32>
    %cst_20 = arith.constant 0.000000e+00 : f32
    %22 = vector.broadcast %cst_20 : f32 to vector<32x128xf32>
    %23 = arith.maximumf %21, %22 : vector<32x128xf32>
    %cst_21 = arith.constant dense<0.000000e+00> : vector<32x128xf32>
    %24 = tpu.matmul %5, %23, %cst_21 {dimension_numbers = #tpu.dot_dimension_numbers<[1], [0], [0], [1], [0, 0, 1, 1], [], []>} : vector<32x32xf32>, vector<32x128xf32>, vector<32x128xf32> -> vector<32x128xf32>
    %25 = vector.broadcast %11 : vector<32x1xf32> to vector<32x128xf32>
    %26 = arith.addf %24, %25 : vector<32x128xf32>
    %cst_22 = arith.constant 0.000000e+00 : f32
    %27 = vector.broadcast %cst_22 : f32 to vector<32x128xf32>
    %28 = arith.maximumf %26, %27 : vector<32x128xf32>
    %c1_23 = arith.constant 1 : index
    %c0_24 = arith.constant 0 : index
    %c0_25 = arith.constant 0 : index
    %29 = vector.load %arg1[%c1_23, %c0_24, %c0_25] : memref<16x32x128xf32, #tpu.memory_space<vmem>>, vector<1x32x128xf32>
    %30 = vector.shape_cast %29 : vector<1x32x128xf32> to vector<32x128xf32>
    %cst_26 = arith.constant dense<0.000000e+00> : vector<32x128xf32>
    %31 = tpu.matmul %1, %30, %cst_26 {dimension_numbers = #tpu.dot_dimension_numbers<[1], [0], [0], [1], [0, 0, 1, 1], [], []>} : vector<32x32xf32>, vector<32x128xf32>, vector<32x128xf32> -> vector<32x128xf32>
    %32 = vector.broadcast %7 : vector<32x1xf32> to vector<32x128xf32>
    %33 = arith.addf %31, %32 : vector<32x128xf32>
    %cst_27 = arith.constant 0.000000e+00 : f32
    %34 = vector.broadcast %cst_27 : f32 to vector<32x128xf32>
    %35 = arith.maximumf %33, %34 : vector<32x128xf32>
    %cst_28 = arith.constant dense<0.000000e+00> : vector<32x128xf32>
    %36 = tpu.matmul %3, %35, %cst_28 {dimension_numbers = #tpu.dot_dimension_numbers<[1], [0], [0], [1], [0, 0, 1, 1], [], []>} : vector<32x32xf32>, vector<32x128xf32>, vector<32x128xf32> -> vector<32x128xf32>
    %37 = vector.broadcast %9 : vector<32x1xf32> to vector<32x128xf32>
    %38 = arith.addf %36, %37 : vector<32x128xf32>
    %cst_29 = arith.constant 0.000000e+00 : f32
    %39 = vector.broadcast %cst_29 : f32 to vector<32x128xf32>
    %40 = arith.maximumf %38, %39 : vector<32x128xf32>
    %cst_30 = arith.constant dense<0.000000e+00> : vector<32x128xf32>
    %41 = tpu.matmul %5, %40, %cst_30 {dimension_numbers = #tpu.dot_dimension_numbers<[1], [0], [0], [1], [0, 0, 1, 1], [], []>} : vector<32x32xf32>, vector<32x128xf32>, vector<32x128xf32> -> vector<32x128xf32>
    %42 = vector.broadcast %11 : vector<32x1xf32> to vector<32x128xf32>
    %43 = arith.addf %41, %42 : vector<32x128xf32>
    %cst_31 = arith.constant 0.000000e+00 : f32
    %44 = vector.broadcast %cst_31 : f32 to vector<32x128xf32>
    %45 = arith.maximumf %43, %44 : vector<32x128xf32>
    %46 = arith.maximumf %28, %45 : vector<32x128xf32>
    %c2_32 = arith.constant 2 : index
    %c0_33 = arith.constant 0 : index
    %c0_34 = arith.constant 0 : index
    %47 = vector.load %arg1[%c2_32, %c0_33, %c0_34] : memref<16x32x128xf32, #tpu.memory_space<vmem>>, vector<1x32x128xf32>
    %48 = vector.shape_cast %47 : vector<1x32x128xf32> to vector<32x128xf32>
    %cst_35 = arith.constant dense<0.000000e+00> : vector<32x128xf32>
    %49 = tpu.matmul %1, %48, %cst_35 {dimension_numbers = #tpu.dot_dimension_numbers<[1], [0], [0], [1], [0, 0, 1, 1], [], []>} : vector<32x32xf32>, vector<32x128xf32>, vector<32x128xf32> -> vector<32x128xf32>
    %50 = vector.broadcast %7 : vector<32x1xf32> to vector<32x128xf32>
    %51 = arith.addf %49, %50 : vector<32x128xf32>
    %cst_36 = arith.constant 0.000000e+00 : f32
    %52 = vector.broadcast %cst_36 : f32 to vector<32x128xf32>
    %53 = arith.maximumf %51, %52 : vector<32x128xf32>
    %cst_37 = arith.constant dense<0.000000e+00> : vector<32x128xf32>
    %54 = tpu.matmul %3, %53, %cst_37 {dimension_numbers = #tpu.dot_dimension_numbers<[1], [0], [0], [1], [0, 0, 1, 1], [], []>} : vector<32x32xf32>, vector<32x128xf32>, vector<32x128xf32> -> vector<32x128xf32>
    %55 = vector.broadcast %9 : vector<32x1xf32> to vector<32x128xf32>
    %56 = arith.addf %54, %55 : vector<32x128xf32>
    %cst_38 = arith.constant 0.000000e+00 : f32
    %57 = vector.broadcast %cst_38 : f32 to vector<32x128xf32>
    %58 = arith.maximumf %56, %57 : vector<32x128xf32>
    %cst_39 = arith.constant dense<0.000000e+00> : vector<32x128xf32>
    %59 = tpu.matmul %5, %58, %cst_39 {dimension_numbers = #tpu.dot_dimension_numbers<[1], [0], [0], [1], [0, 0, 1, 1], [], []>} : vector<32x32xf32>, vector<32x128xf32>, vector<32x128xf32> -> vector<32x128xf32>
    %60 = vector.broadcast %11 : vector<32x1xf32> to vector<32x128xf32>
    %61 = arith.addf %59, %60 : vector<32x128xf32>
    %cst_40 = arith.constant 0.000000e+00 : f32
    %62 = vector.broadcast %cst_40 : f32 to vector<32x128xf32>
    %63 = arith.maximumf %61, %62 : vector<32x128xf32>
    %64 = arith.maximumf %46, %63 : vector<32x128xf32>
    %c3 = arith.constant 3 : index
    %c0_41 = arith.constant 0 : index
    %c0_42 = arith.constant 0 : index
    %65 = vector.load %arg1[%c3, %c0_41, %c0_42] : memref<16x32x128xf32, #tpu.memory_space<vmem>>, vector<1x32x128xf32>
    %66 = vector.shape_cast %65 : vector<1x32x128xf32> to vector<32x128xf32>
    %cst_43 = arith.constant dense<0.000000e+00> : vector<32x128xf32>
    %67 = tpu.matmul %1, %66, %cst_43 {dimension_numbers = #tpu.dot_dimension_numbers<[1], [0], [0], [1], [0, 0, 1, 1], [], []>} : vector<32x32xf32>, vector<32x128xf32>, vector<32x128xf32> -> vector<32x128xf32>
    %68 = vector.broadcast %7 : vector<32x1xf32> to vector<32x128xf32>
    %69 = arith.addf %67, %68 : vector<32x128xf32>
    %cst_44 = arith.constant 0.000000e+00 : f32
    %70 = vector.broadcast %cst_44 : f32 to vector<32x128xf32>
    %71 = arith.maximumf %69, %70 : vector<32x128xf32>
    %cst_45 = arith.constant dense<0.000000e+00> : vector<32x128xf32>
    %72 = tpu.matmul %3, %71, %cst_45 {dimension_numbers = #tpu.dot_dimension_numbers<[1], [0], [0], [1], [0, 0, 1, 1], [], []>} : vector<32x32xf32>, vector<32x128xf32>, vector<32x128xf32> -> vector<32x128xf32>
    %73 = vector.broadcast %9 : vector<32x1xf32> to vector<32x128xf32>
    %74 = arith.addf %72, %73 : vector<32x128xf32>
    %cst_46 = arith.constant 0.000000e+00 : f32
    %75 = vector.broadcast %cst_46 : f32 to vector<32x128xf32>
    %76 = arith.maximumf %74, %75 : vector<32x128xf32>
    %cst_47 = arith.constant dense<0.000000e+00> : vector<32x128xf32>
    %77 = tpu.matmul %5, %76, %cst_47 {dimension_numbers = #tpu.dot_dimension_numbers<[1], [0], [0], [1], [0, 0, 1, 1], [], []>} : vector<32x32xf32>, vector<32x128xf32>, vector<32x128xf32> -> vector<32x128xf32>
    %78 = vector.broadcast %11 : vector<32x1xf32> to vector<32x128xf32>
    %79 = arith.addf %77, %78 : vector<32x128xf32>
    %cst_48 = arith.constant 0.000000e+00 : f32
    %80 = vector.broadcast %cst_48 : f32 to vector<32x128xf32>
    %81 = arith.maximumf %79, %80 : vector<32x128xf32>
    %82 = arith.maximumf %64, %81 : vector<32x128xf32>
    %c4 = arith.constant 4 : index
    %c0_49 = arith.constant 0 : index
    %c0_50 = arith.constant 0 : index
    %83 = vector.load %arg1[%c4, %c0_49, %c0_50] : memref<16x32x128xf32, #tpu.memory_space<vmem>>, vector<1x32x128xf32>
    %84 = vector.shape_cast %83 : vector<1x32x128xf32> to vector<32x128xf32>
    %cst_51 = arith.constant dense<0.000000e+00> : vector<32x128xf32>
    %85 = tpu.matmul %1, %84, %cst_51 {dimension_numbers = #tpu.dot_dimension_numbers<[1], [0], [0], [1], [0, 0, 1, 1], [], []>} : vector<32x32xf32>, vector<32x128xf32>, vector<32x128xf32> -> vector<32x128xf32>
    %86 = vector.broadcast %7 : vector<32x1xf32> to vector<32x128xf32>
    %87 = arith.addf %85, %86 : vector<32x128xf32>
    %cst_52 = arith.constant 0.000000e+00 : f32
    %88 = vector.broadcast %cst_52 : f32 to vector<32x128xf32>
    %89 = arith.maximumf %87, %88 : vector<32x128xf32>
    %cst_53 = arith.constant dense<0.000000e+00> : vector<32x128xf32>
    %90 = tpu.matmul %3, %89, %cst_53 {dimension_numbers = #tpu.dot_dimension_numbers<[1], [0], [0], [1], [0, 0, 1, 1], [], []>} : vector<32x32xf32>, vector<32x128xf32>, vector<32x128xf32> -> vector<32x128xf32>
    %91 = vector.broadcast %9 : vector<32x1xf32> to vector<32x128xf32>
    %92 = arith.addf %90, %91 : vector<32x128xf32>
    %cst_54 = arith.constant 0.000000e+00 : f32
    %93 = vector.broadcast %cst_54 : f32 to vector<32x128xf32>
    %94 = arith.maximumf %92, %93 : vector<32x128xf32>
    %cst_55 = arith.constant dense<0.000000e+00> : vector<32x128xf32>
    %95 = tpu.matmul %5, %94, %cst_55 {dimension_numbers = #tpu.dot_dimension_numbers<[1], [0], [0], [1], [0, 0, 1, 1], [], []>} : vector<32x32xf32>, vector<32x128xf32>, vector<32x128xf32> -> vector<32x128xf32>
    %96 = vector.broadcast %11 : vector<32x1xf32> to vector<32x128xf32>
    %97 = arith.addf %95, %96 : vector<32x128xf32>
    %cst_56 = arith.constant 0.000000e+00 : f32
    %98 = vector.broadcast %cst_56 : f32 to vector<32x128xf32>
    %99 = arith.maximumf %97, %98 : vector<32x128xf32>
    %100 = arith.maximumf %82, %99 : vector<32x128xf32>
    %c5 = arith.constant 5 : index
    %c0_57 = arith.constant 0 : index
    %c0_58 = arith.constant 0 : index
    %101 = vector.load %arg1[%c5, %c0_57, %c0_58] : memref<16x32x128xf32, #tpu.memory_space<vmem>>, vector<1x32x128xf32>
    %102 = vector.shape_cast %101 : vector<1x32x128xf32> to vector<32x128xf32>
    %cst_59 = arith.constant dense<0.000000e+00> : vector<32x128xf32>
    %103 = tpu.matmul %1, %102, %cst_59 {dimension_numbers = #tpu.dot_dimension_numbers<[1], [0], [0], [1], [0, 0, 1, 1], [], []>} : vector<32x32xf32>, vector<32x128xf32>, vector<32x128xf32> -> vector<32x128xf32>
    %104 = vector.broadcast %7 : vector<32x1xf32> to vector<32x128xf32>
    %105 = arith.addf %103, %104 : vector<32x128xf32>
    %cst_60 = arith.constant 0.000000e+00 : f32
    %106 = vector.broadcast %cst_60 : f32 to vector<32x128xf32>
    %107 = arith.maximumf %105, %106 : vector<32x128xf32>
    %cst_61 = arith.constant dense<0.000000e+00> : vector<32x128xf32>
    %108 = tpu.matmul %3, %107, %cst_61 {dimension_numbers = #tpu.dot_dimension_numbers<[1], [0], [0], [1], [0, 0, 1, 1], [], []>} : vector<32x32xf32>, vector<32x128xf32>, vector<32x128xf32> -> vector<32x128xf32>
    %109 = vector.broadcast %9 : vector<32x1xf32> to vector<32x128xf32>
    %110 = arith.addf %108, %109 : vector<32x128xf32>
    %cst_62 = arith.constant 0.000000e+00 : f32
    %111 = vector.broadcast %cst_62 : f32 to vector<32x128xf32>
    %112 = arith.maximumf %110, %111 : vector<32x128xf32>
    %cst_63 = arith.constant dense<0.000000e+00> : vector<32x128xf32>
    %113 = tpu.matmul %5, %112, %cst_63 {dimension_numbers = #tpu.dot_dimension_numbers<[1], [0], [0], [1], [0, 0, 1, 1], [], []>} : vector<32x32xf32>, vector<32x128xf32>, vector<32x128xf32> -> vector<32x128xf32>
    %114 = vector.broadcast %11 : vector<32x1xf32> to vector<32x128xf32>
    %115 = arith.addf %113, %114 : vector<32x128xf32>
    %cst_64 = arith.constant 0.000000e+00 : f32
    %116 = vector.broadcast %cst_64 : f32 to vector<32x128xf32>
    %117 = arith.maximumf %115, %116 : vector<32x128xf32>
    %118 = arith.maximumf %100, %117 : vector<32x128xf32>
    %c6 = arith.constant 6 : index
    %c0_65 = arith.constant 0 : index
    %c0_66 = arith.constant 0 : index
    %119 = vector.load %arg1[%c6, %c0_65, %c0_66] : memref<16x32x128xf32, #tpu.memory_space<vmem>>, vector<1x32x128xf32>
    %120 = vector.shape_cast %119 : vector<1x32x128xf32> to vector<32x128xf32>
    %cst_67 = arith.constant dense<0.000000e+00> : vector<32x128xf32>
    %121 = tpu.matmul %1, %120, %cst_67 {dimension_numbers = #tpu.dot_dimension_numbers<[1], [0], [0], [1], [0, 0, 1, 1], [], []>} : vector<32x32xf32>, vector<32x128xf32>, vector<32x128xf32> -> vector<32x128xf32>
    %122 = vector.broadcast %7 : vector<32x1xf32> to vector<32x128xf32>
    %123 = arith.addf %121, %122 : vector<32x128xf32>
    %cst_68 = arith.constant 0.000000e+00 : f32
    %124 = vector.broadcast %cst_68 : f32 to vector<32x128xf32>
    %125 = arith.maximumf %123, %124 : vector<32x128xf32>
    %cst_69 = arith.constant dense<0.000000e+00> : vector<32x128xf32>
    %126 = tpu.matmul %3, %125, %cst_69 {dimension_numbers = #tpu.dot_dimension_numbers<[1], [0], [0], [1], [0, 0, 1, 1], [], []>} : vector<32x32xf32>, vector<32x128xf32>, vector<32x128xf32> -> vector<32x128xf32>
    %127 = vector.broadcast %9 : vector<32x1xf32> to vector<32x128xf32>
    %128 = arith.addf %126, %127 : vector<32x128xf32>
    %cst_70 = arith.constant 0.000000e+00 : f32
    %129 = vector.broadcast %cst_70 : f32 to vector<32x128xf32>
    %130 = arith.maximumf %128, %129 : vector<32x128xf32>
    %cst_71 = arith.constant dense<0.000000e+00> : vector<32x128xf32>
    %131 = tpu.matmul %5, %130, %cst_71 {dimension_numbers = #tpu.dot_dimension_numbers<[1], [0], [0], [1], [0, 0, 1, 1], [], []>} : vector<32x32xf32>, vector<32x128xf32>, vector<32x128xf32> -> vector<32x128xf32>
    %132 = vector.broadcast %11 : vector<32x1xf32> to vector<32x128xf32>
    %133 = arith.addf %131, %132 : vector<32x128xf32>
    %cst_72 = arith.constant 0.000000e+00 : f32
    %134 = vector.broadcast %cst_72 : f32 to vector<32x128xf32>
    %135 = arith.maximumf %133, %134 : vector<32x128xf32>
    %136 = arith.maximumf %118, %135 : vector<32x128xf32>
    %c7 = arith.constant 7 : index
    %c0_73 = arith.constant 0 : index
    %c0_74 = arith.constant 0 : index
    %137 = vector.load %arg1[%c7, %c0_73, %c0_74] : memref<16x32x128xf32, #tpu.memory_space<vmem>>, vector<1x32x128xf32>
    %138 = vector.shape_cast %137 : vector<1x32x128xf32> to vector<32x128xf32>
    %cst_75 = arith.constant dense<0.000000e+00> : vector<32x128xf32>
    %139 = tpu.matmul %1, %138, %cst_75 {dimension_numbers = #tpu.dot_dimension_numbers<[1], [0], [0], [1], [0, 0, 1, 1], [], []>} : vector<32x32xf32>, vector<32x128xf32>, vector<32x128xf32> -> vector<32x128xf32>
    %140 = vector.broadcast %7 : vector<32x1xf32> to vector<32x128xf32>
    %141 = arith.addf %139, %140 : vector<32x128xf32>
    %cst_76 = arith.constant 0.000000e+00 : f32
    %142 = vector.broadcast %cst_76 : f32 to vector<32x128xf32>
    %143 = arith.maximumf %141, %142 : vector<32x128xf32>
    %cst_77 = arith.constant dense<0.000000e+00> : vector<32x128xf32>
    %144 = tpu.matmul %3, %143, %cst_77 {dimension_numbers = #tpu.dot_dimension_numbers<[1], [0], [0], [1], [0, 0, 1, 1], [], []>} : vector<32x32xf32>, vector<32x128xf32>, vector<32x128xf32> -> vector<32x128xf32>
    %145 = vector.broadcast %9 : vector<32x1xf32> to vector<32x128xf32>
    %146 = arith.addf %144, %145 : vector<32x128xf32>
    %cst_78 = arith.constant 0.000000e+00 : f32
    %147 = vector.broadcast %cst_78 : f32 to vector<32x128xf32>
    %148 = arith.maximumf %146, %147 : vector<32x128xf32>
    %cst_79 = arith.constant dense<0.000000e+00> : vector<32x128xf32>
    %149 = tpu.matmul %5, %148, %cst_79 {dimension_numbers = #tpu.dot_dimension_numbers<[1], [0], [0], [1], [0, 0, 1, 1], [], []>} : vector<32x32xf32>, vector<32x128xf32>, vector<32x128xf32> -> vector<32x128xf32>
    %150 = vector.broadcast %11 : vector<32x1xf32> to vector<32x128xf32>
    %151 = arith.addf %149, %150 : vector<32x128xf32>
    %cst_80 = arith.constant 0.000000e+00 : f32
    %152 = vector.broadcast %cst_80 : f32 to vector<32x128xf32>
    %153 = arith.maximumf %151, %152 : vector<32x128xf32>
    %154 = arith.maximumf %136, %153 : vector<32x128xf32>
    %c8 = arith.constant 8 : index
    %c0_81 = arith.constant 0 : index
    %c0_82 = arith.constant 0 : index
    %155 = vector.load %arg1[%c8, %c0_81, %c0_82] : memref<16x32x128xf32, #tpu.memory_space<vmem>>, vector<1x32x128xf32>
    %156 = vector.shape_cast %155 : vector<1x32x128xf32> to vector<32x128xf32>
    %cst_83 = arith.constant dense<0.000000e+00> : vector<32x128xf32>
    %157 = tpu.matmul %1, %156, %cst_83 {dimension_numbers = #tpu.dot_dimension_numbers<[1], [0], [0], [1], [0, 0, 1, 1], [], []>} : vector<32x32xf32>, vector<32x128xf32>, vector<32x128xf32> -> vector<32x128xf32>
    %158 = vector.broadcast %7 : vector<32x1xf32> to vector<32x128xf32>
    %159 = arith.addf %157, %158 : vector<32x128xf32>
    %cst_84 = arith.constant 0.000000e+00 : f32
    %160 = vector.broadcast %cst_84 : f32 to vector<32x128xf32>
    %161 = arith.maximumf %159, %160 : vector<32x128xf32>
    %cst_85 = arith.constant dense<0.000000e+00> : vector<32x128xf32>
    %162 = tpu.matmul %3, %161, %cst_85 {dimension_numbers = #tpu.dot_dimension_numbers<[1], [0], [0], [1], [0, 0, 1, 1], [], []>} : vector<32x32xf32>, vector<32x128xf32>, vector<32x128xf32> -> vector<32x128xf32>
    %163 = vector.broadcast %9 : vector<32x1xf32> to vector<32x128xf32>
    %164 = arith.addf %162, %163 : vector<32x128xf32>
    %cst_86 = arith.constant 0.000000e+00 : f32
    %165 = vector.broadcast %cst_86 : f32 to vector<32x128xf32>
    %166 = arith.maximumf %164, %165 : vector<32x128xf32>
    %cst_87 = arith.constant dense<0.000000e+00> : vector<32x128xf32>
    %167 = tpu.matmul %5, %166, %cst_87 {dimension_numbers = #tpu.dot_dimension_numbers<[1], [0], [0], [1], [0, 0, 1, 1], [], []>} : vector<32x32xf32>, vector<32x128xf32>, vector<32x128xf32> -> vector<32x128xf32>
    %168 = vector.broadcast %11 : vector<32x1xf32> to vector<32x128xf32>
    %169 = arith.addf %167, %168 : vector<32x128xf32>
    %cst_88 = arith.constant 0.000000e+00 : f32
    %170 = vector.broadcast %cst_88 : f32 to vector<32x128xf32>
    %171 = arith.maximumf %169, %170 : vector<32x128xf32>
    %172 = arith.maximumf %154, %171 : vector<32x128xf32>
    %c9 = arith.constant 9 : index
    %c0_89 = arith.constant 0 : index
    %c0_90 = arith.constant 0 : index
    %173 = vector.load %arg1[%c9, %c0_89, %c0_90] : memref<16x32x128xf32, #tpu.memory_space<vmem>>, vector<1x32x128xf32>
    %174 = vector.shape_cast %173 : vector<1x32x128xf32> to vector<32x128xf32>
    %cst_91 = arith.constant dense<0.000000e+00> : vector<32x128xf32>
    %175 = tpu.matmul %1, %174, %cst_91 {dimension_numbers = #tpu.dot_dimension_numbers<[1], [0], [0], [1], [0, 0, 1, 1], [], []>} : vector<32x32xf32>, vector<32x128xf32>, vector<32x128xf32> -> vector<32x128xf32>
    %176 = vector.broadcast %7 : vector<32x1xf32> to vector<32x128xf32>
    %177 = arith.addf %175, %176 : vector<32x128xf32>
    %cst_92 = arith.constant 0.000000e+00 : f32
    %178 = vector.broadcast %cst_92 : f32 to vector<32x128xf32>
    %179 = arith.maximumf %177, %178 : vector<32x128xf32>
    %cst_93 = arith.constant dense<0.000000e+00> : vector<32x128xf32>
    %180 = tpu.matmul %3, %179, %cst_93 {dimension_numbers = #tpu.dot_dimension_numbers<[1], [0], [0], [1], [0, 0, 1, 1], [], []>} : vector<32x32xf32>, vector<32x128xf32>, vector<32x128xf32> -> vector<32x128xf32>
    %181 = vector.broadcast %9 : vector<32x1xf32> to vector<32x128xf32>
    %182 = arith.addf %180, %181 : vector<32x128xf32>
    %cst_94 = arith.constant 0.000000e+00 : f32
    %183 = vector.broadcast %cst_94 : f32 to vector<32x128xf32>
    %184 = arith.maximumf %182, %183 : vector<32x128xf32>
    %cst_95 = arith.constant dense<0.000000e+00> : vector<32x128xf32>
    %185 = tpu.matmul %5, %184, %cst_95 {dimension_numbers = #tpu.dot_dimension_numbers<[1], [0], [0], [1], [0, 0, 1, 1], [], []>} : vector<32x32xf32>, vector<32x128xf32>, vector<32x128xf32> -> vector<32x128xf32>
    %186 = vector.broadcast %11 : vector<32x1xf32> to vector<32x128xf32>
    %187 = arith.addf %185, %186 : vector<32x128xf32>
    %cst_96 = arith.constant 0.000000e+00 : f32
    %188 = vector.broadcast %cst_96 : f32 to vector<32x128xf32>
    %189 = arith.maximumf %187, %188 : vector<32x128xf32>
    %190 = arith.maximumf %172, %189 : vector<32x128xf32>
    %c10 = arith.constant 10 : index
    %c0_97 = arith.constant 0 : index
    %c0_98 = arith.constant 0 : index
    %191 = vector.load %arg1[%c10, %c0_97, %c0_98] : memref<16x32x128xf32, #tpu.memory_space<vmem>>, vector<1x32x128xf32>
    %192 = vector.shape_cast %191 : vector<1x32x128xf32> to vector<32x128xf32>
    %cst_99 = arith.constant dense<0.000000e+00> : vector<32x128xf32>
    %193 = tpu.matmul %1, %192, %cst_99 {dimension_numbers = #tpu.dot_dimension_numbers<[1], [0], [0], [1], [0, 0, 1, 1], [], []>} : vector<32x32xf32>, vector<32x128xf32>, vector<32x128xf32> -> vector<32x128xf32>
    %194 = vector.broadcast %7 : vector<32x1xf32> to vector<32x128xf32>
    %195 = arith.addf %193, %194 : vector<32x128xf32>
    %cst_100 = arith.constant 0.000000e+00 : f32
    %196 = vector.broadcast %cst_100 : f32 to vector<32x128xf32>
    %197 = arith.maximumf %195, %196 : vector<32x128xf32>
    %cst_101 = arith.constant dense<0.000000e+00> : vector<32x128xf32>
    %198 = tpu.matmul %3, %197, %cst_101 {dimension_numbers = #tpu.dot_dimension_numbers<[1], [0], [0], [1], [0, 0, 1, 1], [], []>} : vector<32x32xf32>, vector<32x128xf32>, vector<32x128xf32> -> vector<32x128xf32>
    %199 = vector.broadcast %9 : vector<32x1xf32> to vector<32x128xf32>
    %200 = arith.addf %198, %199 : vector<32x128xf32>
    %cst_102 = arith.constant 0.000000e+00 : f32
    %201 = vector.broadcast %cst_102 : f32 to vector<32x128xf32>
    %202 = arith.maximumf %200, %201 : vector<32x128xf32>
    %cst_103 = arith.constant dense<0.000000e+00> : vector<32x128xf32>
    %203 = tpu.matmul %5, %202, %cst_103 {dimension_numbers = #tpu.dot_dimension_numbers<[1], [0], [0], [1], [0, 0, 1, 1], [], []>} : vector<32x32xf32>, vector<32x128xf32>, vector<32x128xf32> -> vector<32x128xf32>
    %204 = vector.broadcast %11 : vector<32x1xf32> to vector<32x128xf32>
    %205 = arith.addf %203, %204 : vector<32x128xf32>
    %cst_104 = arith.constant 0.000000e+00 : f32
    %206 = vector.broadcast %cst_104 : f32 to vector<32x128xf32>
    %207 = arith.maximumf %205, %206 : vector<32x128xf32>
    %208 = arith.maximumf %190, %207 : vector<32x128xf32>
    %c11 = arith.constant 11 : index
    %c0_105 = arith.constant 0 : index
    %c0_106 = arith.constant 0 : index
    %209 = vector.load %arg1[%c11, %c0_105, %c0_106] : memref<16x32x128xf32, #tpu.memory_space<vmem>>, vector<1x32x128xf32>
    %210 = vector.shape_cast %209 : vector<1x32x128xf32> to vector<32x128xf32>
    %cst_107 = arith.constant dense<0.000000e+00> : vector<32x128xf32>
    %211 = tpu.matmul %1, %210, %cst_107 {dimension_numbers = #tpu.dot_dimension_numbers<[1], [0], [0], [1], [0, 0, 1, 1], [], []>} : vector<32x32xf32>, vector<32x128xf32>, vector<32x128xf32> -> vector<32x128xf32>
    %212 = vector.broadcast %7 : vector<32x1xf32> to vector<32x128xf32>
    %213 = arith.addf %211, %212 : vector<32x128xf32>
    %cst_108 = arith.constant 0.000000e+00 : f32
    %214 = vector.broadcast %cst_108 : f32 to vector<32x128xf32>
    %215 = arith.maximumf %213, %214 : vector<32x128xf32>
    %cst_109 = arith.constant dense<0.000000e+00> : vector<32x128xf32>
    %216 = tpu.matmul %3, %215, %cst_109 {dimension_numbers = #tpu.dot_dimension_numbers<[1], [0], [0], [1], [0, 0, 1, 1], [], []>} : vector<32x32xf32>, vector<32x128xf32>, vector<32x128xf32> -> vector<32x128xf32>
    %217 = vector.broadcast %9 : vector<32x1xf32> to vector<32x128xf32>
    %218 = arith.addf %216, %217 : vector<32x128xf32>
    %cst_110 = arith.constant 0.000000e+00 : f32
    %219 = vector.broadcast %cst_110 : f32 to vector<32x128xf32>
    %220 = arith.maximumf %218, %219 : vector<32x128xf32>
    %cst_111 = arith.constant dense<0.000000e+00> : vector<32x128xf32>
    %221 = tpu.matmul %5, %220, %cst_111 {dimension_numbers = #tpu.dot_dimension_numbers<[1], [0], [0], [1], [0, 0, 1, 1], [], []>} : vector<32x32xf32>, vector<32x128xf32>, vector<32x128xf32> -> vector<32x128xf32>
    %222 = vector.broadcast %11 : vector<32x1xf32> to vector<32x128xf32>
    %223 = arith.addf %221, %222 : vector<32x128xf32>
    %cst_112 = arith.constant 0.000000e+00 : f32
    %224 = vector.broadcast %cst_112 : f32 to vector<32x128xf32>
    %225 = arith.maximumf %223, %224 : vector<32x128xf32>
    %226 = arith.maximumf %208, %225 : vector<32x128xf32>
    %c12 = arith.constant 12 : index
    %c0_113 = arith.constant 0 : index
    %c0_114 = arith.constant 0 : index
    %227 = vector.load %arg1[%c12, %c0_113, %c0_114] : memref<16x32x128xf32, #tpu.memory_space<vmem>>, vector<1x32x128xf32>
    %228 = vector.shape_cast %227 : vector<1x32x128xf32> to vector<32x128xf32>
    %cst_115 = arith.constant dense<0.000000e+00> : vector<32x128xf32>
    %229 = tpu.matmul %1, %228, %cst_115 {dimension_numbers = #tpu.dot_dimension_numbers<[1], [0], [0], [1], [0, 0, 1, 1], [], []>} : vector<32x32xf32>, vector<32x128xf32>, vector<32x128xf32> -> vector<32x128xf32>
    %230 = vector.broadcast %7 : vector<32x1xf32> to vector<32x128xf32>
    %231 = arith.addf %229, %230 : vector<32x128xf32>
    %cst_116 = arith.constant 0.000000e+00 : f32
    %232 = vector.broadcast %cst_116 : f32 to vector<32x128xf32>
    %233 = arith.maximumf %231, %232 : vector<32x128xf32>
    %cst_117 = arith.constant dense<0.000000e+00> : vector<32x128xf32>
    %234 = tpu.matmul %3, %233, %cst_117 {dimension_numbers = #tpu.dot_dimension_numbers<[1], [0], [0], [1], [0, 0, 1, 1], [], []>} : vector<32x32xf32>, vector<32x128xf32>, vector<32x128xf32> -> vector<32x128xf32>
    %235 = vector.broadcast %9 : vector<32x1xf32> to vector<32x128xf32>
    %236 = arith.addf %234, %235 : vector<32x128xf32>
    %cst_118 = arith.constant 0.000000e+00 : f32
    %237 = vector.broadcast %cst_118 : f32 to vector<32x128xf32>
    %238 = arith.maximumf %236, %237 : vector<32x128xf32>
    %cst_119 = arith.constant dense<0.000000e+00> : vector<32x128xf32>
    %239 = tpu.matmul %5, %238, %cst_119 {dimension_numbers = #tpu.dot_dimension_numbers<[1], [0], [0], [1], [0, 0, 1, 1], [], []>} : vector<32x32xf32>, vector<32x128xf32>, vector<32x128xf32> -> vector<32x128xf32>
    %240 = vector.broadcast %11 : vector<32x1xf32> to vector<32x128xf32>
    %241 = arith.addf %239, %240 : vector<32x128xf32>
    %cst_120 = arith.constant 0.000000e+00 : f32
    %242 = vector.broadcast %cst_120 : f32 to vector<32x128xf32>
    %243 = arith.maximumf %241, %242 : vector<32x128xf32>
    %244 = arith.maximumf %226, %243 : vector<32x128xf32>
    %c13 = arith.constant 13 : index
    %c0_121 = arith.constant 0 : index
    %c0_122 = arith.constant 0 : index
    %245 = vector.load %arg1[%c13, %c0_121, %c0_122] : memref<16x32x128xf32, #tpu.memory_space<vmem>>, vector<1x32x128xf32>
    %246 = vector.shape_cast %245 : vector<1x32x128xf32> to vector<32x128xf32>
    %cst_123 = arith.constant dense<0.000000e+00> : vector<32x128xf32>
    %247 = tpu.matmul %1, %246, %cst_123 {dimension_numbers = #tpu.dot_dimension_numbers<[1], [0], [0], [1], [0, 0, 1, 1], [], []>} : vector<32x32xf32>, vector<32x128xf32>, vector<32x128xf32> -> vector<32x128xf32>
    %248 = vector.broadcast %7 : vector<32x1xf32> to vector<32x128xf32>
    %249 = arith.addf %247, %248 : vector<32x128xf32>
    %cst_124 = arith.constant 0.000000e+00 : f32
    %250 = vector.broadcast %cst_124 : f32 to vector<32x128xf32>
    %251 = arith.maximumf %249, %250 : vector<32x128xf32>
    %cst_125 = arith.constant dense<0.000000e+00> : vector<32x128xf32>
    %252 = tpu.matmul %3, %251, %cst_125 {dimension_numbers = #tpu.dot_dimension_numbers<[1], [0], [0], [1], [0, 0, 1, 1], [], []>} : vector<32x32xf32>, vector<32x128xf32>, vector<32x128xf32> -> vector<32x128xf32>
    %253 = vector.broadcast %9 : vector<32x1xf32> to vector<32x128xf32>
    %254 = arith.addf %252, %253 : vector<32x128xf32>
    %cst_126 = arith.constant 0.000000e+00 : f32
    %255 = vector.broadcast %cst_126 : f32 to vector<32x128xf32>
    %256 = arith.maximumf %254, %255 : vector<32x128xf32>
    %cst_127 = arith.constant dense<0.000000e+00> : vector<32x128xf32>
    %257 = tpu.matmul %5, %256, %cst_127 {dimension_numbers = #tpu.dot_dimension_numbers<[1], [0], [0], [1], [0, 0, 1, 1], [], []>} : vector<32x32xf32>, vector<32x128xf32>, vector<32x128xf32> -> vector<32x128xf32>
    %258 = vector.broadcast %11 : vector<32x1xf32> to vector<32x128xf32>
    %259 = arith.addf %257, %258 : vector<32x128xf32>
    %cst_128 = arith.constant 0.000000e+00 : f32
    %260 = vector.broadcast %cst_128 : f32 to vector<32x128xf32>
    %261 = arith.maximumf %259, %260 : vector<32x128xf32>
    %262 = arith.maximumf %244, %261 : vector<32x128xf32>
    %c14 = arith.constant 14 : index
    %c0_129 = arith.constant 0 : index
    %c0_130 = arith.constant 0 : index
    %263 = vector.load %arg1[%c14, %c0_129, %c0_130] : memref<16x32x128xf32, #tpu.memory_space<vmem>>, vector<1x32x128xf32>
    %264 = vector.shape_cast %263 : vector<1x32x128xf32> to vector<32x128xf32>
    %cst_131 = arith.constant dense<0.000000e+00> : vector<32x128xf32>
    %265 = tpu.matmul %1, %264, %cst_131 {dimension_numbers = #tpu.dot_dimension_numbers<[1], [0], [0], [1], [0, 0, 1, 1], [], []>} : vector<32x32xf32>, vector<32x128xf32>, vector<32x128xf32> -> vector<32x128xf32>
    %266 = vector.broadcast %7 : vector<32x1xf32> to vector<32x128xf32>
    %267 = arith.addf %265, %266 : vector<32x128xf32>
    %cst_132 = arith.constant 0.000000e+00 : f32
    %268 = vector.broadcast %cst_132 : f32 to vector<32x128xf32>
    %269 = arith.maximumf %267, %268 : vector<32x128xf32>
    %cst_133 = arith.constant dense<0.000000e+00> : vector<32x128xf32>
    %270 = tpu.matmul %3, %269, %cst_133 {dimension_numbers = #tpu.dot_dimension_numbers<[1], [0], [0], [1], [0, 0, 1, 1], [], []>} : vector<32x32xf32>, vector<32x128xf32>, vector<32x128xf32> -> vector<32x128xf32>
    %271 = vector.broadcast %9 : vector<32x1xf32> to vector<32x128xf32>
    %272 = arith.addf %270, %271 : vector<32x128xf32>
    %cst_134 = arith.constant 0.000000e+00 : f32
    %273 = vector.broadcast %cst_134 : f32 to vector<32x128xf32>
    %274 = arith.maximumf %272, %273 : vector<32x128xf32>
    %cst_135 = arith.constant dense<0.000000e+00> : vector<32x128xf32>
    %275 = tpu.matmul %5, %274, %cst_135 {dimension_numbers = #tpu.dot_dimension_numbers<[1], [0], [0], [1], [0, 0, 1, 1], [], []>} : vector<32x32xf32>, vector<32x128xf32>, vector<32x128xf32> -> vector<32x128xf32>
    %276 = vector.broadcast %11 : vector<32x1xf32> to vector<32x128xf32>
    %277 = arith.addf %275, %276 : vector<32x128xf32>
    %cst_136 = arith.constant 0.000000e+00 : f32
    %278 = vector.broadcast %cst_136 : f32 to vector<32x128xf32>
    %279 = arith.maximumf %277, %278 : vector<32x128xf32>
    %280 = arith.maximumf %262, %279 : vector<32x128xf32>
    %c15 = arith.constant 15 : index
    %c0_137 = arith.constant 0 : index
    %c0_138 = arith.constant 0 : index
    %281 = vector.load %arg1[%c15, %c0_137, %c0_138] : memref<16x32x128xf32, #tpu.memory_space<vmem>>, vector<1x32x128xf32>
    %282 = vector.shape_cast %281 : vector<1x32x128xf32> to vector<32x128xf32>
    %cst_139 = arith.constant dense<0.000000e+00> : vector<32x128xf32>
    %283 = tpu.matmul %1, %282, %cst_139 {dimension_numbers = #tpu.dot_dimension_numbers<[1], [0], [0], [1], [0, 0, 1, 1], [], []>} : vector<32x32xf32>, vector<32x128xf32>, vector<32x128xf32> -> vector<32x128xf32>
    %284 = vector.broadcast %7 : vector<32x1xf32> to vector<32x128xf32>
    %285 = arith.addf %283, %284 : vector<32x128xf32>
    %cst_140 = arith.constant 0.000000e+00 : f32
    %286 = vector.broadcast %cst_140 : f32 to vector<32x128xf32>
    %287 = arith.maximumf %285, %286 : vector<32x128xf32>
    %cst_141 = arith.constant dense<0.000000e+00> : vector<32x128xf32>
    %288 = tpu.matmul %3, %287, %cst_141 {dimension_numbers = #tpu.dot_dimension_numbers<[1], [0], [0], [1], [0, 0, 1, 1], [], []>} : vector<32x32xf32>, vector<32x128xf32>, vector<32x128xf32> -> vector<32x128xf32>
    %289 = vector.broadcast %9 : vector<32x1xf32> to vector<32x128xf32>
    %290 = arith.addf %288, %289 : vector<32x128xf32>
    %cst_142 = arith.constant 0.000000e+00 : f32
    %291 = vector.broadcast %cst_142 : f32 to vector<32x128xf32>
    %292 = arith.maximumf %290, %291 : vector<32x128xf32>
    %cst_143 = arith.constant dense<0.000000e+00> : vector<32x128xf32>
    %293 = tpu.matmul %5, %292, %cst_143 {dimension_numbers = #tpu.dot_dimension_numbers<[1], [0], [0], [1], [0, 0, 1, 1], [], []>} : vector<32x32xf32>, vector<32x128xf32>, vector<32x128xf32> -> vector<32x128xf32>
    %294 = vector.broadcast %11 : vector<32x1xf32> to vector<32x128xf32>
    %295 = arith.addf %293, %294 : vector<32x128xf32>
    %cst_144 = arith.constant 0.000000e+00 : f32
    %296 = vector.broadcast %cst_144 : f32 to vector<32x128xf32>
    %297 = arith.maximumf %295, %296 : vector<32x128xf32>
    %298 = arith.maximumf %280, %297 : vector<32x128xf32>
    %c0_145 = arith.constant 0 : index
    %c0_146 = arith.constant 0 : index
    %299 = vector.load %arg4[%c0_145, %c0_146] : memref<32x128xf32, #tpu.memory_space<vmem>>, vector<32x128xf32>
    tpu.vector_store %arg4[%c0_145, %c0_146], %298 {strides = array<i32>} : memref<32x128xf32, #tpu.memory_space<vmem>>, vector<32x128xf32>,
    return
  }
  func.func @transform_0(%arg0: i32) -> (i32, i32, i32) {
    %c0_i32 = arith.constant 0 : i32
    %c0_i32_0 = arith.constant 0 : i32
    %c0_i32_1 = arith.constant 0 : i32
    return %c0_i32, %c0_i32_0, %arg0 : i32, i32, i32
  }
  func.func @transform_1(%arg0: i32) -> (i32, i32, i32) {
    %c0_i32 = arith.constant 0 : i32
    %c0_i32_0 = arith.constant 0 : i32
    %c0_i32_1 = arith.constant 0 : i32
    %c0_i32_2 = arith.constant 0 : i32
    return %c0_i32, %c0_i32_0, %c0_i32_1 : i32, i32, i32
  }
  func.func @transform_2(%arg0: i32) -> (i32, i32, i32) {
    %c0_i32 = arith.constant 0 : i32
    %c0_i32_0 = arith.constant 0 : i32
    %c0_i32_1 = arith.constant 0 : i32
    %c0_i32_2 = arith.constant 0 : i32
    return %c0_i32, %c0_i32_0, %c0_i32_1 : i32, i32, i32
  }
  func.func @transform_3(%arg0: i32) -> (i32, i32) {
    %c0_i32 = arith.constant 0 : i32
    %c0_i32_0 = arith.constant 0 : i32
    return %c0_i32, %arg0 : i32, i32
  }
}

module attributes {stable_mosaic.version = 11 : i64} {
  func.func @_sqdist_kernel(%arg0: i32, %arg1: i32, %arg2: i32, %arg3: memref<1x64x5xf32, #tpu.memory_space<vmem>>, %arg4: memref<1x16x5xf32, #tpu.memory_space<vmem>>, %arg5: memref<1x64x16xf32, #tpu.memory_space<vmem>>) attributes {dimension_semantics = [#tpu.dimension_semantics<parallel>, #tpu.dimension_semantics<parallel>, #tpu.dimension_semantics<parallel>], iteration_bounds = array<i64: 2, 1, 1>, scalar_prefetch = 0 : i64, scratch_operands = 0 : i64, tpu.core_type = #tpu.core_type<tc>, window_params = [{transform_indices = @transform_0, window_bounds = array<i64: 1, 64, 5>}, {transform_indices = @transform_1, window_bounds = array<i64: 1, 16, 5>}, {transform_indices = @transform_2, window_bounds = array<i64: 1, 64, 16>}]} {
    %c0 = arith.constant 0 : index
    %c0_0 = arith.constant 0 : index
    %c0_1 = arith.constant 0 : index
    %0 = vector.load %arg3[%c0, %c0_0, %c0_1] : memref<1x64x5xf32, #tpu.memory_space<vmem>>, vector<1x64x5xf32>
    %1 = vector.shape_cast %0 : vector<1x64x5xf32> to vector<64x5xf32>
    %c0_2 = arith.constant 0 : index
    %c0_3 = arith.constant 0 : index
    %c0_4 = arith.constant 0 : index
    %2 = vector.load %arg4[%c0_2, %c0_3, %c0_4] : memref<1x16x5xf32, #tpu.memory_space<vmem>>, vector<1x16x5xf32>
    %3 = vector.shape_cast %2 : vector<1x16x5xf32> to vector<16x5xf32>
    %cst = arith.constant dense<0.000000e+00> : vector<64x16xf32>
    %4 = tpu.matmul %1, %3, %cst {dimension_numbers = #tpu.dot_dimension_numbers<[1], [1], [0], [0], [0, 0, 1, 0], [], []>} : vector<64x5xf32>, vector<16x5xf32>, vector<64x16xf32> -> vector<64x16xf32>
    %cst_5 = arith.constant 0.000000e+00 : f32
    %5 = vector.broadcast %cst_5 : f32 to vector<64x16xf32>
    %6 = arith.maximumf %4, %5 : vector<64x16xf32>
    %c0_6 = arith.constant 0 : index
    %c0_7 = arith.constant 0 : index
    %c0_8 = arith.constant 0 : index
    %7 = vector.load %arg5[%c0_6, %c0_7, %c0_8] : memref<1x64x16xf32, #tpu.memory_space<vmem>>, vector<1x64x16xf32>
    %8 = vector.shape_cast %7 : vector<1x64x16xf32> to vector<64x16xf32>
    %9 = vector.shape_cast %6 : vector<64x16xf32> to vector<1x64x16xf32>
    tpu.vector_store %arg5[%c0_6, %c0_7, %c0_8], %9 {strides = array<i32>} : memref<1x64x16xf32, #tpu.memory_space<vmem>>, vector<1x64x16xf32>,
    return
  }
  func.func @transform_0(%arg0: i32, %arg1: i32, %arg2: i32) -> (i32, i32, i32) {
    %c0_i32 = arith.constant 0 : i32
    %c0_i32_0 = arith.constant 0 : i32
    return %arg0, %arg1, %c0_i32 : i32, i32, i32
  }
  func.func @transform_1(%arg0: i32, %arg1: i32, %arg2: i32) -> (i32, i32, i32) {
    %c0_i32 = arith.constant 0 : i32
    %c0_i32_0 = arith.constant 0 : i32
    return %arg0, %arg2, %c0_i32 : i32, i32, i32
  }
  func.func @transform_2(%arg0: i32, %arg1: i32, %arg2: i32) -> (i32, i32, i32) {
    %c0_i32 = arith.constant 0 : i32
    return %arg0, %arg1, %arg2 : i32, i32, i32
  }
}

module attributes {stable_mosaic.version = 11 : i64} {
  func.func @kernel(%arg0: i32, %arg1: memref<16x72x32xf32, #tpu.memory_space<vmem>>, %arg2: memref<3x72x72xf32, #tpu.memory_space<vmem>>, %arg3: memref<3x72x1xf32, #tpu.memory_space<vmem>>, %arg4: memref<64x32xf32, #tpu.memory_space<vmem>>) attributes {dimension_semantics = [#tpu.dimension_semantics<parallel>], iteration_bounds = array<i64: 1>, scalar_prefetch = 0 : i64, scratch_operands = 0 : i64, tpu.core_type = #tpu.core_type<tc>, window_params = [{transform_indices = @transform_0, window_bounds = array<i64: 16, 72, 32>}, {pipeline_mode = #tpu.pipeline_mode<synchronous>, transform_indices = @transform_1, window_bounds = array<i64: 3, 72, 72>}, {pipeline_mode = #tpu.pipeline_mode<synchronous>, transform_indices = @transform_2, window_bounds = array<i64: 3, 72, 1>}, {transform_indices = @transform_3, window_bounds = array<i64: 64, 32>}]} {
    %c0 = arith.constant 0 : index
    %c0_0 = arith.constant 0 : index
    %c0_1 = arith.constant 0 : index
    %0 = vector.load %arg2[%c0, %c0_0, %c0_1] : memref<3x72x72xf32, #tpu.memory_space<vmem>>, vector<1x72x72xf32>
    %1 = vector.shape_cast %0 : vector<1x72x72xf32> to vector<72x72xf32>
    %c1 = arith.constant 1 : index
    %c0_2 = arith.constant 0 : index
    %c0_3 = arith.constant 0 : index
    %2 = vector.load %arg2[%c1, %c0_2, %c0_3] : memref<3x72x72xf32, #tpu.memory_space<vmem>>, vector<1x72x72xf32>
    %3 = vector.shape_cast %2 : vector<1x72x72xf32> to vector<72x72xf32>
    %c2 = arith.constant 2 : index
    %c0_4 = arith.constant 0 : index
    %c0_5 = arith.constant 0 : index
    %4 = vector.load %arg2[%c2, %c0_4, %c0_5] : memref<3x72x72xf32, #tpu.memory_space<vmem>>, vector<1x72x72xf32>
    %5 = vector.shape_cast %4 : vector<1x72x72xf32> to vector<72x72xf32>
    %c0_6 = arith.constant 0 : index
    %c0_7 = arith.constant 0 : index
    %c0_8 = arith.constant 0 : index
    %6 = vector.load %arg3[%c0_6, %c0_7, %c0_8] : memref<3x72x1xf32, #tpu.memory_space<vmem>>, vector<1x72x1xf32>
    %7 = vector.shape_cast %6 : vector<1x72x1xf32> to vector<72x1xf32>
    %c1_9 = arith.constant 1 : index
    %c0_10 = arith.constant 0 : index
    %c0_11 = arith.constant 0 : index
    %8 = vector.load %arg3[%c1_9, %c0_10, %c0_11] : memref<3x72x1xf32, #tpu.memory_space<vmem>>, vector<1x72x1xf32>
    %9 = vector.shape_cast %8 : vector<1x72x1xf32> to vector<72x1xf32>
    %c2_12 = arith.constant 2 : index
    %c0_13 = arith.constant 0 : index
    %c0_14 = arith.constant 0 : index
    %10 = vector.load %arg3[%c2_12, %c0_13, %c0_14] : memref<3x72x1xf32, #tpu.memory_space<vmem>>, vector<1x72x1xf32>
    %11 = vector.shape_cast %10 : vector<1x72x1xf32> to vector<72x1xf32>
    %c0_15 = arith.constant 0 : index
    %c0_16 = arith.constant 0 : index
    %c0_17 = arith.constant 0 : index
    %12 = vector.load %arg1[%c0_15, %c0_16, %c0_17] : memref<16x72x32xf32, #tpu.memory_space<vmem>>, vector<1x72x32xf32>
    %13 = vector.shape_cast %12 : vector<1x72x32xf32> to vector<72x32xf32>
    %cst = arith.constant dense<0.000000e+00> : vector<72x32xf32>
    %14 = tpu.matmul %1, %13, %cst {dimension_numbers = #tpu.dot_dimension_numbers<[1], [0], [0], [1], [0, 0, 1, 1], [], []>} : vector<72x72xf32>, vector<72x32xf32>, vector<72x32xf32> -> vector<72x32xf32>
    %15 = vector.broadcast %7 : vector<72x1xf32> to vector<72x32xf32>
    %16 = arith.addf %14, %15 : vector<72x32xf32>
    %cst_18 = arith.constant 0.000000e+00 : f32
    %17 = vector.broadcast %cst_18 : f32 to vector<72x32xf32>
    %18 = arith.maximumf %16, %17 : vector<72x32xf32>
    %cst_19 = arith.constant dense<0.000000e+00> : vector<72x32xf32>
    %19 = tpu.matmul %3, %18, %cst_19 {dimension_numbers = #tpu.dot_dimension_numbers<[1], [0], [0], [1], [0, 0, 1, 1], [], []>} : vector<72x72xf32>, vector<72x32xf32>, vector<72x32xf32> -> vector<72x32xf32>
    %20 = vector.broadcast %9 : vector<72x1xf32> to vector<72x32xf32>
    %21 = arith.addf %19, %20 : vector<72x32xf32>
    %cst_20 = arith.constant 0.000000e+00 : f32
    %22 = vector.broadcast %cst_20 : f32 to vector<72x32xf32>
    %23 = arith.maximumf %21, %22 : vector<72x32xf32>
    %cst_21 = arith.constant dense<0.000000e+00> : vector<72x32xf32>
    %24 = tpu.matmul %5, %23, %cst_21 {dimension_numbers = #tpu.dot_dimension_numbers<[1], [0], [0], [1], [0, 0, 1, 1], [], []>} : vector<72x72xf32>, vector<72x32xf32>, vector<72x32xf32> -> vector<72x32xf32>
    %25 = vector.broadcast %11 : vector<72x1xf32> to vector<72x32xf32>
    %26 = arith.addf %24, %25 : vector<72x32xf32>
    %cst_22 = arith.constant 0.000000e+00 : f32
    %27 = vector.broadcast %cst_22 : f32 to vector<72x32xf32>
    %28 = arith.maximumf %26, %27 : vector<72x32xf32>
    %c1_23 = arith.constant 1 : index
    %c0_24 = arith.constant 0 : index
    %c0_25 = arith.constant 0 : index
    %29 = vector.load %arg1[%c1_23, %c0_24, %c0_25] : memref<16x72x32xf32, #tpu.memory_space<vmem>>, vector<1x72x32xf32>
    %30 = vector.shape_cast %29 : vector<1x72x32xf32> to vector<72x32xf32>
    %cst_26 = arith.constant dense<0.000000e+00> : vector<72x32xf32>
    %31 = tpu.matmul %1, %30, %cst_26 {dimension_numbers = #tpu.dot_dimension_numbers<[1], [0], [0], [1], [0, 0, 1, 1], [], []>} : vector<72x72xf32>, vector<72x32xf32>, vector<72x32xf32> -> vector<72x32xf32>
    %32 = vector.broadcast %7 : vector<72x1xf32> to vector<72x32xf32>
    %33 = arith.addf %31, %32 : vector<72x32xf32>
    %cst_27 = arith.constant 0.000000e+00 : f32
    %34 = vector.broadcast %cst_27 : f32 to vector<72x32xf32>
    %35 = arith.maximumf %33, %34 : vector<72x32xf32>
    %cst_28 = arith.constant dense<0.000000e+00> : vector<72x32xf32>
    %36 = tpu.matmul %3, %35, %cst_28 {dimension_numbers = #tpu.dot_dimension_numbers<[1], [0], [0], [1], [0, 0, 1, 1], [], []>} : vector<72x72xf32>, vector<72x32xf32>, vector<72x32xf32> -> vector<72x32xf32>
    %37 = vector.broadcast %9 : vector<72x1xf32> to vector<72x32xf32>
    %38 = arith.addf %36, %37 : vector<72x32xf32>
    %cst_29 = arith.constant 0.000000e+00 : f32
    %39 = vector.broadcast %cst_29 : f32 to vector<72x32xf32>
    %40 = arith.maximumf %38, %39 : vector<72x32xf32>
    %cst_30 = arith.constant dense<0.000000e+00> : vector<72x32xf32>
    %41 = tpu.matmul %5, %40, %cst_30 {dimension_numbers = #tpu.dot_dimension_numbers<[1], [0], [0], [1], [0, 0, 1, 1], [], []>} : vector<72x72xf32>, vector<72x32xf32>, vector<72x32xf32> -> vector<72x32xf32>
    %42 = vector.broadcast %11 : vector<72x1xf32> to vector<72x32xf32>
    %43 = arith.addf %41, %42 : vector<72x32xf32>
    %cst_31 = arith.constant 0.000000e+00 : f32
    %44 = vector.broadcast %cst_31 : f32 to vector<72x32xf32>
    %45 = arith.maximumf %43, %44 : vector<72x32xf32>
    %46 = arith.maximumf %28, %45 : vector<72x32xf32>
    %c2_32 = arith.constant 2 : index
    %c0_33 = arith.constant 0 : index
    %c0_34 = arith.constant 0 : index
    %47 = vector.load %arg1[%c2_32, %c0_33, %c0_34] : memref<16x72x32xf32, #tpu.memory_space<vmem>>, vector<1x72x32xf32>
    %48 = vector.shape_cast %47 : vector<1x72x32xf32> to vector<72x32xf32>
    %cst_35 = arith.constant dense<0.000000e+00> : vector<72x32xf32>
    %49 = tpu.matmul %1, %48, %cst_35 {dimension_numbers = #tpu.dot_dimension_numbers<[1], [0], [0], [1], [0, 0, 1, 1], [], []>} : vector<72x72xf32>, vector<72x32xf32>, vector<72x32xf32> -> vector<72x32xf32>
    %50 = vector.broadcast %7 : vector<72x1xf32> to vector<72x32xf32>
    %51 = arith.addf %49, %50 : vector<72x32xf32>
    %cst_36 = arith.constant 0.000000e+00 : f32
    %52 = vector.broadcast %cst_36 : f32 to vector<72x32xf32>
    %53 = arith.maximumf %51, %52 : vector<72x32xf32>
    %cst_37 = arith.constant dense<0.000000e+00> : vector<72x32xf32>
    %54 = tpu.matmul %3, %53, %cst_37 {dimension_numbers = #tpu.dot_dimension_numbers<[1], [0], [0], [1], [0, 0, 1, 1], [], []>} : vector<72x72xf32>, vector<72x32xf32>, vector<72x32xf32> -> vector<72x32xf32>
    %55 = vector.broadcast %9 : vector<72x1xf32> to vector<72x32xf32>
    %56 = arith.addf %54, %55 : vector<72x32xf32>
    %cst_38 = arith.constant 0.000000e+00 : f32
    %57 = vector.broadcast %cst_38 : f32 to vector<72x32xf32>
    %58 = arith.maximumf %56, %57 : vector<72x32xf32>
    %cst_39 = arith.constant dense<0.000000e+00> : vector<72x32xf32>
    %59 = tpu.matmul %5, %58, %cst_39 {dimension_numbers = #tpu.dot_dimension_numbers<[1], [0], [0], [1], [0, 0, 1, 1], [], []>} : vector<72x72xf32>, vector<72x32xf32>, vector<72x32xf32> -> vector<72x32xf32>
    %60 = vector.broadcast %11 : vector<72x1xf32> to vector<72x32xf32>
    %61 = arith.addf %59, %60 : vector<72x32xf32>
    %cst_40 = arith.constant 0.000000e+00 : f32
    %62 = vector.broadcast %cst_40 : f32 to vector<72x32xf32>
    %63 = arith.maximumf %61, %62 : vector<72x32xf32>
    %64 = arith.maximumf %46, %63 : vector<72x32xf32>
    %c3 = arith.constant 3 : index
    %c0_41 = arith.constant 0 : index
    %c0_42 = arith.constant 0 : index
    %65 = vector.load %arg1[%c3, %c0_41, %c0_42] : memref<16x72x32xf32, #tpu.memory_space<vmem>>, vector<1x72x32xf32>
    %66 = vector.shape_cast %65 : vector<1x72x32xf32> to vector<72x32xf32>
    %cst_43 = arith.constant dense<0.000000e+00> : vector<72x32xf32>
    %67 = tpu.matmul %1, %66, %cst_43 {dimension_numbers = #tpu.dot_dimension_numbers<[1], [0], [0], [1], [0, 0, 1, 1], [], []>} : vector<72x72xf32>, vector<72x32xf32>, vector<72x32xf32> -> vector<72x32xf32>
    %68 = vector.broadcast %7 : vector<72x1xf32> to vector<72x32xf32>
    %69 = arith.addf %67, %68 : vector<72x32xf32>
    %cst_44 = arith.constant 0.000000e+00 : f32
    %70 = vector.broadcast %cst_44 : f32 to vector<72x32xf32>
    %71 = arith.maximumf %69, %70 : vector<72x32xf32>
    %cst_45 = arith.constant dense<0.000000e+00> : vector<72x32xf32>
    %72 = tpu.matmul %3, %71, %cst_45 {dimension_numbers = #tpu.dot_dimension_numbers<[1], [0], [0], [1], [0, 0, 1, 1], [], []>} : vector<72x72xf32>, vector<72x32xf32>, vector<72x32xf32> -> vector<72x32xf32>
    %73 = vector.broadcast %9 : vector<72x1xf32> to vector<72x32xf32>
    %74 = arith.addf %72, %73 : vector<72x32xf32>
    %cst_46 = arith.constant 0.000000e+00 : f32
    %75 = vector.broadcast %cst_46 : f32 to vector<72x32xf32>
    %76 = arith.maximumf %74, %75 : vector<72x32xf32>
    %cst_47 = arith.constant dense<0.000000e+00> : vector<72x32xf32>
    %77 = tpu.matmul %5, %76, %cst_47 {dimension_numbers = #tpu.dot_dimension_numbers<[1], [0], [0], [1], [0, 0, 1, 1], [], []>} : vector<72x72xf32>, vector<72x32xf32>, vector<72x32xf32> -> vector<72x32xf32>
    %78 = vector.broadcast %11 : vector<72x1xf32> to vector<72x32xf32>
    %79 = arith.addf %77, %78 : vector<72x32xf32>
    %cst_48 = arith.constant 0.000000e+00 : f32
    %80 = vector.broadcast %cst_48 : f32 to vector<72x32xf32>
    %81 = arith.maximumf %79, %80 : vector<72x32xf32>
    %82 = arith.maximumf %64, %81 : vector<72x32xf32>
    %c4 = arith.constant 4 : index
    %c0_49 = arith.constant 0 : index
    %c0_50 = arith.constant 0 : index
    %83 = vector.load %arg1[%c4, %c0_49, %c0_50] : memref<16x72x32xf32, #tpu.memory_space<vmem>>, vector<1x72x32xf32>
    %84 = vector.shape_cast %83 : vector<1x72x32xf32> to vector<72x32xf32>
    %cst_51 = arith.constant dense<0.000000e+00> : vector<72x32xf32>
    %85 = tpu.matmul %1, %84, %cst_51 {dimension_numbers = #tpu.dot_dimension_numbers<[1], [0], [0], [1], [0, 0, 1, 1], [], []>} : vector<72x72xf32>, vector<72x32xf32>, vector<72x32xf32> -> vector<72x32xf32>
    %86 = vector.broadcast %7 : vector<72x1xf32> to vector<72x32xf32>
    %87 = arith.addf %85, %86 : vector<72x32xf32>
    %cst_52 = arith.constant 0.000000e+00 : f32
    %88 = vector.broadcast %cst_52 : f32 to vector<72x32xf32>
    %89 = arith.maximumf %87, %88 : vector<72x32xf32>
    %cst_53 = arith.constant dense<0.000000e+00> : vector<72x32xf32>
    %90 = tpu.matmul %3, %89, %cst_53 {dimension_numbers = #tpu.dot_dimension_numbers<[1], [0], [0], [1], [0, 0, 1, 1], [], []>} : vector<72x72xf32>, vector<72x32xf32>, vector<72x32xf32> -> vector<72x32xf32>
    %91 = vector.broadcast %9 : vector<72x1xf32> to vector<72x32xf32>
    %92 = arith.addf %90, %91 : vector<72x32xf32>
    %cst_54 = arith.constant 0.000000e+00 : f32
    %93 = vector.broadcast %cst_54 : f32 to vector<72x32xf32>
    %94 = arith.maximumf %92, %93 : vector<72x32xf32>
    %cst_55 = arith.constant dense<0.000000e+00> : vector<72x32xf32>
    %95 = tpu.matmul %5, %94, %cst_55 {dimension_numbers = #tpu.dot_dimension_numbers<[1], [0], [0], [1], [0, 0, 1, 1], [], []>} : vector<72x72xf32>, vector<72x32xf32>, vector<72x32xf32> -> vector<72x32xf32>
    %96 = vector.broadcast %11 : vector<72x1xf32> to vector<72x32xf32>
    %97 = arith.addf %95, %96 : vector<72x32xf32>
    %cst_56 = arith.constant 0.000000e+00 : f32
    %98 = vector.broadcast %cst_56 : f32 to vector<72x32xf32>
    %99 = arith.maximumf %97, %98 : vector<72x32xf32>
    %100 = arith.maximumf %82, %99 : vector<72x32xf32>
    %c5 = arith.constant 5 : index
    %c0_57 = arith.constant 0 : index
    %c0_58 = arith.constant 0 : index
    %101 = vector.load %arg1[%c5, %c0_57, %c0_58] : memref<16x72x32xf32, #tpu.memory_space<vmem>>, vector<1x72x32xf32>
    %102 = vector.shape_cast %101 : vector<1x72x32xf32> to vector<72x32xf32>
    %cst_59 = arith.constant dense<0.000000e+00> : vector<72x32xf32>
    %103 = tpu.matmul %1, %102, %cst_59 {dimension_numbers = #tpu.dot_dimension_numbers<[1], [0], [0], [1], [0, 0, 1, 1], [], []>} : vector<72x72xf32>, vector<72x32xf32>, vector<72x32xf32> -> vector<72x32xf32>
    %104 = vector.broadcast %7 : vector<72x1xf32> to vector<72x32xf32>
    %105 = arith.addf %103, %104 : vector<72x32xf32>
    %cst_60 = arith.constant 0.000000e+00 : f32
    %106 = vector.broadcast %cst_60 : f32 to vector<72x32xf32>
    %107 = arith.maximumf %105, %106 : vector<72x32xf32>
    %cst_61 = arith.constant dense<0.000000e+00> : vector<72x32xf32>
    %108 = tpu.matmul %3, %107, %cst_61 {dimension_numbers = #tpu.dot_dimension_numbers<[1], [0], [0], [1], [0, 0, 1, 1], [], []>} : vector<72x72xf32>, vector<72x32xf32>, vector<72x32xf32> -> vector<72x32xf32>
    %109 = vector.broadcast %9 : vector<72x1xf32> to vector<72x32xf32>
    %110 = arith.addf %108, %109 : vector<72x32xf32>
    %cst_62 = arith.constant 0.000000e+00 : f32
    %111 = vector.broadcast %cst_62 : f32 to vector<72x32xf32>
    %112 = arith.maximumf %110, %111 : vector<72x32xf32>
    %cst_63 = arith.constant dense<0.000000e+00> : vector<72x32xf32>
    %113 = tpu.matmul %5, %112, %cst_63 {dimension_numbers = #tpu.dot_dimension_numbers<[1], [0], [0], [1], [0, 0, 1, 1], [], []>} : vector<72x72xf32>, vector<72x32xf32>, vector<72x32xf32> -> vector<72x32xf32>
    %114 = vector.broadcast %11 : vector<72x1xf32> to vector<72x32xf32>
    %115 = arith.addf %113, %114 : vector<72x32xf32>
    %cst_64 = arith.constant 0.000000e+00 : f32
    %116 = vector.broadcast %cst_64 : f32 to vector<72x32xf32>
    %117 = arith.maximumf %115, %116 : vector<72x32xf32>
    %118 = arith.maximumf %100, %117 : vector<72x32xf32>
    %c6 = arith.constant 6 : index
    %c0_65 = arith.constant 0 : index
    %c0_66 = arith.constant 0 : index
    %119 = vector.load %arg1[%c6, %c0_65, %c0_66] : memref<16x72x32xf32, #tpu.memory_space<vmem>>, vector<1x72x32xf32>
    %120 = vector.shape_cast %119 : vector<1x72x32xf32> to vector<72x32xf32>
    %cst_67 = arith.constant dense<0.000000e+00> : vector<72x32xf32>
    %121 = tpu.matmul %1, %120, %cst_67 {dimension_numbers = #tpu.dot_dimension_numbers<[1], [0], [0], [1], [0, 0, 1, 1], [], []>} : vector<72x72xf32>, vector<72x32xf32>, vector<72x32xf32> -> vector<72x32xf32>
    %122 = vector.broadcast %7 : vector<72x1xf32> to vector<72x32xf32>
    %123 = arith.addf %121, %122 : vector<72x32xf32>
    %cst_68 = arith.constant 0.000000e+00 : f32
    %124 = vector.broadcast %cst_68 : f32 to vector<72x32xf32>
    %125 = arith.maximumf %123, %124 : vector<72x32xf32>
    %cst_69 = arith.constant dense<0.000000e+00> : vector<72x32xf32>
    %126 = tpu.matmul %3, %125, %cst_69 {dimension_numbers = #tpu.dot_dimension_numbers<[1], [0], [0], [1], [0, 0, 1, 1], [], []>} : vector<72x72xf32>, vector<72x32xf32>, vector<72x32xf32> -> vector<72x32xf32>
    %127 = vector.broadcast %9 : vector<72x1xf32> to vector<72x32xf32>
    %128 = arith.addf %126, %127 : vector<72x32xf32>
    %cst_70 = arith.constant 0.000000e+00 : f32
    %129 = vector.broadcast %cst_70 : f32 to vector<72x32xf32>
    %130 = arith.maximumf %128, %129 : vector<72x32xf32>
    %cst_71 = arith.constant dense<0.000000e+00> : vector<72x32xf32>
    %131 = tpu.matmul %5, %130, %cst_71 {dimension_numbers = #tpu.dot_dimension_numbers<[1], [0], [0], [1], [0, 0, 1, 1], [], []>} : vector<72x72xf32>, vector<72x32xf32>, vector<72x32xf32> -> vector<72x32xf32>
    %132 = vector.broadcast %11 : vector<72x1xf32> to vector<72x32xf32>
    %133 = arith.addf %131, %132 : vector<72x32xf32>
    %cst_72 = arith.constant 0.000000e+00 : f32
    %134 = vector.broadcast %cst_72 : f32 to vector<72x32xf32>
    %135 = arith.maximumf %133, %134 : vector<72x32xf32>
    %136 = arith.maximumf %118, %135 : vector<72x32xf32>
    %c7 = arith.constant 7 : index
    %c0_73 = arith.constant 0 : index
    %c0_74 = arith.constant 0 : index
    %137 = vector.load %arg1[%c7, %c0_73, %c0_74] : memref<16x72x32xf32, #tpu.memory_space<vmem>>, vector<1x72x32xf32>
    %138 = vector.shape_cast %137 : vector<1x72x32xf32> to vector<72x32xf32>
    %cst_75 = arith.constant dense<0.000000e+00> : vector<72x32xf32>
    %139 = tpu.matmul %1, %138, %cst_75 {dimension_numbers = #tpu.dot_dimension_numbers<[1], [0], [0], [1], [0, 0, 1, 1], [], []>} : vector<72x72xf32>, vector<72x32xf32>, vector<72x32xf32> -> vector<72x32xf32>
    %140 = vector.broadcast %7 : vector<72x1xf32> to vector<72x32xf32>
    %141 = arith.addf %139, %140 : vector<72x32xf32>
    %cst_76 = arith.constant 0.000000e+00 : f32
    %142 = vector.broadcast %cst_76 : f32 to vector<72x32xf32>
    %143 = arith.maximumf %141, %142 : vector<72x32xf32>
    %cst_77 = arith.constant dense<0.000000e+00> : vector<72x32xf32>
    %144 = tpu.matmul %3, %143, %cst_77 {dimension_numbers = #tpu.dot_dimension_numbers<[1], [0], [0], [1], [0, 0, 1, 1], [], []>} : vector<72x72xf32>, vector<72x32xf32>, vector<72x32xf32> -> vector<72x32xf32>
    %145 = vector.broadcast %9 : vector<72x1xf32> to vector<72x32xf32>
    %146 = arith.addf %144, %145 : vector<72x32xf32>
    %cst_78 = arith.constant 0.000000e+00 : f32
    %147 = vector.broadcast %cst_78 : f32 to vector<72x32xf32>
    %148 = arith.maximumf %146, %147 : vector<72x32xf32>
    %cst_79 = arith.constant dense<0.000000e+00> : vector<72x32xf32>
    %149 = tpu.matmul %5, %148, %cst_79 {dimension_numbers = #tpu.dot_dimension_numbers<[1], [0], [0], [1], [0, 0, 1, 1], [], []>} : vector<72x72xf32>, vector<72x32xf32>, vector<72x32xf32> -> vector<72x32xf32>
    %150 = vector.broadcast %11 : vector<72x1xf32> to vector<72x32xf32>
    %151 = arith.addf %149, %150 : vector<72x32xf32>
    %cst_80 = arith.constant 0.000000e+00 : f32
    %152 = vector.broadcast %cst_80 : f32 to vector<72x32xf32>
    %153 = arith.maximumf %151, %152 : vector<72x32xf32>
    %154 = arith.maximumf %136, %153 : vector<72x32xf32>
    %c8 = arith.constant 8 : index
    %c0_81 = arith.constant 0 : index
    %c0_82 = arith.constant 0 : index
    %155 = vector.load %arg1[%c8, %c0_81, %c0_82] : memref<16x72x32xf32, #tpu.memory_space<vmem>>, vector<1x72x32xf32>
    %156 = vector.shape_cast %155 : vector<1x72x32xf32> to vector<72x32xf32>
    %cst_83 = arith.constant dense<0.000000e+00> : vector<72x32xf32>
    %157 = tpu.matmul %1, %156, %cst_83 {dimension_numbers = #tpu.dot_dimension_numbers<[1], [0], [0], [1], [0, 0, 1, 1], [], []>} : vector<72x72xf32>, vector<72x32xf32>, vector<72x32xf32> -> vector<72x32xf32>
    %158 = vector.broadcast %7 : vector<72x1xf32> to vector<72x32xf32>
    %159 = arith.addf %157, %158 : vector<72x32xf32>
    %cst_84 = arith.constant 0.000000e+00 : f32
    %160 = vector.broadcast %cst_84 : f32 to vector<72x32xf32>
    %161 = arith.maximumf %159, %160 : vector<72x32xf32>
    %cst_85 = arith.constant dense<0.000000e+00> : vector<72x32xf32>
    %162 = tpu.matmul %3, %161, %cst_85 {dimension_numbers = #tpu.dot_dimension_numbers<[1], [0], [0], [1], [0, 0, 1, 1], [], []>} : vector<72x72xf32>, vector<72x32xf32>, vector<72x32xf32> -> vector<72x32xf32>
    %163 = vector.broadcast %9 : vector<72x1xf32> to vector<72x32xf32>
    %164 = arith.addf %162, %163 : vector<72x32xf32>
    %cst_86 = arith.constant 0.000000e+00 : f32
    %165 = vector.broadcast %cst_86 : f32 to vector<72x32xf32>
    %166 = arith.maximumf %164, %165 : vector<72x32xf32>
    %cst_87 = arith.constant dense<0.000000e+00> : vector<72x32xf32>
    %167 = tpu.matmul %5, %166, %cst_87 {dimension_numbers = #tpu.dot_dimension_numbers<[1], [0], [0], [1], [0, 0, 1, 1], [], []>} : vector<72x72xf32>, vector<72x32xf32>, vector<72x32xf32> -> vector<72x32xf32>
    %168 = vector.broadcast %11 : vector<72x1xf32> to vector<72x32xf32>
    %169 = arith.addf %167, %168 : vector<72x32xf32>
    %cst_88 = arith.constant 0.000000e+00 : f32
    %170 = vector.broadcast %cst_88 : f32 to vector<72x32xf32>
    %171 = arith.maximumf %169, %170 : vector<72x32xf32>
    %172 = arith.maximumf %154, %171 : vector<72x32xf32>
    %c9 = arith.constant 9 : index
    %c0_89 = arith.constant 0 : index
    %c0_90 = arith.constant 0 : index
    %173 = vector.load %arg1[%c9, %c0_89, %c0_90] : memref<16x72x32xf32, #tpu.memory_space<vmem>>, vector<1x72x32xf32>
    %174 = vector.shape_cast %173 : vector<1x72x32xf32> to vector<72x32xf32>
    %cst_91 = arith.constant dense<0.000000e+00> : vector<72x32xf32>
    %175 = tpu.matmul %1, %174, %cst_91 {dimension_numbers = #tpu.dot_dimension_numbers<[1], [0], [0], [1], [0, 0, 1, 1], [], []>} : vector<72x72xf32>, vector<72x32xf32>, vector<72x32xf32> -> vector<72x32xf32>
    %176 = vector.broadcast %7 : vector<72x1xf32> to vector<72x32xf32>
    %177 = arith.addf %175, %176 : vector<72x32xf32>
    %cst_92 = arith.constant 0.000000e+00 : f32
    %178 = vector.broadcast %cst_92 : f32 to vector<72x32xf32>
    %179 = arith.maximumf %177, %178 : vector<72x32xf32>
    %cst_93 = arith.constant dense<0.000000e+00> : vector<72x32xf32>
    %180 = tpu.matmul %3, %179, %cst_93 {dimension_numbers = #tpu.dot_dimension_numbers<[1], [0], [0], [1], [0, 0, 1, 1], [], []>} : vector<72x72xf32>, vector<72x32xf32>, vector<72x32xf32> -> vector<72x32xf32>
    %181 = vector.broadcast %9 : vector<72x1xf32> to vector<72x32xf32>
    %182 = arith.addf %180, %181 : vector<72x32xf32>
    %cst_94 = arith.constant 0.000000e+00 : f32
    %183 = vector.broadcast %cst_94 : f32 to vector<72x32xf32>
    %184 = arith.maximumf %182, %183 : vector<72x32xf32>
    %cst_95 = arith.constant dense<0.000000e+00> : vector<72x32xf32>
    %185 = tpu.matmul %5, %184, %cst_95 {dimension_numbers = #tpu.dot_dimension_numbers<[1], [0], [0], [1], [0, 0, 1, 1], [], []>} : vector<72x72xf32>, vector<72x32xf32>, vector<72x32xf32> -> vector<72x32xf32>
    %186 = vector.broadcast %11 : vector<72x1xf32> to vector<72x32xf32>
    %187 = arith.addf %185, %186 : vector<72x32xf32>
    %cst_96 = arith.constant 0.000000e+00 : f32
    %188 = vector.broadcast %cst_96 : f32 to vector<72x32xf32>
    %189 = arith.maximumf %187, %188 : vector<72x32xf32>
    %190 = arith.maximumf %172, %189 : vector<72x32xf32>
    %c10 = arith.constant 10 : index
    %c0_97 = arith.constant 0 : index
    %c0_98 = arith.constant 0 : index
    %191 = vector.load %arg1[%c10, %c0_97, %c0_98] : memref<16x72x32xf32, #tpu.memory_space<vmem>>, vector<1x72x32xf32>
    %192 = vector.shape_cast %191 : vector<1x72x32xf32> to vector<72x32xf32>
    %cst_99 = arith.constant dense<0.000000e+00> : vector<72x32xf32>
    %193 = tpu.matmul %1, %192, %cst_99 {dimension_numbers = #tpu.dot_dimension_numbers<[1], [0], [0], [1], [0, 0, 1, 1], [], []>} : vector<72x72xf32>, vector<72x32xf32>, vector<72x32xf32> -> vector<72x32xf32>
    %194 = vector.broadcast %7 : vector<72x1xf32> to vector<72x32xf32>
    %195 = arith.addf %193, %194 : vector<72x32xf32>
    %cst_100 = arith.constant 0.000000e+00 : f32
    %196 = vector.broadcast %cst_100 : f32 to vector<72x32xf32>
    %197 = arith.maximumf %195, %196 : vector<72x32xf32>
    %cst_101 = arith.constant dense<0.000000e+00> : vector<72x32xf32>
    %198 = tpu.matmul %3, %197, %cst_101 {dimension_numbers = #tpu.dot_dimension_numbers<[1], [0], [0], [1], [0, 0, 1, 1], [], []>} : vector<72x72xf32>, vector<72x32xf32>, vector<72x32xf32> -> vector<72x32xf32>
    %199 = vector.broadcast %9 : vector<72x1xf32> to vector<72x32xf32>
    %200 = arith.addf %198, %199 : vector<72x32xf32>
    %cst_102 = arith.constant 0.000000e+00 : f32
    %201 = vector.broadcast %cst_102 : f32 to vector<72x32xf32>
    %202 = arith.maximumf %200, %201 : vector<72x32xf32>
    %cst_103 = arith.constant dense<0.000000e+00> : vector<72x32xf32>
    %203 = tpu.matmul %5, %202, %cst_103 {dimension_numbers = #tpu.dot_dimension_numbers<[1], [0], [0], [1], [0, 0, 1, 1], [], []>} : vector<72x72xf32>, vector<72x32xf32>, vector<72x32xf32> -> vector<72x32xf32>
    %204 = vector.broadcast %11 : vector<72x1xf32> to vector<72x32xf32>
    %205 = arith.addf %203, %204 : vector<72x32xf32>
    %cst_104 = arith.constant 0.000000e+00 : f32
    %206 = vector.broadcast %cst_104 : f32 to vector<72x32xf32>
    %207 = arith.maximumf %205, %206 : vector<72x32xf32>
    %208 = arith.maximumf %190, %207 : vector<72x32xf32>
    %c11 = arith.constant 11 : index
    %c0_105 = arith.constant 0 : index
    %c0_106 = arith.constant 0 : index
    %209 = vector.load %arg1[%c11, %c0_105, %c0_106] : memref<16x72x32xf32, #tpu.memory_space<vmem>>, vector<1x72x32xf32>
    %210 = vector.shape_cast %209 : vector<1x72x32xf32> to vector<72x32xf32>
    %cst_107 = arith.constant dense<0.000000e+00> : vector<72x32xf32>
    %211 = tpu.matmul %1, %210, %cst_107 {dimension_numbers = #tpu.dot_dimension_numbers<[1], [0], [0], [1], [0, 0, 1, 1], [], []>} : vector<72x72xf32>, vector<72x32xf32>, vector<72x32xf32> -> vector<72x32xf32>
    %212 = vector.broadcast %7 : vector<72x1xf32> to vector<72x32xf32>
    %213 = arith.addf %211, %212 : vector<72x32xf32>
    %cst_108 = arith.constant 0.000000e+00 : f32
    %214 = vector.broadcast %cst_108 : f32 to vector<72x32xf32>
    %215 = arith.maximumf %213, %214 : vector<72x32xf32>
    %cst_109 = arith.constant dense<0.000000e+00> : vector<72x32xf32>
    %216 = tpu.matmul %3, %215, %cst_109 {dimension_numbers = #tpu.dot_dimension_numbers<[1], [0], [0], [1], [0, 0, 1, 1], [], []>} : vector<72x72xf32>, vector<72x32xf32>, vector<72x32xf32> -> vector<72x32xf32>
    %217 = vector.broadcast %9 : vector<72x1xf32> to vector<72x32xf32>
    %218 = arith.addf %216, %217 : vector<72x32xf32>
    %cst_110 = arith.constant 0.000000e+00 : f32
    %219 = vector.broadcast %cst_110 : f32 to vector<72x32xf32>
    %220 = arith.maximumf %218, %219 : vector<72x32xf32>
    %cst_111 = arith.constant dense<0.000000e+00> : vector<72x32xf32>
    %221 = tpu.matmul %5, %220, %cst_111 {dimension_numbers = #tpu.dot_dimension_numbers<[1], [0], [0], [1], [0, 0, 1, 1], [], []>} : vector<72x72xf32>, vector<72x32xf32>, vector<72x32xf32> -> vector<72x32xf32>
    %222 = vector.broadcast %11 : vector<72x1xf32> to vector<72x32xf32>
    %223 = arith.addf %221, %222 : vector<72x32xf32>
    %cst_112 = arith.constant 0.000000e+00 : f32
    %224 = vector.broadcast %cst_112 : f32 to vector<72x32xf32>
    %225 = arith.maximumf %223, %224 : vector<72x32xf32>
    %226 = arith.maximumf %208, %225 : vector<72x32xf32>
    %c12 = arith.constant 12 : index
    %c0_113 = arith.constant 0 : index
    %c0_114 = arith.constant 0 : index
    %227 = vector.load %arg1[%c12, %c0_113, %c0_114] : memref<16x72x32xf32, #tpu.memory_space<vmem>>, vector<1x72x32xf32>
    %228 = vector.shape_cast %227 : vector<1x72x32xf32> to vector<72x32xf32>
    %cst_115 = arith.constant dense<0.000000e+00> : vector<72x32xf32>
    %229 = tpu.matmul %1, %228, %cst_115 {dimension_numbers = #tpu.dot_dimension_numbers<[1], [0], [0], [1], [0, 0, 1, 1], [], []>} : vector<72x72xf32>, vector<72x32xf32>, vector<72x32xf32> -> vector<72x32xf32>
    %230 = vector.broadcast %7 : vector<72x1xf32> to vector<72x32xf32>
    %231 = arith.addf %229, %230 : vector<72x32xf32>
    %cst_116 = arith.constant 0.000000e+00 : f32
    %232 = vector.broadcast %cst_116 : f32 to vector<72x32xf32>
    %233 = arith.maximumf %231, %232 : vector<72x32xf32>
    %cst_117 = arith.constant dense<0.000000e+00> : vector<72x32xf32>
    %234 = tpu.matmul %3, %233, %cst_117 {dimension_numbers = #tpu.dot_dimension_numbers<[1], [0], [0], [1], [0, 0, 1, 1], [], []>} : vector<72x72xf32>, vector<72x32xf32>, vector<72x32xf32> -> vector<72x32xf32>
    %235 = vector.broadcast %9 : vector<72x1xf32> to vector<72x32xf32>
    %236 = arith.addf %234, %235 : vector<72x32xf32>
    %cst_118 = arith.constant 0.000000e+00 : f32
    %237 = vector.broadcast %cst_118 : f32 to vector<72x32xf32>
    %238 = arith.maximumf %236, %237 : vector<72x32xf32>
    %cst_119 = arith.constant dense<0.000000e+00> : vector<72x32xf32>
    %239 = tpu.matmul %5, %238, %cst_119 {dimension_numbers = #tpu.dot_dimension_numbers<[1], [0], [0], [1], [0, 0, 1, 1], [], []>} : vector<72x72xf32>, vector<72x32xf32>, vector<72x32xf32> -> vector<72x32xf32>
    %240 = vector.broadcast %11 : vector<72x1xf32> to vector<72x32xf32>
    %241 = arith.addf %239, %240 : vector<72x32xf32>
    %cst_120 = arith.constant 0.000000e+00 : f32
    %242 = vector.broadcast %cst_120 : f32 to vector<72x32xf32>
    %243 = arith.maximumf %241, %242 : vector<72x32xf32>
    %244 = arith.maximumf %226, %243 : vector<72x32xf32>
    %c13 = arith.constant 13 : index
    %c0_121 = arith.constant 0 : index
    %c0_122 = arith.constant 0 : index
    %245 = vector.load %arg1[%c13, %c0_121, %c0_122] : memref<16x72x32xf32, #tpu.memory_space<vmem>>, vector<1x72x32xf32>
    %246 = vector.shape_cast %245 : vector<1x72x32xf32> to vector<72x32xf32>
    %cst_123 = arith.constant dense<0.000000e+00> : vector<72x32xf32>
    %247 = tpu.matmul %1, %246, %cst_123 {dimension_numbers = #tpu.dot_dimension_numbers<[1], [0], [0], [1], [0, 0, 1, 1], [], []>} : vector<72x72xf32>, vector<72x32xf32>, vector<72x32xf32> -> vector<72x32xf32>
    %248 = vector.broadcast %7 : vector<72x1xf32> to vector<72x32xf32>
    %249 = arith.addf %247, %248 : vector<72x32xf32>
    %cst_124 = arith.constant 0.000000e+00 : f32
    %250 = vector.broadcast %cst_124 : f32 to vector<72x32xf32>
    %251 = arith.maximumf %249, %250 : vector<72x32xf32>
    %cst_125 = arith.constant dense<0.000000e+00> : vector<72x32xf32>
    %252 = tpu.matmul %3, %251, %cst_125 {dimension_numbers = #tpu.dot_dimension_numbers<[1], [0], [0], [1], [0, 0, 1, 1], [], []>} : vector<72x72xf32>, vector<72x32xf32>, vector<72x32xf32> -> vector<72x32xf32>
    %253 = vector.broadcast %9 : vector<72x1xf32> to vector<72x32xf32>
    %254 = arith.addf %252, %253 : vector<72x32xf32>
    %cst_126 = arith.constant 0.000000e+00 : f32
    %255 = vector.broadcast %cst_126 : f32 to vector<72x32xf32>
    %256 = arith.maximumf %254, %255 : vector<72x32xf32>
    %cst_127 = arith.constant dense<0.000000e+00> : vector<72x32xf32>
    %257 = tpu.matmul %5, %256, %cst_127 {dimension_numbers = #tpu.dot_dimension_numbers<[1], [0], [0], [1], [0, 0, 1, 1], [], []>} : vector<72x72xf32>, vector<72x32xf32>, vector<72x32xf32> -> vector<72x32xf32>
    %258 = vector.broadcast %11 : vector<72x1xf32> to vector<72x32xf32>
    %259 = arith.addf %257, %258 : vector<72x32xf32>
    %cst_128 = arith.constant 0.000000e+00 : f32
    %260 = vector.broadcast %cst_128 : f32 to vector<72x32xf32>
    %261 = arith.maximumf %259, %260 : vector<72x32xf32>
    %262 = arith.maximumf %244, %261 : vector<72x32xf32>
    %c14 = arith.constant 14 : index
    %c0_129 = arith.constant 0 : index
    %c0_130 = arith.constant 0 : index
    %263 = vector.load %arg1[%c14, %c0_129, %c0_130] : memref<16x72x32xf32, #tpu.memory_space<vmem>>, vector<1x72x32xf32>
    %264 = vector.shape_cast %263 : vector<1x72x32xf32> to vector<72x32xf32>
    %cst_131 = arith.constant dense<0.000000e+00> : vector<72x32xf32>
    %265 = tpu.matmul %1, %264, %cst_131 {dimension_numbers = #tpu.dot_dimension_numbers<[1], [0], [0], [1], [0, 0, 1, 1], [], []>} : vector<72x72xf32>, vector<72x32xf32>, vector<72x32xf32> -> vector<72x32xf32>
    %266 = vector.broadcast %7 : vector<72x1xf32> to vector<72x32xf32>
    %267 = arith.addf %265, %266 : vector<72x32xf32>
    %cst_132 = arith.constant 0.000000e+00 : f32
    %268 = vector.broadcast %cst_132 : f32 to vector<72x32xf32>
    %269 = arith.maximumf %267, %268 : vector<72x32xf32>
    %cst_133 = arith.constant dense<0.000000e+00> : vector<72x32xf32>
    %270 = tpu.matmul %3, %269, %cst_133 {dimension_numbers = #tpu.dot_dimension_numbers<[1], [0], [0], [1], [0, 0, 1, 1], [], []>} : vector<72x72xf32>, vector<72x32xf32>, vector<72x32xf32> -> vector<72x32xf32>
    %271 = vector.broadcast %9 : vector<72x1xf32> to vector<72x32xf32>
    %272 = arith.addf %270, %271 : vector<72x32xf32>
    %cst_134 = arith.constant 0.000000e+00 : f32
    %273 = vector.broadcast %cst_134 : f32 to vector<72x32xf32>
    %274 = arith.maximumf %272, %273 : vector<72x32xf32>
    %cst_135 = arith.constant dense<0.000000e+00> : vector<72x32xf32>
    %275 = tpu.matmul %5, %274, %cst_135 {dimension_numbers = #tpu.dot_dimension_numbers<[1], [0], [0], [1], [0, 0, 1, 1], [], []>} : vector<72x72xf32>, vector<72x32xf32>, vector<72x32xf32> -> vector<72x32xf32>
    %276 = vector.broadcast %11 : vector<72x1xf32> to vector<72x32xf32>
    %277 = arith.addf %275, %276 : vector<72x32xf32>
    %cst_136 = arith.constant 0.000000e+00 : f32
    %278 = vector.broadcast %cst_136 : f32 to vector<72x32xf32>
    %279 = arith.maximumf %277, %278 : vector<72x32xf32>
    %280 = arith.maximumf %262, %279 : vector<72x32xf32>
    %c15 = arith.constant 15 : index
    %c0_137 = arith.constant 0 : index
    %c0_138 = arith.constant 0 : index
    %281 = vector.load %arg1[%c15, %c0_137, %c0_138] : memref<16x72x32xf32, #tpu.memory_space<vmem>>, vector<1x72x32xf32>
    %282 = vector.shape_cast %281 : vector<1x72x32xf32> to vector<72x32xf32>
    %cst_139 = arith.constant dense<0.000000e+00> : vector<72x32xf32>
    %283 = tpu.matmul %1, %282, %cst_139 {dimension_numbers = #tpu.dot_dimension_numbers<[1], [0], [0], [1], [0, 0, 1, 1], [], []>} : vector<72x72xf32>, vector<72x32xf32>, vector<72x32xf32> -> vector<72x32xf32>
    %284 = vector.broadcast %7 : vector<72x1xf32> to vector<72x32xf32>
    %285 = arith.addf %283, %284 : vector<72x32xf32>
    %cst_140 = arith.constant 0.000000e+00 : f32
    %286 = vector.broadcast %cst_140 : f32 to vector<72x32xf32>
    %287 = arith.maximumf %285, %286 : vector<72x32xf32>
    %cst_141 = arith.constant dense<0.000000e+00> : vector<72x32xf32>
    %288 = tpu.matmul %3, %287, %cst_141 {dimension_numbers = #tpu.dot_dimension_numbers<[1], [0], [0], [1], [0, 0, 1, 1], [], []>} : vector<72x72xf32>, vector<72x32xf32>, vector<72x32xf32> -> vector<72x32xf32>
    %289 = vector.broadcast %9 : vector<72x1xf32> to vector<72x32xf32>
    %290 = arith.addf %288, %289 : vector<72x32xf32>
    %cst_142 = arith.constant 0.000000e+00 : f32
    %291 = vector.broadcast %cst_142 : f32 to vector<72x32xf32>
    %292 = arith.maximumf %290, %291 : vector<72x32xf32>
    %cst_143 = arith.constant dense<0.000000e+00> : vector<72x32xf32>
    %293 = tpu.matmul %5, %292, %cst_143 {dimension_numbers = #tpu.dot_dimension_numbers<[1], [0], [0], [1], [0, 0, 1, 1], [], []>} : vector<72x72xf32>, vector<72x32xf32>, vector<72x32xf32> -> vector<72x32xf32>
    %294 = vector.broadcast %11 : vector<72x1xf32> to vector<72x32xf32>
    %295 = arith.addf %293, %294 : vector<72x32xf32>
    %cst_144 = arith.constant 0.000000e+00 : f32
    %296 = vector.broadcast %cst_144 : f32 to vector<72x32xf32>
    %297 = arith.maximumf %295, %296 : vector<72x32xf32>
    %298 = arith.maximumf %280, %297 : vector<72x32xf32>
    %299 = vector.extract_strided_slice %298 {offsets = [0, 0], sizes = [64, 32], strides = [1, 1]} : vector<72x32xf32> to vector<64x32xf32>
    %c0_145 = arith.constant 0 : index
    %c0_146 = arith.constant 0 : index
    %300 = vector.load %arg4[%c0_145, %c0_146] : memref<64x32xf32, #tpu.memory_space<vmem>>, vector<64x32xf32>
    tpu.vector_store %arg4[%c0_145, %c0_146], %299 {strides = array<i32>} : memref<64x32xf32, #tpu.memory_space<vmem>>, vector<64x32xf32>,
    return
  }
  func.func @transform_0(%arg0: i32) -> (i32, i32, i32) {
    %c0_i32 = arith.constant 0 : i32
    %c0_i32_0 = arith.constant 0 : i32
    %c0_i32_1 = arith.constant 0 : i32
    return %c0_i32, %c0_i32_0, %arg0 : i32, i32, i32
  }
  func.func @transform_1(%arg0: i32) -> (i32, i32, i32) {
    %c0_i32 = arith.constant 0 : i32
    %c0_i32_0 = arith.constant 0 : i32
    %c0_i32_1 = arith.constant 0 : i32
    %c0_i32_2 = arith.constant 0 : i32
    return %c0_i32, %c0_i32_0, %c0_i32_1 : i32, i32, i32
  }
  func.func @transform_2(%arg0: i32) -> (i32, i32, i32) {
    %c0_i32 = arith.constant 0 : i32
    %c0_i32_0 = arith.constant 0 : i32
    %c0_i32_1 = arith.constant 0 : i32
    %c0_i32_2 = arith.constant 0 : i32
    return %c0_i32, %c0_i32_0, %c0_i32_1 : i32, i32, i32
  }
  func.func @transform_3(%arg0: i32) -> (i32, i32) {
    %c0_i32 = arith.constant 0 : i32
    %c0_i32_0 = arith.constant 0 : i32
    return %c0_i32, %arg0 : i32, i32
  }
}

module attributes {stable_mosaic.version = 11 : i64} {
  func.func @kernel(%arg0: i32, %arg1: memref<96x128xf32, #tpu.memory_space<vmem>>, %arg2: memref<2x96x96xf32, #tpu.memory_space<vmem>>, %arg3: memref<2x96x1xf32, #tpu.memory_space<vmem>>, %arg4: memref<32x128xf32, #tpu.memory_space<vmem>>) attributes {dimension_semantics = [#tpu.dimension_semantics<parallel>], iteration_bounds = array<i64: 1>, scalar_prefetch = 0 : i64, scratch_operands = 0 : i64, tpu.core_type = #tpu.core_type<tc>, window_params = [{transform_indices = @transform_0, window_bounds = array<i64: 96, 128>}, {pipeline_mode = #tpu.pipeline_mode<synchronous>, transform_indices = @transform_1, window_bounds = array<i64: 2, 96, 96>}, {pipeline_mode = #tpu.pipeline_mode<synchronous>, transform_indices = @transform_2, window_bounds = array<i64: 2, 96, 1>}, {transform_indices = @transform_3, window_bounds = array<i64: 32, 128>}]} {
    %c0 = arith.constant 0 : index
    %c0_0 = arith.constant 0 : index
    %0 = vector.load %arg1[%c0, %c0_0] : memref<96x128xf32, #tpu.memory_space<vmem>>, vector<96x128xf32>
    %c0_1 = arith.constant 0 : index
    %c0_2 = arith.constant 0 : index
    %c0_3 = arith.constant 0 : index
    %1 = vector.load %arg2[%c0_1, %c0_2, %c0_3] : memref<2x96x96xf32, #tpu.memory_space<vmem>>, vector<1x96x96xf32>
    %2 = vector.shape_cast %1 : vector<1x96x96xf32> to vector<96x96xf32>
    %cst = arith.constant dense<0.000000e+00> : vector<96x128xf32>
    %3 = tpu.matmul %2, %0, %cst {dimension_numbers = #tpu.dot_dimension_numbers<[1], [0], [0], [1], [0, 0, 1, 1], [], []>} : vector<96x96xf32>, vector<96x128xf32>, vector<96x128xf32> -> vector<96x128xf32>
    %c0_4 = arith.constant 0 : index
    %c0_5 = arith.constant 0 : index
    %c0_6 = arith.constant 0 : index
    %4 = vector.load %arg3[%c0_4, %c0_5, %c0_6] : memref<2x96x1xf32, #tpu.memory_space<vmem>>, vector<1x96x1xf32>
    %5 = vector.shape_cast %4 : vector<1x96x1xf32> to vector<96x1xf32>
    %6 = vector.broadcast %5 : vector<96x1xf32> to vector<96x128xf32>
    %7 = arith.addf %3, %6 : vector<96x128xf32>
    %cst_7 = arith.constant 0.000000e+00 : f32
    %8 = vector.broadcast %cst_7 : f32 to vector<96x128xf32>
    %9 = arith.maximumf %7, %8 : vector<96x128xf32>
    %c1 = arith.constant 1 : index
    %c0_8 = arith.constant 0 : index
    %c0_9 = arith.constant 0 : index
    %10 = vector.load %arg2[%c1, %c0_8, %c0_9] : memref<2x96x96xf32, #tpu.memory_space<vmem>>, vector<1x96x96xf32>
    %11 = vector.shape_cast %10 : vector<1x96x96xf32> to vector<96x96xf32>
    %cst_10 = arith.constant dense<0.000000e+00> : vector<96x128xf32>
    %12 = tpu.matmul %11, %9, %cst_10 {dimension_numbers = #tpu.dot_dimension_numbers<[1], [0], [0], [1], [0, 0, 1, 1], [], []>} : vector<96x96xf32>, vector<96x128xf32>, vector<96x128xf32> -> vector<96x128xf32>
    %c1_11 = arith.constant 1 : index
    %c0_12 = arith.constant 0 : index
    %c0_13 = arith.constant 0 : index
    %13 = vector.load %arg3[%c1_11, %c0_12, %c0_13] : memref<2x96x1xf32, #tpu.memory_space<vmem>>, vector<1x96x1xf32>
    %14 = vector.shape_cast %13 : vector<1x96x1xf32> to vector<96x1xf32>
    %15 = vector.broadcast %14 : vector<96x1xf32> to vector<96x128xf32>
    %16 = arith.addf %12, %15 : vector<96x128xf32>
    %cst_14 = arith.constant 0.000000e+00 : f32
    %17 = vector.broadcast %cst_14 : f32 to vector<96x128xf32>
    %18 = arith.maximumf %16, %17 : vector<96x128xf32>
    %19 = vector.extract_strided_slice %18 {offsets = [0, 0], sizes = [32, 128], strides = [1, 1]} : vector<96x128xf32> to vector<32x128xf32>
    %c0_15 = arith.constant 0 : index
    %c0_16 = arith.constant 0 : index
    %20 = vector.load %arg4[%c0_15, %c0_16] : memref<32x128xf32, #tpu.memory_space<vmem>>, vector<32x128xf32>
    tpu.vector_store %arg4[%c0_15, %c0_16], %19 {strides = array<i32>} : memref<32x128xf32, #tpu.memory_space<vmem>>, vector<32x128xf32>,
    return
  }
  func.func @transform_0(%arg0: i32) -> (i32, i32) {
    %c0_i32 = arith.constant 0 : i32
    %c0_i32_0 = arith.constant 0 : i32
    return %c0_i32, %arg0 : i32, i32
  }
  func.func @transform_1(%arg0: i32) -> (i32, i32, i32) {
    %c0_i32 = arith.constant 0 : i32
    %c0_i32_0 = arith.constant 0 : i32
    %c0_i32_1 = arith.constant 0 : i32
    %c0_i32_2 = arith.constant 0 : i32
    return %c0_i32, %c0_i32_0, %c0_i32_1 : i32, i32, i32
  }
  func.func @transform_2(%arg0: i32) -> (i32, i32, i32) {
    %c0_i32 = arith.constant 0 : i32
    %c0_i32_0 = arith.constant 0 : i32
    %c0_i32_1 = arith.constant 0 : i32
    %c0_i32_2 = arith.constant 0 : i32
    return %c0_i32, %c0_i32_0, %c0_i32_1 : i32, i32, i32
  }
  func.func @transform_3(%arg0: i32) -> (i32, i32) {
    %c0_i32 = arith.constant 0 : i32
    %c0_i32_0 = arith.constant 0 : i32
    return %c0_i32, %arg0 : i32, i32
  }
}

module attributes {stable_mosaic.version = 11 : i64} {
  func.func @_sqdist_kernel(%arg0: i32, %arg1: i32, %arg2: i32, %arg3: memref<1x256x5xf32, #tpu.memory_space<vmem>>, %arg4: memref<1x64x5xf32, #tpu.memory_space<vmem>>, %arg5: memref<1x256x64xf32, #tpu.memory_space<vmem>>) attributes {dimension_semantics = [#tpu.dimension_semantics<parallel>, #tpu.dimension_semantics<parallel>, #tpu.dimension_semantics<parallel>], iteration_bounds = array<i64: 2, 1, 1>, scalar_prefetch = 0 : i64, scratch_operands = 0 : i64, tpu.core_type = #tpu.core_type<tc>, window_params = [{transform_indices = @transform_0, window_bounds = array<i64: 1, 256, 5>}, {transform_indices = @transform_1, window_bounds = array<i64: 1, 64, 5>}, {transform_indices = @transform_2, window_bounds = array<i64: 1, 256, 64>}]} {
    %c0 = arith.constant 0 : index
    %c0_0 = arith.constant 0 : index
    %c0_1 = arith.constant 0 : index
    %0 = vector.load %arg3[%c0, %c0_0, %c0_1] : memref<1x256x5xf32, #tpu.memory_space<vmem>>, vector<1x256x5xf32>
    %1 = vector.shape_cast %0 : vector<1x256x5xf32> to vector<256x5xf32>
    %c0_2 = arith.constant 0 : index
    %c0_3 = arith.constant 0 : index
    %c0_4 = arith.constant 0 : index
    %2 = vector.load %arg4[%c0_2, %c0_3, %c0_4] : memref<1x64x5xf32, #tpu.memory_space<vmem>>, vector<1x64x5xf32>
    %3 = vector.shape_cast %2 : vector<1x64x5xf32> to vector<64x5xf32>
    %cst = arith.constant dense<0.000000e+00> : vector<256x64xf32>
    %4 = tpu.matmul %1, %3, %cst {dimension_numbers = #tpu.dot_dimension_numbers<[1], [1], [0], [0], [0, 0, 1, 0], [], []>} : vector<256x5xf32>, vector<64x5xf32>, vector<256x64xf32> -> vector<256x64xf32>
    %cst_5 = arith.constant 0.000000e+00 : f32
    %5 = vector.broadcast %cst_5 : f32 to vector<256x64xf32>
    %6 = arith.maximumf %4, %5 : vector<256x64xf32>
    %c0_6 = arith.constant 0 : index
    %c0_7 = arith.constant 0 : index
    %c0_8 = arith.constant 0 : index
    %7 = vector.load %arg5[%c0_6, %c0_7, %c0_8] : memref<1x256x64xf32, #tpu.memory_space<vmem>>, vector<1x256x64xf32>
    %8 = vector.shape_cast %7 : vector<1x256x64xf32> to vector<256x64xf32>
    %9 = vector.shape_cast %6 : vector<256x64xf32> to vector<1x256x64xf32>
    tpu.vector_store %arg5[%c0_6, %c0_7, %c0_8], %9 {strides = array<i32>} : memref<1x256x64xf32, #tpu.memory_space<vmem>>, vector<1x256x64xf32>,
    return
  }
  func.func @transform_0(%arg0: i32, %arg1: i32, %arg2: i32) -> (i32, i32, i32) {
    %c0_i32 = arith.constant 0 : i32
    %c0_i32_0 = arith.constant 0 : i32
    return %arg0, %arg1, %c0_i32 : i32, i32, i32
  }
  func.func @transform_1(%arg0: i32, %arg1: i32, %arg2: i32) -> (i32, i32, i32) {
    %c0_i32 = arith.constant 0 : i32
    %c0_i32_0 = arith.constant 0 : i32
    return %arg0, %arg2, %c0_i32 : i32, i32, i32
  }
  func.func @transform_2(%arg0: i32, %arg1: i32, %arg2: i32) -> (i32, i32, i32) {
    %c0_i32 = arith.constant 0 : i32
    return %arg0, %arg1, %arg2 : i32, i32, i32
  }
}

module attributes {stable_mosaic.version = 11 : i64} {
  func.func @kernel(%arg0: i32, %arg1: memref<40x256xf32, #tpu.memory_space<vmem>>, %arg2: memref<2x40x40xf32, #tpu.memory_space<vmem>>, %arg3: memref<2x40x1xf32, #tpu.memory_space<vmem>>, %arg4: memref<32x256xf32, #tpu.memory_space<vmem>>) attributes {dimension_semantics = [#tpu.dimension_semantics<parallel>], iteration_bounds = array<i64: 2>, scalar_prefetch = 0 : i64, scratch_operands = 0 : i64, tpu.core_type = #tpu.core_type<tc>, window_params = [{transform_indices = @transform_0, window_bounds = array<i64: 40, 256>}, {pipeline_mode = #tpu.pipeline_mode<synchronous>, transform_indices = @transform_1, window_bounds = array<i64: 2, 40, 40>}, {pipeline_mode = #tpu.pipeline_mode<synchronous>, transform_indices = @transform_2, window_bounds = array<i64: 2, 40, 1>}, {transform_indices = @transform_3, window_bounds = array<i64: 32, 256>}]} {
    %c0 = arith.constant 0 : index
    %c0_0 = arith.constant 0 : index
    %0 = vector.load %arg1[%c0, %c0_0] : memref<40x256xf32, #tpu.memory_space<vmem>>, vector<40x256xf32>
    %c0_1 = arith.constant 0 : index
    %c0_2 = arith.constant 0 : index
    %c0_3 = arith.constant 0 : index
    %1 = vector.load %arg2[%c0_1, %c0_2, %c0_3] : memref<2x40x40xf32, #tpu.memory_space<vmem>>, vector<1x40x40xf32>
    %2 = vector.shape_cast %1 : vector<1x40x40xf32> to vector<40x40xf32>
    %cst = arith.constant dense<0.000000e+00> : vector<40x256xf32>
    %3 = tpu.matmul %2, %0, %cst {dimension_numbers = #tpu.dot_dimension_numbers<[1], [0], [0], [1], [0, 0, 1, 1], [], []>} : vector<40x40xf32>, vector<40x256xf32>, vector<40x256xf32> -> vector<40x256xf32>
    %c0_4 = arith.constant 0 : index
    %c0_5 = arith.constant 0 : index
    %c0_6 = arith.constant 0 : index
    %4 = vector.load %arg3[%c0_4, %c0_5, %c0_6] : memref<2x40x1xf32, #tpu.memory_space<vmem>>, vector<1x40x1xf32>
    %5 = vector.shape_cast %4 : vector<1x40x1xf32> to vector<40x1xf32>
    %6 = vector.broadcast %5 : vector<40x1xf32> to vector<40x256xf32>
    %7 = arith.addf %3, %6 : vector<40x256xf32>
    %cst_7 = arith.constant 0.000000e+00 : f32
    %8 = vector.broadcast %cst_7 : f32 to vector<40x256xf32>
    %9 = arith.maximumf %7, %8 : vector<40x256xf32>
    %c1 = arith.constant 1 : index
    %c0_8 = arith.constant 0 : index
    %c0_9 = arith.constant 0 : index
    %10 = vector.load %arg2[%c1, %c0_8, %c0_9] : memref<2x40x40xf32, #tpu.memory_space<vmem>>, vector<1x40x40xf32>
    %11 = vector.shape_cast %10 : vector<1x40x40xf32> to vector<40x40xf32>
    %cst_10 = arith.constant dense<0.000000e+00> : vector<40x256xf32>
    %12 = tpu.matmul %11, %9, %cst_10 {dimension_numbers = #tpu.dot_dimension_numbers<[1], [0], [0], [1], [0, 0, 1, 1], [], []>} : vector<40x40xf32>, vector<40x256xf32>, vector<40x256xf32> -> vector<40x256xf32>
    %c1_11 = arith.constant 1 : index
    %c0_12 = arith.constant 0 : index
    %c0_13 = arith.constant 0 : index
    %13 = vector.load %arg3[%c1_11, %c0_12, %c0_13] : memref<2x40x1xf32, #tpu.memory_space<vmem>>, vector<1x40x1xf32>
    %14 = vector.shape_cast %13 : vector<1x40x1xf32> to vector<40x1xf32>
    %15 = vector.broadcast %14 : vector<40x1xf32> to vector<40x256xf32>
    %16 = arith.addf %12, %15 : vector<40x256xf32>
    %cst_14 = arith.constant 0.000000e+00 : f32
    %17 = vector.broadcast %cst_14 : f32 to vector<40x256xf32>
    %18 = arith.maximumf %16, %17 : vector<40x256xf32>
    %19 = vector.extract_strided_slice %18 {offsets = [0, 0], sizes = [32, 256], strides = [1, 1]} : vector<40x256xf32> to vector<32x256xf32>
    %c0_15 = arith.constant 0 : index
    %c0_16 = arith.constant 0 : index
    %20 = vector.load %arg4[%c0_15, %c0_16] : memref<32x256xf32, #tpu.memory_space<vmem>>, vector<32x256xf32>
    tpu.vector_store %arg4[%c0_15, %c0_16], %19 {strides = array<i32>} : memref<32x256xf32, #tpu.memory_space<vmem>>, vector<32x256xf32>,
    return
  }
  func.func @transform_0(%arg0: i32) -> (i32, i32) {
    %c0_i32 = arith.constant 0 : i32
    %c0_i32_0 = arith.constant 0 : i32
    return %c0_i32, %arg0 : i32, i32
  }
  func.func @transform_1(%arg0: i32) -> (i32, i32, i32) {
    %c0_i32 = arith.constant 0 : i32
    %c0_i32_0 = arith.constant 0 : i32
    %c0_i32_1 = arith.constant 0 : i32
    %c0_i32_2 = arith.constant 0 : i32
    return %c0_i32, %c0_i32_0, %c0_i32_1 : i32, i32, i32
  }
  func.func @transform_2(%arg0: i32) -> (i32, i32, i32) {
    %c0_i32 = arith.constant 0 : i32
    %c0_i32_0 = arith.constant 0 : i32
    %c0_i32_1 = arith.constant 0 : i32
    %c0_i32_2 = arith.constant 0 : i32
    return %c0_i32, %c0_i32_0, %c0_i32_1 : i32, i32, i32
  }
  func.func @transform_3(%arg0: i32) -> (i32, i32) {
    %c0_i32 = arith.constant 0 : i32
    %c0_i32_0 = arith.constant 0 : i32
    return %c0_i32, %arg0 : i32, i32
  }
}

</mosaic_0001>

<bundles_post_ra>
// kernel: custom-call.32
= control target key start
LH: loop header
LB: loop body
LE: loop exit
PB: predicated region body
PF: predicated region fallthrough
CT: control target
= control target key end

     0   :  { %s6_s0 = inlined_call_operand.vmem [shape: f32[2,256], index: 0, kind: output, shape index: {}]  }

// kernel: custom-call.33
= control target key start
LH: loop header
LB: loop body
LE: loop exit
PB: predicated region body
PF: predicated region fallthrough
CT: control target
= control target key end

     0   :  { %s6_s0 = inlined_call_operand.vmem [shape: f32[2,64], index: 0, kind: output, shape index: {}]  }

// kernel: forward.10
= control target key start
LH: loop header
LB: loop body
LE: loop exit
PB: predicated region body
PF: predicated region fallthrough
CT: control target
= control target key end

     0   :  { %s518_s9 = smov 0   ;;  %s520_s10 = smov 0   ;;  %s576_s0 = inlined_call_operand.vmem [shape: f32[2,16,5], index: 0, kind: input, shape index: {}]   ;;  %s577_s1 = inlined_call_operand.vmem [shape: f32[2,64,5], index: 1, kind: input, shape index: {}]   ;;  %s578_s2 = inlined_call_operand.vmem [shape: f32[2,16,64], index: 2, kind: output, shape index: {}]  }
   0x1   :  { %s522_s11 = smov 0  }
   0x2 LB: > { %s31_s12 = sadd.s32 1, %s497_s10  ;;  %p425_p0 = scmp.ge.s32.totalorder %s501_s11, 1  ;;  %s501_s11 = sphi %s522_s11, %s12_s11   ;;  %s497_s10 = sphi %s520_s10, %s580_s10   ;;  %s493_s9 = sphi %s518_s9, %s579_s9  }
   0x3   : > { %p33_p1 = scmp.ge.s32.totalorder %s31_s12, 2  ;;  %p159_p2 = scmp.lt.s32.totalorder %s501_s11, 3 }
   0x5   : > { %s582_s12 = smov (%p33_p1, %s31_s12), 0  ;;  %p160_p3 = pnand %p425_p0, %p159_p2 }
   0x6   : > { %p202_p4 = scmp.lt.s32.totalorder (!%p160_p3), %s493_s9, 1 }
   0x7   : > { %163 = sbr.rel (%p160_p3) target bundleno = 177 (0xb1), region = 28 }
   0xc   : > { %s584_s9 = smov (!%p202_p4, %s493_s9), 1  ;;  %vm244_vm0 = vcmask 39936   ;;  %vm300_vm1 = vcmask 523264  }
   0xd   : > { %s445_s13 = sshll.u32 %s584_s9, 6  ;;  %s444_s17 = sshll.u32 %s584_s9, 4 }
   0xe   : > { %s219_s16 = scalar_lea.vmem %s577_s1, %s445_s13  ;;  %s209_s20 = scalar_lea.vmem %s576_s0, %s444_s17 }
   0xf   : > { %v243_v0 = vld [vmem:[%s219_s16 + $0x38] sm:$0xff]  ;;  %v242_v1 = vld [vmem:[%s219_s16 + $0x30] sm:$0xff]  ;;  %v241_v2 = vld [vmem:[%s219_s16 + $0x28] sm:$0xff]  ;;  %s232_s23 = scalar_lea.vmem %s578_s2, %s444_s17 }
  0x10   : > { %432 = vmatpush.xpose.msk.msra.mxu0 %vm244_vm0, %v243_v0  ;;  %447 = vmatpush.xpose.msk.msra.mxu1 %vm244_vm0, %v243_v0  ;;  %v240_v3 = vld [vmem:[%s219_s16 + $0x20] sm:$0xff]  ;;  %v239_v4 = vld [vmem:[%s219_s16 + $0x18] sm:$0xff]  ;;  %v238_v5 = vld [vmem:[%s219_s16 + $0x10] sm:$0xff] }
  0x11   : > { %v237_v6 = vld [vmem:[%s219_s16 + $0x8] sm:$0xff]  ;;  %v236_v7 = vld [vmem:[%s219_s16] sm:$0xff] }
  0x12   : > { %v234_v8 = vld [vmem:[%s209_s20] sm:$0xff]  ;;  %v235_v9 = vld [vmem:[%s209_s20 + $0x8] sm:$0xff] }
  0x14   : > { %433 = vmatpush.xpose.msk.msra.mxu0 %vm244_vm0, %v242_v1  ;;  %448 = vmatpush.xpose.msk.msra.mxu1 %vm244_vm0, %v242_v1 }
  0x18   : > { %434 = vmatpush.xpose.msk.msra.mxu0 %vm244_vm0, %v241_v2  ;;  %449 = vmatpush.xpose.msk.msra.mxu1 %vm244_vm0, %v241_v2 }
  0x1c   : > { %435 = vmatpush.xpose.msk.msra.mxu0 %vm244_vm0, %v240_v3  ;;  %450 = vmatpush.xpose.msk.msra.mxu1 %vm244_vm0, %v240_v3 }
  0x20   : > { %436 = vmatpush.xpose.msk.msra.mxu0 %vm244_vm0, %v239_v4  ;;  %451 = vmatpush.xpose.msk.msra.mxu1 %vm244_vm0, %v239_v4 }
  0x24   : > { %437 = vmatpush.xpose.msk.msra.mxu0 %vm244_vm0, %v238_v5  ;;  %452 = vmatpush.xpose.msk.msra.mxu1 %vm244_vm0, %v238_v5 }
  0x28   : > { %438 = vmatpush.xpose.msk.msra.mxu0 %vm244_vm0, %v237_v6  ;;  %453 = vmatpush.xpose.msk.msra.mxu1 %vm244_vm0, %v237_v6 }
  0x2c   : > { %439 = vmatpush.xpose.msk.msra.mxu0 %vm244_vm0, %v236_v7  ;;  %454 = vmatpush.xpose.msk.msra.mxu1 %vm244_vm0, %v236_v7 }
  0x2f   : > { %440 = vmatmul.msk.f32.vlgmr.msra.gmra.mxu0 %vm244_vm0, %v234_v8  ;;  %441 = vmatmul.msk.f32.vlgmr.msra.gmra.mxu1 %vm244_vm0, %v235_v9 }
  0xac   : > { %v292_v10 = vpop.f32.mrf.mxu0  ;;  %v295_v11 = vpop.f32.mrf.mxu1 }
  0xad   : > { %v298_v12 = vmax.f32 %v292_v10, 0.0  ;;  %v299_v13 = vmax.f32 %v295_v11, 0.0 }
  0xaf   : > { %301 = vst.msk [vmem:[%s232_s23] sm:$0xff] %vm300_vm1, %v298_v12 }
  0xb0   : > { %302 = vst.msk [vmem:[%s232_s23 + $0x8] sm:$0xff] %vm300_vm1, %v299_v13 }
  0xb1 PF: > { %s12_s11 = sadd.s32 1, %s501_s11   ;;  %s579_s9 = smov %s497_s10 }
  0xb2   : > { %p9_p5 = scmp.ge.s32.totalorder %s12_s11, 4   ;;  %s580_s10 = smov %s582_s12 }
  0xb4   :  { %11 = sbr.rel (!%p9_p5) target bundleno = 2 (0x2), region = 61 }

// kernel: forward.8
= control target key start
LH: loop header
LB: loop body
LE: loop exit
PB: predicated region body
PF: predicated region fallthrough
CT: control target
= control target key end

     0   :  { %s800_s9 = smov 0   ;;  %s802_s10 = smov 0   ;;  %s973_s0 = inlined_call_operand.vmem [shape: f32[2,64,5], index: 0, kind: input, shape index: {}]   ;;  %s974_s1 = inlined_call_operand.vmem [shape: f32[2,256,5], index: 1, kind: input, shape index: {}]   ;;  %s975_s2 = inlined_call_operand.vmem [shape: f32[2,64,256], index: 2, kind: output, shape index: {}]  }
   0x1   :  { %s804_s11 = smov 0  }
   0x2 LB: > { %s31_s12 = sadd.s32 1, %s779_s10  ;;  %p645_p0 = scmp.ge.s32.totalorder %s783_s11, 1  ;;  %s783_s11 = sphi %s804_s11, %s12_s11   ;;  %s779_s10 = sphi %s802_s10, %s977_s10   ;;  %s775_s9 = sphi %s800_s9, %s976_s9  }
   0x3   : > { %p33_p1 = scmp.ge.s32.totalorder %s31_s12, 2  ;;  %p159_p2 = scmp.lt.s32.totalorder %s783_s11, 3 }
   0x5   : > { %s979_s12 = smov (%p33_p1, %s31_s12), 0  ;;  %p160_p3 = pnand %p645_p0, %p159_p2 }
   0x6   : > { %p204_p4 = scmp.lt.s32.totalorder (!%p160_p3), %s775_s9, 1 }
   0x7   : > { %163 = sbr.rel (%p160_p3) target bundleno = 239 (0xef), region = 28 }
   0xc   : > { %s981_s9 = smov (!%p204_p4, %s775_s9), 1  ;;  %vm279_vm0 = vcmask 39936  }
   0xd   : > { %s703_s13 = sshll.u32 %s981_s9, 8  ;;  %s702_s17 = sshll.u32 %s981_s9, 6 }
   0xe   : > { %s824_s16 = scalar_lea.vmem %s974_s1, %s703_s13  ;;  %s211_s20 = scalar_lea.vmem %s973_s0, %s702_s17 }
   0xf   : > { %v262_v0 = vld [vmem:[%s824_s16 + $0x78] sm:$0xff]  ;;  %v261_v2 = vld [vmem:[%s824_s16 + $0x70] sm:$0xff]  ;;  %v260_v4 = vld [vmem:[%s824_s16 + $0x68] sm:$0xff]  ;;  %s704_s21 = sshll.u32 %s981_s9, 7 }
  0x10   : > { %v278_v1 = vld [vmem:[%s824_s16 + $0xf8] sm:$0xff]  ;;  %705 = vmatpush.xpose.msk.msra.mxu2 %vm279_vm0, %v262_v0  ;;  %v277_v3 = vld [vmem:[%s824_s16 + $0xf0] sm:$0xff]  ;;  %652 = vmatpush.xpose.msk.msra.mxu0 %vm279_vm0, %v262_v0  ;;  %v276_v5 = vld [vmem:[%s824_s16 + $0xe8] sm:$0xff]  ;;  %s946_s24 = scalar_lea.vmem %s975_s2, %s704_s21 }
  0x11   : > { %721 = vmatpush.xpose.msk.msra.mxu3 %vm279_vm0, %v278_v1  ;;  %676 = vmatpush.xpose.msk.msra.mxu1 %vm279_vm0, %v278_v1  ;;  %v259_v6 = vld [vmem:[%s824_s16 + $0x60] sm:$0xff]  ;;  %v258_v8 = vld [vmem:[%s824_s16 + $0x58] sm:$0xff]  ;;  %v257_v10 = vld [vmem:[%s824_s16 + $0x50] sm:$0xff] }
  0x12   : > { %v275_v7 = vld [vmem:[%s824_s16 + $0xe0] sm:$0xff]  ;;  %v274_v9 = vld [vmem:[%s824_s16 + $0xd8] sm:$0xff]  ;;  %v273_v11 = vld [vmem:[%s824_s16 + $0xd0] sm:$0xff] }
  0x13   : > { %v256_v12 = vld [vmem:[%s824_s16 + $0x48] sm:$0xff]  ;;  %v255_v14 = vld [vmem:[%s824_s16 + $0x40] sm:$0xff]  ;;  %v254_v16 = vld [vmem:[%s824_s16 + $0x38] sm:$0xff] }
  0x14   : > { %706 = vmatpush.xpose.msk.msra.mxu2 %vm279_vm0, %v261_v2  ;;  %653 = vmatpush.xpose.msk.msra.mxu0 %vm279_vm0, %v261_v2  ;;  %v272_v13 = vld [vmem:[%s824_s16 + $0xc8] sm:$0xff]  ;;  %v271_v15 = vld [vmem:[%s824_s16 + $0xc0] sm:$0xff]  ;;  %v270_v17 = vld [vmem:[%s824_s16 + $0xb8] sm:$0xff] }
  0x15   : > { %722 = vmatpush.xpose.msk.msra.mxu3 %vm279_vm0, %v277_v3  ;;  %677 = vmatpush.xpose.msk.msra.mxu1 %vm279_vm0, %v277_v3  ;;  %v253_v18 = vld [vmem:[%s824_s16 + $0x30] sm:$0xff]  ;;  %v252_v20 = vld [vmem:[%s824_s16 + $0x28] sm:$0xff]  ;;  %v251_v22 = vld [vmem:[%s824_s16 + $0x20] sm:$0xff] }
  0x16   : > { %v269_v19 = vld [vmem:[%s824_s16 + $0xb0] sm:$0xff]  ;;  %v268_v21 = vld [vmem:[%s824_s16 + $0xa8] sm:$0xff]  ;;  %v267_v23 = vld [vmem:[%s824_s16 + $0xa0] sm:$0xff] }
  0x17   : > { %v250_v24 = vld [vmem:[%s824_s16 + $0x18] sm:$0xff]  ;;  %v249_v26 = vld [vmem:[%s824_s16 + $0x10] sm:$0xff]  ;;  %v248_v28 = vld [vmem:[%s824_s16 + $0x8] sm:$0xff] }
  0x18   : > { %707 = vmatpush.xpose.msk.msra.mxu2 %vm279_vm0, %v260_v4  ;;  %654 = vmatpush.xpose.msk.msra.mxu0 %vm279_vm0, %v260_v4  ;;  %v266_v25 = vld [vmem:[%s824_s16 + $0x98] sm:$0xff]  ;;  %v265_v27 = vld [vmem:[%s824_s16 + $0x90] sm:$0xff]  ;;  %v264_v29 = vld [vmem:[%s824_s16 + $0x88] sm:$0xff] }
  0x19   : > { %723 = vmatpush.xpose.msk.msra.mxu3 %vm279_vm0, %v276_v5  ;;  %678 = vmatpush.xpose.msk.msra.mxu1 %vm279_vm0, %v276_v5  ;;  %v247_v30 = vld [vmem:[%s824_s16] sm:$0xff]  ;;  %v244_v34 = vld [vmem:[%s211_s20 + $0x28] sm:$0xff]  ;;  %v245_v36 = vld [vmem:[%s211_s20 + $0x30] sm:$0xff] }
  0x1a   : > { %v263_v31 = vld [vmem:[%s824_s16 + $0x80] sm:$0xff]  ;;  %v240_v35 = vld [vmem:[%s211_s20 + $0x8] sm:$0xff]  ;;  %v241_v37 = vld [vmem:[%s211_s20 + $0x10] sm:$0xff] }
  0x1b   : > { %v243_v32 = vld [vmem:[%s211_s20 + $0x20] sm:$0xff]  ;;  %v246_v38 = vld [vmem:[%s211_s20 + $0x38] sm:$0xff] }
  0x1c   : > { %708 = vmatpush.xpose.msk.msra.mxu2 %vm279_vm0, %v259_v6  ;;  %655 = vmatpush.xpose.msk.msra.mxu0 %vm279_vm0, %v259_v6  ;;  %v239_v33 = vld [vmem:[%s211_s20] sm:$0xff]  ;;  %v242_v39 = vld [vmem:[%s211_s20 + $0x18] sm:$0xff] }
  0x1d   : > { %724 = vmatpush.xpose.msk.msra.mxu3 %vm279_vm0, %v275_v7  ;;  %679 = vmatpush.xpose.msk.msra.mxu1 %vm279_vm0, %v275_v7 }
  0x20   : > { %709 = vmatpush.xpose.msk.msra.mxu2 %vm279_vm0, %v258_v8  ;;  %656 = vmatpush.xpose.msk.msra.mxu0 %vm279_vm0, %v258_v8 }
  0x21   : > { %725 = vmatpush.xpose.msk.msra.mxu3 %vm279_vm0, %v274_v9  ;;  %680 = vmatpush.xpose.msk.msra.mxu1 %vm279_vm0, %v274_v9 }
  0x24   : > { %710 = vmatpush.xpose.msk.msra.mxu2 %vm279_vm0, %v257_v10  ;;  %657 = vmatpush.xpose.msk.msra.mxu0 %vm279_vm0, %v257_v10 }
  0x25   : > { %726 = vmatpush.xpose.msk.msra.mxu3 %vm279_vm0, %v273_v11  ;;  %681 = vmatpush.xpose.msk.msra.mxu1 %vm279_vm0, %v273_v11 }
  0x28   : > { %711 = vmatpush.xpose.msk.msra.mxu2 %vm279_vm0, %v256_v12  ;;  %658 = vmatpush.xpose.msk.msra.mxu0 %vm279_vm0, %v256_v12 }
  0x29   : > { %727 = vmatpush.xpose.msk.msra.mxu3 %vm279_vm0, %v272_v13  ;;  %682 = vmatpush.xpose.msk.msra.mxu1 %vm279_vm0, %v272_v13 }
  0x2c   : > { %712 = vmatpush.xpose.msk.msra.mxu2 %vm279_vm0, %v255_v14  ;;  %659 = vmatpush.xpose.msk.msra.mxu0 %vm279_vm0, %v255_v14 }
  0x2d   : > { %728 = vmatpush.xpose.msk.msra.mxu3 %vm279_vm0, %v271_v15  ;;  %683 = vmatpush.xpose.msk.msra.mxu1 %vm279_vm0, %v271_v15 }
  0x30   : > { %713 = vmatpush.xpose.msk.msra.mxu2 %vm279_vm0, %v254_v16  ;;  %660 = vmatpush.xpose.msk.msra.mxu0 %vm279_vm0, %v254_v16 }
  0x31   : > { %729 = vmatpush.xpose.msk.msra.mxu3 %vm279_vm0, %v270_v17  ;;  %684 = vmatpush.xpose.msk.msra.mxu1 %vm279_vm0, %v270_v17 }
  0x34   : > { %714 = vmatpush.xpose.msk.msra.mxu2 %vm279_vm0, %v253_v18  ;;  %661 = vmatpush.xpose.msk.msra.mxu0 %vm279_vm0, %v253_v18 }
  0x35   : > { %730 = vmatpush.xpose.msk.msra.mxu3 %vm279_vm0, %v269_v19  ;;  %685 = vmatpush.xpose.msk.msra.mxu1 %vm279_vm0, %v269_v19 }
  0x38   : > { %715 = vmatpush.xpose.msk.msra.mxu2 %vm279_vm0, %v252_v20  ;;  %662 = vmatpush.xpose.msk.msra.mxu0 %vm279_vm0, %v252_v20 }
  0x39   : > { %731 = vmatpush.xpose.msk.msra.mxu3 %vm279_vm0, %v268_v21  ;;  %686 = vmatpush.xpose.msk.msra.mxu1 %vm279_vm0, %v268_v21 }
  0x3c   : > { %716 = vmatpush.xpose.msk.msra.mxu2 %vm279_vm0, %v251_v22  ;;  %663 = vmatpush.xpose.msk.msra.mxu0 %vm279_vm0, %v251_v22 }
  0x3d   : > { %732 = vmatpush.xpose.msk.msra.mxu3 %vm279_vm0, %v267_v23  ;;  %687 = vmatpush.xpose.msk.msra.mxu1 %vm279_vm0, %v267_v23 }
  0x40   : > { %717 = vmatpush.xpose.msk.msra.mxu2 %vm279_vm0, %v250_v24  ;;  %664 = vmatpush.xpose.msk.msra.mxu0 %vm279_vm0, %v250_v24 }
  0x41   : > { %733 = vmatpush.xpose.msk.msra.mxu3 %vm279_vm0, %v266_v25  ;;  %688 = vmatpush.xpose.msk.msra.mxu1 %vm279_vm0, %v266_v25 }
  0x44   : > { %718 = vmatpush.xpose.msk.msra.mxu2 %vm279_vm0, %v249_v26  ;;  %665 = vmatpush.xpose.msk.msra.mxu0 %vm279_vm0, %v249_v26 }
  0x45   : > { %734 = vmatpush.xpose.msk.msra.mxu3 %vm279_vm0, %v265_v27  ;;  %689 = vmatpush.xpose.msk.msra.mxu1 %vm279_vm0, %v265_v27 }
  0x48   : > { %719 = vmatpush.xpose.msk.msra.mxu2 %vm279_vm0, %v248_v28  ;;  %666 = vmatpush.xpose.msk.msra.mxu0 %vm279_vm0, %v248_v28 }
  0x49   : > { %735 = vmatpush.xpose.msk.msra.mxu3 %vm279_vm0, %v264_v29  ;;  %690 = vmatpush.xpose.msk.msra.mxu1 %vm279_vm0, %v264_v29 }
  0x4c   : > { %720 = vmatpush.xpose.msk.msra.mxu2 %vm279_vm0, %v247_v30  ;;  %667 = vmatpush.xpose.msk.msra.mxu0 %vm279_vm0, %v247_v30 }
  0x4d   : > { %736 = vmatpush.xpose.msk.msra.mxu3 %vm279_vm0, %v263_v31  ;;  %691 = vmatpush.xpose.msk.msra.mxu1 %vm279_vm0, %v263_v31 }
  0x4f   : > { %672 = vmatmul.msk.f32.vlgmr.msra.gmra.mxu2 %vm279_vm0, %v243_v32  ;;  %668 = vmatmul.msk.f32.vlgmr.msra.gmra.mxu0 %vm279_vm0, %v239_v33 }
  0x50   : > { %696 = vmatmul.msk.f32.vlgmr.msra.gmra.mxu3 %vm279_vm0, %v243_v32  ;;  %692 = vmatmul.msk.f32.vlgmr.msra.gmra.mxu1 %vm279_vm0, %v239_v33 }
  0x57   : > { %673 = vmatmul.msk.f32.gmra.mxu2 %vm279_vm0, %v244_v34  ;;  %669 = vmatmul.msk.f32.gmra.mxu0 %vm279_vm0, %v240_v35 }
  0x58   : > { %697 = vmatmul.msk.f32.gmra.mxu3 %vm279_vm0, %v244_v34  ;;  %693 = vmatmul.msk.f32.gmra.mxu1 %vm279_vm0, %v240_v35 }
  0x5f   : > { %674 = vmatmul.msk.f32.gmra.mxu2 %vm279_vm0, %v245_v36  ;;  %670 = vmatmul.msk.f32.gmra.mxu0 %vm279_vm0, %v241_v37 }
  0x60   : > { %698 = vmatmul.msk.f32.gmra.mxu3 %vm279_vm0, %v245_v36  ;;  %694 = vmatmul.msk.f32.gmra.mxu1 %vm279_vm0, %v241_v37 }
  0x67   : > { %675 = vmatmul.msk.f32.gmra.mxu2 %vm279_vm0, %v246_v38  ;;  %671 = vmatmul.msk.f32.gmra.mxu0 %vm279_vm0, %v242_v39 }
  0x68   : > { %699 = vmatmul.msk.f32.gmra.mxu3 %vm279_vm0, %v246_v38  ;;  %695 = vmatmul.msk.f32.gmra.mxu1 %vm279_vm0, %v242_v39 }
  0xcc   : > { %v417_v40 = vpop.f32.mrf.mxu0 }
  0xcd   : > { %v458_v41 = vpop.f32.mrf.mxu1  ;;  %v482_v42 = vmax.f32 %v417_v40, 0.0 }
  0xce   : > { %v483_v43 = vmax.f32 %v458_v41, 0.0 }
  0xcf   : > { %498 = vst [vmem:[%s946_s24] sm:$0xff] %v482_v42 }
  0xd0   : > { %499 = vst [vmem:[%s946_s24 + $0x8] sm:$0xff] %v483_v43 }
  0xd2   : > { %v429_v44 = vpop.f32.mrf.mxu2 }
  0xd3   : > { %v470_v45 = vpop.f32.mrf.mxu3  ;;  %v490_v46 = vmax.f32 %v429_v44, 0.0 }
  0xd4   : > { %v491_v47 = vmax.f32 %v470_v45, 0.0  ;;  %v420_v48 = vpop.f32.mrf.mxu0 }
  0xd5   : > { %506 = vst [vmem:[%s946_s24 + $0x40] sm:$0xff] %v490_v46  ;;  %v461_v49 = vpop.f32.mrf.mxu1  ;;  %v484_v50 = vmax.f32 %v420_v48, 0.0 }
  0xd6   : > { %507 = vst [vmem:[%s946_s24 + $0x48] sm:$0xff] %v491_v47  ;;  %v485_v51 = vmax.f32 %v461_v49, 0.0 }
  0xd7   : > { %500 = vst [vmem:[%s946_s24 + $0x10] sm:$0xff] %v484_v50 }
  0xd8   : > { %501 = vst [vmem:[%s946_s24 + $0x18] sm:$0xff] %v485_v51 }
  0xda   : > { %v432_v52 = vpop.f32.mrf.mxu2 }
  0xdb   : > { %v473_v53 = vpop.f32.mrf.mxu3  ;;  %v492_v54 = vmax.f32 %v432_v52, 0.0 }
  0xdc   : > { %v493_v55 = vmax.f32 %v473_v53, 0.0  ;;  %v423_v56 = vpop.f32.mrf.mxu0 }
  0xdd   : > { %508 = vst [vmem:[%s946_s24 + $0x50] sm:$0xff] %v492_v54  ;;  %v464_v57 = vpop.f32.mrf.mxu1  ;;  %v486_v58 = vmax.f32 %v423_v56, 0.0 }
  0xde   : > { %509 = vst [vmem:[%s946_s24 + $0x58] sm:$0xff] %v493_v55  ;;  %v487_v59 = vmax.f32 %v464_v57, 0.0 }
  0xdf   : > { %502 = vst [vmem:[%s946_s24 + $0x20] sm:$0xff] %v486_v58 }
  0xe0   : > { %503 = vst [vmem:[%s946_s24 + $0x28] sm:$0xff] %v487_v59 }
  0xe2   : > { %v435_v60 = vpop.f32.mrf.mxu2 }
  0xe3   : > { %v476_v61 = vpop.f32.mrf.mxu3  ;;  %v494_v62 = vmax.f32 %v435_v60, 0.0 }
  0xe4   : > { %v495_v63 = vmax.f32 %v476_v61, 0.0  ;;  %v426_v0 = vpop.f32.mrf.mxu0 }
  0xe5   : > { %510 = vst [vmem:[%s946_s24 + $0x60] sm:$0xff] %v494_v62  ;;  %v467_v1 = vpop.f32.mrf.mxu1  ;;  %v488_v2 = vmax.f32 %v426_v0, 0.0 }
  0xe6   : > { %511 = vst [vmem:[%s946_s24 + $0x68] sm:$0xff] %v495_v63  ;;  %v489_v3 = vmax.f32 %v467_v1, 0.0 }
  0xe7   : > { %504 = vst [vmem:[%s946_s24 + $0x30] sm:$0xff] %v488_v2 }
  0xe8   : > { %505 = vst [vmem:[%s946_s24 + $0x38] sm:$0xff] %v489_v3 }
  0xea   : > { %v438_v4 = vpop.f32.mrf.mxu2 }
  0xeb   : > { %v479_v5 = vpop.f32.mrf.mxu3  ;;  %v496_v6 = vmax.f32 %v438_v4, 0.0 }
  0xec   : > { %v497_v7 = vmax.f32 %v479_v5, 0.0 }
  0xed   : > { %512 = vst [vmem:[%s946_s24 + $0x70] sm:$0xff] %v496_v6 }
  0xee   : > { %513 = vst [vmem:[%s946_s24 + $0x78] sm:$0xff] %v497_v7 }
  0xef PF: > { %s12_s11 = sadd.s32 1, %s783_s11   ;;  %s976_s9 = smov %s779_s10 }
  0xf0   : > { %p9_p5 = scmp.ge.s32.totalorder %s12_s11, 4   ;;  %s977_s10 = smov %s979_s12 }
  0xf2   :  { %11 = sbr.rel (!%p9_p5) target bundleno = 2 (0x2), region = 61 }

// kernel: forward.9
= control target key start
LH: loop header
LB: loop body
LE: loop exit
PB: predicated region body
PF: predicated region fallthrough
CT: control target
= control target key end

     0   :  { %v2154_v3 = vmov 0   ;;  %vm66_vm0 = vcmask 261120   ;;  %s3267_s0 = inlined_call_operand.vmem [shape: f32[16,32,128], index: 0, kind: input, shape index: {}]   ;;  %s3268_s2 = inlined_call_operand.vmem [shape: f32[3,32,1], index: 2, kind: input, shape index: {}]   ;;  %s3269_s1 = inlined_call_operand.vmem [shape: f32[3,32,32], index: 1, kind: input, shape index: {}]   ;;  %s3270_s3 = inlined_call_operand.vmem [shape: f32[32,128], index: 3, kind: output, shape index: {}]  }
   0x1   :  { %v45_v0 = vld [vmem:[%s3267_s0 + $0x18] sm:$0xff]  ;;  %v44_v2 = vld [vmem:[%s3267_s0 + $0x10] sm:$0xff]  ;;  %2140 = vset.pattern.permute.xlu1 %v2154_v3  ;;  %2139 = vset.pattern.permute.xlu0 %v2154_v3  ;;  %v43_v5 = vld [vmem:[%s3267_s0 + $0x8] sm:$0xff] }
   0x2   :  { %v1901_v1 = vld [vmem:[%s3267_s0 + $0x38] sm:$0xff]  ;;  %91 = vmatpush.msra.mxu0 %v45_v0  ;;  %v1900_v4 = vld [vmem:[%s3267_s0 + $0x30] sm:$0xff]  ;;  %v1899_v6 = vld [vmem:[%s3267_s0 + $0x28] sm:$0xff]  ;;  %2141 = vset.pattern.permute.xlu2 %v2154_v3 }
   0x3   :  { %259 = vmatpush.msra.mxu3 %v1901_v1  ;;  %v29_v7 = vld [vmem:[%s3268_s2 + $0x8] sm:$0xff]  ;;  %v31_v8 = vld [vmem:[%s3268_s2 + $0x18] sm:$0xff]  ;;  %v42_v9 = vld [vmem:[%s3267_s0] sm:$0xff] }
   0x4   :  { %92 = vmatpush.msra.mxu0 %v44_v2  ;;  %v1898_v10 = vld [vmem:[%s3267_s0 + $0x20] sm:$0xff]  ;;  %53 = vperm.xlu1 %2140, %v29_v7   ;;  %v30_v13 = vld [vmem:[%s3268_s2 + $0x10] sm:$0xff]  ;;  %v2223_v14 = vld [vmem:[%s3269_s1 + $0x8] sm:$0xff] }
   0x5   :  { %260 = vmatpush.msra.mxu3 %v1900_v4  ;;  %63 = vperm.xlu0 %2139, %v31_v8   ;;  %v2208_v11 = vld [vmem:[%s3269_s1] sm:$0xff]  ;;  %v1879_v15 = vld [vmem:[%s3268_s2 + $0x28] sm:$0xff]  ;;  %v2238_v17 = vld [vmem:[%s3269_s1 + $0x10] sm:$0xff] }
   0x6   :  { %93 = vmatpush.msra.mxu0 %v43_v5  ;;  %v28_v12 = vld [vmem:[%s3268_s2] sm:$0xff]  ;;  %v1883_v18 = vld [vmem:[%s3268_s2 + $0x48] sm:$0xff]  ;;  %v1884_v19 = vld [vmem:[%s3268_s2 + $0x50] sm:$0xff] }
   0x7   :  { %261 = vmatpush.msra.mxu3 %v1899_v6  ;;  %v1878_v16 = vld [vmem:[%s3268_s2 + $0x20] sm:$0xff]  ;;  %v2253_v20 = vld [vmem:[%s3269_s1 + $0x18] sm:$0xff]  ;;  %v2288_v51 = vld [vmem:[%s3269_s1 + $0x28] sm:$0xff] }
   0x8   :  { %94 = vmatpush.msra.mxu0 %v42_v9  ;;  %v2277_v45 = vld [vmem:[%s3269_s1 + $0x20] sm:$0xff]  ;;  %v1881_v46 = vld [vmem:[%s3268_s2 + $0x38] sm:$0xff]  ;;  %v1880_v52 = vld [vmem:[%s3268_s2 + $0x30] sm:$0xff] }
   0x9   :  { %262 = vmatpush.msra.mxu3 %v1898_v10  ;;  %1886 = vmatmul.msk.f32.vlgmr.msra.gmra.mxu0 %vm66_vm0, %v2208_v11  ;;  %v2300_v53 = vld [vmem:[%s3269_s1 + $0x30] sm:$0xff]  ;;  %v1882_v54 = vld [vmem:[%s3268_s2 + $0x40] sm:$0xff]  ;;  %v2312_v55 = vld [vmem:[%s3269_s1 + $0x38] sm:$0xff] }
   0xa   :  { %1902 = vmatmul.msk.f32.vlgmr.msra.gmra.mxu3 %vm66_vm0, %v2208_v11  ;;  %129 = vperm.xlu2 %2141, %v1881_v46   ;;  %v1885_v56 = vld [vmem:[%s3268_s2 + $0x58] sm:$0xff] }
   0xc   :  { %48 = vperm.xlu1 %2140, %v28_v12  }
   0xd   :  { %58 = vperm.xlu0 %2139, %v30_v13  }
  0x11   :  { %1887 = vmatmul.msk.f32.gmra.mxu0 %vm66_vm0, %v2223_v14 }
  0x12   :  { %1903 = vmatmul.msk.f32.gmra.mxu3 %vm66_vm0, %v2223_v14  ;;  %124 = vperm.xlu2 %2141, %v1880_v52  }
  0x14   :  { %114 = vperm.xlu1 %2140, %v1878_v16  }
  0x15   :  { %119 = vperm.xlu0 %2139, %v1879_v15  }
  0x19   :  { %1888 = vmatmul.msk.f32.gmra.mxu0 %vm66_vm0, %v2238_v17 }
  0x1a   :  { %1904 = vmatmul.msk.f32.gmra.mxu3 %vm66_vm0, %v2238_v17  ;;  %179 = vperm.xlu2 %2141, %v1882_v54  }
  0x1c   :  { %189 = vperm.xlu1 %2140, %v1884_v19  }
  0x1d   :  { %184 = vperm.xlu0 %2139, %v1883_v18  }
  0x21   :  { %1889 = vmatmul.msk.f32.gmra.mxu0 %vm66_vm0, %v2253_v20 }
  0x22   :  { %1905 = vmatmul.msk.f32.gmra.mxu3 %vm66_vm0, %v2253_v20  ;;  %194 = vperm.xlu2 %2141, %v1885_v56  }
  0x64   :  { %v2323_v60 = vpop.permute.xlu2 %129 }
  0x6c   :  { %v2325_v0 = vpop.permute.xlu2 %124 }
  0x76   :  { %v2261_v26 = vpop.permute.xlu1 %53 }
  0x77   :  { %v2259_v24 = vpop.permute.xlu0 %63 }
  0x7e   :  { %v2267_v33 = vpop.permute.xlu1 %48 }
  0x7f   :  { %v2263_v29 = vpop.permute.xlu0 %58 }
  0x86   :  { %v96_v21 = vpop.f32.mrf.mxu0  ;;  %v2332_v7 = vpop.permute.xlu1 %114 }
  0x87   :  { %v97_v37 = vadd.f32 %v96_v21, %v2267_v33  ;;  %v2329_v4 = vpop.permute.xlu0 %119  ;;  %v2341_v21 = vld [vmem:[%s3269_s1 + $0x40] sm:$0xff] }
  0x89   :  { %v108_v43 = vmax.f32 %v97_v37, 0.0  ;;  %v1931_v37 = vld [vmem:[%s3267_s0 + $0x68] sm:$0xff] }
  0x8d   :  { %v264_v22 = vpop.f32.mrf.mxu3 }
  0x8e   :  { %v99_v23 = vpop.f32.mrf.mxu0  ;;  %v265_v47 = vadd.f32 %v264_v22, %v2267_v33  ;;  %v1917_v22 = vld [vmem:[%s3267_s0 + $0x58] sm:$0xff] }
  0x8f   :  { %v100_v34 = vadd.f32 %v99_v23, %v2261_v26 }
  0x90   :  { %v276_v50 = vmax.f32 %v265_v47, 0.0 }
  0x91   :  { %v109_v41 = vmax.f32 %v100_v34, 0.0  ;;  %v1933_v34 = vld [vmem:[%s3267_s0 + $0x78] sm:$0xff] }
  0x95   :  { %v267_v25 = vpop.f32.mrf.mxu3 }
  0x96   :  { %v102_v27 = vpop.f32.mrf.mxu0  ;;  %v268_v42 = vadd.f32 %v267_v25, %v2261_v26 }
  0x97   :  { %v103_v31 = vadd.f32 %v102_v27, %v2263_v29  ;;  %v1916_v27 = vld [vmem:[%s3267_s0 + $0x50] sm:$0xff] }
  0x98   :  { %v277_v49 = vmax.f32 %v268_v42, 0.0 }
  0x99   :  { %v110_v36 = vmax.f32 %v103_v31, 0.0 }
  0x9d   :  { %v270_v28 = vpop.f32.mrf.mxu3 }
  0x9e   :  { %v105_v30 = vpop.f32.mrf.mxu0  ;;  %v271_v39 = vadd.f32 %v270_v28, %v2263_v29 }
  0x9f   :  { %v106_v32 = vadd.f32 %v105_v30, %v2259_v24  ;;  %v1915_v30 = vld [vmem:[%s3267_s0 + $0x48] sm:$0xff] }
  0xa0   :  { %v278_v48 = vmax.f32 %v271_v39, 0.0  ;;  %v2382_v39 = vld [vmem:[%s3269_s1 + $0x50] sm:$0xff] }
  0xa1   :  { %v111_v35 = vmax.f32 %v106_v32, 0.0  ;;  %v1914_v32 = vld [vmem:[%s3267_s0 + $0x40] sm:$0xff] }
  0xa3   :  { %156 = vmatpush.msra.mxu1 %v111_v35  ;;  %v2364_v35 = vld [vmem:[%s3269_s1 + $0x48] sm:$0xff] }
  0xa5   :  { %v273_v38 = vpop.f32.mrf.mxu3  ;;  %157 = vmatpush.msra.mxu1 %v110_v36  ;;  %v1932_v36 = vld [vmem:[%s3267_s0 + $0x70] sm:$0xff] }
  0xa6   :  { %v274_v40 = vadd.f32 %v273_v38, %v2259_v24  ;;  %v1930_v38 = vld [vmem:[%s3267_s0 + $0x60] sm:$0xff] }
  0xa7   :  { %158 = vmatpush.msra.mxu1 %v109_v41 }
  0xa8   :  { %v279_v44 = vmax.f32 %v274_v40, 0.0  ;;  %v2391_v40 = vld [vmem:[%s3269_s1 + $0x58] sm:$0xff] }
  0xa9   :  { %159 = vmatpush.msra.mxu1 %v108_v43 }
  0xaa   :  { %292 = vmatpush.msrb.mxu0 %v279_v44  ;;  %1890 = vmatmul.msk.f32.vlgmr.msra.gmra.mxu1 %vm66_vm0, %v2277_v45 }
  0xac   :  { %293 = vmatpush.msrb.mxu0 %v278_v48 }
  0xae   :  { %294 = vmatpush.msrb.mxu0 %v277_v49 }
  0xb0   :  { %295 = vmatpush.msrb.mxu0 %v276_v50 }
  0xb1   :  { %1906 = vmatmul.msk.f32.vlgmr.msrb.gmra.mxu0 %vm66_vm0, %v2277_v45 }
  0xb2   :  { %1891 = vmatmul.msk.f32.gmra.mxu1 %vm66_vm0, %v2288_v51 }
  0xb9   :  { %1907 = vmatmul.msk.f32.gmra.mxu0 %vm66_vm0, %v2288_v51 }
  0xba   :  { %1892 = vmatmul.msk.f32.gmra.mxu1 %vm66_vm0, %v2300_v53 }
  0xc1   :  { %1908 = vmatmul.msk.f32.gmra.mxu0 %vm66_vm0, %v2300_v53 }
  0xc2   :  { %1893 = vmatmul.msk.f32.gmra.mxu1 %vm66_vm0, %v2312_v55 }
  0xc9   :  { %1909 = vmatmul.msk.f32.gmra.mxu0 %vm66_vm0, %v2312_v55 }
 0x127   :  { %v161_v57 = vpop.f32.mrf.mxu1 }
 0x128   :  { %v162_v8 = vadd.f32 %v161_v57, %v2332_v7 }
 0x12a   :  { %v173_v18 = vmax.f32 %v162_v8, 0.0 }
 0x12e   :  { %v297_v58 = vpop.f32.mrf.mxu0 }
 0x12f   :  { %v164_v59 = vpop.f32.mrf.mxu1  ;;  %v298_v23 = vadd.f32 %v297_v58, %v2332_v7 }
 0x130   :  { %v165_v5 = vadd.f32 %v164_v59, %v2329_v4 }
 0x131   :  { %v309_v31 = vmax.f32 %v298_v23, 0.0 }
 0x132   :  { %v174_v15 = vmax.f32 %v165_v5, 0.0 }
 0x136   :  { %v300_v61 = vpop.f32.mrf.mxu0 }
 0x137   :  { %v167_v62 = vpop.f32.mrf.mxu1  ;;  %v301_v16 = vadd.f32 %v300_v61, %v2329_v4 }
 0x138   :  { %v168_v2 = vadd.f32 %v167_v62, %v2325_v0 }
 0x139   :  { %v310_v28 = vmax.f32 %v301_v16, 0.0 }
 0x13a   :  { %v175_v9 = vmax.f32 %v168_v2, 0.0 }
 0x13e   :  { %v303_v63 = vpop.f32.mrf.mxu0 }
 0x13f   :  { %v170_v1 = vpop.f32.mrf.mxu1  ;;  %v304_v12 = vadd.f32 %v303_v63, %v2325_v0 }
 0x140   :  { %v171_v3 = vadd.f32 %v170_v1, %v2323_v60 }
 0x141   :  { %v311_v25 = vmax.f32 %v304_v12, 0.0 }
 0x142   :  { %v176_v6 = vmax.f32 %v171_v3, 0.0 }
 0x144   :  { %221 = vmatpush.msra.mxu2 %v176_v6 }
 0x146   :  { %v306_v10 = vpop.f32.mrf.mxu0  ;;  %222 = vmatpush.msra.mxu2 %v175_v9 }
 0x147   :  { %v307_v13 = vadd.f32 %v306_v10, %v2323_v60 }
 0x148   :  { %223 = vmatpush.msra.mxu2 %v174_v15 }
 0x149   :  { %v312_v19 = vmax.f32 %v307_v13, 0.0 }
 0x14a   :  { %224 = vmatpush.msra.mxu2 %v173_v18 }
 0x14b   :  { %325 = vmatpush.msrb.mxu1 %v312_v19  ;;  %1894 = vmatmul.msk.f32.vlgmr.msra.gmra.mxu2 %vm66_vm0, %v2341_v21 }
 0x14c   :  { %367 = vmatpush.msrb.mxu2 %v1917_v22 }
 0x14d   :  { %326 = vmatpush.msrb.mxu1 %v311_v25 }
 0x14e   :  { %368 = vmatpush.msrb.mxu2 %v1916_v27 }
 0x14f   :  { %327 = vmatpush.msrb.mxu1 %v310_v28 }
 0x150   :  { %369 = vmatpush.msrb.mxu2 %v1915_v30 }
 0x151   :  { %328 = vmatpush.msrb.mxu1 %v309_v31 }
 0x152   :  { %1910 = vmatmul.msk.f32.vlgmr.msrb.gmra.mxu1 %vm66_vm0, %v2341_v21  ;;  %370 = vmatpush.msrb.mxu2 %v1914_v32 }
 0x153   :  { %475 = vmatpush.msra.mxu1 %v1933_v34  ;;  %1895 = vmatmul.msk.f32.gmra.mxu2 %vm66_vm0, %v2364_v35 }
 0x155   :  { %476 = vmatpush.msra.mxu1 %v1932_v36 }
 0x157   :  { %477 = vmatpush.msra.mxu1 %v1931_v37 }
 0x159   :  { %478 = vmatpush.msra.mxu1 %v1930_v38 }
 0x15a   :  { %1911 = vmatmul.msk.f32.gmra.mxu1 %vm66_vm0, %v2364_v35 }
 0x15b   :  { %1896 = vmatmul.msk.f32.gmra.mxu2 %vm66_vm0, %v2382_v39 }
 0x162   :  { %1912 = vmatmul.msk.f32.gmra.mxu1 %vm66_vm0, %v2382_v39 }
 0x163   :  { %1897 = vmatmul.msk.f32.gmra.mxu2 %vm66_vm0, %v2391_v40 }
 0x16a   :  { %1913 = vmatmul.msk.f32.gmra.mxu1 %vm66_vm0, %v2391_v40 }
 0x16b   :  { %1918 = vmatmul.msk.f32.vlgmr.msrb.gmra.mxu2 %vm66_vm0, %v2208_v11 }
 0x172   :  { %1934 = vmatmul.msk.f32.vlgmr.msra.gmra.mxu1 %vm66_vm0, %v2208_v11 }
 0x173   :  { %1919 = vmatmul.msk.f32.gmra.mxu2 %vm66_vm0, %v2223_v14 }
 0x17a   :  { %1935 = vmatmul.msk.f32.gmra.mxu1 %vm66_vm0, %v2223_v14 }
 0x17b   :  { %1920 = vmatmul.msk.f32.gmra.mxu2 %vm66_vm0, %v2238_v17 }
 0x182   :  { %1936 = vmatmul.msk.f32.gmra.mxu1 %vm66_vm0, %v2238_v17 }
 0x183   :  { %1921 = vmatmul.msk.f32.gmra.mxu2 %vm66_vm0, %v2253_v20 }
 0x18a   :  { %1937 = vmatmul.msk.f32.gmra.mxu1 %vm66_vm0, %v2253_v20 }
 0x1ce   :  { %v2415_v41 = vpop.f32.mrf.mxu2 }
 0x1cf   :  { %v2417_v42 = vpop.f32.mrf.mxu1 }
 0x1d6   :  { %v2419_v43 = vpop.f32.mrf.mxu2 }
 0x1d7   :  { %v2421_v44 = vpop.f32.mrf.mxu1 }
 0x1de   :  { %v2423_v46 = vpop.f32.mrf.mxu2 }
 0x1df   :  { %v2425_v47 = vpop.f32.mrf.mxu1 }
 0x1e6   :  { %v2427_v48 = vpop.f32.mrf.mxu2 }
 0x1e7   :  { %v2429_v49 = vpop.f32.mrf.mxu1 }
 0x1ee   :  { %v372_v50 = vpop.f32.mrf.mxu2 }
 0x1ef   :  { %v480_v52 = vpop.f32.mrf.mxu1  ;;  %v373_v9 = vadd.f32 %v372_v50, %v2267_v33 }
 0x1f0   :  { %v481_v10 = vadd.f32 %v480_v52, %v2267_v33 }
 0x1f1   :  { %v384_v19 = vmax.f32 %v373_v9, 0.0  ;;  %v1947_v9 = vld [vmem:[%s3267_s0 + $0x88] sm:$0xff] }
 0x1f2   :  { %v492_v18 = vmax.f32 %v481_v10, 0.0  ;;  %v1963_v10 = vld [vmem:[%s3267_s0 + $0xa8] sm:$0xff] }
 0x1f6   :  { %v375_v54 = vpop.f32.mrf.mxu2 }
 0x1f7   :  { %v483_v56 = vpop.f32.mrf.mxu1  ;;  %v376_v3 = vadd.f32 %v375_v54, %v2261_v26 }
 0x1f8   :  { %v484_v5 = vadd.f32 %v483_v56, %v2261_v26 }
 0x1f9   :  { %v385_v16 = vmax.f32 %v376_v3, 0.0  ;;  %v1949_v3 = vld [vmem:[%s3267_s0 + $0x98] sm:$0xff] }
 0x1fa   :  { %v493_v15 = vmax.f32 %v484_v5, 0.0  ;;  %v1965_v5 = vld [vmem:[%s3267_s0 + $0xb8] sm:$0xff] }
 0x1fe   :  { %v378_v57 = vpop.f32.mrf.mxu2 }
 0x1ff   :  { %v486_v58 = vpop.f32.mrf.mxu1  ;;  %v379_v62 = vadd.f32 %v378_v57, %v2263_v29 }
 0x200   :  { %v487_v63 = vadd.f32 %v486_v58, %v2263_v29 }
 0x201   :  { %v386_v13 = vmax.f32 %v379_v62, 0.0 }
 0x202   :  { %v494_v12 = vmax.f32 %v487_v63, 0.0 }
 0x206   :  { %v381_v59 = vpop.f32.mrf.mxu2 }
 0x207   :  { %v489_v61 = vpop.f32.mrf.mxu1  ;;  %v382_v1 = vadd.f32 %v381_v59, %v2259_v24 }
 0x208   :  { %v490_v2 = vadd.f32 %v489_v61, %v2259_v24 }
 0x209   :  { %v387_v8 = vmax.f32 %v382_v1, 0.0 }
 0x20a   :  { %v495_v6 = vmax.f32 %v490_v2, 0.0 }
 0x20b   :  { %400 = vmatpush.msrb.mxu3 %v387_v8  ;;  %v1964_v8 = vld [vmem:[%s3267_s0 + $0xb0] sm:$0xff] }
 0x20c   :  { %508 = vmatpush.msra.mxu2 %v495_v6  ;;  %v1948_v6 = vld [vmem:[%s3267_s0 + $0x90] sm:$0xff] }
 0x20d   :  { %401 = vmatpush.msrb.mxu3 %v386_v13  ;;  %v1962_v13 = vld [vmem:[%s3267_s0 + $0xa0] sm:$0xff] }
 0x20e   :  { %509 = vmatpush.msra.mxu2 %v494_v12  ;;  %v1946_v12 = vld [vmem:[%s3267_s0 + $0x80] sm:$0xff] }
 0x20f   :  { %402 = vmatpush.msrb.mxu3 %v385_v16 }
 0x210   :  { %510 = vmatpush.msra.mxu2 %v493_v15 }
 0x211   :  { %403 = vmatpush.msrb.mxu3 %v384_v19 }
 0x212   :  { %511 = vmatpush.msra.mxu2 %v492_v18  ;;  %1922 = vmatmul.msk.f32.vlgmr.msrb.gmra.mxu3 %vm66_vm0, %v2277_v45 }
 0x213   :  { %1938 = vmatmul.msk.f32.vlgmr.msra.gmra.mxu2 %vm66_vm0, %v2277_v45 }
 0x21a   :  { %1923 = vmatmul.msk.f32.gmra.mxu3 %vm66_vm0, %v2288_v51 }
 0x21b   :  { %1939 = vmatmul.msk.f32.gmra.mxu2 %vm66_vm0, %v2288_v51 }
 0x222   :  { %1924 = vmatmul.msk.f32.gmra.mxu3 %vm66_vm0, %v2300_v53 }
 0x223   :  { %1940 = vmatmul.msk.f32.gmra.mxu2 %vm66_vm0, %v2300_v53 }
 0x22a   :  { %1925 = vmatmul.msk.f32.gmra.mxu3 %vm66_vm0, %v2312_v55 }
 0x22b   :  { %1941 = vmatmul.msk.f32.gmra.mxu2 %vm66_vm0, %v2312_v55 }
 0x295   :  { %v405_v22 = vpop.f32.mrf.mxu3 }
 0x296   :  { %v513_v23 = vpop.f32.mrf.mxu2  ;;  %v406_v57 = vadd.f32 %v405_v22, %v2332_v7 }
 0x297   :  { %v514_v58 = vadd.f32 %v513_v23, %v2332_v7 }
 0x298   :  { %v417_v1 = vmax.f32 %v406_v57, 0.0 }
 0x299   :  { %v525_v2 = vmax.f32 %v514_v58, 0.0 }
 0x29d   :  { %v408_v25 = vpop.f32.mrf.mxu3 }
 0x29e   :  { %v516_v27 = vpop.f32.mrf.mxu2  ;;  %v409_v50 = vadd.f32 %v408_v25, %v2329_v4 }
 0x29f   :  { %v517_v52 = vadd.f32 %v516_v27, %v2329_v4 }
 0x2a0   :  { %v418_v62 = vmax.f32 %v409_v50, 0.0 }
 0x2a1   :  { %v526_v63 = vmax.f32 %v517_v52, 0.0 }
 0x2a5   :  { %v411_v28 = vpop.f32.mrf.mxu3 }
 0x2a6   :  { %v519_v30 = vpop.f32.mrf.mxu2  ;;  %v412_v34 = vadd.f32 %v411_v28, %v2325_v0 }
 0x2a7   :  { %v520_v36 = vadd.f32 %v519_v30, %v2325_v0 }
 0x2a8   :  { %v419_v59 = vmax.f32 %v412_v34, 0.0 }
 0x2a9   :  { %v527_v61 = vmax.f32 %v520_v36, 0.0 }
 0x2ad   :  { %v414_v31 = vpop.f32.mrf.mxu3 }
 0x2ae   :  { %v522_v32 = vpop.f32.mrf.mxu2  ;;  %v415_v37 = vadd.f32 %v414_v31, %v2323_v60 }
 0x2af   :  { %v523_v38 = vadd.f32 %v522_v32, %v2323_v60 }
 0x2b0   :  { %v420_v54 = vmax.f32 %v415_v37, 0.0 }
 0x2b1   :  { %v528_v56 = vmax.f32 %v523_v38, 0.0 }
 0x2b2   :  { %433 = vmatpush.msra.mxu0 %v420_v54 }
 0x2b3   :  { %541 = vmatpush.msra.mxu3 %v528_v56 }
 0x2b4   :  { %434 = vmatpush.msra.mxu0 %v419_v59 }
 0x2b5   :  { %542 = vmatpush.msra.mxu3 %v527_v61 }
 0x2b6   :  { %435 = vmatpush.msra.mxu0 %v418_v62 }
 0x2b7   :  { %543 = vmatpush.msra.mxu3 %v526_v63 }
 0x2b8   :  { %436 = vmatpush.msra.mxu0 %v417_v1 }
 0x2b9   :  { %544 = vmatpush.msra.mxu3 %v525_v2  ;;  %1926 = vmatmul.msk.f32.vlgmr.msra.gmra.mxu0 %vm66_vm0, %v2341_v21 }
 0x2ba   :  { %1942 = vmatmul.msk.f32.vlgmr.msra.gmra.mxu3 %vm66_vm0, %v2341_v21  ;;  %583 = vmatpush.msrb.mxu0 %v1949_v3 }
 0x2bb   :  { %691 = vmatpush.msrb.mxu3 %v1965_v5 }
 0x2bc   :  { %584 = vmatpush.msrb.mxu0 %v1948_v6 }
 0x2bd   :  { %692 = vmatpush.msrb.mxu3 %v1964_v8 }
 0x2be   :  { %585 = vmatpush.msrb.mxu0 %v1947_v9 }
 0x2bf   :  { %693 = vmatpush.msrb.mxu3 %v1963_v10 }
 0x2c0   :  { %586 = vmatpush.msrb.mxu0 %v1946_v12 }
 0x2c1   :  { %694 = vmatpush.msrb.mxu3 %v1962_v13  ;;  %1927 = vmatmul.msk.f32.gmra.mxu0 %vm66_vm0, %v2364_v35 }
 0x2c2   :  { %1943 = vmatmul.msk.f32.gmra.mxu3 %vm66_vm0, %v2364_v35 }
 0x2c9   :  { %1928 = vmatmul.msk.f32.gmra.mxu0 %vm66_vm0, %v2382_v39 }
 0x2ca   :  { %1944 = vmatmul.msk.f32.gmra.mxu3 %vm66_vm0, %v2382_v39 }
 0x2d1   :  { %1929 = vmatmul.msk.f32.gmra.mxu0 %vm66_vm0, %v2391_v40 }
 0x2d2   :  { %1945 = vmatmul.msk.f32.gmra.mxu3 %vm66_vm0, %v2391_v40 }
 0x2d9   :  { %1950 = vmatmul.msk.f32.vlgmr.msrb.gmra.mxu0 %vm66_vm0, %v2208_v11 }
 0x2da   :  { %1966 = vmatmul.msk.f32.vlgmr.msrb.gmra.mxu3 %vm66_vm0, %v2208_v11 }
 0x2e1   :  { %1951 = vmatmul.msk.f32.gmra.mxu0 %vm66_vm0, %v2223_v14 }
 0x2e2   :  { %1967 = vmatmul.msk.f32.gmra.mxu3 %vm66_vm0, %v2223_v14 }
 0x2e9   :  { %1952 = vmatmul.msk.f32.gmra.mxu0 %vm66_vm0, %v2238_v17 }
 0x2ea   :  { %1968 = vmatmul.msk.f32.gmra.mxu3 %vm66_vm0, %v2238_v17 }
 0x2f1   :  { %1953 = vmatmul.msk.f32.gmra.mxu0 %vm66_vm0, %v2253_v20 }
 0x2f2   :  { %1969 = vmatmul.msk.f32.gmra.mxu3 %vm66_vm0, %v2253_v20 }
 0x336   :  { %v2519_v15 = vpop.f32.mrf.mxu0 }
 0x33d   :  { %v2521_v16 = vpop.f32.mrf.mxu3 }
 0x33e   :  { %v2523_v18 = vpop.f32.mrf.mxu0 }
 0x345   :  { %v2525_v19 = vpop.f32.mrf.mxu3 }
 0x346   :  { %v2527_v22 = vpop.f32.mrf.mxu0 }
 0x34d   :  { %v2529_v23 = vpop.f32.mrf.mxu3 }
 0x34e   :  { %v2531_v25 = vpop.f32.mrf.mxu0 }
 0x355   :  { %v2533_v27 = vpop.f32.mrf.mxu3 }
 0x356   :  { %v588_v28 = vpop.f32.mrf.mxu0 }
 0x357   :  { %v589_v56 = vadd.f32 %v588_v28, %v2267_v33 }
 0x359   :  { %v600_v63 = vmax.f32 %v589_v56, 0.0 }
 0x35d   :  { %v696_v30 = vpop.f32.mrf.mxu3 }
 0x35e   :  { %v591_v31 = vpop.f32.mrf.mxu0  ;;  %v697_v3 = vadd.f32 %v696_v30, %v2267_v33 }
 0x35f   :  { %v592_v52 = vadd.f32 %v591_v31, %v2261_v26 }
 0x360   :  { %v708_v8 = vmax.f32 %v697_v3, 0.0 }
 0x361   :  { %v601_v59 = vmax.f32 %v592_v52, 0.0 }
 0x365   :  { %v699_v32 = vpop.f32.mrf.mxu3 }
 0x366   :  { %v594_v34 = vpop.f32.mrf.mxu0  ;;  %v700_v1 = vadd.f32 %v699_v32, %v2261_v26 }
 0x367   :  { %v595_v38 = vadd.f32 %v594_v34, %v2263_v29 }
 0x368   :  { %v709_v6 = vmax.f32 %v700_v1, 0.0 }
 0x369   :  { %v602_v57 = vmax.f32 %v595_v38, 0.0 }
 0x36d   :  { %v702_v36 = vpop.f32.mrf.mxu3 }
 0x36e   :  { %v597_v37 = vpop.f32.mrf.mxu0  ;;  %v703_v61 = vadd.f32 %v702_v36, %v2263_v29 }
 0x36f   :  { %v598_v50 = vadd.f32 %v597_v37, %v2259_v24 }
 0x370   :  { %v710_v5 = vmax.f32 %v703_v61, 0.0 }
 0x371   :  { %v603_v54 = vmax.f32 %v598_v50, 0.0 }
 0x373   :  { %616 = vmatpush.msrb.mxu1 %v603_v54 }
 0x375   :  { %v705_v58 = vpop.f32.mrf.mxu3  ;;  %617 = vmatpush.msrb.mxu1 %v602_v57 }
 0x376   :  { %v706_v62 = vadd.f32 %v705_v58, %v2259_v24 }
 0x377   :  { %618 = vmatpush.msrb.mxu1 %v601_v59 }
 0x378   :  { %v711_v2 = vmax.f32 %v706_v62, 0.0  ;;  %v1981_v62 = vld [vmem:[%s3267_s0 + $0xd8] sm:$0xff] }
 0x379   :  { %619 = vmatpush.msrb.mxu1 %v600_v63 }
 0x37a   :  { %724 = vmatpush.msra.mxu0 %v711_v2  ;;  %1954 = vmatmul.msk.f32.vlgmr.msrb.gmra.mxu1 %vm66_vm0, %v2277_v45  ;;  %v1980_v2 = vld [vmem:[%s3267_s0 + $0xd0] sm:$0xff] }
 0x37c   :  { %725 = vmatpush.msra.mxu0 %v710_v5  ;;  %v1979_v5 = vld [vmem:[%s3267_s0 + $0xc8] sm:$0xff] }
 0x37e   :  { %726 = vmatpush.msra.mxu0 %v709_v6 }
 0x380   :  { %727 = vmatpush.msra.mxu0 %v708_v8  ;;  %v1978_v8 = vld [vmem:[%s3267_s0 + $0xc0] sm:$0xff] }
 0x381   :  { %1970 = vmatmul.msk.f32.vlgmr.msra.gmra.mxu0 %vm66_vm0, %v2277_v45 }
 0x382   :  { %1955 = vmatmul.msk.f32.gmra.mxu1 %vm66_vm0, %v2288_v51 }
 0x389   :  { %1971 = vmatmul.msk.f32.gmra.mxu0 %vm66_vm0, %v2288_v51 }
 0x38a   :  { %1956 = vmatmul.msk.f32.gmra.mxu1 %vm66_vm0, %v2300_v53 }
 0x391   :  { %1972 = vmatmul.msk.f32.gmra.mxu0 %vm66_vm0, %v2300_v53 }
 0x392   :  { %1957 = vmatmul.msk.f32.gmra.mxu1 %vm66_vm0, %v2312_v55 }
 0x399   :  { %1973 = vmatmul.msk.f32.gmra.mxu0 %vm66_vm0, %v2312_v55 }
 0x3f7   :  { %v621_v9 = vpop.f32.mrf.mxu1 }
 0x3f8   :  { %v622_v38 = vadd.f32 %v621_v9, %v2332_v7  ;;  %v1997_v9 = vld [vmem:[%s3267_s0 + $0xf8] sm:$0xff] }
 0x3fa   :  { %v633_v58 = vmax.f32 %v622_v38, 0.0 }
 0x3fe   :  { %v729_v10 = vpop.f32.mrf.mxu0 }
 0x3ff   :  { %v624_v12 = vpop.f32.mrf.mxu1  ;;  %v730_v63 = vadd.f32 %v729_v10, %v2332_v7  ;;  %v1996_v10 = vld [vmem:[%s3267_s0 + $0xf0] sm:$0xff] }
 0x400   :  { %v625_v36 = vadd.f32 %v624_v12, %v2329_v4  ;;  %v1995_v12 = vld [vmem:[%s3267_s0 + $0xe8] sm:$0xff] }
 0x401   :  { %v741_v6 = vmax.f32 %v730_v63, 0.0 }
 0x402   :  { %v634_v54 = vmax.f32 %v625_v36, 0.0 }
 0x406   :  { %v732_v13 = vpop.f32.mrf.mxu0 }
 0x407   :  { %v627_v28 = vpop.f32.mrf.mxu1  ;;  %v733_v59 = vadd.f32 %v732_v13, %v2329_v4  ;;  %v1994_v13 = vld [vmem:[%s3267_s0 + $0xe0] sm:$0xff] }
 0x408   :  { %v628_v32 = vadd.f32 %v627_v28, %v2325_v0 }
 0x409   :  { %v742_v3 = vmax.f32 %v733_v59, 0.0 }
 0x40a   :  { %v635_v50 = vmax.f32 %v628_v32, 0.0 }
 0x40e   :  { %v735_v30 = vpop.f32.mrf.mxu0 }
 0x40f   :  { %v630_v31 = vpop.f32.mrf.mxu1  ;;  %v736_v56 = vadd.f32 %v735_v30, %v2325_v0 }
 0x410   :  { %v631_v34 = vadd.f32 %v630_v31, %v2323_v60 }
 0x411   :  { %v743_v1 = vmax.f32 %v736_v56, 0.0 }
 0x412   :  { %v636_v37 = vmax.f32 %v631_v34, 0.0 }
 0x414   :  { %649 = vmatpush.msrb.mxu2 %v636_v37 }
 0x416   :  { %v738_v52 = vpop.f32.mrf.mxu0  ;;  %650 = vmatpush.msrb.mxu2 %v635_v50 }
 0x417   :  { %v739_v57 = vadd.f32 %v738_v52, %v2323_v60 }
 0x418   :  { %651 = vmatpush.msrb.mxu2 %v634_v54 }
 0x419   :  { %v744_v61 = vmax.f32 %v739_v57, 0.0 }
 0x41a   :  { %652 = vmatpush.msrb.mxu2 %v633_v58 }
 0x41b   :  { %757 = vmatpush.msra.mxu1 %v744_v61  ;;  %1958 = vmatmul.msk.f32.vlgmr.msrb.gmra.mxu2 %vm66_vm0, %v2341_v21 }
 0x41c   :  { %799 = vmatpush.msra.mxu2 %v1981_v62 }
 0x41d   :  { %758 = vmatpush.msra.mxu1 %v743_v1 }
 0x41e   :  { %800 = vmatpush.msra.mxu2 %v1980_v2 }
 0x41f   :  { %759 = vmatpush.msra.mxu1 %v742_v3 }
 0x420   :  { %801 = vmatpush.msra.mxu2 %v1979_v5 }
 0x421   :  { %760 = vmatpush.msra.mxu1 %v741_v6 }
 0x422   :  { %1974 = vmatmul.msk.f32.vlgmr.msra.gmra.mxu1 %vm66_vm0, %v2341_v21  ;;  %802 = vmatpush.msra.mxu2 %v1978_v8 }
 0x423   :  { %907 = vmatpush.msrb.mxu1 %v1997_v9  ;;  %1959 = vmatmul.msk.f32.gmra.mxu2 %vm66_vm0, %v2364_v35 }
 0x425   :  { %908 = vmatpush.msrb.mxu1 %v1996_v10 }
 0x427   :  { %909 = vmatpush.msrb.mxu1 %v1995_v12 }
 0x429   :  { %910 = vmatpush.msrb.mxu1 %v1994_v13 }
 0x42a   :  { %1975 = vmatmul.msk.f32.gmra.mxu1 %vm66_vm0, %v2364_v35 }
 0x42b   :  { %1960 = vmatmul.msk.f32.gmra.mxu2 %vm66_vm0, %v2382_v39 }
 0x432   :  { %1976 = vmatmul.msk.f32.gmra.mxu1 %vm66_vm0, %v2382_v39 }
 0x433   :  { %1961 = vmatmul.msk.f32.gmra.mxu2 %vm66_vm0, %v2391_v40 }
 0x43a   :  { %1977 = vmatmul.msk.f32.gmra.mxu1 %vm66_vm0, %v2391_v40 }
 0x43b   :  { %1982 = vmatmul.msk.f32.vlgmr.msra.gmra.mxu2 %vm66_vm0, %v2208_v11 }
 0x442   :  { %1998 = vmatmul.msk.f32.vlgmr.msrb.gmra.mxu1 %vm66_vm0, %v2208_v11 }
 0x443   :  { %1983 = vmatmul.msk.f32.gmra.mxu2 %vm66_vm0, %v2223_v14 }
 0x44a   :  { %1999 = vmatmul.msk.f32.gmra.mxu1 %vm66_vm0, %v2223_v14 }
 0x44b   :  { %1984 = vmatmul.msk.f32.gmra.mxu2 %vm66_vm0, %v2238_v17 }
 0x452   :  { %2000 = vmatmul.msk.f32.gmra.mxu1 %vm66_vm0, %v2238_v17 }
 0x453   :  { %1985 = vmatmul.msk.f32.gmra.mxu2 %vm66_vm0, %v2253_v20 }
 0x45a   :  { %2001 = vmatmul.msk.f32.gmra.mxu1 %vm66_vm0, %v2253_v20 }
 0x49e   :  { %v2623_v28 = vpop.f32.mrf.mxu2 }
 0x49f   :  { %v2625_v30 = vpop.f32.mrf.mxu1 }
 0x4a6   :  { %v2627_v31 = vpop.f32.mrf.mxu2 }
 0x4a7   :  { %v2629_v32 = vpop.f32.mrf.mxu1 }
 0x4ae   :  { %v2631_v34 = vpop.f32.mrf.mxu2 }
 0x4af   :  { %v2633_v36 = vpop.f32.mrf.mxu1 }
 0x4b6   :  { %v2635_v37 = vpop.f32.mrf.mxu2 }
 0x4b7   :  { %v2637_v38 = vpop.f32.mrf.mxu1 }
 0x4b8   :  { %3271 = vst [vmem:[#allocation2_spill] sm:$0xff] %v2637_v38 }
 0x4be   :  { %v804_v50 = vpop.f32.mrf.mxu2 }
 0x4bf   :  { %v912_v52 = vpop.f32.mrf.mxu1  ;;  %v805_v9 = vadd.f32 %v804_v50, %v2267_v33 }
 0x4c0   :  { %v913_v10 = vadd.f32 %v912_v52, %v2267_v33 }
 0x4c6   :  { %v807_v54 = vpop.f32.mrf.mxu2 }
 0x4c7   :  { %v915_v56 = vpop.f32.mrf.mxu1  ;;  %v808_v3 = vadd.f32 %v807_v54, %v2261_v26 }
 0x4c8   :  { %v916_v5 = vadd.f32 %v915_v56, %v2261_v26 }
 0x4ce   :  { %v810_v57 = vpop.f32.mrf.mxu2 }
 0x4cf   :  { %v918_v58 = vpop.f32.mrf.mxu1  ;;  %v811_v62 = vadd.f32 %v810_v57, %v2263_v29  ;;  %v817_v57 = vmax.f32 %v808_v3, 0.0 }
 0x4d0   :  { %v919_v63 = vadd.f32 %v918_v58, %v2263_v29  ;;  %v925_v58 = vmax.f32 %v916_v5, 0.0 }
 0x4d1   :  { %v818_v12 = vmax.f32 %v811_v62, 0.0 }
 0x4d2   :  { %v926_v13 = vmax.f32 %v919_v63, 0.0 }
 0x4d6   :  { %v813_v59 = vpop.f32.mrf.mxu2 }
 0x4d7   :  { %v921_v61 = vpop.f32.mrf.mxu1  ;;  %v814_v1 = vadd.f32 %v813_v59, %v2259_v24  ;;  %v816_v59 = vmax.f32 %v805_v9, 0.0 }
 0x4d8   :  { %v922_v2 = vadd.f32 %v921_v61, %v2259_v24  ;;  %v924_v61 = vmax.f32 %v913_v10, 0.0 }
 0x4d9   :  { %v819_v6 = vmax.f32 %v814_v1, 0.0 }
 0x4da   :  { %v927_v8 = vmax.f32 %v922_v2, 0.0 }
 0x4db   :  { %832 = vmatpush.msra.mxu3 %v819_v6 }
 0x4dc   :  { %940 = vmatpush.msrb.mxu2 %v927_v8 }
 0x4dd   :  { %833 = vmatpush.msra.mxu3 %v818_v12 }
 0x4de   :  { %941 = vmatpush.msrb.mxu2 %v926_v13 }
 0x4df   :  { %834 = vmatpush.msra.mxu3 %v817_v57 }
 0x4e0   :  { %942 = vmatpush.msrb.mxu2 %v925_v58 }
 0x4e1   :  { %835 = vmatpush.msra.mxu3 %v816_v59 }
 0x4e2   :  { %943 = vmatpush.msrb.mxu2 %v924_v61  ;;  %1986 = vmatmul.msk.f32.vlgmr.msra.gmra.mxu3 %vm66_vm0, %v2277_v45 }
 0x4e3   :  { %2002 = vmatmul.msk.f32.vlgmr.msrb.gmra.mxu2 %vm66_vm0, %v2277_v45 }
 0x4ea   :  { %1987 = vmatmul.msk.f32.gmra.mxu3 %vm66_vm0, %v2288_v51 }
 0x4eb   :  { %2003 = vmatmul.msk.f32.gmra.mxu2 %vm66_vm0, %v2288_v51 }
 0x4f2   :  { %1988 = vmatmul.msk.f32.gmra.mxu3 %vm66_vm0, %v2300_v53 }
 0x4f3   :  { %2004 = vmatmul.msk.f32.gmra.mxu2 %vm66_vm0, %v2300_v53 }
 0x4fa   :  { %1989 = vmatmul.msk.f32.gmra.mxu3 %vm66_vm0, %v2312_v55 }
 0x4fb   :  { %2005 = vmatmul.msk.f32.gmra.mxu2 %vm66_vm0, %v2312_v55 }
 0x565   :  { %v837_v50 = vpop.f32.mrf.mxu3 }
 0x566   :  { %v945_v52 = vpop.f32.mrf.mxu2  ;;  %v838_v57 = vadd.f32 %v837_v50, %v2332_v7  ;;  %v2029_v50 = vld [vmem:[%s3267_s0 + $0x138] sm:$0xff] }
 0x567   :  { %v946_v58 = vadd.f32 %v945_v52, %v2332_v7  ;;  %v2012_v52 = vld [vmem:[%s3267_s0 + $0x110] sm:$0xff] }
 0x56d   :  { %v840_v54 = vpop.f32.mrf.mxu3 }
 0x56e   :  { %v948_v56 = vpop.f32.mrf.mxu2  ;;  %v841_v9 = vadd.f32 %v840_v54, %v2329_v4  ;;  %v2013_v54 = vld [vmem:[%s3267_s0 + $0x118] sm:$0xff] }
 0x56f   :  { %v949_v10 = vadd.f32 %v948_v56, %v2329_v4  ;;  %v2028_v56 = vld [vmem:[%s3267_s0 + $0x130] sm:$0xff] }
 0x575   :  { %v843_v62 = vpop.f32.mrf.mxu3 }
 0x576   :  { %v951_v63 = vpop.f32.mrf.mxu2  ;;  %v844_v3 = vadd.f32 %v843_v62, %v2325_v0  ;;  %v850_v62 = vmax.f32 %v841_v9, 0.0 }
 0x577   :  { %v952_v5 = vadd.f32 %v951_v63, %v2325_v0  ;;  %v958_v63 = vmax.f32 %v949_v10, 0.0 }
 0x578   :  { %v851_v59 = vmax.f32 %v844_v3, 0.0  ;;  %v2011_v3 = vld [vmem:[%s3267_s0 + $0x108] sm:$0xff] }
 0x579   :  { %v959_v61 = vmax.f32 %v952_v5, 0.0  ;;  %v2027_v5 = vld [vmem:[%s3267_s0 + $0x128] sm:$0xff] }
 0x57d   :  { %v846_v1 = vpop.f32.mrf.mxu3 }
 0x57e   :  { %v954_v2 = vpop.f32.mrf.mxu2  ;;  %v847_v6 = vadd.f32 %v846_v1, %v2323_v60  ;;  %v849_v1 = vmax.f32 %v838_v57, 0.0 }
 0x57f   :  { %v955_v8 = vadd.f32 %v954_v2, %v2323_v60  ;;  %v957_v2 = vmax.f32 %v946_v58, 0.0 }
 0x580   :  { %v852_v12 = vmax.f32 %v847_v6, 0.0  ;;  %v2010_v6 = vld [vmem:[%s3267_s0 + $0x100] sm:$0xff] }
 0x581   :  { %v960_v13 = vmax.f32 %v955_v8, 0.0  ;;  %v2026_v8 = vld [vmem:[%s3267_s0 + $0x120] sm:$0xff] }
 0x582   :  { %865 = vmatpush.msrb.mxu0 %v852_v12 }
 0x583   :  { %973 = vmatpush.msrb.mxu3 %v960_v13 }
 0x584   :  { %866 = vmatpush.msrb.mxu0 %v851_v59 }
 0x585   :  { %974 = vmatpush.msrb.mxu3 %v959_v61 }
 0x586   :  { %867 = vmatpush.msrb.mxu0 %v850_v62 }
 0x587   :  { %975 = vmatpush.msrb.mxu3 %v958_v63 }
 0x588   :  { %868 = vmatpush.msrb.mxu0 %v849_v1 }
 0x589   :  { %976 = vmatpush.msrb.mxu3 %v957_v2  ;;  %1990 = vmatmul.msk.f32.vlgmr.msrb.gmra.mxu0 %vm66_vm0, %v2341_v21 }
 0x58a   :  { %2006 = vmatmul.msk.f32.vlgmr.msrb.gmra.mxu3 %vm66_vm0, %v2341_v21  ;;  %1015 = vmatpush.msra.mxu0 %v2013_v54 }
 0x58b   :  { %1123 = vmatpush.msra.mxu3 %v2029_v50 }
 0x58c   :  { %1016 = vmatpush.msra.mxu0 %v2012_v52 }
 0x58d   :  { %1124 = vmatpush.msra.mxu3 %v2028_v56 }
 0x58e   :  { %1017 = vmatpush.msra.mxu0 %v2011_v3 }
 0x58f   :  { %1125 = vmatpush.msra.mxu3 %v2027_v5 }
 0x590   :  { %1018 = vmatpush.msra.mxu0 %v2010_v6 }
 0x591   :  { %1126 = vmatpush.msra.mxu3 %v2026_v8  ;;  %1991 = vmatmul.msk.f32.gmra.mxu0 %vm66_vm0, %v2364_v35 }
 0x592   :  { %2007 = vmatmul.msk.f32.gmra.mxu3 %vm66_vm0, %v2364_v35 }
 0x599   :  { %1992 = vmatmul.msk.f32.gmra.mxu0 %vm66_vm0, %v2382_v39 }
 0x59a   :  { %2008 = vmatmul.msk.f32.gmra.mxu3 %vm66_vm0, %v2382_v39 }
 0x5a1   :  { %1993 = vmatmul.msk.f32.gmra.mxu0 %vm66_vm0, %v2391_v40 }
 0x5a2   :  { %2009 = vmatmul.msk.f32.gmra.mxu3 %vm66_vm0, %v2391_v40 }
 0x5a9   :  { %2014 = vmatmul.msk.f32.vlgmr.msra.gmra.mxu0 %vm66_vm0, %v2208_v11 }
 0x5aa   :  { %2030 = vmatmul.msk.f32.vlgmr.msra.gmra.mxu3 %vm66_vm0, %v2208_v11 }
 0x5b1   :  { %2015 = vmatmul.msk.f32.gmra.mxu0 %vm66_vm0, %v2223_v14 }
 0x5b2   :  { %2031 = vmatmul.msk.f32.gmra.mxu3 %vm66_vm0, %v2223_v14 }
 0x5b9   :  { %2016 = vmatmul.msk.f32.gmra.mxu0 %vm66_vm0, %v2238_v17 }
 0x5ba   :  { %2032 = vmatmul.msk.f32.gmra.mxu3 %vm66_vm0, %v2238_v17 }
 0x5c1   :  { %2017 = vmatmul.msk.f32.gmra.mxu0 %vm66_vm0, %v2253_v20 }
 0x5c2   :  { %2033 = vmatmul.msk.f32.gmra.mxu3 %vm66_vm0, %v2253_v20 }
 0x606   :  { %v2727_v9 = vpop.f32.mrf.mxu0 }
 0x60d   :  { %v2729_v11 = vpop.f32.mrf.mxu3 }
 0x60e   :  { %v2731_v10 = vpop.f32.mrf.mxu0 }
 0x615   :  { %v2733_v12 = vpop.f32.mrf.mxu3 }
 0x616   :  { %v2735_v14 = vpop.f32.mrf.mxu0 }
 0x61d   :  { %v2737_v13 = vpop.f32.mrf.mxu3 }
 0x61e   :  { %v2739_v57 = vpop.f32.mrf.mxu0 }
 0x61f   :  { %3272 = vst [vmem:[#allocation3_spill] sm:$0xff] %v2739_v57 }
 0x625   :  { %v2741_v17 = vpop.f32.mrf.mxu3 }
 0x626   :  { %3273 = vst [vmem:[#allocation4_spill] sm:$0xff] %v2741_v17  ;;  %v1020_v58 = vpop.f32.mrf.mxu0 }
 0x627   :  { %v1021_v56 = vadd.f32 %v1020_v58, %v2267_v33 }
 0x629   :  { %v1032_v57 = vmax.f32 %v1021_v56, 0.0 }
 0x62d   :  { %v1128_v59 = vpop.f32.mrf.mxu3 }
 0x62e   :  { %v1023_v61 = vpop.f32.mrf.mxu0 }
 0x62f   :  { %v1024_v50 = vadd.f32 %v1023_v61, %v2261_v26 }
 0x631   :  { %v1033_v6 = vmax.f32 %v1024_v50, 0.0 }
 0x635   :  { %v1131_v20 = vpop.f32.mrf.mxu3 }
 0x636   :  { %v1026_v62 = vpop.f32.mrf.mxu0  ;;  %v1132_v38 = vadd.f32 %v1131_v20, %v2261_v26 }
 0x637   :  { %v1027_v2 = vadd.f32 %v1026_v62, %v2263_v29 }
 0x638   :  { %v1141_v58 = vmax.f32 %v1132_v38, 0.0 }
 0x639   :  { %v1034_v3 = vmax.f32 %v1027_v2, 0.0 }
 0x63d   :  { %v1134_v63 = vpop.f32.mrf.mxu3 }
 0x63e   :  { %v1029_v1 = vpop.f32.mrf.mxu0  ;;  %v1135_v8 = vadd.f32 %v1134_v63, %v2263_v29 }
 0x63f   :  { %v1030_v54 = vadd.f32 %v1029_v1, %v2259_v24  ;;  %v1129_v1 = vadd.f32 %v1128_v59, %v2267_v33 }
 0x640   :  { %v1142_v61 = vmax.f32 %v1135_v8, 0.0 }
 0x641   :  { %v1035_v52 = vmax.f32 %v1030_v54, 0.0  ;;  %v1140_v2 = vmax.f32 %v1129_v1, 0.0 }
 0x643   :  { %1048 = vmatpush.msra.mxu1 %v1035_v52 }
 0x645   :  { %v1137_v5 = vpop.f32.mrf.mxu3  ;;  %1049 = vmatpush.msra.mxu1 %v1034_v3 }
 0x646   :  { %v1138_v17 = vadd.f32 %v1137_v5, %v2259_v24 }
 0x647   :  { %1050 = vmatpush.msra.mxu1 %v1033_v6 }
 0x648   :  { %v1143_v62 = vmax.f32 %v1138_v17, 0.0 }
 0x649   :  { %1051 = vmatpush.msra.mxu1 %v1032_v57 }
 0x64a   :  { %1156 = vmatpush.msrb.mxu0 %v1143_v62  ;;  %2018 = vmatmul.msk.f32.vlgmr.msra.gmra.mxu1 %vm66_vm0, %v2277_v45 }
 0x64c   :  { %1157 = vmatpush.msrb.mxu0 %v1142_v61  ;;  %v2045_v61 = vld [vmem:[%s3267_s0 + $0x158] sm:$0xff] }
 0x64e   :  { %1158 = vmatpush.msrb.mxu0 %v1141_v58 }
 0x650   :  { %1159 = vmatpush.msrb.mxu0 %v1140_v2 }
 0x651   :  { %2034 = vmatmul.msk.f32.vlgmr.msrb.gmra.mxu0 %vm66_vm0, %v2277_v45 }
 0x652   :  { %2019 = vmatmul.msk.f32.gmra.mxu1 %vm66_vm0, %v2288_v51 }
 0x659   :  { %2035 = vmatmul.msk.f32.gmra.mxu0 %vm66_vm0, %v2288_v51 }
 0x65a   :  { %2020 = vmatmul.msk.f32.gmra.mxu1 %vm66_vm0, %v2300_v53 }
 0x661   :  { %2036 = vmatmul.msk.f32.gmra.mxu0 %vm66_vm0, %v2300_v53 }
 0x662   :  { %2021 = vmatmul.msk.f32.gmra.mxu1 %vm66_vm0, %v2312_v55 }
 0x669   :  { %2037 = vmatmul.msk.f32.gmra.mxu0 %vm66_vm0, %v2312_v55 }
 0x6c7   :  { %v1053_v38 = vpop.f32.mrf.mxu1 }
 0x6c8   :  { %v1054_v52 = vadd.f32 %v1053_v38, %v2332_v7  ;;  %v2044_v38 = vld [vmem:[%s3267_s0 + $0x150] sm:$0xff] }
 0x6ca   :  { %v1065_v8 = vmax.f32 %v1054_v52, 0.0 }
 0x6ce   :  { %v1161_v45 = vpop.f32.mrf.mxu0 }
 0x6cf   :  { %v1056_v57 = vpop.f32.mrf.mxu1  ;;  %v1162_v58 = vadd.f32 %v1161_v45, %v2332_v7  ;;  %v2042_v45 = vld [vmem:[%s3267_s0 + $0x140] sm:$0xff] }
 0x6d0   :  { %v1057_v50 = vadd.f32 %v1056_v57, %v2329_v4 }
 0x6d2   :  { %v1066_v55 = vmax.f32 %v1057_v50, 0.0  ;;  %v2851_v50 = vpop.permute.xlu2 %179 }
 0x6d3   :  { %v331_v52 = vadd.f32 %v2417_v42, %v2851_v50 }
 0x6d6   :  { %v1164_v17 = vpop.f32.mrf.mxu0 }
 0x6d7   :  { %v1059_v59 = vpop.f32.mrf.mxu1  ;;  %v1165_v62 = vadd.f32 %v1164_v17, %v2329_v4  ;;  %v2043_v17 = vld [vmem:[%s3267_s0 + $0x148] sm:$0xff] }
 0x6d8   :  { %v1060_v51 = vadd.f32 %v1059_v59, %v2325_v0  ;;  %v1173_v59 = vmax.f32 %v1162_v58, 0.0 }
 0x6d9   :  { %v1174_v57 = vmax.f32 %v1165_v62, 0.0  ;;  %v655_v62 = vadd.f32 %v2623_v28, %v2851_v50  ;;  %v763_v28 = vadd.f32 %v2625_v30, %v2851_v50 }
 0x6da   :  { %v1067_v56 = vmax.f32 %v1060_v51, 0.0  ;;  %v2059_v51 = vld [vmem:[%s3267_s0 + $0x168] sm:$0xff] }
 0x6de   :  { %v1167_v20 = vpop.f32.mrf.mxu0 }
 0x6df   :  { %v1062_v63 = vpop.f32.mrf.mxu1  ;;  %v1168_v5 = vadd.f32 %v1167_v20, %v2325_v0  ;;  %v2061_v20 = vld [vmem:[%s3267_s0 + $0x178] sm:$0xff] }
 0x6e0   :  { %v1063_v54 = vadd.f32 %v1062_v63, %v2323_v60  ;;  %v2060_v63 = vld [vmem:[%s3267_s0 + $0x170] sm:$0xff] }
 0x6e1   :  { %v1175_v2 = vmax.f32 %v1168_v5, 0.0  ;;  %v547_v5 = vadd.f32 %v2521_v16, %v2851_v50 }
 0x6e2   :  { %v1068_v53 = vmax.f32 %v1063_v54, 0.0  ;;  %v2058_v54 = vld [vmem:[%s3267_s0 + $0x160] sm:$0xff] }
 0x6e4   :  { %1081 = vmatpush.msra.mxu2 %v1068_v53  ;;  %v227_v53 = vadd.f32 %v2415_v41, %v2851_v50 }
 0x6e6   :  { %v1170_v3 = vpop.f32.mrf.mxu0  ;;  %1082 = vmatpush.msra.mxu2 %v1067_v56  ;;  %v439_v56 = vadd.f32 %v2519_v15, %v2851_v50 }
 0x6e7   :  { %v1171_v6 = vadd.f32 %v1170_v3, %v2323_v60  ;;  %v238_v3 = vmax.f32 %v227_v53, 0.0 }
 0x6e8   :  { %1083 = vmatpush.msra.mxu2 %v1066_v55  ;;  %v342_v55 = vmax.f32 %v331_v52, 0.0 }
 0x6e9   :  { %v1176_v1 = vmax.f32 %v1171_v6, 0.0  ;;  %v2861_v6 = vpop.permute.xlu0 %184 }
 0x6ea   :  { %1084 = vmatpush.msra.mxu2 %v1065_v8  ;;  %v450_v8 = vmax.f32 %v439_v56, 0.0  ;;  %v230_v41 = vadd.f32 %v2419_v43, %v2861_v6  ;;  %v334_v42 = vadd.f32 %v2421_v44, %v2861_v6  ;;  %v442_v15 = vadd.f32 %v2523_v18, %v2861_v6  ;;  %v2877_v44 = vpop.permute.xlu1 %189 }
 0x6eb   :  { %1189 = vmatpush.msrb.mxu1 %v1176_v1  ;;  %2022 = vmatmul.msk.f32.vlgmr.msra.gmra.mxu2 %vm66_vm0, %v2341_v21  ;;  %v346_v1 = vmax.f32 %v238_v3, %v342_v55  ;;  %v871_v43 = vadd.f32 %v2727_v9, %v2851_v50  ;;  %v233_v18 = vadd.f32 %v2423_v46, %v2877_v44 }
 0x6ec   :  { %1231 = vmatpush.msrb.mxu2 %v2045_v61  ;;  %v558_v61 = vmax.f32 %v547_v5, 0.0  ;;  %v239_v16 = vmax.f32 %v230_v41, 0.0  ;;  %v337_v30 = vadd.f32 %v2425_v47, %v2877_v44  ;;  %v445_v52 = vadd.f32 %v2527_v22, %v2877_v44  ;;  %v2893_v41 = vpop.permute.xlu2 %194 }
 0x6ed   :  { %1190 = vmatpush.msrb.mxu1 %v1175_v2  ;;  %v454_v58 = vmax.f32 %v346_v1, %v450_v8  ;;  %v666_v2 = vmax.f32 %v655_v62, 0.0  ;;  %v882_v9 = vmax.f32 %v871_v43, 0.0  ;;  %v240_v56 = vmax.f32 %v233_v18, 0.0 }
 0x6ee   :  { %1232 = vmatpush.msrb.mxu2 %v2044_v38  ;;  %v343_v38 = vmax.f32 %v334_v42, 0.0  ;;  %v344_v5 = vmax.f32 %v337_v30, 0.0  ;;  %v766_v8 = vadd.f32 %v2629_v32, %v2861_v6  ;;  %v874_v22 = vadd.f32 %v2731_v10, %v2861_v6 }
 0x6ef   :  { %1191 = vmatpush.msrb.mxu1 %v1174_v57  ;;  %v550_v57 = vadd.f32 %v2525_v19, %v2861_v6  ;;  %v979_v19 = vadd.f32 %v2729_v11, %v2851_v50  ;;  %v553_v11 = vadd.f32 %v2529_v23, %v2877_v44  ;;  %v661_v23 = vadd.f32 %v2631_v34, %v2877_v44 }
 0x6f0   :  { %1233 = vmatpush.msrb.mxu2 %v2043_v17  ;;  %v562_v17 = vmax.f32 %v454_v58, %v558_v61  ;;  %v452_v58 = vmax.f32 %v445_v52, 0.0  ;;  %v340_v10 = vadd.f32 %v2429_v49, %v2893_v41  ;;  %v883_v43 = vmax.f32 %v874_v22, 0.0 }
 0x6f1   :  { %1192 = vmatpush.msrb.mxu1 %v1173_v59  ;;  %v451_v59 = vmax.f32 %v442_v15, 0.0  ;;  %v990_v55 = vmax.f32 %v979_v19, 0.0  ;;  %v236_v15 = vadd.f32 %v2427_v48, %v2893_v41  ;;  %v668_v34 = vmax.f32 %v661_v23, 0.0 }
 0x6f2   :  { %2038 = vmatmul.msk.f32.vlgmr.msrb.gmra.mxu1 %vm66_vm0, %v2341_v21  ;;  %1234 = vmatpush.msrb.mxu2 %v2042_v45  ;;  %v2818_v21 = vld [vmem:[%s3269_s1] sm:$0xff]  ;;  %v670_v45 = vmax.f32 %v562_v17, %v666_v2  ;;  %v560_v17 = vmax.f32 %v553_v11, 0.0  ;;  %v556_v49 = vadd.f32 %v2533_v27, %v2893_v41  ;;  %v985_v27 = vadd.f32 %v2737_v13, %v2877_v44 }
 0x6f3   :  { %1339 = vmatpush.msra.mxu1 %v2061_v20  ;;  %2023 = vmatmul.msk.f32.gmra.mxu2 %vm66_vm0, %v2364_v35  ;;  %v658_v20 = vadd.f32 %v2627_v31, %v2861_v6 }
 0x6f5   :  { %1340 = vmatpush.msra.mxu1 %v2060_v63  ;;  %v347_v63 = vmax.f32 %v239_v16, %v343_v38  ;;  %v667_v3 = vmax.f32 %v658_v20, 0.0  ;;  %v982_v16 = vadd.f32 %v2733_v12, %v2861_v6  ;;  %v241_v20 = vmax.f32 %v236_v15, 0.0 }
 0x6f6   :  { %v345_v12 = vmax.f32 %v340_v10, 0.0  ;;  %v992_v15 = vmax.f32 %v985_v27, 0.0 }
 0x6f7   :  { %1341 = vmatpush.msra.mxu1 %v2059_v51  ;;  %v559_v51 = vmax.f32 %v550_v57, 0.0  ;;  %v455_v53 = vmax.f32 %v347_v63, %v451_v59  ;;  %v348_v57 = vmax.f32 %v240_v56, %v344_v5  ;;  %v991_v63 = vmax.f32 %v982_v16, 0.0 }
 0x6f8   :  { %v664_v5 = vadd.f32 %v2635_v37, %v2893_v41  ;;  %v349_v11 = vmax.f32 %v241_v20, %v345_v12  ;;  %v3274_v37 = vld [vmem:[#allocation2_spill] sm:$0xff] }
 0x6f9   :  { %1342 = vmatpush.msra.mxu1 %v2058_v54  ;;  %v774_v54 = vmax.f32 %v763_v28, 0.0  ;;  %v563_v31 = vmax.f32 %v455_v53, %v559_v51  ;;  %v775_v28 = vmax.f32 %v766_v8, 0.0  ;;  %v456_v48 = vmax.f32 %v348_v57, %v452_v58 }
 0x6fa   :  { %2039 = vmatmul.msk.f32.gmra.mxu1 %vm66_vm0, %v2364_v35  ;;  %v2827_v35 = vld [vmem:[%s3269_s1 + $0x8] sm:$0xff]  ;;  %v561_v8 = vmax.f32 %v556_v49, 0.0 }
 0x6fb   :  { %2024 = vmatmul.msk.f32.gmra.mxu2 %vm66_vm0, %v2382_v39  ;;  %v778_v46 = vmax.f32 %v670_v45, %v774_v54  ;;  %v671_v32 = vmax.f32 %v563_v31, %v667_v3  ;;  %v448_v45 = vadd.f32 %v2531_v25, %v2893_v41  ;;  %v564_v51 = vmax.f32 %v456_v48, %v560_v17 }
 0x6fc   :  { %v769_v54 = vadd.f32 %v2633_v36, %v2877_v44  ;;  %v877_v25 = vadd.f32 %v2735_v14, %v2877_v44 }
 0x6fd   :  { %v886_v42 = vmax.f32 %v778_v46, %v882_v9  ;;  %v779_v19 = vmax.f32 %v671_v32, %v775_v28  ;;  %v453_v3 = vmax.f32 %v448_v45, 0.0  ;;  %v772_v32 = vadd.f32 %v3274_v37, %v2893_v41 }
 0x6ff   :  { %v994_v2 = vmax.f32 %v886_v42, %v990_v55  ;;  %v887_v52 = vmax.f32 %v779_v19, %v883_v43  ;;  %v672_v55 = vmax.f32 %v564_v51, %v668_v34  ;;  %v457_v22 = vmax.f32 %v349_v11, %v453_v3 }
 0x700   :  { %v777_v45 = vmax.f32 %v772_v32, 0.0 }
 0x701   :  { %v995_v31 = vmax.f32 %v887_v52, %v991_v63  ;;  %v565_v23 = vmax.f32 %v457_v22, %v561_v8 }
 0x702   :  { %2040 = vmatmul.msk.f32.gmra.mxu1 %vm66_vm0, %v2382_v39  ;;  %v2836_v39 = vld [vmem:[%s3269_s1 + $0x10] sm:$0xff] }
 0x703   :  { %2025 = vmatmul.msk.f32.gmra.mxu2 %vm66_vm0, %v2391_v40 }
 0x70a   :  { %2041 = vmatmul.msk.f32.gmra.mxu1 %vm66_vm0, %v2391_v40  ;;  %v2845_v40 = vld [vmem:[%s3269_s1 + $0x18] sm:$0xff] }
 0x70b   :  { %2046 = vmatmul.msk.f32.vlgmr.msrb.gmra.mxu2 %vm66_vm0, %v2818_v21 }
 0x712   :  { %2062 = vmatmul.msk.f32.vlgmr.msra.gmra.mxu1 %vm66_vm0, %v2818_v21 }
 0x713   :  { %2047 = vmatmul.msk.f32.gmra.mxu2 %vm66_vm0, %v2827_v35 }
 0x71a   :  { %2063 = vmatmul.msk.f32.gmra.mxu1 %vm66_vm0, %v2827_v35 }
 0x71b   :  { %2048 = vmatmul.msk.f32.gmra.mxu2 %vm66_vm0, %v2836_v39 }
 0x722   :  { %2064 = vmatmul.msk.f32.gmra.mxu1 %vm66_vm0, %v2836_v39 }
 0x723   :  { %2049 = vmatmul.msk.f32.gmra.mxu2 %vm66_vm0, %v2845_v40 }
 0x72a   :  { %2065 = vmatmul.msk.f32.gmra.mxu1 %vm66_vm0, %v2845_v40 }
 0x76e   :  { %v1086_v47 = vpop.f32.mrf.mxu2 }
 0x76f   :  { %v1194_v62 = vpop.f32.mrf.mxu1  ;;  %v1087_v1 = vadd.f32 %v1086_v47, %v2851_v50  ;;  %v776_v47 = vmax.f32 %v769_v54, 0.0 }
 0x770   :  { %v1195_v61 = vadd.f32 %v1194_v62, %v2851_v50  ;;  %v884_v62 = vmax.f32 %v877_v25, 0.0 }
 0x771   :  { %v1098_v38 = vmax.f32 %v1087_v1, 0.0  ;;  %v780_v1 = vmax.f32 %v672_v55, %v776_v47 }
 0x772   :  { %v1206_v18 = vmax.f32 %v1195_v61, 0.0  ;;  %v669_v61 = vmax.f32 %v664_v5, 0.0 }
 0x773   :  { %v1102_v59 = vmax.f32 %v994_v2, %v1098_v38  ;;  %v888_v13 = vmax.f32 %v780_v1, %v884_v62  ;;  %v3275_v38 = vld [vmem:[#allocation3_spill] sm:$0xff] }
 0x774   :  { %v880_v57 = vadd.f32 %v3275_v38, %v2893_v41  ;;  %v673_v28 = vmax.f32 %v565_v23, %v669_v61 }
 0x775   :  { %v2909_v30 = vmax.f32 %v1102_v59, %v1206_v18  ;;  %v996_v43 = vmax.f32 %v888_v13, %v992_v15  ;;  %v3276_v59 = vld [vmem:[#allocation4_spill] sm:$0xff] }
 0x776   :  { %v1089_v9 = vpop.f32.mrf.mxu2  ;;  %v988_v18 = vadd.f32 %v3276_v59, %v2893_v41  ;;  %v885_v34 = vmax.f32 %v880_v57, 0.0  ;;  %v781_v63 = vmax.f32 %v673_v28, %v777_v45  ;;  %v2950_v28 = vld [vmem:[%s3269_s1 + $0x20] sm:$0xff]  ;;  %v2968_v59 = vld [vmem:[%s3269_s1 + $0x30] sm:$0xff] }
 0x777   :  { %v1197_v53 = vpop.f32.mrf.mxu1  ;;  %v1090_v56 = vadd.f32 %v1089_v9, %v2861_v6 }
 0x778   :  { %v1198_v46 = vadd.f32 %v1197_v53, %v2861_v6  ;;  %v993_v12 = vmax.f32 %v988_v18, 0.0  ;;  %v889_v9 = vmax.f32 %v781_v63, %v885_v34  ;;  %v2977_v18 = vld [vmem:[%s3269_s1 + $0x38] sm:$0xff] }
 0x779   :  { %v1099_v36 = vmax.f32 %v1090_v56, 0.0 }
 0x77a   :  { %v1207_v14 = vmax.f32 %v1198_v46, 0.0  ;;  %v997_v25 = vmax.f32 %v889_v9, %v993_v12 }
 0x77b   :  { %v1103_v42 = vmax.f32 %v995_v31, %v1099_v36 }
 0x77d   :  { %v2923_v58 = vmax.f32 %v1103_v42, %v1207_v14 }
 0x77e   :  { %v1092_v2 = vpop.f32.mrf.mxu2 }
 0x77f   :  { %v1200_v16 = vpop.f32.mrf.mxu1  ;;  %v1093_v10 = vadd.f32 %v1092_v2, %v2877_v44 }
 0x780   :  { %v1201_v17 = vadd.f32 %v1200_v16, %v2877_v44 }
 0x781   :  { %v1100_v48 = vmax.f32 %v1093_v10, 0.0 }
 0x782   :  { %v1208_v19 = vmax.f32 %v1201_v17, 0.0 }
 0x783   :  { %v1104_v20 = vmax.f32 %v996_v43, %v1100_v48  ;;  %v2959_v43 = vld [vmem:[%s3269_s1 + $0x28] sm:$0xff] }
 0x785   :  { %v2933_v51 = vmax.f32 %v1104_v20, %v1208_v19 }
 0x786   :  { %v1095_v49 = vpop.f32.mrf.mxu2 }
 0x787   :  { %v1203_v54 = vpop.f32.mrf.mxu1  ;;  %v1096_v53 = vadd.f32 %v1095_v49, %v2893_v41 }
 0x788   :  { %v1204_v52 = vadd.f32 %v1203_v54, %v2893_v41 }
 0x789   :  { %v1101_v56 = vmax.f32 %v1096_v53, 0.0 }
 0x78a   :  { %v1209_v3 = vmax.f32 %v1204_v52, 0.0 }
 0x78b   :  { %v1105_v46 = vmax.f32 %v997_v25, %v1101_v56 }
 0x78d   :  { %v2937_v55 = vmax.f32 %v1105_v46, %v1209_v3 }
 0x78e   :  { %v1236_v5 = vpop.f32.mrf.mxu2 }
 0x78f   :  { %v1344_v31 = vpop.f32.mrf.mxu1  ;;  %v1237_v32 = vadd.f32 %v1236_v5, %v2267_v33 }
 0x790   :  { %v1345_v2 = vadd.f32 %v1344_v31, %v2267_v33 }
 0x791   :  { %v1248_v10 = vmax.f32 %v1237_v32, 0.0  ;;  %v2090_v32 = vld [vmem:[%s3267_s0 + $0x1a0] sm:$0xff] }
 0x792   :  { %v1356_v17 = vmax.f32 %v1345_v2, 0.0  ;;  %v3027_v2 = vld [vmem:[%s3269_s1 + $0x48] sm:$0xff] }
 0x796   :  { %v1239_v27 = vpop.f32.mrf.mxu2 }
 0x797   :  { %v1347_v36 = vpop.f32.mrf.mxu1  ;;  %v1240_v61 = vadd.f32 %v1239_v27, %v2261_v26 }
 0x798   :  { %v1348_v15 = vadd.f32 %v1347_v36, %v2261_v26 }
 0x799   :  { %v1249_v38 = vmax.f32 %v1240_v61, 0.0  ;;  %v2092_v61 = vld [vmem:[%s3267_s0 + $0x1b0] sm:$0xff] }
 0x79a   :  { %v1357_v57 = vmax.f32 %v1348_v15, 0.0  ;;  %v2075_v15 = vld [vmem:[%s3267_s0 + $0x188] sm:$0xff] }
 0x79e   :  { %v1242_v11 = vpop.f32.mrf.mxu2 }
 0x79f   :  { %v1350_v8 = vpop.f32.mrf.mxu1  ;;  %v1243_v42 = vadd.f32 %v1242_v11, %v2263_v29 }
 0x7a0   :  { %v1351_v14 = vadd.f32 %v1350_v8, %v2263_v29 }
 0x7a1   :  { %v1250_v16 = vmax.f32 %v1243_v42, 0.0  ;;  %v2077_v42 = vld [vmem:[%s3267_s0 + $0x198] sm:$0xff] }
 0x7a2   :  { %v1358_v13 = vmax.f32 %v1351_v14, 0.0  ;;  %v2093_v14 = vld [vmem:[%s3267_s0 + $0x1b8] sm:$0xff] }
 0x7a6   :  { %v1245_v47 = vpop.f32.mrf.mxu2 }
 0x7a7   :  { %v1353_v62 = vpop.f32.mrf.mxu1  ;;  %v1246_v22 = vadd.f32 %v1245_v47, %v2259_v24 }
 0x7a8   :  { %v1354_v1 = vadd.f32 %v1353_v62, %v2259_v24 }
 0x7a9   :  { %v1251_v23 = vmax.f32 %v1246_v22, 0.0  ;;  %v3000_v22 = vld [vmem:[%s3269_s1 + $0x40] sm:$0xff] }
 0x7aa   :  { %v1359_v37 = vmax.f32 %v1354_v1, 0.0  ;;  %v2076_v1 = vld [vmem:[%s3267_s0 + $0x190] sm:$0xff] }
 0x7ab   :  { %1264 = vmatpush.msrb.mxu3 %v1251_v23  ;;  %v2091_v23 = vld [vmem:[%s3267_s0 + $0x1a8] sm:$0xff] }
 0x7ac   :  { %1372 = vmatpush.msra.mxu2 %v1359_v37  ;;  %v2074_v37 = vld [vmem:[%s3267_s0 + $0x180] sm:$0xff] }
 0x7ad   :  { %1265 = vmatpush.msrb.mxu3 %v1250_v16  ;;  %v3036_v16 = vld [vmem:[%s3269_s1 + $0x50] sm:$0xff] }
 0x7ae   :  { %1373 = vmatpush.msra.mxu2 %v1358_v13  ;;  %v3045_v13 = vld [vmem:[%s3269_s1 + $0x58] sm:$0xff] }
 0x7af   :  { %1266 = vmatpush.msrb.mxu3 %v1249_v38 }
 0x7b0   :  { %1374 = vmatpush.msra.mxu2 %v1357_v57 }
 0x7b1   :  { %1267 = vmatpush.msrb.mxu3 %v1248_v10 }
 0x7b2   :  { %1375 = vmatpush.msra.mxu2 %v1356_v17  ;;  %2050 = vmatmul.msk.f32.vlgmr.msrb.gmra.mxu3 %vm66_vm0, %v2950_v28 }
 0x7b3   :  { %2066 = vmatmul.msk.f32.vlgmr.msra.gmra.mxu2 %vm66_vm0, %v2950_v28 }
 0x7ba   :  { %2051 = vmatmul.msk.f32.gmra.mxu3 %vm66_vm0, %v2959_v43 }
 0x7bb   :  { %2067 = vmatmul.msk.f32.gmra.mxu2 %vm66_vm0, %v2959_v43 }
 0x7c2   :  { %2052 = vmatmul.msk.f32.gmra.mxu3 %vm66_vm0, %v2968_v59 }
 0x7c3   :  { %2068 = vmatmul.msk.f32.gmra.mxu2 %vm66_vm0, %v2968_v59 }
 0x7ca   :  { %2053 = vmatmul.msk.f32.gmra.mxu3 %vm66_vm0, %v2977_v18 }
 0x7cb   :  { %2069 = vmatmul.msk.f32.gmra.mxu2 %vm66_vm0, %v2977_v18 }
 0x835   :  { %v1269_v48 = vpop.f32.mrf.mxu3 }
 0x836   :  { %v1377_v45 = vpop.f32.mrf.mxu2  ;;  %v1270_v5 = vadd.f32 %v1269_v48, %v2332_v7 }
 0x837   :  { %v1378_v31 = vadd.f32 %v1377_v45, %v2332_v7 }
 0x838   :  { %v1281_v47 = vmax.f32 %v1270_v5, 0.0 }
 0x839   :  { %v1389_v62 = vmax.f32 %v1378_v31, 0.0 }
 0x83d   :  { %v1272_v34 = vpop.f32.mrf.mxu3 }
 0x83e   :  { %v1380_v20 = vpop.f32.mrf.mxu2  ;;  %v1273_v25 = vadd.f32 %v1272_v34, %v2329_v4 }
 0x83f   :  { %v1381_v56 = vadd.f32 %v1380_v20, %v2329_v4 }
 0x840   :  { %v1282_v11 = vmax.f32 %v1273_v25, 0.0 }
 0x841   :  { %v1390_v8 = vmax.f32 %v1381_v56, 0.0 }
 0x845   :  { %v1275_v19 = vpop.f32.mrf.mxu3 }
 0x846   :  { %v1383_v63 = vpop.f32.mrf.mxu2  ;;  %v1276_v54 = vadd.f32 %v1275_v19, %v2325_v0 }
 0x847   :  { %v1384_v9 = vadd.f32 %v1383_v63, %v2325_v0 }
 0x848   :  { %v1283_v27 = vmax.f32 %v1276_v54, 0.0 }
 0x849   :  { %v1391_v36 = vmax.f32 %v1384_v9, 0.0 }
 0x84d   :  { %v1278_v12 = vpop.f32.mrf.mxu3 }
 0x84e   :  { %v1386_v49 = vpop.f32.mrf.mxu2  ;;  %v1279_v53 = vadd.f32 %v1278_v12, %v2323_v60 }
 0x84f   :  { %v1387_v52 = vadd.f32 %v1386_v49, %v2323_v60 }
 0x850   :  { %v1284_v46 = vmax.f32 %v1279_v53, 0.0 }
 0x851   :  { %v1392_v3 = vmax.f32 %v1387_v52, 0.0 }
 0x852   :  { %1297 = vmatpush.msra.mxu0 %v1284_v46 }
 0x853   :  { %1405 = vmatpush.msra.mxu3 %v1392_v3 }
 0x854   :  { %1298 = vmatpush.msra.mxu0 %v1283_v27 }
 0x855   :  { %1406 = vmatpush.msra.mxu3 %v1391_v36 }
 0x856   :  { %1299 = vmatpush.msra.mxu0 %v1282_v11 }
 0x857   :  { %1407 = vmatpush.msra.mxu3 %v1390_v8 }
 0x858   :  { %1300 = vmatpush.msra.mxu0 %v1281_v47 }
 0x859   :  { %1408 = vmatpush.msra.mxu3 %v1389_v62  ;;  %2054 = vmatmul.msk.f32.vlgmr.msra.gmra.mxu0 %vm66_vm0, %v3000_v22 }
 0x85a   :  { %2070 = vmatmul.msk.f32.vlgmr.msra.gmra.mxu3 %vm66_vm0, %v3000_v22  ;;  %1447 = vmatpush.msrb.mxu0 %v2077_v42 }
 0x85b   :  { %1555 = vmatpush.msrb.mxu3 %v2093_v14 }
 0x85c   :  { %1448 = vmatpush.msrb.mxu0 %v2076_v1 }
 0x85d   :  { %1556 = vmatpush.msrb.mxu3 %v2092_v61 }
 0x85e   :  { %1449 = vmatpush.msrb.mxu0 %v2075_v15 }
 0x85f   :  { %1557 = vmatpush.msrb.mxu3 %v2091_v23 }
 0x860   :  { %1450 = vmatpush.msrb.mxu0 %v2074_v37 }
 0x861   :  { %1558 = vmatpush.msrb.mxu3 %v2090_v32  ;;  %2055 = vmatmul.msk.f32.gmra.mxu0 %vm66_vm0, %v3027_v2 }
 0x862   :  { %2071 = vmatmul.msk.f32.gmra.mxu3 %vm66_vm0, %v3027_v2 }
 0x869   :  { %2056 = vmatmul.msk.f32.gmra.mxu0 %vm66_vm0, %v3036_v16 }
 0x86a   :  { %2072 = vmatmul.msk.f32.gmra.mxu3 %vm66_vm0, %v3036_v16 }
 0x871   :  { %2057 = vmatmul.msk.f32.gmra.mxu0 %vm66_vm0, %v3045_v13 }
 0x872   :  { %2073 = vmatmul.msk.f32.gmra.mxu3 %vm66_vm0, %v3045_v13 }
 0x879   :  { %2078 = vmatmul.msk.f32.vlgmr.msrb.gmra.mxu0 %vm66_vm0, %v2818_v21 }
 0x87a   :  { %2094 = vmatmul.msk.f32.vlgmr.msrb.gmra.mxu3 %vm66_vm0, %v2818_v21 }
 0x881   :  { %2079 = vmatmul.msk.f32.gmra.mxu0 %vm66_vm0, %v2827_v35 }
 0x882   :  { %2095 = vmatmul.msk.f32.gmra.mxu3 %vm66_vm0, %v2827_v35 }
 0x889   :  { %2080 = vmatmul.msk.f32.gmra.mxu0 %vm66_vm0, %v2836_v39 }
 0x88a   :  { %2096 = vmatmul.msk.f32.gmra.mxu3 %vm66_vm0, %v2836_v39 }
 0x891   :  { %2081 = vmatmul.msk.f32.gmra.mxu0 %vm66_vm0, %v2845_v40 }
 0x892   :  { %2097 = vmatmul.msk.f32.gmra.mxu3 %vm66_vm0, %v2845_v40 }
 0x8d6   :  { %v1302_v38 = vpop.f32.mrf.mxu0 }
 0x8d7   :  { %v1303_v57 = vadd.f32 %v1302_v38, %v2851_v50 }
 0x8d9   :  { %v1314_v10 = vmax.f32 %v1303_v57, 0.0 }
 0x8db   :  { %v1318_v17 = vmax.f32 %v2909_v30, %v1314_v10 }
 0x8dd   :  { %v1410_v48 = vpop.f32.mrf.mxu3 }
 0x8de   :  { %v1411_v45 = vadd.f32 %v1410_v48, %v2851_v50  ;;  %v1305_v34 = vpop.f32.mrf.mxu0 }
 0x8df   :  { %v1306_v19 = vadd.f32 %v1305_v34, %v2861_v6 }
 0x8e0   :  { %v1422_v20 = vmax.f32 %v1411_v45, 0.0 }
 0x8e1   :  { %v1315_v12 = vmax.f32 %v1306_v19, 0.0 }
 0x8e2   :  { %v3071_v63 = vmax.f32 %v1318_v17, %v1422_v20 }
 0x8e3   :  { %v1319_v49 = vmax.f32 %v2923_v58, %v1315_v12 }
 0x8e5   :  { %v1413_v54 = vpop.f32.mrf.mxu3 }
 0x8e6   :  { %v1414_v9 = vadd.f32 %v1413_v54, %v2861_v6  ;;  %v1308_v53 = vpop.f32.mrf.mxu0 }
 0x8e7   :  { %v1309_v25 = vadd.f32 %v1308_v53, %v2877_v44 }
 0x8e8   :  { %v1423_v52 = vmax.f32 %v1414_v9, 0.0 }
 0x8e9   :  { %v1316_v56 = vmax.f32 %v1309_v25, 0.0 }
 0x8ea   :  { %v3076_v30 = vmax.f32 %v1319_v49, %v1423_v52 }
 0x8eb   :  { %v1320_v46 = vmax.f32 %v2933_v51, %v1316_v56 }
 0x8ed   :  { %v1416_v3 = vpop.f32.mrf.mxu3 }
 0x8ee   :  { %v1417_v5 = vadd.f32 %v1416_v3, %v2877_v44  ;;  %v1311_v31 = vpop.f32.mrf.mxu0 }
 0x8ef   :  { %v1312_v36 = vadd.f32 %v1311_v31, %v2893_v41 }
 0x8f0   :  { %v1424_v27 = vmax.f32 %v1417_v5, 0.0 }
 0x8f1   :  { %v1317_v11 = vmax.f32 %v1312_v36, 0.0 }
 0x8f2   :  { %v3081_v58 = vmax.f32 %v1320_v46, %v1424_v27 }
 0x8f3   :  { %v1321_v8 = vmax.f32 %v2937_v55, %v1317_v11 }
 0x8f5   :  { %v1419_v47 = vpop.f32.mrf.mxu3 }
 0x8f6   :  { %v1420_v62 = vadd.f32 %v1419_v47, %v2893_v41  ;;  %v1452_v42 = vpop.f32.mrf.mxu0 }
 0x8f7   :  { %v1453_v17 = vadd.f32 %v1452_v42, %v2267_v33 }
 0x8f8   :  { %v1425_v14 = vmax.f32 %v1420_v62, 0.0 }
 0x8f9   :  { %v1464_v12 = vmax.f32 %v1453_v17, 0.0  ;;  %v2108_v17 = vld [vmem:[%s3267_s0 + $0x1d0] sm:$0xff] }
 0x8fa   :  { %v3085_v1 = vmax.f32 %v1321_v8, %v1425_v14 }
 0x8fd   :  { %v1560_v51 = vpop.f32.mrf.mxu3 }
 0x8fe   :  { %v1455_v61 = vpop.f32.mrf.mxu0  ;;  %v1561_v9 = vadd.f32 %v1560_v51, %v2267_v33 }
 0x8ff   :  { %v1456_v10 = vadd.f32 %v1455_v61, %v2261_v26 }
 0x900   :  { %v1572_v25 = vmax.f32 %v1561_v9, 0.0 }
 0x901   :  { %v1465_v34 = vmax.f32 %v1456_v10, 0.0 }
 0x905   :  { %v1563_v15 = vpop.f32.mrf.mxu3 }
 0x906   :  { %v1458_v23 = vpop.f32.mrf.mxu0  ;;  %v1564_v49 = vadd.f32 %v1563_v15, %v2261_v26 }
 0x907   :  { %v1459_v38 = vadd.f32 %v1458_v23, %v2263_v29 }
 0x908   :  { %v1573_v52 = vmax.f32 %v1564_v49, 0.0  ;;  %v2123_v49 = vld [vmem:[%s3267_s0 + $0x1e8] sm:$0xff] }
 0x909   :  { %v1466_v48 = vmax.f32 %v1459_v38, 0.0 }
 0x90d   :  { %v1566_v37 = vpop.f32.mrf.mxu3 }
 0x90e   :  { %v1461_v32 = vpop.f32.mrf.mxu0  ;;  %v1567_v20 = vadd.f32 %v1566_v37, %v2263_v29 }
 0x90f   :  { %v1462_v57 = vadd.f32 %v1461_v32, %v2259_v24 }
 0x910   :  { %v1574_v53 = vmax.f32 %v1567_v20, 0.0  ;;  %v2106_v20 = vld [vmem:[%s3267_s0 + $0x1c0] sm:$0xff] }
 0x911   :  { %v1467_v55 = vmax.f32 %v1462_v57, 0.0  ;;  %v2109_v57 = vld [vmem:[%s3267_s0 + $0x1d8] sm:$0xff] }
 0x913   :  { %1480 = vmatpush.msrb.mxu1 %v1467_v55 }
 0x915   :  { %v1569_v45 = vpop.f32.mrf.mxu3  ;;  %1481 = vmatpush.msrb.mxu1 %v1466_v48 }
 0x916   :  { %v1570_v19 = vadd.f32 %v1569_v45, %v2259_v24  ;;  %v2107_v45 = vld [vmem:[%s3267_s0 + $0x1c8] sm:$0xff] }
 0x917   :  { %1482 = vmatpush.msrb.mxu1 %v1465_v34 }
 0x918   :  { %v1575_v54 = vmax.f32 %v1570_v19, 0.0  ;;  %v2125_v19 = vld [vmem:[%s3267_s0 + $0x1f8] sm:$0xff] }
 0x919   :  { %1483 = vmatpush.msrb.mxu1 %v1464_v12  ;;  %v2124_v12 = vld [vmem:[%s3267_s0 + $0x1f0] sm:$0xff] }
 0x91a   :  { %1588 = vmatpush.msra.mxu0 %v1575_v54  ;;  %2082 = vmatmul.msk.f32.vlgmr.msrb.gmra.mxu1 %vm66_vm0, %v2950_v28  ;;  %v2122_v54 = vld [vmem:[%s3267_s0 + $0x1e0] sm:$0xff] }
 0x91c   :  { %1589 = vmatpush.msra.mxu0 %v1574_v53 }
 0x91e   :  { %1590 = vmatpush.msra.mxu0 %v1573_v52 }
 0x920   :  { %1591 = vmatpush.msra.mxu0 %v1572_v25 }
 0x921   :  { %2098 = vmatmul.msk.f32.vlgmr.msra.gmra.mxu0 %vm66_vm0, %v2950_v28 }
 0x922   :  { %2083 = vmatmul.msk.f32.gmra.mxu1 %vm66_vm0, %v2959_v43 }
 0x929   :  { %2099 = vmatmul.msk.f32.gmra.mxu0 %vm66_vm0, %v2959_v43 }
 0x92a   :  { %2084 = vmatmul.msk.f32.gmra.mxu1 %vm66_vm0, %v2968_v59 }
 0x931   :  { %2100 = vmatmul.msk.f32.gmra.mxu0 %vm66_vm0, %v2968_v59 }
 0x932   :  { %2085 = vmatmul.msk.f32.gmra.mxu1 %vm66_vm0, %v2977_v18 }
 0x939   :  { %2101 = vmatmul.msk.f32.gmra.mxu0 %vm66_vm0, %v2977_v18 }
 0x997   :  { %v1485_v56 = vpop.f32.mrf.mxu1 }
 0x998   :  { %v1486_v42 = vadd.f32 %v1485_v56, %v2332_v7 }
 0x99a   :  { %v1497_v37 = vmax.f32 %v1486_v42, 0.0 }
 0x99e   :  { %v1593_v46 = vpop.f32.mrf.mxu0 }
 0x99f   :  { %v1488_v3 = vpop.f32.mrf.mxu1  ;;  %v1594_v10 = vadd.f32 %v1593_v46, %v2332_v7 }
 0x9a0   :  { %v1489_v47 = vadd.f32 %v1488_v3, %v2329_v4 }
 0x9a1   :  { %v1605_v34 = vmax.f32 %v1594_v10, 0.0 }
 0x9a2   :  { %v1498_v61 = vmax.f32 %v1489_v47, 0.0 }
 0x9a6   :  { %v1596_v5 = vpop.f32.mrf.mxu0 }
 0x9a7   :  { %v1491_v31 = vpop.f32.mrf.mxu1  ;;  %v1597_v32 = vadd.f32 %v1596_v5, %v2329_v4 }
 0x9a8   :  { %v1492_v11 = vadd.f32 %v1491_v31, %v2325_v0 }
 0x9a9   :  { %v1606_v48 = vmax.f32 %v1597_v32, 0.0 }
 0x9aa   :  { %v1499_v14 = vmax.f32 %v1492_v11, 0.0 }
 0x9ae   :  { %v1599_v27 = vpop.f32.mrf.mxu0 }
 0x9af   :  { %v1494_v36 = vpop.f32.mrf.mxu1  ;;  %v1600_v15 = vadd.f32 %v1599_v27, %v2325_v0 }
 0x9b0   :  { %v1495_v8 = vadd.f32 %v1494_v36, %v2323_v60 }
 0x9b1   :  { %v1607_v55 = vmax.f32 %v1600_v15, 0.0 }
 0x9b2   :  { %v1500_v62 = vmax.f32 %v1495_v8, 0.0 }
 0x9b4   :  { %1513 = vmatpush.msrb.mxu2 %v1500_v62 }
 0x9b6   :  { %v1602_v51 = vpop.f32.mrf.mxu0  ;;  %1514 = vmatpush.msrb.mxu2 %v1499_v14 }
 0x9b7   :  { %v1603_v23 = vadd.f32 %v1602_v51, %v2323_v60 }
 0x9b8   :  { %1515 = vmatpush.msrb.mxu2 %v1498_v61 }
 0x9b9   :  { %v1608_v38 = vmax.f32 %v1603_v23, 0.0 }
 0x9ba   :  { %1516 = vmatpush.msrb.mxu2 %v1497_v37 }
 0x9bb   :  { %1621 = vmatpush.msra.mxu1 %v1608_v38  ;;  %2086 = vmatmul.msk.f32.vlgmr.msrb.gmra.mxu2 %vm66_vm0, %v3000_v22 }
 0x9bc   :  { %1663 = vmatpush.msra.mxu2 %v2109_v57 }
 0x9bd   :  { %1622 = vmatpush.msra.mxu1 %v1607_v55 }
 0x9be   :  { %1664 = vmatpush.msra.mxu2 %v2108_v17 }
 0x9bf   :  { %1623 = vmatpush.msra.mxu1 %v1606_v48 }
 0x9c0   :  { %1665 = vmatpush.msra.mxu2 %v2107_v45 }
 0x9c1   :  { %1624 = vmatpush.msra.mxu1 %v1605_v34 }
 0x9c2   :  { %2102 = vmatmul.msk.f32.vlgmr.msra.gmra.mxu1 %vm66_vm0, %v3000_v22  ;;  %1666 = vmatpush.msra.mxu2 %v2106_v20 }
 0x9c3   :  { %1771 = vmatpush.msrb.mxu1 %v2125_v19  ;;  %2087 = vmatmul.msk.f32.gmra.mxu2 %vm66_vm0, %v3027_v2 }
 0x9c5   :  { %1772 = vmatpush.msrb.mxu1 %v2124_v12 }
 0x9c7   :  { %1773 = vmatpush.msrb.mxu1 %v2123_v49 }
 0x9c9   :  { %1774 = vmatpush.msrb.mxu1 %v2122_v54 }
 0x9ca   :  { %2103 = vmatmul.msk.f32.gmra.mxu1 %vm66_vm0, %v3027_v2 }
 0x9cb   :  { %2088 = vmatmul.msk.f32.gmra.mxu2 %vm66_vm0, %v3036_v16 }
 0x9d2   :  { %2104 = vmatmul.msk.f32.gmra.mxu1 %vm66_vm0, %v3036_v16 }
 0x9d3   :  { %2089 = vmatmul.msk.f32.gmra.mxu2 %vm66_vm0, %v3045_v13 }
 0x9da   :  { %2105 = vmatmul.msk.f32.gmra.mxu1 %vm66_vm0, %v3045_v13 }
 0x9db   :  { %2110 = vmatmul.msk.f32.vlgmr.msra.gmra.mxu2 %vm66_vm0, %v2818_v21 }
 0x9e2   :  { %2126 = vmatmul.msk.f32.vlgmr.msrb.gmra.mxu1 %vm66_vm0, %v2818_v21 }
 0x9e3   :  { %2111 = vmatmul.msk.f32.gmra.mxu2 %vm66_vm0, %v2827_v35 }
 0x9ea   :  { %2127 = vmatmul.msk.f32.gmra.mxu1 %vm66_vm0, %v2827_v35 }
 0x9eb   :  { %2112 = vmatmul.msk.f32.gmra.mxu2 %vm66_vm0, %v2836_v39 }
 0x9f2   :  { %2128 = vmatmul.msk.f32.gmra.mxu1 %vm66_vm0, %v2836_v39 }
 0x9f3   :  { %2113 = vmatmul.msk.f32.gmra.mxu2 %vm66_vm0, %v2845_v40 }
 0x9fa   :  { %2129 = vmatmul.msk.f32.gmra.mxu1 %vm66_vm0, %v2845_v40 }
 0xa3e   :  { %v1518_v9 = vpop.f32.mrf.mxu2 }
 0xa3f   :  { %v1626_v21 = vpop.f32.mrf.mxu1  ;;  %v1519_v53 = vadd.f32 %v1518_v9, %v2851_v50 }
 0xa40   :  { %v1627_v52 = vadd.f32 %v1626_v21, %v2851_v50 }
 0xa41   :  { %v1530_v25 = vmax.f32 %v1519_v53, 0.0 }
 0xa42   :  { %v1638_v56 = vmax.f32 %v1627_v52, 0.0 }
 0xa43   :  { %v1534_v35 = vmax.f32 %v3071_v63, %v1530_v25 }
 0xa45   :  { %v3178_v46 = vmax.f32 %v1534_v35, %v1638_v56 }
 0xa46   :  { %v1521_v3 = vpop.f32.mrf.mxu2 }
 0xa47   :  { %v1629_v39 = vpop.f32.mrf.mxu1  ;;  %v1522_v5 = vadd.f32 %v1521_v3, %v2861_v6 }
 0xa48   :  { %v1630_v31 = vadd.f32 %v1629_v39, %v2861_v6 }
 0xa49   :  { %v1531_v27 = vmax.f32 %v1522_v5, 0.0 }
 0xa4a   :  { %v1639_v36 = vmax.f32 %v1630_v31, 0.0 }
 0xa4b   :  { %v1535_v40 = vmax.f32 %v3076_v30, %v1531_v27 }
 0xa4d   :  { %v3183_v11 = vmax.f32 %v1535_v40, %v1639_v36 }
 0xa4e   :  { %v1524_v8 = vpop.f32.mrf.mxu2 }
 0xa4f   :  { %v1632_v47 = vpop.f32.mrf.mxu1  ;;  %v1525_v62 = vadd.f32 %v1524_v8, %v2877_v44 }
 0xa50   :  { %v1633_v63 = vadd.f32 %v1632_v47, %v2877_v44 }
 0xa51   :  { %v1532_v42 = vmax.f32 %v1525_v62, 0.0 }
 0xa52   :  { %v1640_v51 = vmax.f32 %v1633_v63, 0.0 }
 0xa53   :  { %v1536_v14 = vmax.f32 %v3081_v58, %v1532_v42 }
 0xa55   :  { %v3188_v61 = vmax.f32 %v1536_v14, %v1640_v51 }
 0xa56   :  { %v1527_v15 = vpop.f32.mrf.mxu2 }
 0xa57   :  { %v1635_v23 = vpop.f32.mrf.mxu1  ;;  %v1528_v37 = vadd.f32 %v1527_v15, %v2893_v41 }
 0xa58   :  { %v1636_v30 = vadd.f32 %v1635_v23, %v2893_v41 }
 0xa59   :  { %v1533_v32 = vmax.f32 %v1528_v37, 0.0 }
 0xa5a   :  { %v1641_v57 = vmax.f32 %v1636_v30, 0.0 }
 0xa5b   :  { %v1537_v38 = vmax.f32 %v3085_v1, %v1533_v32 }
 0xa5d   :  { %v3193_v10 = vmax.f32 %v1537_v38, %v1641_v57 }
 0xa5e   :  { %v1668_v55 = vpop.f32.mrf.mxu2 }
 0xa5f   :  { %v1776_v17 = vpop.f32.mrf.mxu1  ;;  %v1669_v25 = vadd.f32 %v1668_v55, %v2267_v33 }
 0xa60   :  { %v1777_v35 = vadd.f32 %v1776_v17, %v2267_v33 }
 0xa61   :  { %v1680_v5 = vmax.f32 %v1669_v25, 0.0 }
 0xa66   :  { %v1671_v48 = vpop.f32.mrf.mxu2 }
 0xa67   :  { %v1779_v45 = vpop.f32.mrf.mxu1  ;;  %v1672_v1 = vadd.f32 %v1671_v48, %v2261_v26 }
 0xa68   :  { %v1780_v21 = vadd.f32 %v1779_v45, %v2261_v26 }
 0xa69   :  { %v1681_v39 = vmax.f32 %v1672_v1, 0.0 }
 0xa6e   :  { %v1674_v58 = vpop.f32.mrf.mxu2 }
 0xa6f   :  { %v1782_v34 = vpop.f32.mrf.mxu1  ;;  %v1675_v12 = vadd.f32 %v1674_v58, %v2263_v29 }
 0xa70   :  { %v1783_v49 = vadd.f32 %v1782_v34, %v2263_v29  ;;  %v1789_v29 = vmax.f32 %v1780_v21, 0.0 }
 0xa71   :  { %v1682_v56 = vmax.f32 %v1675_v12, 0.0 }
 0xa72   :  { %v1790_v3 = vmax.f32 %v1783_v49, 0.0 }
 0xa76   :  { %v1677_v20 = vpop.f32.mrf.mxu2 }
 0xa77   :  { %v1785_v19 = vpop.f32.mrf.mxu1  ;;  %v1678_v54 = vadd.f32 %v1677_v20, %v2259_v24 }
 0xa78   :  { %v1786_v9 = vadd.f32 %v1785_v19, %v2259_v24  ;;  %v1788_v24 = vmax.f32 %v1777_v35, 0.0 }
 0xa79   :  { %v1683_v53 = vmax.f32 %v1678_v54, 0.0 }
 0xa7a   :  { %v1791_v52 = vmax.f32 %v1786_v9, 0.0 }
 0xa7b   :  { %1696 = vmatpush.msra.mxu3 %v1683_v53 }
 0xa7c   :  { %1804 = vmatpush.msrb.mxu2 %v1791_v52 }
 0xa7d   :  { %1697 = vmatpush.msra.mxu3 %v1682_v56 }
 0xa7e   :  { %1805 = vmatpush.msrb.mxu2 %v1790_v3 }
 0xa7f   :  { %1698 = vmatpush.msra.mxu3 %v1681_v39 }
 0xa80   :  { %1806 = vmatpush.msrb.mxu2 %v1789_v29 }
 0xa81   :  { %1699 = vmatpush.msra.mxu3 %v1680_v5 }
 0xa82   :  { %1807 = vmatpush.msrb.mxu2 %v1788_v24  ;;  %2114 = vmatmul.msk.f32.vlgmr.msra.gmra.mxu3 %vm66_vm0, %v2950_v28 }
 0xa83   :  { %2130 = vmatmul.msk.f32.vlgmr.msrb.gmra.mxu2 %vm66_vm0, %v2950_v28 }
 0xa8a   :  { %2115 = vmatmul.msk.f32.gmra.mxu3 %vm66_vm0, %v2959_v43 }
 0xa8b   :  { %2131 = vmatmul.msk.f32.gmra.mxu2 %vm66_vm0, %v2959_v43 }
 0xa92   :  { %2116 = vmatmul.msk.f32.gmra.mxu3 %vm66_vm0, %v2968_v59 }
 0xa93   :  { %2132 = vmatmul.msk.f32.gmra.mxu2 %vm66_vm0, %v2968_v59 }
 0xa9a   :  { %2117 = vmatmul.msk.f32.gmra.mxu3 %vm66_vm0, %v2977_v18 }
 0xa9b   :  { %2133 = vmatmul.msk.f32.gmra.mxu2 %vm66_vm0, %v2977_v18 }
 0xb05   :  { %v1701_v26 = vpop.f32.mrf.mxu3 }
 0xb06   :  { %v1809_v33 = vpop.f32.mrf.mxu2  ;;  %v1702_v51 = vadd.f32 %v1701_v26, %v2332_v7 }
 0xb07   :  { %v1810_v15 = vadd.f32 %v1809_v33, %v2332_v7 }
 0xb08   :  { %v1713_v32 = vmax.f32 %v1702_v51, 0.0 }
 0xb0d   :  { %v1704_v28 = vpop.f32.mrf.mxu3 }
 0xb0e   :  { %v1812_v31 = vpop.f32.mrf.mxu2  ;;  %v1705_v63 = vadd.f32 %v1704_v28, %v2329_v4 }
 0xb0f   :  { %v1813_v18 = vadd.f32 %v1812_v31, %v2329_v4 }
 0xb10   :  { %v1714_v30 = vmax.f32 %v1705_v63, 0.0 }
 0xb15   :  { %v1707_v27 = vpop.f32.mrf.mxu3 }
 0xb16   :  { %v1815_v40 = vpop.f32.mrf.mxu2  ;;  %v1708_v8 = vadd.f32 %v1707_v27, %v2325_v0 }
 0xb17   :  { %v1816_v47 = vadd.f32 %v1815_v40, %v2325_v0  ;;  %v1822_v0 = vmax.f32 %v1813_v18, 0.0 }
 0xb18   :  { %v1715_v23 = vmax.f32 %v1708_v8, 0.0 }
 0xb19   :  { %v1823_v37 = vmax.f32 %v1816_v47, 0.0 }
 0xb1d   :  { %v1710_v36 = vpop.f32.mrf.mxu3 }
 0xb1e   :  { %v1818_v43 = vpop.f32.mrf.mxu2  ;;  %v1711_v59 = vadd.f32 %v1710_v36, %v2323_v60 }
 0xb1f   :  { %v1819_v62 = vadd.f32 %v1818_v43, %v2323_v60  ;;  %v1821_v60 = vmax.f32 %v1810_v15, 0.0 }
 0xb20   :  { %v1716_v42 = vmax.f32 %v1711_v59, 0.0 }
 0xb21   :  { %v1824_v14 = vmax.f32 %v1819_v62, 0.0 }
 0xb22   :  { %1729 = vmatpush.msrb.mxu0 %v1716_v42 }
 0xb23   :  { %1837 = vmatpush.msrb.mxu3 %v1824_v14 }
 0xb24   :  { %1730 = vmatpush.msrb.mxu0 %v1715_v23 }
 0xb25   :  { %1838 = vmatpush.msrb.mxu3 %v1823_v37 }
 0xb26   :  { %1731 = vmatpush.msrb.mxu0 %v1714_v30 }
 0xb27   :  { %1839 = vmatpush.msrb.mxu3 %v1822_v0 }
 0xb28   :  { %1732 = vmatpush.msrb.mxu0 %v1713_v32 }
 0xb29   :  { %1840 = vmatpush.msrb.mxu3 %v1821_v60  ;;  %2118 = vmatmul.msk.f32.vlgmr.msrb.gmra.mxu0 %vm66_vm0, %v3000_v22 }
 0xb2a   :  { %2134 = vmatmul.msk.f32.vlgmr.msrb.gmra.mxu3 %vm66_vm0, %v3000_v22 }
 0xb31   :  { %2119 = vmatmul.msk.f32.gmra.mxu0 %vm66_vm0, %v3027_v2 }
 0xb32   :  { %2135 = vmatmul.msk.f32.gmra.mxu3 %vm66_vm0, %v3027_v2 }
 0xb39   :  { %2120 = vmatmul.msk.f32.gmra.mxu0 %vm66_vm0, %v3036_v16 }
 0xb3a   :  { %2136 = vmatmul.msk.f32.gmra.mxu3 %vm66_vm0, %v3036_v16 }
 0xb41   :  { %2121 = vmatmul.msk.f32.gmra.mxu0 %vm66_vm0, %v3045_v13 }
 0xb42   :  { %2137 = vmatmul.msk.f32.gmra.mxu3 %vm66_vm0, %v3045_v13 }
 0xba6   :  { %v1734_v4 = vpop.f32.mrf.mxu0 }
 0xba7   :  { %v1735_v7 = vadd.f32 %v1734_v4, %v2851_v50 }
 0xba9   :  { %v1746_v22 = vmax.f32 %v1735_v7, 0.0 }
 0xbab   :  { %v1750_v55 = vmax.f32 %v3178_v46, %v1746_v22 }
 0xbad   :  { %v1842_v38 = vpop.f32.mrf.mxu3 }
 0xbae   :  { %v1843_v57 = vadd.f32 %v1842_v38, %v2851_v50  ;;  %v1737_v2 = vpop.f32.mrf.mxu0 }
 0xbaf   :  { %v1738_v48 = vadd.f32 %v1737_v2, %v2861_v6 }
 0xbb0   :  { %v1854_v17 = vmax.f32 %v1843_v57, 0.0 }
 0xbb1   :  { %v1747_v45 = vmax.f32 %v1738_v48, 0.0 }
 0xbb2   :  { %v1858_v16 = vmax.f32 %v1750_v55, %v1854_v17 }
 0xbb3   :  { %v1751_v20 = vmax.f32 %v3183_v11, %v1747_v45 }
 0xbb4   :  { %1862 = vst [vmem:[%s3270_s3] sm:$0xff] %v1858_v16 }
 0xbb5   :  { %v1845_v13 = vpop.f32.mrf.mxu3 }
 0xbb6   :  { %v1846_v58 = vadd.f32 %v1845_v13, %v2861_v6  ;;  %v1740_v34 = vpop.f32.mrf.mxu0 }
 0xbb7   :  { %v1741_v50 = vadd.f32 %v1740_v34, %v2877_v44 }
 0xbb8   :  { %v1855_v19 = vmax.f32 %v1846_v58, 0.0 }
 0xbb9   :  { %v1748_v46 = vmax.f32 %v1741_v50, 0.0 }
 0xbba   :  { %v1859_v12 = vmax.f32 %v1751_v20, %v1855_v19 }
 0xbbb   :  { %v1752_v1 = vmax.f32 %v3188_v61, %v1748_v46 }
 0xbbc   :  { %1863 = vst [vmem:[%s3270_s3 + $0x8] sm:$0xff] %v1859_v12 }
 0xbbd   :  { %v1848_v49 = vpop.f32.mrf.mxu3 }
 0xbbe   :  { %v1849_v54 = vadd.f32 %v1848_v49, %v2877_v44  ;;  %v1743_v9 = vpop.f32.mrf.mxu0 }
 0xbbf   :  { %v1744_v6 = vadd.f32 %v1743_v9, %v2893_v41 }
 0xbc0   :  { %v1856_v21 = vmax.f32 %v1849_v54, 0.0 }
 0xbc1   :  { %v1749_v11 = vmax.f32 %v1744_v6, 0.0 }
 0xbc2   :  { %v1860_v53 = vmax.f32 %v1752_v1, %v1856_v21 }
 0xbc3   :  { %v1753_v35 = vmax.f32 %v3193_v10, %v1749_v11 }
 0xbc4   :  { %1864 = vst [vmem:[%s3270_s3 + $0x10] sm:$0xff] %v1860_v53 }
 0xbc5   :  { %v1851_v52 = vpop.f32.mrf.mxu3 }
 0xbc6   :  { %v1852_v25 = vadd.f32 %v1851_v52, %v2893_v41 }
 0xbc8   :  { %v1857_v56 = vmax.f32 %v1852_v25, 0.0 }
 0xbca   :  { %v1861_v3 = vmax.f32 %v1753_v35, %v1857_v56 }
 0xbcc   :  { %1865 = vst [vmem:[%s3270_s3 + $0x18] sm:$0xff] %v1861_v3 }

// kernel: forward.12
= control target key start
LH: loop header
LB: loop body
LE: loop exit
PB: predicated region body
PF: predicated region fallthrough
CT: control target
= control target key end

     0   :  { %s546_s9 = smov 0   ;;  %s548_s10 = smov 0   ;;  %s614_s0 = inlined_call_operand.vmem [shape: f32[2,64,5], index: 0, kind: input, shape index: {}]   ;;  %s615_s1 = inlined_call_operand.vmem [shape: f32[2,16,5], index: 1, kind: input, shape index: {}]   ;;  %s616_s2 = inlined_call_operand.vmem [shape: f32[2,64,16], index: 2, kind: output, shape index: {}]  }
   0x1   :  { %s550_s11 = smov 0  }
   0x2 LB: > { %s31_s12 = sadd.s32 1, %s525_s10  ;;  %p455_p0 = scmp.ge.s32.totalorder %s529_s11, 1  ;;  %s529_s11 = sphi %s550_s11, %s12_s11   ;;  %s525_s10 = sphi %s548_s10, %s618_s10   ;;  %s521_s9 = sphi %s546_s9, %s617_s9  }
   0x3   : > { %p33_p1 = scmp.ge.s32.totalorder %s31_s12, 2  ;;  %p159_p2 = scmp.lt.s32.totalorder %s529_s11, 3 }
   0x5   : > { %s620_s12 = smov (%p33_p1, %s31_s12), 0  ;;  %p160_p3 = pnand %p455_p0, %p159_p2 }
   0x6   : > { %p202_p4 = scmp.lt.s32.totalorder (!%p160_p3), %s521_s9, 1 }
   0x7   : > { %163 = sbr.rel (%p160_p3) target bundleno = 167 (0xa7), region = 28 }
   0xc   : > { %s622_s9 = smov (!%p202_p4, %s521_s9), 1  ;;  %vm244_vm0 = vcmask 39936   ;;  %vm324_vm1 = vcmask 130048  }
   0xd   : > { %s475_s13 = sshll.u32 %s622_s9, 4  ;;  %s474_s14 = sshll.u32 %s622_s9, 6 }
   0xe   : > { %s219_s17 = scalar_lea.vmem %s615_s1, %s475_s13  ;;  %s209_s20 = scalar_lea.vmem %s614_s0, %s474_s14 }
   0xf   : > { %v243_v0 = vld [vmem:[%s219_s17 + $0x8] sm:$0xff]  ;;  %v242_v1 = vld [vmem:[%s219_s17] sm:$0xff]  ;;  %v240_v3 = vld [vmem:[%s209_s20 + $0x30] sm:$0xff]  ;;  %s232_s23 = scalar_lea.vmem %s616_s2, %s474_s14 }
  0x10   : > { %478 = vmatpush.xpose.msk.msra.mxu2 %vm244_vm0, %v243_v0  ;;  %479 = vmatpush.xpose.msk.msra.mxu3 %vm244_vm0, %v243_v0  ;;  %v238_v2 = vld [vmem:[%s209_s20 + $0x20] sm:$0xff]  ;;  %v236_v5 = vld [vmem:[%s209_s20 + $0x10] sm:$0xff]  ;;  %v239_v6 = vld [vmem:[%s209_s20 + $0x28] sm:$0xff] }
  0x11   : > { %462 = vmatpush.xpose.msk.msra.mxu0 %vm244_vm0, %v243_v0  ;;  %477 = vmatpush.xpose.msk.msra.mxu1 %vm244_vm0, %v243_v0  ;;  %v234_v4 = vld [vmem:[%s209_s20] sm:$0xff]  ;;  %v241_v7 = vld [vmem:[%s209_s20 + $0x38] sm:$0xff]  ;;  %v235_v8 = vld [vmem:[%s209_s20 + $0x8] sm:$0xff] }
  0x12   : > { %v237_v9 = vld [vmem:[%s209_s20 + $0x18] sm:$0xff] }
  0x14   : > { %481 = vmatpush.xpose.msk.msra.mxu2 %vm244_vm0, %v242_v1  ;;  %482 = vmatpush.xpose.msk.msra.mxu3 %vm244_vm0, %v242_v1 }
  0x15   : > { %463 = vmatpush.xpose.msk.msra.mxu0 %vm244_vm0, %v242_v1  ;;  %480 = vmatpush.xpose.msk.msra.mxu1 %vm244_vm0, %v242_v1 }
  0x17   : > { %468 = vmatmul.msk.f32.vlgmr.msra.gmra.mxu2 %vm244_vm0, %v238_v2  ;;  %470 = vmatmul.msk.f32.vlgmr.msra.gmra.mxu3 %vm244_vm0, %v240_v3 }
  0x18   : > { %464 = vmatmul.msk.f32.vlgmr.msra.gmra.mxu0 %vm244_vm0, %v234_v4  ;;  %466 = vmatmul.msk.f32.vlgmr.msra.gmra.mxu1 %vm244_vm0, %v236_v5 }
  0x1f   : > { %469 = vmatmul.msk.f32.gmra.mxu2 %vm244_vm0, %v239_v6  ;;  %471 = vmatmul.msk.f32.gmra.mxu3 %vm244_vm0, %v241_v7 }
  0x20   : > { %465 = vmatmul.msk.f32.gmra.mxu0 %vm244_vm0, %v235_v8  ;;  %467 = vmatmul.msk.f32.gmra.mxu1 %vm244_vm0, %v237_v9 }
  0x95   : > { %v292_v10 = vpop.f32.mrf.mxu0  ;;  %v298_v11 = vpop.f32.mrf.mxu1 }
  0x96   : > { %v316_v12 = vmax.f32 %v292_v10, 0.0  ;;  %v318_v13 = vmax.f32 %v298_v11, 0.0 }
  0x98   : > { %325 = vst.msk [vmem:[%s232_s23] sm:$0xff] %vm324_vm1, %v316_v12 }
  0x99   : > { %327 = vst.msk [vmem:[%s232_s23 + $0x10] sm:$0xff] %vm324_vm1, %v318_v13 }
  0x9a   : > { %v304_v14 = vpop.f32.mrf.mxu2  ;;  %v310_v15 = vpop.f32.mrf.mxu3 }
  0x9b   : > { %v320_v16 = vmax.f32 %v304_v14, 0.0  ;;  %v322_v17 = vmax.f32 %v310_v15, 0.0 }
  0x9d   : > { %329 = vst.msk [vmem:[%s232_s23 + $0x20] sm:$0xff] %vm324_vm1, %v320_v16  ;;  %v295_v18 = vpop.f32.mrf.mxu0  ;;  %v301_v19 = vpop.f32.mrf.mxu1 }
  0x9e   : > { %331 = vst.msk [vmem:[%s232_s23 + $0x30] sm:$0xff] %vm324_vm1, %v322_v17  ;;  %v317_v20 = vmax.f32 %v295_v18, 0.0  ;;  %v319_v21 = vmax.f32 %v301_v19, 0.0 }
  0xa0   : > { %326 = vst.msk [vmem:[%s232_s23 + $0x8] sm:$0xff] %vm324_vm1, %v317_v20 }
  0xa1   : > { %328 = vst.msk [vmem:[%s232_s23 + $0x18] sm:$0xff] %vm324_vm1, %v319_v21 }
  0xa2   : > { %v307_v22 = vpop.f32.mrf.mxu2  ;;  %v313_v23 = vpop.f32.mrf.mxu3 }
  0xa3   : > { %v321_v24 = vmax.f32 %v307_v22, 0.0  ;;  %v323_v25 = vmax.f32 %v313_v23, 0.0 }
  0xa5   : > { %330 = vst.msk [vmem:[%s232_s23 + $0x28] sm:$0xff] %vm324_vm1, %v321_v24 }
  0xa6   : > { %332 = vst.msk [vmem:[%s232_s23 + $0x38] sm:$0xff] %vm324_vm1, %v323_v25 }
  0xa7 PF: > { %s12_s11 = sadd.s32 1, %s529_s11   ;;  %s617_s9 = smov %s525_s10 }
  0xa8   : > { %p9_p5 = scmp.ge.s32.totalorder %s12_s11, 4   ;;  %s618_s10 = smov %s620_s12 }
  0xaa   :  { %11 = sbr.rel (!%p9_p5) target bundleno = 2 (0x2), region = 61 }

// kernel: neg.4
= control target key start
LH: loop header
LB: loop body
LE: loop exit
PB: predicated region body
PF: predicated region fallthrough
CT: control target
= control target key end

     0   :  { %s264_s0 = inlined_call_operand.vmem [shape: f32[2,64,16], index: 0, kind: input, shape index: {}]   ;;  %s265_s1 = inlined_call_operand.vmem [shape: f32[2,64,16], index: 1, kind: output, shape index: {}]  }
   0x1   :  { %v2_v0 = vld [vmem:[%s264_s0] sm:$0xff]  ;;  %v130_v2 = vld [vmem:[%s264_s0 + $0x8] sm:$0xff]  ;;  %v134_v7 = vld [vmem:[%s264_s0 + $0x10] sm:$0xff] }
   0x2   :  { %v128_v1 = vld [vmem:[%s264_s0 + $0x40] sm:$0xff]  ;;  %v5_v3 = vxor.u32 2147483648, %v2_v0  ;;  %v20_v5 = vxor.u32 2147483648, %v130_v2  ;;  %v132_v6 = vld [vmem:[%s264_s0 + $0x48] sm:$0xff]  ;;  %v136_v8 = vld [vmem:[%s264_s0 + $0x50] sm:$0xff]  ;;  %v36_v11 = vxor.u32 2147483648, %v134_v7 }
   0x3   :  { %v12_v4 = vxor.u32 2147483648, %v128_v1  ;;  %v28_v9 = vxor.u32 2147483648, %v132_v6  ;;  %v138_v10 = vld [vmem:[%s264_s0 + $0x18] sm:$0xff]  ;;  %v44_v13 = vxor.u32 2147483648, %v136_v8  ;;  %v142_v14 = vld [vmem:[%s264_s0 + $0x20] sm:$0xff]  ;;  %v146_v18 = vld [vmem:[%s264_s0 + $0x28] sm:$0xff] }
   0x4   :  { %7 = vst [vmem:[%s265_s1] sm:$0xff] %v5_v3  ;;  %v140_v12 = vld [vmem:[%s264_s0 + $0x58] sm:$0xff]  ;;  %v52_v15 = vxor.u32 2147483648, %v138_v10  ;;  %v144_v16 = vld [vmem:[%s264_s0 + $0x60] sm:$0xff]  ;;  %v68_v19 = vxor.u32 2147483648, %v142_v14  ;;  %v148_v20 = vld [vmem:[%s264_s0 + $0x68] sm:$0xff]  ;;  %v84_v23 = vxor.u32 2147483648, %v146_v18 }
   0x5   :  { %129 = vst [vmem:[%s265_s1 + $0x40] sm:$0xff] %v12_v4  ;;  %v60_v17 = vxor.u32 2147483648, %v140_v12  ;;  %v76_v21 = vxor.u32 2147483648, %v144_v16  ;;  %v150_v22 = vld [vmem:[%s264_s0 + $0x30] sm:$0xff]  ;;  %v92_v25 = vxor.u32 2147483648, %v148_v20  ;;  %v154_v26 = vld [vmem:[%s264_s0 + $0x38] sm:$0xff] }
   0x6   :  { %131 = vst [vmem:[%s265_s1 + $0x8] sm:$0xff] %v20_v5  ;;  %v152_v24 = vld [vmem:[%s264_s0 + $0x70] sm:$0xff]  ;;  %v100_v27 = vxor.u32 2147483648, %v150_v22  ;;  %v156_v28 = vld [vmem:[%s264_s0 + $0x78] sm:$0xff]  ;;  %v116_v30 = vxor.u32 2147483648, %v154_v26 }
   0x7   :  { %133 = vst [vmem:[%s265_s1 + $0x48] sm:$0xff] %v28_v9  ;;  %v108_v29 = vxor.u32 2147483648, %v152_v24  ;;  %v124_v31 = vxor.u32 2147483648, %v156_v28 }
   0x8   :  { %135 = vst [vmem:[%s265_s1 + $0x10] sm:$0xff] %v36_v11 }
   0x9   :  { %137 = vst [vmem:[%s265_s1 + $0x50] sm:$0xff] %v44_v13 }
   0xa   :  { %139 = vst [vmem:[%s265_s1 + $0x18] sm:$0xff] %v52_v15 }
   0xb   :  { %141 = vst [vmem:[%s265_s1 + $0x58] sm:$0xff] %v60_v17 }
   0xc   :  { %143 = vst [vmem:[%s265_s1 + $0x20] sm:$0xff] %v68_v19 }
   0xd   :  { %145 = vst [vmem:[%s265_s1 + $0x60] sm:$0xff] %v76_v21 }
   0xe   :  { %147 = vst [vmem:[%s265_s1 + $0x28] sm:$0xff] %v84_v23 }
   0xf   :  { %149 = vst [vmem:[%s265_s1 + $0x68] sm:$0xff] %v92_v25 }
  0x10   :  { %151 = vst [vmem:[%s265_s1 + $0x30] sm:$0xff] %v100_v27 }
  0x11   :  { %153 = vst [vmem:[%s265_s1 + $0x70] sm:$0xff] %v108_v29 }
  0x12   :  { %155 = vst [vmem:[%s265_s1 + $0x38] sm:$0xff] %v116_v30 }
  0x13   :  { %157 = vst [vmem:[%s265_s1 + $0x78] sm:$0xff] %v124_v31 }

// kernel: forward.11
= control target key start
LH: loop header
LB: loop body
LE: loop exit
PB: predicated region body
PF: predicated region fallthrough
CT: control target
= control target key end

     0   :  { %v3770_v3 = vmov 0   ;;  %vm126_vm0 = vcmask 588800   ;;  %vm3079_vm1 = vcmask 261120   ;;  %s6423_s0 = inlined_call_operand.vmem [shape: f32[16,72,32], index: 0, kind: input, shape index: {}]   ;;  %s6424_s2 = inlined_call_operand.vmem [shape: f32[3,72,1], index: 2, kind: input, shape index: {}]   ;;  %s6425_s1 = inlined_call_operand.vmem [shape: f32[3,72,72], index: 1, kind: input, shape index: {}]   ;;  %s6426_s3 = inlined_call_operand.vmem [shape: f32[64,32], index: 3, kind: output, shape index: {}]  }
   0x1   :  { %v80_v0 = vld [vmem:[%s6423_s0 + $0x40] sm:$0xff]  ;;  %v3163_v1 = vld [vmem:[%s6423_s0 + $0x88] sm:$0xff]  ;;  %v79_v2 = vld [vmem:[%s6423_s0 + $0x38] sm:$0xff]  ;;  %3697 = vset.pattern.permute.xlu1 %v3770_v3  ;;  %3696 = vset.pattern.permute.xlu0 %v3770_v3 }
   0x2   :  { %161 = vmatpush.msra.mxu0 %v80_v0  ;;  %471 = vmatpush.msra.mxu3 %v3163_v1  ;;  %v3162_v4 = vld [vmem:[%s6423_s0 + $0x80] sm:$0xff]  ;;  %v78_v5 = vld [vmem:[%s6423_s0 + $0x30] sm:$0xff]  ;;  %v3161_v6 = vld [vmem:[%s6423_s0 + $0x78] sm:$0xff] }
   0x3   :  { %3698 = vset.pattern.permute.xlu2 %v3770_v3  ;;  %v77_v7 = vld [vmem:[%s6423_s0 + $0x28] sm:$0xff]  ;;  %v3160_v8 = vld [vmem:[%s6423_s0 + $0x70] sm:$0xff]  ;;  %v76_v9 = vld [vmem:[%s6423_s0 + $0x20] sm:$0xff] }
   0x4   :  { %162 = vmatpush.msra.mxu0 %v79_v2  ;;  %472 = vmatpush.msra.mxu3 %v3162_v4  ;;  %v3159_v10 = vld [vmem:[%s6423_s0 + $0x68] sm:$0xff]  ;;  %v49_v11 = vld [vmem:[%s6424_s2 + $0x30] sm:$0xff]  ;;  %v51_v12 = vld [vmem:[%s6424_s2 + $0x40] sm:$0xff] }
   0x5   :  { %v75_v13 = vld [vmem:[%s6423_s0 + $0x18] sm:$0xff]  ;;  %v3158_v14 = vld [vmem:[%s6423_s0 + $0x60] sm:$0xff]  ;;  %113 = vperm.xlu1 %3697, %v49_v11   ;;  %123 = vperm.xlu0 %3696, %v51_v12   ;;  %v74_v16 = vld [vmem:[%s6423_s0 + $0x10] sm:$0xff] }
   0x6   :  { %163 = vmatpush.msra.mxu0 %v78_v5  ;;  %473 = vmatpush.msra.mxu3 %v3161_v6  ;;  %v47_v15 = vld [vmem:[%s6424_s2 + $0x20] sm:$0xff]  ;;  %v3157_v17 = vld [vmem:[%s6423_s0 + $0x58] sm:$0xff]  ;;  %v73_v18 = vld [vmem:[%s6423_s0 + $0x8] sm:$0xff] }
   0x7   :  { %103 = vperm.xlu2 %3698, %v47_v15   ;;  %v3156_v19 = vld [vmem:[%s6423_s0 + $0x50] sm:$0xff]  ;;  %v48_v20 = vld [vmem:[%s6424_s2 + $0x28] sm:$0xff]  ;;  %v50_v21 = vld [vmem:[%s6424_s2 + $0x38] sm:$0xff] }
   0x8   :  { %164 = vmatpush.msra.mxu0 %v77_v7  ;;  %474 = vmatpush.msra.mxu3 %v3160_v8  ;;  %v72_v22 = vld [vmem:[%s6423_s0] sm:$0xff]  ;;  %v3155_v23 = vld [vmem:[%s6423_s0 + $0x48] sm:$0xff]  ;;  %v46_v25 = vld [vmem:[%s6424_s2 + $0x18] sm:$0xff] }
   0x9   :  { %v3863_v24 = vld [vmem:[%s6425_s1] sm:$0xff]  ;;  %v44_v26 = vld [vmem:[%s6424_s2 + $0x8] sm:$0xff]  ;;  %v45_v27 = vld [vmem:[%s6424_s2 + $0x10] sm:$0xff] }
   0xa   :  { %165 = vmatpush.msra.mxu0 %v76_v9  ;;  %475 = vmatpush.msra.mxu3 %v3159_v10  ;;  %v3881_v28 = vld [vmem:[%s6425_s1 + $0x8] sm:$0xff]  ;;  %v43_v29 = vld [vmem:[%s6424_s2] sm:$0xff]  ;;  %v3899_v32 = vld [vmem:[%s6425_s1 + $0x10] sm:$0xff] }
   0xb   :  { %v3118_v30 = vld [vmem:[%s6424_s2 + $0x88] sm:$0xff]  ;;  %v3117_v31 = vld [vmem:[%s6424_s2 + $0x80] sm:$0xff]  ;;  %v3115_v33 = vld [vmem:[%s6424_s2 + $0x70] sm:$0xff] }
   0xc   :  { %166 = vmatpush.msra.mxu0 %v75_v13  ;;  %476 = vmatpush.msra.mxu3 %v3158_v14  ;;  %v3114_v34 = vld [vmem:[%s6424_s2 + $0x68] sm:$0xff]  ;;  %v3914_v35 = vld [vmem:[%s6425_s1 + $0x18] sm:$0xff]  ;;  %v3111_v37 = vld [vmem:[%s6424_s2 + $0x50] sm:$0xff] }
   0xd   :  { %108 = vperm.xlu1 %3697, %v48_v20   ;;  %118 = vperm.xlu0 %3696, %v50_v21   ;;  %v3112_v36 = vld [vmem:[%s6424_s2 + $0x58] sm:$0xff]  ;;  %v3929_v38 = vld [vmem:[%s6425_s1 + $0x20] sm:$0xff]  ;;  %v3119_v40 = vld [vmem:[%s6424_s2 + $0x90] sm:$0xff] }
   0xe   :  { %167 = vmatpush.msra.mxu0 %v74_v16  ;;  %477 = vmatpush.msra.mxu3 %v3157_v17  ;;  %v3116_v39 = vld [vmem:[%s6424_s2 + $0x78] sm:$0xff]  ;;  %v3947_v42 = vld [vmem:[%s6425_s1 + $0x28] sm:$0xff]  ;;  %v3113_v43 = vld [vmem:[%s6424_s2 + $0x60] sm:$0xff] }
   0xf   :  { %98 = vperm.xlu2 %3698, %v46_v25   ;;  %v3120_v41 = vld [vmem:[%s6424_s2 + $0x98] sm:$0xff]  ;;  %v3122_v44 = vld [vmem:[%s6424_s2 + $0xa8] sm:$0xff]  ;;  %v3123_v45 = vld [vmem:[%s6424_s2 + $0xb0] sm:$0xff] }
  0x10   :  { %168 = vmatpush.msra.mxu0 %v73_v18  ;;  %478 = vmatpush.msra.mxu3 %v3156_v19  ;;  %v3965_v46 = vld [vmem:[%s6425_s1 + $0x30] sm:$0xff]  ;;  %v3110_v47 = vld [vmem:[%s6424_s2 + $0x48] sm:$0xff]  ;;  %v3125_v48 = vld [vmem:[%s6424_s2 + $0xc0] sm:$0xff] }
  0x11   :  { %v3126_v49 = vld [vmem:[%s6424_s2 + $0xc8] sm:$0xff]  ;;  %v3983_v50 = vld [vmem:[%s6425_s1 + $0x38] sm:$0xff]  ;;  %v3121_v51 = vld [vmem:[%s6424_s2 + $0xa0] sm:$0xff] }
  0x12   :  { %169 = vmatpush.msra.mxu0 %v72_v22  ;;  %479 = vmatpush.msra.mxu3 %v3155_v23  ;;  %v3995_v52 = vld [vmem:[%s6425_s1 + $0x40] sm:$0xff]  ;;  %v3124_v53 = vld [vmem:[%s6424_s2 + $0xb8] sm:$0xff] }
  0x13   :  { %3128 = vmatmul.msk.f32.vlgmr.msra.gmra.mxu0 %vm126_vm0, %v3863_v24  ;;  %3164 = vmatmul.msk.f32.vlgmr.msra.gmra.mxu3 %vm126_vm0, %v3863_v24 }
  0x15   :  { %88 = vperm.xlu1 %3697, %v44_v26   ;;  %93 = vperm.xlu0 %3696, %v45_v27  }
  0x17   :  { %83 = vperm.xlu2 %3698, %v43_v29  }
  0x1b   :  { %3129 = vmatmul.msk.f32.gmra.mxu0 %vm126_vm0, %v3881_v28  ;;  %3165 = vmatmul.msk.f32.gmra.mxu3 %vm126_vm0, %v3881_v28 }
  0x1d   :  { %249 = vperm.xlu0 %3696, %v3118_v30   ;;  %244 = vperm.xlu1 %3697, %v3117_v31  }
  0x1f   :  { %239 = vperm.xlu2 %3698, %v3116_v39  }
  0x23   :  { %3130 = vmatmul.msk.f32.gmra.mxu0 %vm126_vm0, %v3899_v32  ;;  %3166 = vmatmul.msk.f32.gmra.mxu3 %vm126_vm0, %v3899_v32 }
  0x25   :  { %234 = vperm.xlu0 %3696, %v3115_v33   ;;  %229 = vperm.xlu1 %3697, %v3114_v34  }
  0x27   :  { %224 = vperm.xlu2 %3698, %v3113_v43  }
  0x2b   :  { %3131 = vmatmul.msk.f32.gmra.mxu0 %vm126_vm0, %v3914_v35  ;;  %3167 = vmatmul.msk.f32.gmra.mxu3 %vm126_vm0, %v3914_v35 }
  0x2d   :  { %219 = vperm.xlu0 %3696, %v3112_v36   ;;  %214 = vperm.xlu1 %3697, %v3111_v37  }
  0x2f   :  { %209 = vperm.xlu2 %3698, %v3110_v47  }
  0x33   :  { %3132 = vmatmul.msk.f32.gmra.mxu0 %vm126_vm0, %v3929_v38  ;;  %3168 = vmatmul.msk.f32.gmra.mxu3 %vm126_vm0, %v3929_v38 }
  0x35   :  { %334 = vperm.xlu0 %3696, %v3119_v40   ;;  %339 = vperm.xlu1 %3697, %v3120_v41  }
  0x37   :  { %344 = vperm.xlu2 %3698, %v3121_v51  }
  0x3b   :  { %3133 = vmatmul.msk.f32.gmra.mxu0 %vm126_vm0, %v3947_v42  ;;  %3169 = vmatmul.msk.f32.gmra.mxu3 %vm126_vm0, %v3947_v42 }
  0x3d   :  { %349 = vperm.xlu0 %3696, %v3122_v44   ;;  %354 = vperm.xlu1 %3697, %v3123_v45  }
  0x3f   :  { %359 = vperm.xlu2 %3698, %v3124_v53  }
  0x43   :  { %3134 = vmatmul.msk.f32.gmra.mxu0 %vm126_vm0, %v3965_v46  ;;  %3170 = vmatmul.msk.f32.gmra.mxu3 %vm126_vm0, %v3965_v46 }
  0x45   :  { %364 = vperm.xlu0 %3696, %v3125_v48   ;;  %369 = vperm.xlu1 %3697, %v3126_v49  }
  0x4b   :  { %3135 = vmatmul.msk.f32.gmra.mxu0 %vm126_vm0, %v3983_v50  ;;  %3171 = vmatmul.msk.f32.gmra.mxu3 %vm126_vm0, %v3983_v50 }
  0x53   :  { %3136 = vmatmul.msk.f32.gmra.mxu0 %vm126_vm0, %v3995_v52  ;;  %3172 = vmatmul.msk.f32.gmra.mxu3 %vm126_vm0, %v3995_v52 }
  0x61   :  { %v4012_v6 = vpop.permute.xlu2 %103 }
  0x69   :  { %v4020_v14 = vpop.permute.xlu2 %98 }
  0x71   :  { %v4035_v39 = vpop.permute.xlu2 %83 }
  0x77   :  { %v4008_v3 = vpop.permute.xlu1 %113  ;;  %v4010_v4 = vpop.permute.xlu0 %123 }
  0x7f   :  { %v4014_v9 = vpop.permute.xlu1 %108  ;;  %v4016_v10 = vpop.permute.xlu0 %118 }
  0x80   :  { %6465 = vst [vmem:[#allocation2_spill] sm:$0xff] %v4016_v10 }
  0x87   :  { %v4029_v30 = vpop.permute.xlu1 %88  ;;  %v4031_v31 = vpop.permute.xlu0 %93 }
  0x90   :  { %v171_v54 = vpop.f32.mrf.mxu0 }
  0x91   :  { %v172_v49 = vadd.f32 %v171_v54, %v4035_v39 }
  0x96   :  { %v4004_v55 = vpop.f32.mrf.mxu3 }
  0x97   :  { %v482_v54 = vadd.f32 %v4004_v55, %v4035_v39  ;;  %v4065_v55 = vld [vmem:[%s6425_s1 + $0x58] sm:$0xff] }
  0x98   :  { %v174_v56 = vpop.f32.mrf.mxu0 }
  0x99   :  { %v175_v44 = vadd.f32 %v174_v56, %v4029_v30  ;;  %v198_v56 = vmax.f32 %v172_v49, 0.0 }
  0x9b   :  { %v199_v53 = vmax.f32 %v175_v44, 0.0 }
  0x9e   :  { %v4006_v57 = vpop.f32.mrf.mxu3 }
  0xa0   :  { %v177_v58 = vpop.f32.mrf.mxu0 }
  0xa1   :  { %v178_v33 = vadd.f32 %v177_v58, %v4031_v31 }
  0xa3   :  { %v200_v47 = vmax.f32 %v178_v33, 0.0  ;;  %v4133_v33 = vpop.permute.xlu1 %244 }
  0xa6   :  { %v487_v59 = vpop.f32.mrf.mxu3 }
  0xa7   :  { %v488_v51 = vadd.f32 %v487_v59, %v4031_v31 }
  0xa8   :  { %v180_v60 = vpop.f32.mrf.mxu0 }
  0xa9   :  { %v181_v25 = vadd.f32 %v180_v60, %v4020_v14  ;;  %v485_v60 = vadd.f32 %v4006_v57, %v4029_v30  ;;  %v510_v59 = vmax.f32 %v488_v51, 0.0 }
  0xab   :  { %v201_v41 = vmax.f32 %v181_v25, 0.0  ;;  %v509_v57 = vmax.f32 %v485_v60, 0.0 }
  0xae   :  { %v490_v61 = vpop.f32.mrf.mxu3 }
  0xaf   :  { %v491_v45 = vadd.f32 %v490_v61, %v4020_v14  ;;  %v4047_v61 = vld [vmem:[%s6425_s1 + $0x48] sm:$0xff] }
  0xb0   :  { %v183_v62 = vpop.f32.mrf.mxu0 }
  0xb1   :  { %v184_v20 = vadd.f32 %v183_v62, %v4012_v6  ;;  %v511_v62 = vmax.f32 %v491_v45, 0.0  ;;  %v4141_v45 = vpop.permute.xlu1 %229 }
  0xb3   :  { %v202_v36 = vmax.f32 %v184_v20, 0.0 }
  0xb6   :  { %v493_v63 = vpop.f32.mrf.mxu3 }
  0xb7   :  { %v494_v40 = vadd.f32 %v493_v63, %v4012_v6  ;;  %v508_v63 = vmax.f32 %v482_v54, 0.0 }
  0xb8   :  { %v186_v0 = vpop.f32.mrf.mxu0 }
  0xb9   :  { %v187_v17 = vadd.f32 %v186_v0, %v4014_v9  ;;  %v512_v58 = vmax.f32 %v494_v40, 0.0  ;;  %v4056_v0 = vld [vmem:[%s6425_s1 + $0x50] sm:$0xff] }
  0xbb   :  { %v203_v27 = vmax.f32 %v187_v17, 0.0 }
  0xbe   :  { %v496_v1 = vpop.f32.mrf.mxu3 }
  0xbf   :  { %v497_v34 = vadd.f32 %v496_v1, %v4014_v9  ;;  %v4074_v1 = vld [vmem:[%s6425_s1 + $0x60] sm:$0xff] }
  0xc0   :  { %v189_v2 = vpop.f32.mrf.mxu0 }
  0xc1   :  { %v190_v15 = vadd.f32 %v189_v2, %v4008_v3  ;;  %v513_v48 = vmax.f32 %v497_v34, 0.0  ;;  %v4083_v2 = vld [vmem:[%s6425_s1 + $0x68] sm:$0xff] }
  0xc3   :  { %v204_v23 = vmax.f32 %v190_v15, 0.0 }
  0xc6   :  { %v499_v5 = vpop.f32.mrf.mxu3 }
  0xc7   :  { %v500_v26 = vadd.f32 %v499_v5, %v4008_v3  ;;  %v4092_v5 = vld [vmem:[%s6425_s1 + $0x70] sm:$0xff] }
  0xc8   :  { %v192_v7 = vpop.f32.mrf.mxu0 }
  0xc9   :  { %v193_v12 = vadd.f32 %v192_v7, %v4016_v10  ;;  %v514_v43 = vmax.f32 %v500_v26, 0.0  ;;  %v4101_v7 = vld [vmem:[%s6425_s1 + $0x78] sm:$0xff] }
  0xcb   :  { %v205_v18 = vmax.f32 %v193_v12, 0.0 }
  0xce   :  { %v502_v8 = vpop.f32.mrf.mxu3 }
  0xcf   :  { %v503_v21 = vadd.f32 %v502_v8, %v4016_v10  ;;  %v4110_v8 = vld [vmem:[%s6425_s1 + $0x80] sm:$0xff] }
  0xd0   :  { %v195_v11 = vpop.f32.mrf.mxu0 }
  0xd1   :  { %v196_v13 = vadd.f32 %v195_v11, %v4010_v4  ;;  %v515_v37 = vmax.f32 %v503_v21, 0.0  ;;  %v4119_v11 = vld [vmem:[%s6425_s1 + $0x88] sm:$0xff] }
  0xd3   :  { %v206_v16 = vmax.f32 %v196_v13, 0.0 }
  0xd5   :  { %286 = vmatpush.msra.mxu1 %v206_v16 }
  0xd6   :  { %v505_v19 = vpop.f32.mrf.mxu3 }
  0xd7   :  { %v506_v22 = vadd.f32 %v505_v19, %v4010_v4  ;;  %287 = vmatpush.msra.mxu1 %v205_v18 }
  0xd9   :  { %288 = vmatpush.msra.mxu1 %v204_v23  ;;  %v516_v29 = vmax.f32 %v506_v22, 0.0 }
  0xdb   :  { %289 = vmatpush.msra.mxu1 %v203_v27  ;;  %524 = vmatpush.msrb.mxu0 %v516_v29  ;;  %v4131_v27 = vpop.permute.xlu0 %249 }
  0xdd   :  { %290 = vmatpush.msra.mxu1 %v202_v36  ;;  %525 = vmatpush.msrb.mxu0 %v515_v37  ;;  %v4135_v36 = vpop.permute.xlu2 %239 }
  0xdf   :  { %291 = vmatpush.msra.mxu1 %v201_v41  ;;  %526 = vmatpush.msrb.mxu0 %v514_v43 }
  0xe1   :  { %292 = vmatpush.msra.mxu1 %v200_v47  ;;  %527 = vmatpush.msrb.mxu0 %v513_v48 }
  0xe3   :  { %293 = vmatpush.msra.mxu1 %v199_v53  ;;  %528 = vmatpush.msrb.mxu0 %v512_v58  ;;  %v4137_v40 = vpop.permute.xlu0 %234 }
  0xe5   :  { %294 = vmatpush.msra.mxu1 %v198_v56  ;;  %529 = vmatpush.msrb.mxu0 %v511_v62  ;;  %v4144_v49 = vpop.permute.xlu2 %224 }
  0xe6   :  { %3137 = vmatmul.msk.f32.vlgmr.msra.gmra.mxu1 %vm126_vm0, %v4047_v61 }
  0xe7   :  { %530 = vmatpush.msrb.mxu0 %v510_v59 }
  0xe9   :  { %531 = vmatpush.msrb.mxu0 %v509_v57 }
  0xeb   :  { %532 = vmatpush.msrb.mxu0 %v508_v63 }
  0xec   :  { %3173 = vmatmul.msk.f32.vlgmr.msrb.gmra.mxu0 %vm126_vm0, %v4047_v61 }
  0xee   :  { %3138 = vmatmul.msk.f32.gmra.mxu1 %vm126_vm0, %v4056_v0 }
  0xf4   :  { %3174 = vmatmul.msk.f32.gmra.mxu0 %vm126_vm0, %v4056_v0 }
  0xf6   :  { %3139 = vmatmul.msk.f32.gmra.mxu1 %vm126_vm0, %v4065_v55 }
  0xfc   :  { %3175 = vmatmul.msk.f32.gmra.mxu0 %vm126_vm0, %v4065_v55 }
  0xfe   :  { %3140 = vmatmul.msk.f32.gmra.mxu1 %vm126_vm0, %v4074_v1 }
 0x104   :  { %3176 = vmatmul.msk.f32.gmra.mxu0 %vm126_vm0, %v4074_v1 }
 0x106   :  { %3141 = vmatmul.msk.f32.gmra.mxu1 %vm126_vm0, %v4083_v2 }
 0x10c   :  { %3177 = vmatmul.msk.f32.gmra.mxu0 %vm126_vm0, %v4083_v2 }
 0x10e   :  { %3142 = vmatmul.msk.f32.gmra.mxu1 %vm126_vm0, %v4092_v5 }
 0x114   :  { %3178 = vmatmul.msk.f32.gmra.mxu0 %vm126_vm0, %v4092_v5 }
 0x116   :  { %3143 = vmatmul.msk.f32.gmra.mxu1 %vm126_vm0, %v4101_v7 }
 0x11c   :  { %3179 = vmatmul.msk.f32.gmra.mxu0 %vm126_vm0, %v4101_v7 }
 0x11e   :  { %3144 = vmatmul.msk.f32.gmra.mxu1 %vm126_vm0, %v4110_v8 }
 0x124   :  { %3180 = vmatmul.msk.f32.gmra.mxu0 %vm126_vm0, %v4110_v8 }
 0x126   :  { %3145 = vmatmul.msk.f32.gmra.mxu1 %vm126_vm0, %v4119_v11 }
 0x12c   :  { %3181 = vmatmul.msk.f32.gmra.mxu0 %vm126_vm0, %v4119_v11 }
 0x163   :  { %v296_v12 = vpop.f32.mrf.mxu1 }
 0x169   :  { %v4127_v13 = vpop.f32.mrf.mxu0 }
 0x16b   :  { %v299_v15 = vpop.f32.mrf.mxu1 }
 0x171   :  { %v4129_v16 = vpop.f32.mrf.mxu0 }
 0x173   :  { %v302_v17 = vpop.f32.mrf.mxu1 }
 0x179   :  { %v540_v18 = vpop.f32.mrf.mxu0 }
 0x17b   :  { %v305_v19 = vpop.f32.mrf.mxu1 }
 0x17c   :  { %v306_v59 = vadd.f32 %v305_v19, %v4144_v49 }
 0x181   :  { %v543_v20 = vpop.f32.mrf.mxu0 }
 0x183   :  { %v308_v21 = vpop.f32.mrf.mxu1 }
 0x184   :  { %v309_v60 = vadd.f32 %v308_v21, %v4141_v45 }
 0x186   :  { %v327_v21 = vmax.f32 %v309_v60, 0.0 }
 0x189   :  { %v546_v22 = vpop.f32.mrf.mxu0 }
 0x18a   :  { %v547_v19 = vadd.f32 %v546_v22, %v4141_v45 }
 0x18b   :  { %v311_v23 = vpop.f32.mrf.mxu1 }
 0x18c   :  { %v312_v51 = vadd.f32 %v311_v23, %v4137_v40  ;;  %v565_v22 = vmax.f32 %v547_v19, 0.0  ;;  %v3234_v19 = vld [vmem:[%s6423_s0 + $0x110] sm:$0xff] }
 0x18e   :  { %v328_v63 = vmax.f32 %v312_v51, 0.0 }
 0x191   :  { %v549_v25 = vpop.f32.mrf.mxu0 }
 0x193   :  { %v314_v26 = vpop.f32.mrf.mxu1 }
 0x194   :  { %v315_v47 = vadd.f32 %v314_v26, %v4135_v36 }
 0x196   :  { %v329_v54 = vmax.f32 %v315_v47, 0.0 }
 0x199   :  { %v552_v29 = vpop.f32.mrf.mxu0 }
 0x19a   :  { %v553_v57 = vadd.f32 %v552_v29, %v4135_v36  ;;  %v326_v29 = vmax.f32 %v306_v59, 0.0  ;;  %v4179_v59 = vld [vmem:[%s6425_s1 + $0x98] sm:$0xff] }
 0x19b   :  { %v317_v34 = vpop.f32.mrf.mxu1 }
 0x19c   :  { %v318_v43 = vadd.f32 %v317_v34, %v4133_v33  ;;  %v4152_v34 = vpop.permute.xlu0 %219  ;;  %v567_v47 = vmax.f32 %v553_v57, 0.0  ;;  %v4197_v57 = vld [vmem:[%s6425_s1 + $0xa8] sm:$0xff] }
 0x19d   :  { %v303_v23 = vadd.f32 %v302_v17, %v4152_v34 }
 0x19e   :  { %v330_v53 = vmax.f32 %v318_v43, 0.0  ;;  %v4156_v43 = vpop.permute.xlu1 %214 }
 0x19f   :  { %v325_v51 = vmax.f32 %v303_v23, 0.0  ;;  %v538_v60 = vadd.f32 %v4129_v16, %v4156_v43  ;;  %v3197_v23 = vld [vmem:[%s6423_s0 + $0xc0] sm:$0xff] }
 0x1a1   :  { %v555_v37 = vpop.f32.mrf.mxu0  ;;  %v562_v16 = vmax.f32 %v538_v60, 0.0  ;;  %v3229_v60 = vld [vmem:[%s6423_s0 + $0xe8] sm:$0xff] }
 0x1a2   :  { %v556_v56 = vadd.f32 %v555_v37, %v4133_v33 }
 0x1a3   :  { %v320_v41 = vpop.f32.mrf.mxu1 }
 0x1a4   :  { %v321_v44 = vadd.f32 %v320_v41, %v4131_v27  ;;  %v550_v41 = vadd.f32 %v549_v25, %v4137_v40  ;;  %v568_v37 = vmax.f32 %v556_v56, 0.0  ;;  %v544_v25 = vadd.f32 %v543_v20, %v4144_v49 }
 0x1a6   :  { %v331_v48 = vmax.f32 %v321_v44, 0.0  ;;  %v300_v44 = vadd.f32 %v299_v15, %v4156_v43 }
 0x1a8   :  { %410 = vmatpush.msra.mxu2 %v331_v48  ;;  %v4160_v48 = vpop.permute.xlu2 %209  ;;  %v324_v15 = vmax.f32 %v300_v44, 0.0  ;;  %v3195_v44 = vld [vmem:[%s6423_s0 + $0xb0] sm:$0xff] }
 0x1a9   :  { %v558_v58 = vpop.f32.mrf.mxu0  ;;  %v297_v17 = vadd.f32 %v296_v12, %v4160_v48  ;;  %v4170_v12 = vld [vmem:[%s6425_s1 + $0x90] sm:$0xff]  ;;  %v535_v20 = vadd.f32 %v4127_v13, %v4160_v48  ;;  %v4188_v13 = vld [vmem:[%s6425_s1 + $0xa0] sm:$0xff] }
 0x1aa   :  { %v559_v62 = vadd.f32 %v558_v58, %v4131_v27  ;;  %411 = vmatpush.msra.mxu2 %v330_v53  ;;  %v566_v53 = vmax.f32 %v550_v41, 0.0  ;;  %v541_v58 = vadd.f32 %v540_v18, %v4152_v34  ;;  %v3235_v41 = vld [vmem:[%s6423_s0 + $0x118] sm:$0xff] }
 0x1ab   :  { %v323_v56 = vmax.f32 %v297_v17, 0.0  ;;  %v3193_v17 = vld [vmem:[%s6423_s0 + $0xa0] sm:$0xff] }
 0x1ac   :  { %412 = vmatpush.msra.mxu2 %v329_v54  ;;  %v569_v26 = vmax.f32 %v559_v62, 0.0  ;;  %v564_v62 = vmax.f32 %v544_v25, 0.0  ;;  %v563_v18 = vmax.f32 %v541_v58, 0.0  ;;  %v561_v54 = vmax.f32 %v535_v20, 0.0  ;;  %v3232_v25 = vld [vmem:[%s6423_s0 + $0x100] sm:$0xff]  ;;  %v4254_v58 = vld [vmem:[%s6425_s1 + $0xb8] sm:$0xff] }
 0x1ad   :  { %v4278_v20 = vld [vmem:[%s6425_s1 + $0xc0] sm:$0xff] }
 0x1ae   :  { %413 = vmatpush.msra.mxu2 %v328_v63  ;;  %577 = vmatpush.msrb.mxu1 %v569_v26  ;;  %v3199_v63 = vld [vmem:[%s6423_s0 + $0xd0] sm:$0xff]  ;;  %v3198_v26 = vld [vmem:[%s6423_s0 + $0xc8] sm:$0xff] }
 0x1b0   :  { %414 = vmatpush.msra.mxu2 %v327_v21  ;;  %578 = vmatpush.msrb.mxu1 %v568_v37  ;;  %v3196_v21 = vld [vmem:[%s6423_s0 + $0xb8] sm:$0xff]  ;;  %v4221_v37 = vld [vmem:[%s6425_s1 + $0xb0] sm:$0xff] }
 0x1b2   :  { %415 = vmatpush.msra.mxu2 %v326_v29  ;;  %579 = vmatpush.msrb.mxu1 %v567_v47  ;;  %v3194_v29 = vld [vmem:[%s6423_s0 + $0xa8] sm:$0xff] }
 0x1b3   :  { %v3233_v47 = vld [vmem:[%s6423_s0 + $0x108] sm:$0xff] }
 0x1b4   :  { %416 = vmatpush.msra.mxu2 %v325_v51  ;;  %580 = vmatpush.msrb.mxu1 %v566_v53  ;;  %v3192_v51 = vld [vmem:[%s6423_s0 + $0x98] sm:$0xff] }
 0x1b5   :  { %v3231_v53 = vld [vmem:[%s6423_s0 + $0xf8] sm:$0xff] }
 0x1b6   :  { %417 = vmatpush.msra.mxu2 %v324_v15  ;;  %581 = vmatpush.msrb.mxu1 %v565_v22  ;;  %v3191_v15 = vld [vmem:[%s6423_s0 + $0x90] sm:$0xff] }
 0x1b7   :  { %v3230_v22 = vld [vmem:[%s6423_s0 + $0xf0] sm:$0xff] }
 0x1b8   :  { %418 = vmatpush.msra.mxu2 %v323_v56  ;;  %582 = vmatpush.msrb.mxu1 %v564_v62  ;;  %v3228_v56 = vld [vmem:[%s6423_s0 + $0xe0] sm:$0xff]  ;;  %v3227_v62 = vld [vmem:[%s6423_s0 + $0xd8] sm:$0xff] }
 0x1b9   :  { %3146 = vmatmul.msk.f32.vlgmr.msra.gmra.mxu2 %vm126_vm0, %v4170_v12 }
 0x1ba   :  { %583 = vmatpush.msrb.mxu1 %v563_v18  ;;  %646 = vmatpush.msrb.mxu2 %v3199_v63  ;;  %v4287_v18 = vld [vmem:[%s6425_s1 + $0xc8] sm:$0xff] }
 0x1bc   :  { %584 = vmatpush.msrb.mxu1 %v562_v16  ;;  %647 = vmatpush.msrb.mxu2 %v3198_v26  ;;  %v4296_v16 = vld [vmem:[%s6425_s1 + $0xd0] sm:$0xff] }
 0x1bd   :  { %6466 = vst [vmem:[#allocation3_spill] sm:$0xff] %v4296_v16 }
 0x1be   :  { %585 = vmatpush.msrb.mxu1 %v561_v54  ;;  %648 = vmatpush.msrb.mxu2 %v3197_v23 }
 0x1bf   :  { %3182 = vmatmul.msk.f32.vlgmr.msrb.gmra.mxu1 %vm126_vm0, %v4170_v12 }
 0x1c0   :  { %821 = vmatpush.msra.mxu1 %v3235_v41  ;;  %649 = vmatpush.msrb.mxu2 %v3196_v21 }
 0x1c1   :  { %3147 = vmatmul.msk.f32.gmra.mxu2 %vm126_vm0, %v4179_v59 }
 0x1c2   :  { %650 = vmatpush.msrb.mxu2 %v3195_v44  ;;  %822 = vmatpush.msra.mxu1 %v3234_v19 }
 0x1c4   :  { %651 = vmatpush.msrb.mxu2 %v3194_v29  ;;  %823 = vmatpush.msra.mxu1 %v3233_v47 }
 0x1c6   :  { %652 = vmatpush.msrb.mxu2 %v3193_v17  ;;  %824 = vmatpush.msra.mxu1 %v3232_v25 }
 0x1c7   :  { %3183 = vmatmul.msk.f32.gmra.mxu1 %vm126_vm0, %v4179_v59 }
 0x1c8   :  { %653 = vmatpush.msrb.mxu2 %v3192_v51  ;;  %825 = vmatpush.msra.mxu1 %v3231_v53 }
 0x1c9   :  { %3148 = vmatmul.msk.f32.gmra.mxu2 %vm126_vm0, %v4188_v13 }
 0x1ca   :  { %654 = vmatpush.msrb.mxu2 %v3191_v15  ;;  %826 = vmatpush.msra.mxu1 %v3230_v22 }
 0x1cc   :  { %827 = vmatpush.msra.mxu1 %v3229_v60 }
 0x1ce   :  { %828 = vmatpush.msra.mxu1 %v3228_v56 }
 0x1cf   :  { %3184 = vmatmul.msk.f32.gmra.mxu1 %vm126_vm0, %v4188_v13 }
 0x1d0   :  { %829 = vmatpush.msra.mxu1 %v3227_v62 }
 0x1d1   :  { %3149 = vmatmul.msk.f32.gmra.mxu2 %vm126_vm0, %v4197_v57 }
 0x1d7   :  { %3185 = vmatmul.msk.f32.gmra.mxu1 %vm126_vm0, %v4197_v57 }
 0x1d9   :  { %3150 = vmatmul.msk.f32.gmra.mxu2 %vm126_vm0, %v4221_v37 }
 0x1df   :  { %3186 = vmatmul.msk.f32.gmra.mxu1 %vm126_vm0, %v4221_v37 }
 0x1e1   :  { %3151 = vmatmul.msk.f32.gmra.mxu2 %vm126_vm0, %v4254_v58 }
 0x1e7   :  { %3187 = vmatmul.msk.f32.gmra.mxu1 %vm126_vm0, %v4254_v58 }
 0x1e9   :  { %3152 = vmatmul.msk.f32.gmra.mxu2 %vm126_vm0, %v4278_v20 }
 0x1ef   :  { %3188 = vmatmul.msk.f32.gmra.mxu1 %vm126_vm0, %v4278_v20 }
 0x1f1   :  { %3153 = vmatmul.msk.f32.gmra.mxu2 %vm126_vm0, %v4287_v18 }
 0x1f7   :  { %3189 = vmatmul.msk.f32.gmra.mxu1 %vm126_vm0, %v4287_v18 }
 0x1f9   :  { %3154 = vmatmul.msk.f32.gmra.mxu2 %vm126_vm0, %v4296_v16 }
 0x1ff   :  { %3190 = vmatmul.msk.f32.gmra.mxu1 %vm126_vm0, %v4296_v16 }
 0x201   :  { %3200 = vmatmul.msk.f32.vlgmr.msrb.gmra.mxu2 %vm126_vm0, %v3863_v24 }
 0x207   :  { %3236 = vmatmul.msk.f32.vlgmr.msra.gmra.mxu1 %vm126_vm0, %v3863_v24 }
 0x209   :  { %3201 = vmatmul.msk.f32.gmra.mxu2 %vm126_vm0, %v3881_v28 }
 0x20f   :  { %3237 = vmatmul.msk.f32.gmra.mxu1 %vm126_vm0, %v3881_v28 }
 0x211   :  { %3202 = vmatmul.msk.f32.gmra.mxu2 %vm126_vm0, %v3899_v32 }
 0x217   :  { %3238 = vmatmul.msk.f32.gmra.mxu1 %vm126_vm0, %v3899_v32 }
 0x219   :  { %3203 = vmatmul.msk.f32.gmra.mxu2 %vm126_vm0, %v3914_v35 }
 0x21f   :  { %3239 = vmatmul.msk.f32.gmra.mxu1 %vm126_vm0, %v3914_v35 }
 0x221   :  { %3204 = vmatmul.msk.f32.gmra.mxu2 %vm126_vm0, %v3929_v38 }
 0x227   :  { %3240 = vmatmul.msk.f32.gmra.mxu1 %vm126_vm0, %v3929_v38 }
 0x229   :  { %3205 = vmatmul.msk.f32.gmra.mxu2 %vm126_vm0, %v3947_v42 }
 0x22f   :  { %3241 = vmatmul.msk.f32.gmra.mxu1 %vm126_vm0, %v3947_v42 }
 0x231   :  { %3206 = vmatmul.msk.f32.gmra.mxu2 %vm126_vm0, %v3965_v46 }
 0x237   :  { %3242 = vmatmul.msk.f32.gmra.mxu1 %vm126_vm0, %v3965_v46 }
 0x239   :  { %3207 = vmatmul.msk.f32.gmra.mxu2 %vm126_vm0, %v3983_v50 }
 0x23c   :  { %v4334_v24 = vpop.f32.mrf.mxu2  ;;  %v4336_v28 = vpop.f32.mrf.mxu1 }
 0x23d   :  { %6467 = vst [vmem:[#allocation4_spill] sm:$0xff] %v4334_v24 }
 0x23e   :  { %6468 = vst [vmem:[#allocation5_spill] sm:$0xff] %v4336_v28 }
 0x23f   :  { %3243 = vmatmul.msk.f32.gmra.mxu1 %vm126_vm0, %v3983_v50 }
 0x241   :  { %3208 = vmatmul.msk.f32.gmra.mxu2 %vm126_vm0, %v3995_v52 }
 0x244   :  { %v4342_v32 = vpop.f32.mrf.mxu2  ;;  %v4344_v35 = vpop.f32.mrf.mxu1 }
 0x245   :  { %6469 = vst [vmem:[#allocation6_spill] sm:$0xff] %v4342_v32 }
 0x246   :  { %6470 = vst [vmem:[#allocation7_spill] sm:$0xff] %v4344_v35 }
 0x247   :  { %3244 = vmatmul.msk.f32.gmra.mxu1 %vm126_vm0, %v3995_v52 }
 0x24c   :  { %v4348_v38 = vpop.f32.mrf.mxu2  ;;  %v4350_v42 = vpop.f32.mrf.mxu1 }
 0x24d   :  { %6471 = vst [vmem:[#allocation8_spill] sm:$0xff] %v4348_v38 }
 0x24e   :  { %6472 = vst [vmem:[#allocation9_spill] sm:$0xff] %v4350_v42 }
 0x254   :  { %v4352_v46 = vpop.f32.mrf.mxu2  ;;  %v4354_v54 = vpop.f32.mrf.mxu1 }
 0x255   :  { %6473 = vst [vmem:[#allocation10_spill] sm:$0xff] %v4352_v46 }
 0x256   :  { %6474 = vst [vmem:[#allocation11_spill] sm:$0xff] %v4354_v54 }
 0x25c   :  { %v4356_v63 = vpop.f32.mrf.mxu2  ;;  %v4358_v50 = vpop.f32.mrf.mxu1 }
 0x25d   :  { %6475 = vst [vmem:[#allocation12_spill] sm:$0xff] %v4356_v63 }
 0x25e   :  { %6476 = vst [vmem:[#allocation13_spill] sm:$0xff] %v4358_v50 }
 0x264   :  { %v4360_v26 = vpop.f32.mrf.mxu2  ;;  %v4362_v23 = vpop.f32.mrf.mxu1 }
 0x265   :  { %6477 = vst [vmem:[#allocation14_spill] sm:$0xff] %v4360_v26 }
 0x266   :  { %6478 = vst [vmem:[#allocation15_spill] sm:$0xff] %v4362_v23 }
 0x26c   :  { %v4364_v41 = vpop.f32.mrf.mxu2  ;;  %v4366_v21 = vpop.f32.mrf.mxu1 }
 0x26d   :  { %6479 = vst [vmem:[#allocation16_spill] sm:$0xff] %v4364_v41 }
 0x26e   :  { %6480 = vst [vmem:[#allocation17_spill] sm:$0xff] %v4366_v21 }
 0x274   :  { %v4368_v52 = vpop.f32.mrf.mxu2  ;;  %v4370_v44 = vpop.f32.mrf.mxu1 }
 0x275   :  { %6481 = vst [vmem:[#allocation18_spill] sm:$0xff] %v4368_v52 }
 0x276   :  { %6482 = vst [vmem:[#allocation19_spill] sm:$0xff] %v4370_v44 }
 0x27c   :  { %v444_v19 = vpop.f32.mrf.mxu2  ;;  %v611_v29 = vpop.f32.mrf.mxu1 }
 0x284   :  { %v656_v47 = vpop.f32.mrf.mxu2  ;;  %v831_v17 = vpop.f32.mrf.mxu1 }
 0x28c   :  { %v659_v25 = vpop.f32.mrf.mxu2  ;;  %v834_v51 = vpop.f32.mrf.mxu1 }
 0x294   :  { %v662_v53 = vpop.f32.mrf.mxu2  ;;  %v837_v15 = vpop.f32.mrf.mxu1 }
 0x29c   :  { %v665_v22 = vpop.f32.mrf.mxu2  ;;  %v840_v60 = vpop.f32.mrf.mxu1 }
 0x2a4   :  { %v668_v56 = vpop.f32.mrf.mxu2  ;;  %v843_v62 = vpop.f32.mrf.mxu1 }
 0x2ac   :  { %v671_v42 = vpop.f32.mrf.mxu2  ;;  %v846_v38 = vpop.f32.mrf.mxu1 }
 0x2ad   :  { %v672_v54 = vadd.f32 %v671_v42, %v4014_v9  ;;  %v847_v46 = vadd.f32 %v846_v38, %v4014_v9  ;;  %v663_v42 = vadd.f32 %v662_v53, %v4031_v31 }
 0x2af   :  { %v688_v38 = vmax.f32 %v672_v54, 0.0  ;;  %v685_v53 = vmax.f32 %v663_v42, 0.0 }
 0x2b4   :  { %v674_v35 = vpop.f32.mrf.mxu2  ;;  %v849_v32 = vpop.f32.mrf.mxu1 }
 0x2b5   :  { %v675_v23 = vadd.f32 %v674_v35, %v4008_v3  ;;  %v850_v26 = vadd.f32 %v849_v32, %v4008_v3  ;;  %v666_v32 = vadd.f32 %v665_v22, %v4020_v14 }
 0x2b7   :  { %v689_v35 = vmax.f32 %v675_v23, 0.0  ;;  %v686_v22 = vmax.f32 %v666_v32, 0.0 }
 0x2bc   :  { %v677_v28 = vpop.f32.mrf.mxu2  ;;  %v852_v24 = vpop.f32.mrf.mxu1 }
 0x2bd   :  { %v678_v19 = vadd.f32 %v677_v28, %v4016_v10  ;;  %v853_v29 = vadd.f32 %v852_v24, %v4016_v10  ;;  %v669_v24 = vadd.f32 %v668_v56, %v4012_v6  ;;  %v864_v10 = vmax.f32 %v850_v26, 0.0 }
 0x2be   :  { %v660_v26 = vadd.f32 %v659_v25, %v4029_v30 }
 0x2bf   :  { %v865_v16 = vmax.f32 %v853_v29, 0.0  ;;  %v690_v28 = vmax.f32 %v678_v19, 0.0 }
 0x2c4   :  { %v680_v52 = vpop.f32.mrf.mxu2  ;;  %v855_v44 = vpop.f32.mrf.mxu1 }
 0x2c5   :  { %v681_v21 = vadd.f32 %v680_v52, %v4010_v4  ;;  %v856_v41 = vadd.f32 %v855_v44, %v4010_v4  ;;  %v844_v52 = vadd.f32 %v843_v62, %v4012_v6  ;;  %v687_v44 = vmax.f32 %v669_v24, 0.0 }
 0x2c7   :  { %v866_v50 = vmax.f32 %v856_v41, 0.0  ;;  %v691_v63 = vmax.f32 %v681_v21, 0.0  ;;  %v841_v41 = vadd.f32 %v840_v60, %v4020_v14  ;;  %v863_v21 = vmax.f32 %v847_v46, 0.0 }
 0x2c8   :  { %v657_v46 = vadd.f32 %v656_v47, %v4035_v39  ;;  %v684_v60 = vmax.f32 %v660_v26, 0.0 }
 0x2c9   :  { %699 = vmatpush.msrb.mxu3 %v691_v63  ;;  %874 = vmatpush.msra.mxu2 %v866_v50  ;;  %v838_v63 = vadd.f32 %v837_v15, %v4031_v31  ;;  %v862_v50 = vmax.f32 %v844_v52, 0.0  ;;  %v861_v23 = vmax.f32 %v841_v41, 0.0 }
 0x2ca   :  { %v683_v25 = vmax.f32 %v657_v46, 0.0 }
 0x2cb   :  { %700 = vmatpush.msrb.mxu3 %v690_v28  ;;  %875 = vmatpush.msra.mxu2 %v865_v16  ;;  %v835_v16 = vadd.f32 %v834_v51, %v4029_v30  ;;  %v860_v54 = vmax.f32 %v838_v63, 0.0 }
 0x2cd   :  { %701 = vmatpush.msrb.mxu3 %v689_v35  ;;  %876 = vmatpush.msra.mxu2 %v864_v10  ;;  %v832_v10 = vadd.f32 %v831_v17, %v4035_v39  ;;  %v859_v15 = vmax.f32 %v835_v16, 0.0 }
 0x2cf   :  { %702 = vmatpush.msrb.mxu3 %v688_v38  ;;  %877 = vmatpush.msra.mxu2 %v863_v21  ;;  %v858_v56 = vmax.f32 %v832_v10, 0.0 }
 0x2d1   :  { %703 = vmatpush.msrb.mxu3 %v687_v44  ;;  %878 = vmatpush.msra.mxu2 %v862_v50 }
 0x2d3   :  { %704 = vmatpush.msrb.mxu3 %v686_v22  ;;  %879 = vmatpush.msra.mxu2 %v861_v23 }
 0x2d5   :  { %705 = vmatpush.msrb.mxu3 %v685_v53  ;;  %880 = vmatpush.msra.mxu2 %v860_v54 }
 0x2d7   :  { %706 = vmatpush.msrb.mxu3 %v684_v60  ;;  %881 = vmatpush.msra.mxu2 %v859_v15 }
 0x2d9   :  { %707 = vmatpush.msrb.mxu3 %v683_v25  ;;  %882 = vmatpush.msra.mxu2 %v858_v56 }
 0x2da   :  { %3209 = vmatmul.msk.f32.vlgmr.msrb.gmra.mxu3 %vm126_vm0, %v4047_v61  ;;  %3245 = vmatmul.msk.f32.vlgmr.msra.gmra.mxu2 %vm126_vm0, %v4047_v61 }
 0x2e2   :  { %3210 = vmatmul.msk.f32.gmra.mxu3 %vm126_vm0, %v4056_v0  ;;  %3246 = vmatmul.msk.f32.gmra.mxu2 %vm126_vm0, %v4056_v0 }
 0x2ea   :  { %3211 = vmatmul.msk.f32.gmra.mxu3 %vm126_vm0, %v4065_v55  ;;  %3247 = vmatmul.msk.f32.gmra.mxu2 %vm126_vm0, %v4065_v55 }
 0x2f2   :  { %3212 = vmatmul.msk.f32.gmra.mxu3 %vm126_vm0, %v4074_v1  ;;  %3248 = vmatmul.msk.f32.gmra.mxu2 %vm126_vm0, %v4074_v1 }
 0x2fa   :  { %3213 = vmatmul.msk.f32.gmra.mxu3 %vm126_vm0, %v4083_v2  ;;  %3249 = vmatmul.msk.f32.gmra.mxu2 %vm126_vm0, %v4083_v2 }
 0x302   :  { %3214 = vmatmul.msk.f32.gmra.mxu3 %vm126_vm0, %v4092_v5  ;;  %3250 = vmatmul.msk.f32.gmra.mxu2 %vm126_vm0, %v4092_v5 }
 0x30a   :  { %3215 = vmatmul.msk.f32.gmra.mxu3 %vm126_vm0, %v4101_v7  ;;  %3251 = vmatmul.msk.f32.gmra.mxu2 %vm126_vm0, %v4101_v7 }
 0x312   :  { %3216 = vmatmul.msk.f32.gmra.mxu3 %vm126_vm0, %v4110_v8  ;;  %3252 = vmatmul.msk.f32.gmra.mxu2 %vm126_vm0, %v4110_v8 }
 0x31a   :  { %3217 = vmatmul.msk.f32.gmra.mxu3 %vm126_vm0, %v4119_v11  ;;  %3253 = vmatmul.msk.f32.gmra.mxu2 %vm126_vm0, %v4119_v11 }
 0x35d   :  { %v709_v61 = vpop.f32.mrf.mxu3  ;;  %v884_v0 = vpop.f32.mrf.mxu2 }
 0x365   :  { %v712_v55 = vpop.f32.mrf.mxu3  ;;  %v887_v1 = vpop.f32.mrf.mxu2 }
 0x36d   :  { %v715_v2 = vpop.f32.mrf.mxu3  ;;  %v890_v5 = vpop.f32.mrf.mxu2 }
 0x36e   :  { %v716_v25 = vadd.f32 %v715_v2, %v4152_v34 }
 0x375   :  { %v718_v47 = vpop.f32.mrf.mxu3  ;;  %v893_v7 = vpop.f32.mrf.mxu2 }
 0x376   :  { %v719_v53 = vadd.f32 %v718_v47, %v4144_v49  ;;  %v894_v15 = vadd.f32 %v893_v7, %v4144_v49  ;;  %v710_v7 = vadd.f32 %v709_v61, %v4160_v48  ;;  %v3271_v61 = vld [vmem:[%s6423_s0 + $0x160] sm:$0xff] }
 0x378   :  { %v914_v47 = vmax.f32 %v894_v15, 0.0 }
 0x37d   :  { %v721_v17 = vpop.f32.mrf.mxu3  ;;  %v896_v51 = vpop.f32.mrf.mxu2 }
 0x37e   :  { %v722_v22 = vadd.f32 %v721_v17, %v4141_v45  ;;  %v897_v46 = vadd.f32 %v896_v51, %v4141_v45  ;;  %v713_v51 = vadd.f32 %v712_v55, %v4156_v43 }
 0x380   :  { %v915_v17 = vmax.f32 %v897_v46, 0.0  ;;  %v4564_v46 = vld [vmem:[%s6425_s1 + $0x18] sm:$0xff] }
 0x385   :  { %v724_v62 = vpop.f32.mrf.mxu3  ;;  %v899_v19 = vpop.f32.mrf.mxu2 }
 0x386   :  { %v725_v44 = vadd.f32 %v724_v62, %v4137_v40  ;;  %v900_v26 = vadd.f32 %v899_v19, %v4137_v40  ;;  %v891_v62 = vadd.f32 %v890_v5, %v4152_v34  ;;  %v740_v19 = vmax.f32 %v722_v22, 0.0  ;;  %v4555_v22 = vld [vmem:[%s6425_s1 + $0x10] sm:$0xff] }
 0x387   :  { %v737_v5 = vmax.f32 %v713_v51, 0.0 }
 0x388   :  { %v741_v60 = vmax.f32 %v725_v44, 0.0  ;;  %v916_v56 = vmax.f32 %v900_v26, 0.0  ;;  %v913_v2 = vmax.f32 %v891_v62, 0.0  ;;  %v3263_v44 = vld [vmem:[%s6423_s0 + $0x120] sm:$0xff]  ;;  %v3299_v26 = vld [vmem:[%s6423_s0 + $0x168] sm:$0xff] }
 0x389   :  { %v4615_v62 = vld [vmem:[%s6425_s1 + $0x40] sm:$0xff] }
 0x38a   :  { %6490 = vst [vmem:[#allocation25_spill] sm:$0xff] %v4615_v62 }
 0x38d   :  { %v727_v29 = vpop.f32.mrf.mxu3  ;;  %v902_v8 = vpop.f32.mrf.mxu2 }
 0x38e   :  { %v728_v38 = vadd.f32 %v727_v29, %v4135_v36  ;;  %v903_v42 = vadd.f32 %v902_v8, %v4135_v36  ;;  %v888_v29 = vadd.f32 %v887_v1, %v4156_v43  ;;  %v739_v8 = vmax.f32 %v719_v53, 0.0  ;;  %v3305_v1 = vld [vmem:[%s6423_s0 + $0x198] sm:$0xff]  ;;  %v4591_v53 = vld [vmem:[%s6425_s1 + $0x30] sm:$0xff] }
 0x38f   :  { %6485 = vst [vmem:[#allocation20_spill] sm:$0xff] %v4591_v53 }
 0x390   :  { %v742_v10 = vmax.f32 %v728_v38, 0.0  ;;  %v917_v54 = vmax.f32 %v903_v42, 0.0  ;;  %v3302_v38 = vld [vmem:[%s6423_s0 + $0x180] sm:$0xff]  ;;  %v3265_v42 = vld [vmem:[%s6423_s0 + $0x130] sm:$0xff] }
 0x395   :  { %v730_v28 = vpop.f32.mrf.mxu3  ;;  %v905_v24 = vpop.f32.mrf.mxu2 }
 0x396   :  { %v731_v11 = vadd.f32 %v730_v28, %v4133_v33  ;;  %v906_v32 = vadd.f32 %v905_v24, %v4133_v33  ;;  %v885_v28 = vadd.f32 %v884_v0, %v4160_v48  ;;  %v738_v24 = vmax.f32 %v716_v25, 0.0  ;;  %v3269_v0 = vld [vmem:[%s6423_s0 + $0x150] sm:$0xff] }
 0x398   :  { %v743_v16 = vmax.f32 %v731_v11, 0.0  ;;  %v918_v23 = vmax.f32 %v906_v32, 0.0  ;;  %v911_v55 = vmax.f32 %v885_v28, 0.0  ;;  %v3304_v11 = vld [vmem:[%s6423_s0 + $0x190] sm:$0xff]  ;;  %v3267_v32 = vld [vmem:[%s6423_s0 + $0x140] sm:$0xff] }
 0x39d   :  { %v733_v52 = vpop.f32.mrf.mxu3  ;;  %v908_v35 = vpop.f32.mrf.mxu2 }
 0x39e   :  { %v734_v41 = vadd.f32 %v733_v52, %v4131_v27  ;;  %v909_v21 = vadd.f32 %v908_v35, %v4131_v27  ;;  %v912_v52 = vmax.f32 %v888_v29, 0.0  ;;  %v736_v35 = vmax.f32 %v710_v7, 0.0 }
 0x3a0   :  { %v744_v63 = vmax.f32 %v734_v41, 0.0  ;;  %v919_v50 = vmax.f32 %v909_v21, 0.0  ;;  %v3303_v41 = vld [vmem:[%s6423_s0 + $0x188] sm:$0xff]  ;;  %v3266_v21 = vld [vmem:[%s6423_s0 + $0x138] sm:$0xff] }
 0x3a2   :  { %752 = vmatpush.msra.mxu0 %v744_v63  ;;  %927 = vmatpush.msra.mxu3 %v919_v50  ;;  %v3301_v63 = vld [vmem:[%s6423_s0 + $0x178] sm:$0xff]  ;;  %v3300_v50 = vld [vmem:[%s6423_s0 + $0x170] sm:$0xff] }
 0x3a4   :  { %753 = vmatpush.msra.mxu0 %v743_v16  ;;  %928 = vmatpush.msra.mxu3 %v918_v23  ;;  %v6483_v16 = vld [vmem:[#allocation3_spill] sm:$0xff]  ;;  %v4546_v23 = vld [vmem:[%s6425_s1 + $0x8] sm:$0xff] }
 0x3a6   :  { %754 = vmatpush.msra.mxu0 %v742_v10  ;;  %929 = vmatpush.msra.mxu3 %v917_v54  ;;  %v4573_v10 = vld [vmem:[%s6425_s1 + $0x20] sm:$0xff]  ;;  %v4582_v54 = vld [vmem:[%s6425_s1 + $0x28] sm:$0xff] }
 0x3a7   :  { %6484 = vst [vmem:[#allocation3_spill] sm:$0xff] %v4582_v54 }
 0x3a8   :  { %755 = vmatpush.msra.mxu0 %v741_v60  ;;  %930 = vmatpush.msra.mxu3 %v916_v56  ;;  %v4602_v60 = vld [vmem:[%s6425_s1 + $0x38] sm:$0xff] }
 0x3a9   :  { %6487 = vst [vmem:[#allocation22_spill] sm:$0xff] %v4602_v60 }
 0x3aa   :  { %756 = vmatpush.msra.mxu0 %v740_v19  ;;  %931 = vmatpush.msra.mxu3 %v915_v17 }
 0x3ac   :  { %757 = vmatpush.msra.mxu0 %v739_v8  ;;  %932 = vmatpush.msra.mxu3 %v914_v47 }
 0x3ae   :  { %758 = vmatpush.msra.mxu0 %v738_v24  ;;  %933 = vmatpush.msra.mxu3 %v913_v2 }
 0x3b0   :  { %759 = vmatpush.msra.mxu0 %v737_v5  ;;  %934 = vmatpush.msra.mxu3 %v912_v52 }
 0x3b2   :  { %760 = vmatpush.msra.mxu0 %v736_v35  ;;  %935 = vmatpush.msra.mxu3 %v911_v55 }
 0x3b3   :  { %3218 = vmatmul.msk.f32.vlgmr.msra.gmra.mxu0 %vm126_vm0, %v4170_v12  ;;  %3254 = vmatmul.msk.f32.vlgmr.msra.gmra.mxu3 %vm126_vm0, %v4170_v12  ;;  %v3307_v12 = vld [vmem:[%s6423_s0 + $0x1a8] sm:$0xff] }
 0x3b4   :  { %996 = vmatpush.msrb.mxu0 %v3271_v61  ;;  %1171 = vmatpush.msrb.mxu3 %v3307_v12 }
 0x3bb   :  { %3219 = vmatmul.msk.f32.gmra.mxu0 %vm126_vm0, %v4179_v59  ;;  %3255 = vmatmul.msk.f32.gmra.mxu3 %vm126_vm0, %v4179_v59  ;;  %v3270_v59 = vld [vmem:[%s6423_s0 + $0x158] sm:$0xff] }
 0x3bc   :  { %997 = vmatpush.msrb.mxu0 %v3270_v59 }
 0x3be   :  { %998 = vmatpush.msrb.mxu0 %v3269_v0 }
 0x3c3   :  { %3220 = vmatmul.msk.f32.gmra.mxu0 %vm126_vm0, %v4188_v13  ;;  %3256 = vmatmul.msk.f32.gmra.mxu3 %vm126_vm0, %v4188_v13  ;;  %v3306_v13 = vld [vmem:[%s6423_s0 + $0x1a0] sm:$0xff] }
 0x3c4   :  { %1172 = vmatpush.msrb.mxu3 %v3306_v13 }
 0x3c6   :  { %1173 = vmatpush.msrb.mxu3 %v3305_v1 }
 0x3c8   :  { %1174 = vmatpush.msrb.mxu3 %v3304_v11 }
 0x3ca   :  { %1175 = vmatpush.msrb.mxu3 %v3303_v41 }
 0x3cb   :  { %3221 = vmatmul.msk.f32.gmra.mxu0 %vm126_vm0, %v4197_v57  ;;  %3257 = vmatmul.msk.f32.gmra.mxu3 %vm126_vm0, %v4197_v57  ;;  %v3268_v57 = vld [vmem:[%s6423_s0 + $0x148] sm:$0xff] }
 0x3cc   :  { %999 = vmatpush.msrb.mxu0 %v3268_v57  ;;  %1176 = vmatpush.msrb.mxu3 %v3302_v38 }
 0x3ce   :  { %1000 = vmatpush.msrb.mxu0 %v3267_v32  ;;  %1177 = vmatpush.msrb.mxu3 %v3301_v63 }
 0x3d0   :  { %1001 = vmatpush.msrb.mxu0 %v3266_v21  ;;  %1178 = vmatpush.msrb.mxu3 %v3300_v50 }
 0x3d2   :  { %1002 = vmatpush.msrb.mxu0 %v3265_v42  ;;  %1179 = vmatpush.msrb.mxu3 %v3299_v26 }
 0x3d3   :  { %3222 = vmatmul.msk.f32.gmra.mxu0 %vm126_vm0, %v4221_v37  ;;  %3258 = vmatmul.msk.f32.gmra.mxu3 %vm126_vm0, %v4221_v37  ;;  %v3264_v37 = vld [vmem:[%s6423_s0 + $0x128] sm:$0xff] }
 0x3d4   :  { %1003 = vmatpush.msrb.mxu0 %v3264_v37 }
 0x3d6   :  { %1004 = vmatpush.msrb.mxu0 %v3263_v44 }
 0x3db   :  { %3223 = vmatmul.msk.f32.gmra.mxu0 %vm126_vm0, %v4254_v58  ;;  %3259 = vmatmul.msk.f32.gmra.mxu3 %vm126_vm0, %v4254_v58  ;;  %v4537_v58 = vld [vmem:[%s6425_s1] sm:$0xff] }
 0x3e3   :  { %3224 = vmatmul.msk.f32.gmra.mxu0 %vm126_vm0, %v4278_v20  ;;  %3260 = vmatmul.msk.f32.gmra.mxu3 %vm126_vm0, %v4278_v20 }
 0x3eb   :  { %3225 = vmatmul.msk.f32.gmra.mxu0 %vm126_vm0, %v4287_v18  ;;  %3261 = vmatmul.msk.f32.gmra.mxu3 %vm126_vm0, %v4287_v18 }
 0x3f3   :  { %3226 = vmatmul.msk.f32.gmra.mxu0 %vm126_vm0, %v6483_v16  ;;  %3262 = vmatmul.msk.f32.gmra.mxu3 %vm126_vm0, %v6483_v16 }
 0x3fb   :  { %3272 = vmatmul.msk.f32.vlgmr.msrb.gmra.mxu0 %vm126_vm0, %v4537_v58  ;;  %3308 = vmatmul.msk.f32.vlgmr.msrb.gmra.mxu3 %vm126_vm0, %v4537_v58 }
 0x403   :  { %3273 = vmatmul.msk.f32.gmra.mxu0 %vm126_vm0, %v4546_v23  ;;  %3309 = vmatmul.msk.f32.gmra.mxu3 %vm126_vm0, %v4546_v23 }
 0x40b   :  { %3274 = vmatmul.msk.f32.gmra.mxu0 %vm126_vm0, %v4555_v22  ;;  %3310 = vmatmul.msk.f32.gmra.mxu3 %vm126_vm0, %v4555_v22 }
 0x413   :  { %3275 = vmatmul.msk.f32.gmra.mxu0 %vm126_vm0, %v4564_v46  ;;  %3311 = vmatmul.msk.f32.gmra.mxu3 %vm126_vm0, %v4564_v46 }
 0x41b   :  { %3276 = vmatmul.msk.f32.gmra.mxu0 %vm126_vm0, %v4573_v10  ;;  %3312 = vmatmul.msk.f32.gmra.mxu3 %vm126_vm0, %v4573_v10 }
 0x423   :  { %3277 = vmatmul.msk.f32.gmra.mxu0 %vm126_vm0, %v4582_v54  ;;  %3313 = vmatmul.msk.f32.gmra.mxu3 %vm126_vm0, %v4582_v54 }
 0x42b   :  { %3278 = vmatmul.msk.f32.gmra.mxu0 %vm126_vm0, %v4591_v53  ;;  %3314 = vmatmul.msk.f32.gmra.mxu3 %vm126_vm0, %v4591_v53 }
 0x430   :  { %v4597_v15 = vpop.f32.mrf.mxu0 }
 0x431   :  { %6486 = vst [vmem:[#allocation21_spill] sm:$0xff] %v4597_v15 }
 0x433   :  { %3279 = vmatmul.msk.f32.gmra.mxu0 %vm126_vm0, %v4602_v60  ;;  %3315 = vmatmul.msk.f32.gmra.mxu3 %vm126_vm0, %v4602_v60 }
 0x436   :  { %v4608_v56 = vpop.f32.mrf.mxu3 }
 0x437   :  { %6488 = vst [vmem:[#allocation23_spill] sm:$0xff] %v4608_v56 }
 0x438   :  { %v4610_v25 = vpop.f32.mrf.mxu0 }
 0x439   :  { %6489 = vst [vmem:[#allocation24_spill] sm:$0xff] %v4610_v25 }
 0x43b   :  { %3280 = vmatmul.msk.f32.gmra.mxu0 %vm126_vm0, %v4615_v62  ;;  %3316 = vmatmul.msk.f32.gmra.mxu3 %vm126_vm0, %v4615_v62 }
 0x43e   :  { %v4621_v19 = vpop.f32.mrf.mxu3 }
 0x43f   :  { %6491 = vst [vmem:[#allocation26_spill] sm:$0xff] %v4621_v19 }
 0x440   :  { %v4623_v17 = vpop.f32.mrf.mxu0 }
 0x441   :  { %6492 = vst [vmem:[#allocation27_spill] sm:$0xff] %v4623_v17 }
 0x446   :  { %v4625_v51 = vpop.f32.mrf.mxu3 }
 0x447   :  { %6493 = vst [vmem:[#allocation28_spill] sm:$0xff] %v4625_v51  ;;  %v6504_v51 = vld [vmem:[#allocation2_spill] sm:$0xff] }
 0x448   :  { %v4627_v29 = vpop.f32.mrf.mxu0 }
 0x449   :  { %6494 = vst [vmem:[#allocation29_spill] sm:$0xff] %v4627_v29 }
 0x44e   :  { %v4629_v8 = vpop.f32.mrf.mxu3 }
 0x44f   :  { %6495 = vst [vmem:[#allocation30_spill] sm:$0xff] %v4629_v8 }
 0x450   :  { %v4631_v47 = vpop.f32.mrf.mxu0 }
 0x451   :  { %6496 = vst [vmem:[#allocation31_spill] sm:$0xff] %v4631_v47 }
 0x456   :  { %v4633_v7 = vpop.f32.mrf.mxu3 }
 0x457   :  { %6497 = vst [vmem:[#allocation32_spill] sm:$0xff] %v4633_v7 }
 0x458   :  { %v4635_v28 = vpop.f32.mrf.mxu0 }
 0x459   :  { %6498 = vst [vmem:[#allocation33_spill] sm:$0xff] %v4635_v28 }
 0x45e   :  { %v4637_v24 = vpop.f32.mrf.mxu3 }
 0x45f   :  { %6499 = vst [vmem:[#allocation34_spill] sm:$0xff] %v4637_v24 }
 0x460   :  { %v4639_v2 = vpop.f32.mrf.mxu0 }
 0x461   :  { %6500 = vst [vmem:[#allocation35_spill] sm:$0xff] %v4639_v2 }
 0x466   :  { %v4641_v5 = vpop.f32.mrf.mxu3 }
 0x467   :  { %6501 = vst [vmem:[#allocation36_spill] sm:$0xff] %v4641_v5 }
 0x468   :  { %v4643_v52 = vpop.f32.mrf.mxu0 }
 0x469   :  { %6502 = vst [vmem:[#allocation37_spill] sm:$0xff] %v4643_v52 }
 0x46e   :  { %v4645_v35 = vpop.f32.mrf.mxu3 }
 0x46f   :  { %6503 = vst [vmem:[#allocation38_spill] sm:$0xff] %v4645_v35 }
 0x470   :  { %v786_v55 = vpop.f32.mrf.mxu0 }
 0x476   :  { %v961_v61 = vpop.f32.mrf.mxu3 }
 0x478   :  { %v1006_v12 = vpop.f32.mrf.mxu0 }
 0x47e   :  { %v1181_v59 = vpop.f32.mrf.mxu3 }
 0x480   :  { %v1009_v13 = vpop.f32.mrf.mxu0 }
 0x486   :  { %v1184_v0 = vpop.f32.mrf.mxu3 }
 0x488   :  { %v1012_v1 = vpop.f32.mrf.mxu0 }
 0x48e   :  { %v1187_v57 = vpop.f32.mrf.mxu3 }
 0x490   :  { %v1015_v11 = vpop.f32.mrf.mxu0 }
 0x496   :  { %v1190_v32 = vpop.f32.mrf.mxu3 }
 0x498   :  { %v1018_v41 = vpop.f32.mrf.mxu0 }
 0x499   :  { %v1019_v35 = vadd.f32 %v1018_v41, %v4012_v6 }
 0x49e   :  { %v1193_v21 = vpop.f32.mrf.mxu3 }
 0x4a0   :  { %v1021_v38 = vpop.f32.mrf.mxu0 }
 0x4a1   :  { %v1022_v25 = vadd.f32 %v1021_v38, %v4014_v9  ;;  %v1013_v38 = vadd.f32 %v1012_v1, %v4031_v31 }
 0x4a3   :  { %v1038_v24 = vmax.f32 %v1022_v25, 0.0  ;;  %v1007_v25 = vadd.f32 %v1006_v12, %v4035_v39  ;;  %v1182_v12 = vadd.f32 %v1181_v59, %v4035_v39  ;;  %v4677_v59 = vld [vmem:[%s6425_s1 + $0x50] sm:$0xff] }
 0x4a6   :  { %v1196_v42 = vpop.f32.mrf.mxu3 }
 0x4a8   :  { %v1024_v63 = vpop.f32.mrf.mxu0 }
 0x4a9   :  { %v1025_v17 = vadd.f32 %v1024_v63, %v4008_v3 }
 0x4ab   :  { %v1039_v52 = vmax.f32 %v1025_v17, 0.0  ;;  %v1010_v17 = vadd.f32 %v1009_v13, %v4029_v30  ;;  %v1033_v13 = vmax.f32 %v1007_v25, 0.0 }
 0x4ae   :  { %v1199_v37 = vpop.f32.mrf.mxu3 }
 0x4b0   :  { %v1027_v50 = vpop.f32.mrf.mxu0 }
 0x4b1   :  { %v1028_v55 = vadd.f32 %v1027_v50, %v6504_v51  ;;  %v1016_v50 = vadd.f32 %v1015_v11, %v4020_v14  ;;  %v1185_v11 = vadd.f32 %v1184_v0, %v4029_v30  ;;  %v4686_v0 = vld [vmem:[%s6425_s1 + $0x58] sm:$0xff] }
 0x4b3   :  { %v1040_v56 = vmax.f32 %v1028_v55, 0.0  ;;  %v1037_v55 = vmax.f32 %v1019_v35, 0.0  ;;  %v1036_v41 = vmax.f32 %v1016_v50, 0.0  ;;  %v1034_v35 = vmax.f32 %v1010_v17, 0.0  ;;  %v4704_v50 = vld [vmem:[%s6425_s1 + $0x68] sm:$0xff] }
 0x4b6   :  { %v1202_v44 = vpop.f32.mrf.mxu3 }
 0x4b7   :  { %v1203_v5 = vadd.f32 %v1202_v44, %v6504_v51  ;;  %v4695_v44 = vld [vmem:[%s6425_s1 + $0x60] sm:$0xff] }
 0x4b8   :  { %v1030_v26 = vpop.f32.mrf.mxu0 }
 0x4b9   :  { %v1031_v61 = vadd.f32 %v1030_v26, %v4010_v4  ;;  %v1200_v26 = vadd.f32 %v1199_v37, %v4008_v3  ;;  %v1208_v37 = vmax.f32 %v1182_v12, 0.0 }
 0x4bb   :  { %v1041_v19 = vmax.f32 %v1031_v61, 0.0  ;;  %v1215_v61 = vmax.f32 %v1203_v5, 0.0 }
 0x4bd   :  { %1049 = vmatpush.msrb.mxu1 %v1041_v19  ;;  %v1197_v19 = vadd.f32 %v1196_v42, %v4014_v9 }
 0x4be   :  { %v1205_v15 = vpop.f32.mrf.mxu3 }
 0x4bf   :  { %v1206_v2 = vadd.f32 %v1205_v15, %v4010_v4  ;;  %1050 = vmatpush.msrb.mxu1 %v1040_v56  ;;  %v1194_v15 = vadd.f32 %v1193_v21, %v4012_v6  ;;  %v1214_v56 = vmax.f32 %v1200_v26, 0.0  ;;  %v1213_v1 = vmax.f32 %v1197_v19, 0.0  ;;  %v4713_v26 = vld [vmem:[%s6425_s1 + $0x70] sm:$0xff] }
 0x4c0   :  { %6505 = vst [vmem:[#allocation2_spill] sm:$0xff] %v4713_v26 }
 0x4c1   :  { %v1216_v63 = vmax.f32 %v1206_v2, 0.0  ;;  %1051 = vmatpush.msrb.mxu1 %v1039_v52  ;;  %v1035_v2 = vmax.f32 %v1013_v38, 0.0  ;;  %v1191_v52 = vadd.f32 %v1190_v32, %v4020_v14  ;;  %v1212_v5 = vmax.f32 %v1194_v15, 0.0  ;;  %v4668_v32 = vld [vmem:[%s6425_s1 + $0x48] sm:$0xff]  ;;  %v4731_v38 = vld [vmem:[%s6425_s1 + $0x80] sm:$0xff] }
 0x4c2   :  { %6507 = vst [vmem:[#allocation40_spill] sm:$0xff] %v4731_v38 }
 0x4c3   :  { %1052 = vmatpush.msrb.mxu1 %v1038_v24  ;;  %1224 = vmatpush.msra.mxu0 %v1216_v63  ;;  %v1188_v24 = vadd.f32 %v1187_v57, %v4031_v31  ;;  %v1211_v21 = vmax.f32 %v1191_v52, 0.0  ;;  %v1209_v57 = vmax.f32 %v1185_v11, 0.0  ;;  %v4722_v63 = vld [vmem:[%s6425_s1 + $0x78] sm:$0xff] }
 0x4c4   :  { %6506 = vst [vmem:[#allocation39_spill] sm:$0xff] %v4722_v63 }
 0x4c5   :  { %1053 = vmatpush.msrb.mxu1 %v1037_v55  ;;  %1225 = vmatpush.msra.mxu0 %v1215_v61  ;;  %v1210_v42 = vmax.f32 %v1188_v24, 0.0  ;;  %v4740_v55 = vld [vmem:[%s6425_s1 + $0x88] sm:$0xff] }
 0x4c6   :  { %6508 = vst [vmem:[#allocation41_spill] sm:$0xff] %v4740_v55 }
 0x4c7   :  { %1054 = vmatpush.msrb.mxu1 %v1036_v41  ;;  %1226 = vmatpush.msra.mxu0 %v1214_v56 }
 0x4c9   :  { %1055 = vmatpush.msrb.mxu1 %v1035_v2  ;;  %1227 = vmatpush.msra.mxu0 %v1213_v1 }
 0x4cb   :  { %1056 = vmatpush.msrb.mxu1 %v1034_v35  ;;  %1228 = vmatpush.msra.mxu0 %v1212_v5 }
 0x4cd   :  { %1057 = vmatpush.msrb.mxu1 %v1033_v13  ;;  %1229 = vmatpush.msra.mxu0 %v1211_v21 }
 0x4ce   :  { %3281 = vmatmul.msk.f32.vlgmr.msrb.gmra.mxu1 %vm126_vm0, %v4668_v32 }
 0x4cf   :  { %1230 = vmatpush.msra.mxu0 %v1210_v42 }
 0x4d1   :  { %1231 = vmatpush.msra.mxu0 %v1209_v57 }
 0x4d3   :  { %1232 = vmatpush.msra.mxu0 %v1208_v37 }
 0x4d4   :  { %3317 = vmatmul.msk.f32.vlgmr.msra.gmra.mxu0 %vm126_vm0, %v4668_v32 }
 0x4d6   :  { %3282 = vmatmul.msk.f32.gmra.mxu1 %vm126_vm0, %v4677_v59 }
 0x4dc   :  { %3318 = vmatmul.msk.f32.gmra.mxu0 %vm126_vm0, %v4677_v59 }
 0x4de   :  { %3283 = vmatmul.msk.f32.gmra.mxu1 %vm126_vm0, %v4686_v0 }
 0x4e4   :  { %3319 = vmatmul.msk.f32.gmra.mxu0 %vm126_vm0, %v4686_v0 }
 0x4e6   :  { %3284 = vmatmul.msk.f32.gmra.mxu1 %vm126_vm0, %v4695_v44 }
 0x4ec   :  { %3320 = vmatmul.msk.f32.gmra.mxu0 %vm126_vm0, %v4695_v44 }
 0x4ee   :  { %3285 = vmatmul.msk.f32.gmra.mxu1 %vm126_vm0, %v4704_v50 }
 0x4f4   :  { %3321 = vmatmul.msk.f32.gmra.mxu0 %vm126_vm0, %v4704_v50 }
 0x4f6   :  { %3286 = vmatmul.msk.f32.gmra.mxu1 %vm126_vm0, %v4713_v26 }
 0x4fc   :  { %3322 = vmatmul.msk.f32.gmra.mxu0 %vm126_vm0, %v4713_v26 }
 0x4fe   :  { %3287 = vmatmul.msk.f32.gmra.mxu1 %vm126_vm0, %v4722_v63 }
 0x504   :  { %3323 = vmatmul.msk.f32.gmra.mxu0 %vm126_vm0, %v4722_v63 }
 0x506   :  { %3288 = vmatmul.msk.f32.gmra.mxu1 %vm126_vm0, %v4731_v38 }
 0x50c   :  { %3324 = vmatmul.msk.f32.gmra.mxu0 %vm126_vm0, %v4731_v38 }
 0x50e   :  { %3289 = vmatmul.msk.f32.gmra.mxu1 %vm126_vm0, %v4740_v55 }
 0x514   :  { %3325 = vmatmul.msk.f32.gmra.mxu0 %vm126_vm0, %v4740_v55 }
 0x54b   :  { %v1059_v19 = vpop.f32.mrf.mxu1 }
 0x551   :  { %v1234_v61 = vpop.f32.mrf.mxu0 }
 0x553   :  { %v1062_v17 = vpop.f32.mrf.mxu1 }
 0x559   :  { %v1237_v41 = vpop.f32.mrf.mxu0 }
 0x55b   :  { %v1065_v15 = vpop.f32.mrf.mxu1 }
 0x561   :  { %v1240_v56 = vpop.f32.mrf.mxu0 }
 0x563   :  { %v1068_v25 = vpop.f32.mrf.mxu1 }
 0x569   :  { %v1243_v2 = vpop.f32.mrf.mxu0 }
 0x56b   :  { %v1071_v52 = vpop.f32.mrf.mxu1 }
 0x56c   :  { %v1072_v29 = vadd.f32 %v1071_v52, %v4141_v45  ;;  %v1063_v52 = vadd.f32 %v1062_v17, %v4156_v43 }
 0x571   :  { %v1246_v1 = vpop.f32.mrf.mxu0 }
 0x573   :  { %v1074_v35 = vpop.f32.mrf.mxu1 }
 0x574   :  { %v1075_v7 = vadd.f32 %v1074_v35, %v4137_v40  ;;  %v1066_v35 = vadd.f32 %v1065_v15, %v4152_v34 }
 0x576   :  { %v1091_v26 = vmax.f32 %v1075_v7, 0.0  ;;  %v1060_v7 = vadd.f32 %v1059_v19, %v4160_v48  ;;  %v1235_v19 = vadd.f32 %v1234_v61, %v4160_v48  ;;  %v4776_v61 = vld [vmem:[%s6425_s1 + $0x98] sm:$0xff] }
 0x578   :  { %v1086_v17 = vmax.f32 %v1060_v7, 0.0  ;;  %v3376_v7 = vld [vmem:[%s6423_s0 + $0x220] sm:$0xff] }
 0x579   :  { %v1249_v24 = vpop.f32.mrf.mxu0 }
 0x57b   :  { %v1077_v5 = vpop.f32.mrf.mxu1 }
 0x57c   :  { %v1078_v37 = vadd.f32 %v1077_v5, %v4135_v36 }
 0x57e   :  { %v1092_v55 = vmax.f32 %v1078_v37, 0.0  ;;  %v3343_v37 = vld [vmem:[%s6423_s0 + $0x1f0] sm:$0xff] }
 0x581   :  { %v1252_v13 = vpop.f32.mrf.mxu0 }
 0x583   :  { %v1080_v11 = vpop.f32.mrf.mxu1 }
 0x584   :  { %v1081_v42 = vadd.f32 %v1080_v11, %v4133_v33  ;;  %v1069_v11 = vadd.f32 %v1068_v25, %v4144_v49  ;;  %v1238_v25 = vadd.f32 %v1237_v41, %v4156_v43  ;;  %v4785_v41 = vld [vmem:[%s6425_s1 + $0xa0] sm:$0xff] }
 0x586   :  { %v1093_v47 = vmax.f32 %v1081_v42, 0.0  ;;  %v1090_v42 = vmax.f32 %v1072_v29, 0.0  ;;  %v1087_v29 = vmax.f32 %v1063_v52, 0.0  ;;  %v4824_v52 = vld [vmem:[%s6425_s1 + $0xb0] sm:$0xff] }
 0x589   :  { %v1255_v21 = vpop.f32.mrf.mxu0 }
 0x58a   :  { %v1256_v38 = vadd.f32 %v1255_v21, %v4133_v33  ;;  %v1089_v21 = vmax.f32 %v1069_v11, 0.0  ;;  %v4797_v11 = vld [vmem:[%s6425_s1 + $0xa8] sm:$0xff] }
 0x58b   :  { %v1083_v12 = vpop.f32.mrf.mxu1 }
 0x58c   :  { %v1084_v57 = vadd.f32 %v1083_v12, %v4131_v27  ;;  %v1253_v12 = vadd.f32 %v1252_v13, %v4135_v36  ;;  %v1261_v13 = vmax.f32 %v1235_v19, 0.0 }
 0x58e   :  { %v1094_v28 = vmax.f32 %v1084_v57, 0.0  ;;  %v1268_v57 = vmax.f32 %v1256_v38, 0.0 }
 0x590   :  { %1102 = vmatpush.msrb.mxu2 %v1094_v28  ;;  %v1250_v28 = vadd.f32 %v1249_v24, %v4137_v40 }
 0x591   :  { %v1258_v8 = vpop.f32.mrf.mxu0 }
 0x592   :  { %v1259_v63 = vadd.f32 %v1258_v8, %v4131_v27  ;;  %1103 = vmatpush.msrb.mxu2 %v1093_v47  ;;  %v1247_v8 = vadd.f32 %v1246_v1, %v4141_v45  ;;  %v1267_v47 = vmax.f32 %v1253_v12, 0.0  ;;  %v1266_v15 = vmax.f32 %v1250_v28, 0.0  ;;  %v3342_v12 = vld [vmem:[%s6423_s0 + $0x1e8] sm:$0xff]  ;;  %v3339_v28 = vld [vmem:[%s6423_s0 + $0x1d0] sm:$0xff] }
 0x594   :  { %v1269_v5 = vmax.f32 %v1259_v63, 0.0  ;;  %1104 = vmatpush.msrb.mxu2 %v1092_v55  ;;  %v1088_v63 = vmax.f32 %v1066_v35, 0.0  ;;  %v1244_v55 = vadd.f32 %v1243_v2, %v4144_v49  ;;  %v1265_v38 = vmax.f32 %v1247_v8, 0.0  ;;  %v4767_v2 = vld [vmem:[%s6425_s1 + $0x90] sm:$0xff]  ;;  %v3379_v35 = vld [vmem:[%s6423_s0 + $0x238] sm:$0xff]  ;;  %v3377_v8 = vld [vmem:[%s6423_s0 + $0x228] sm:$0xff] }
 0x596   :  { %1105 = vmatpush.msrb.mxu2 %v1091_v26  ;;  %1277 = vmatpush.msra.mxu1 %v1269_v5  ;;  %v1241_v26 = vadd.f32 %v1240_v56, %v4152_v34  ;;  %v1264_v1 = vmax.f32 %v1244_v55, 0.0  ;;  %v1262_v56 = vmax.f32 %v1238_v25, 0.0  ;;  %v3341_v5 = vld [vmem:[%s6423_s0 + $0x1e0] sm:$0xff]  ;;  %v3375_v55 = vld [vmem:[%s6423_s0 + $0x218] sm:$0xff] }
 0x597   :  { %v3371_v25 = vld [vmem:[%s6423_s0 + $0x1f8] sm:$0xff] }
 0x598   :  { %1106 = vmatpush.msrb.mxu2 %v1090_v42  ;;  %1278 = vmatpush.msra.mxu1 %v1268_v57  ;;  %v1263_v24 = vmax.f32 %v1241_v26, 0.0  ;;  %v3340_v42 = vld [vmem:[%s6423_s0 + $0x1d8] sm:$0xff]  ;;  %v3378_v57 = vld [vmem:[%s6423_s0 + $0x230] sm:$0xff] }
 0x599   :  { %v4857_v26 = vld [vmem:[%s6425_s1 + $0xb8] sm:$0xff] }
 0x59a   :  { %1107 = vmatpush.msrb.mxu2 %v1089_v21  ;;  %1279 = vmatpush.msra.mxu1 %v1267_v47  ;;  %v3338_v21 = vld [vmem:[%s6423_s0 + $0x1c8] sm:$0xff]  ;;  %v3337_v47 = vld [vmem:[%s6423_s0 + $0x1c0] sm:$0xff] }
 0x59c   :  { %1108 = vmatpush.msrb.mxu2 %v1088_v63  ;;  %1280 = vmatpush.msra.mxu1 %v1266_v15  ;;  %v3336_v63 = vld [vmem:[%s6423_s0 + $0x1b8] sm:$0xff]  ;;  %v3335_v15 = vld [vmem:[%s6423_s0 + $0x1b0] sm:$0xff] }
 0x59e   :  { %1109 = vmatpush.msrb.mxu2 %v1087_v29  ;;  %1281 = vmatpush.msra.mxu1 %v1265_v38  ;;  %v3374_v29 = vld [vmem:[%s6423_s0 + $0x210] sm:$0xff]  ;;  %v3373_v38 = vld [vmem:[%s6423_s0 + $0x208] sm:$0xff] }
 0x5a0   :  { %1110 = vmatpush.msrb.mxu2 %v1086_v17  ;;  %1282 = vmatpush.msra.mxu1 %v1264_v1  ;;  %v3372_v17 = vld [vmem:[%s6423_s0 + $0x200] sm:$0xff] }
 0x5a1   :  { %3290 = vmatmul.msk.f32.vlgmr.msrb.gmra.mxu2 %vm126_vm0, %v4767_v2 }
 0x5a2   :  { %1283 = vmatpush.msra.mxu1 %v1263_v24  ;;  %1346 = vmatpush.msra.mxu2 %v3343_v37 }
 0x5a4   :  { %1284 = vmatpush.msra.mxu1 %v1262_v56  ;;  %1347 = vmatpush.msra.mxu2 %v3342_v12 }
 0x5a6   :  { %1285 = vmatpush.msra.mxu1 %v1261_v13  ;;  %1348 = vmatpush.msra.mxu2 %v3341_v5 }
 0x5a7   :  { %3326 = vmatmul.msk.f32.vlgmr.msra.gmra.mxu1 %vm126_vm0, %v4767_v2 }
 0x5a8   :  { %1521 = vmatpush.msrb.mxu1 %v3379_v35  ;;  %1349 = vmatpush.msra.mxu2 %v3340_v42 }
 0x5a9   :  { %3291 = vmatmul.msk.f32.gmra.mxu2 %vm126_vm0, %v4776_v61 }
 0x5aa   :  { %1350 = vmatpush.msra.mxu2 %v3339_v28  ;;  %1522 = vmatpush.msrb.mxu1 %v3378_v57 }
 0x5ac   :  { %1351 = vmatpush.msra.mxu2 %v3338_v21  ;;  %1523 = vmatpush.msrb.mxu1 %v3377_v8 }
 0x5ae   :  { %1352 = vmatpush.msra.mxu2 %v3337_v47  ;;  %1524 = vmatpush.msrb.mxu1 %v3376_v7 }
 0x5af   :  { %3327 = vmatmul.msk.f32.gmra.mxu1 %vm126_vm0, %v4776_v61 }
 0x5b0   :  { %1353 = vmatpush.msra.mxu2 %v3336_v63  ;;  %1525 = vmatpush.msrb.mxu1 %v3375_v55 }
 0x5b1   :  { %3292 = vmatmul.msk.f32.gmra.mxu2 %vm126_vm0, %v4785_v41 }
 0x5b2   :  { %1354 = vmatpush.msra.mxu2 %v3335_v15  ;;  %1526 = vmatpush.msrb.mxu1 %v3374_v29 }
 0x5b4   :  { %1527 = vmatpush.msrb.mxu1 %v3373_v38 }
 0x5b6   :  { %1528 = vmatpush.msrb.mxu1 %v3372_v17 }
 0x5b7   :  { %3328 = vmatmul.msk.f32.gmra.mxu1 %vm126_vm0, %v4785_v41 }
 0x5b8   :  { %1529 = vmatpush.msrb.mxu1 %v3371_v25 }
 0x5b9   :  { %3293 = vmatmul.msk.f32.gmra.mxu2 %vm126_vm0, %v4797_v11 }
 0x5bf   :  { %3329 = vmatmul.msk.f32.gmra.mxu1 %vm126_vm0, %v4797_v11 }
 0x5c1   :  { %3294 = vmatmul.msk.f32.gmra.mxu2 %vm126_vm0, %v4824_v52 }
 0x5c7   :  { %3330 = vmatmul.msk.f32.gmra.mxu1 %vm126_vm0, %v4824_v52 }
 0x5c9   :  { %3295 = vmatmul.msk.f32.gmra.mxu2 %vm126_vm0, %v4857_v26 }
 0x5cf   :  { %3331 = vmatmul.msk.f32.gmra.mxu1 %vm126_vm0, %v4857_v26 }
 0x5d1   :  { %3296 = vmatmul.msk.f32.gmra.mxu2 %vm126_vm0, %v4278_v20 }
 0x5d7   :  { %3332 = vmatmul.msk.f32.gmra.mxu1 %vm126_vm0, %v4278_v20 }
 0x5d9   :  { %3297 = vmatmul.msk.f32.gmra.mxu2 %vm126_vm0, %v4287_v18 }
 0x5df   :  { %3333 = vmatmul.msk.f32.gmra.mxu1 %vm126_vm0, %v4287_v18 }
 0x5e1   :  { %3298 = vmatmul.msk.f32.gmra.mxu2 %vm126_vm0, %v6483_v16 }
 0x5e7   :  { %3334 = vmatmul.msk.f32.gmra.mxu1 %vm126_vm0, %v6483_v16 }
 0x5e9   :  { %3344 = vmatmul.msk.f32.vlgmr.msra.gmra.mxu2 %vm126_vm0, %v4537_v58 }
 0x5ef   :  { %3380 = vmatmul.msk.f32.vlgmr.msrb.gmra.mxu1 %vm126_vm0, %v4537_v58 }
 0x5f1   :  { %3345 = vmatmul.msk.f32.gmra.mxu2 %vm126_vm0, %v4546_v23 }
 0x5f7   :  { %3381 = vmatmul.msk.f32.gmra.mxu1 %vm126_vm0, %v4546_v23 }
 0x5f9   :  { %3346 = vmatmul.msk.f32.gmra.mxu2 %vm126_vm0, %v4555_v22 }
 0x5ff   :  { %3382 = vmatmul.msk.f32.gmra.mxu1 %vm126_vm0, %v4555_v22 }
 0x601   :  { %3347 = vmatmul.msk.f32.gmra.mxu2 %vm126_vm0, %v4564_v46 }
 0x607   :  { %3383 = vmatmul.msk.f32.gmra.mxu1 %vm126_vm0, %v4564_v46 }
 0x609   :  { %3348 = vmatmul.msk.f32.gmra.mxu2 %vm126_vm0, %v4573_v10 }
 0x60f   :  { %3384 = vmatmul.msk.f32.gmra.mxu1 %vm126_vm0, %v4573_v10 }
 0x611   :  { %3349 = vmatmul.msk.f32.gmra.mxu2 %vm126_vm0, %v4582_v54 }
 0x617   :  { %3385 = vmatmul.msk.f32.gmra.mxu1 %vm126_vm0, %v4582_v54 }
 0x619   :  { %3350 = vmatmul.msk.f32.gmra.mxu2 %vm126_vm0, %v4591_v53 }
 0x61f   :  { %3386 = vmatmul.msk.f32.gmra.mxu1 %vm126_vm0, %v4591_v53 }
 0x621   :  { %3351 = vmatmul.msk.f32.gmra.mxu2 %vm126_vm0, %v4602_v60 }
 0x624   :  { %v4914_v20 = vpop.f32.mrf.mxu2  ;;  %v4916_v18 = vpop.f32.mrf.mxu1 }
 0x625   :  { %6509 = vst [vmem:[#allocation42_spill] sm:$0xff] %v4914_v20 }
 0x626   :  { %6510 = vst [vmem:[#allocation43_spill] sm:$0xff] %v4916_v18 }
 0x627   :  { %3387 = vmatmul.msk.f32.gmra.mxu1 %vm126_vm0, %v4602_v60 }
 0x629   :  { %3352 = vmatmul.msk.f32.gmra.mxu2 %vm126_vm0, %v4615_v62 }
 0x62c   :  { %v4922_v16 = vpop.f32.mrf.mxu2  ;;  %v4924_v1 = vpop.f32.mrf.mxu1 }
 0x62d   :  { %6511 = vst [vmem:[#allocation44_spill] sm:$0xff] %v4922_v16 }
 0x62e   :  { %6512 = vst [vmem:[#allocation45_spill] sm:$0xff] %v4924_v1 }
 0x62f   :  { %3388 = vmatmul.msk.f32.gmra.mxu1 %vm126_vm0, %v4615_v62 }
 0x634   :  { %v4928_v19 = vpop.f32.mrf.mxu2  ;;  %v4930_v24 = vpop.f32.mrf.mxu1 }
 0x635   :  { %6513 = vst [vmem:[#allocation46_spill] sm:$0xff] %v4928_v19 }
 0x636   :  { %6514 = vst [vmem:[#allocation47_spill] sm:$0xff] %v4930_v24 }
 0x63c   :  { %v4932_v56 = vpop.f32.mrf.mxu2  ;;  %v4934_v13 = vpop.f32.mrf.mxu1 }
 0x63d   :  { %6515 = vst [vmem:[#allocation48_spill] sm:$0xff] %v4932_v56 }
 0x63e   :  { %6516 = vst [vmem:[#allocation49_spill] sm:$0xff] %v4934_v13 }
 0x644   :  { %v4936_v37 = vpop.f32.mrf.mxu2  ;;  %v4938_v12 = vpop.f32.mrf.mxu1 }
 0x645   :  { %6517 = vst [vmem:[#allocation50_spill] sm:$0xff] %v4936_v37 }
 0x646   :  { %6518 = vst [vmem:[#allocation51_spill] sm:$0xff] %v4938_v12 }
 0x64c   :  { %v4940_v5 = vpop.f32.mrf.mxu2  ;;  %v4942_v35 = vpop.f32.mrf.mxu1 }
 0x64d   :  { %6519 = vst [vmem:[#allocation52_spill] sm:$0xff] %v4940_v5 }
 0x64e   :  { %6520 = vst [vmem:[#allocation53_spill] sm:$0xff] %v4942_v35 }
 0x654   :  { %v4944_v42 = vpop.f32.mrf.mxu2  ;;  %v4946_v28 = vpop.f32.mrf.mxu1 }
 0x655   :  { %6521 = vst [vmem:[#allocation54_spill] sm:$0xff] %v4944_v42 }
 0x656   :  { %6522 = vst [vmem:[#allocation55_spill] sm:$0xff] %v4946_v28 }
 0x65c   :  { %v4948_v57 = vpop.f32.mrf.mxu2  ;;  %v4950_v21 = vpop.f32.mrf.mxu1 }
 0x65d   :  { %6523 = vst [vmem:[#allocation56_spill] sm:$0xff] %v4948_v57 }
 0x65e   :  { %6524 = vst [vmem:[#allocation57_spill] sm:$0xff] %v4950_v21 }
 0x664   :  { %v1136_v8 = vpop.f32.mrf.mxu2  ;;  %v1311_v47 = vpop.f32.mrf.mxu1 }
 0x66c   :  { %v1356_v7 = vpop.f32.mrf.mxu2  ;;  %v1531_v63 = vpop.f32.mrf.mxu1 }
 0x674   :  { %v1359_v55 = vpop.f32.mrf.mxu2  ;;  %v1534_v15 = vpop.f32.mrf.mxu1 }
 0x67c   :  { %v1362_v29 = vpop.f32.mrf.mxu2  ;;  %v1537_v38 = vpop.f32.mrf.mxu1 }
 0x684   :  { %v1365_v17 = vpop.f32.mrf.mxu2  ;;  %v1540_v25 = vpop.f32.mrf.mxu1 }
 0x68c   :  { %v1368_v24 = vpop.f32.mrf.mxu2  ;;  %v1543_v19 = vpop.f32.mrf.mxu1 }
 0x694   :  { %v1371_v1 = vpop.f32.mrf.mxu2  ;;  %v1546_v16 = vpop.f32.mrf.mxu1 }
 0x695   :  { %v1372_v62 = vadd.f32 %v1371_v1, %v4014_v9  ;;  %v1547_v60 = vadd.f32 %v1546_v16, %v4014_v9  ;;  %v1363_v16 = vadd.f32 %v1362_v29, %v4031_v31 }
 0x697   :  { %v1563_v1 = vmax.f32 %v1547_v60, 0.0  ;;  %v1357_v60 = vadd.f32 %v1356_v7, %v4035_v39  ;;  %v6525_v7 = vld [vmem:[#allocation2_spill] sm:$0xff] }
 0x69c   :  { %v1374_v18 = vpop.f32.mrf.mxu2  ;;  %v1549_v20 = vpop.f32.mrf.mxu1 }
 0x69d   :  { %v1375_v12 = vadd.f32 %v1374_v18, %v4008_v3  ;;  %v1550_v37 = vadd.f32 %v1549_v20, %v4008_v3  ;;  %v1366_v20 = vadd.f32 %v1365_v17, %v4020_v14  ;;  %v1541_v18 = vadd.f32 %v1540_v25, %v4020_v14  ;;  %v6528_v25 = vld [vmem:[#allocation41_spill] sm:$0xff] }
 0x69e   :  { %v1383_v17 = vmax.f32 %v1357_v60, 0.0 }
 0x6a4   :  { %v1377_v28 = vpop.f32.mrf.mxu2  ;;  %v1552_v57 = vpop.f32.mrf.mxu1 }
 0x6a5   :  { %v1378_v8 = vadd.f32 %v1377_v28, %v6504_v51  ;;  %v1553_v47 = vadd.f32 %v1552_v57, %v6504_v51  ;;  %v1369_v28 = vadd.f32 %v1368_v24, %v4012_v6  ;;  %v1389_v57 = vmax.f32 %v1375_v12, 0.0 }
 0x6a6   :  { %v1385_v12 = vmax.f32 %v1363_v16, 0.0 }
 0x6a7   :  { %v1390_v53 = vmax.f32 %v1378_v8, 0.0  ;;  %v1565_v54 = vmax.f32 %v1553_v47, 0.0 }
 0x6ac   :  { %v1380_v42 = vpop.f32.mrf.mxu2  ;;  %v1555_v21 = vpop.f32.mrf.mxu1 }
 0x6ad   :  { %v1381_v35 = vadd.f32 %v1380_v42, %v4010_v4  ;;  %v1556_v5 = vadd.f32 %v1555_v21, %v4010_v4  ;;  %v1544_v42 = vadd.f32 %v1543_v19, %v4012_v6  ;;  %v1564_v21 = vmax.f32 %v1550_v37, 0.0 }
 0x6ae   :  { %v1360_v19 = vadd.f32 %v1359_v55, %v4029_v30  ;;  %v1561_v37 = vmax.f32 %v1541_v18, 0.0 }
 0x6af   :  { %v1391_v13 = vmax.f32 %v1381_v35, 0.0  ;;  %v1566_v56 = vmax.f32 %v1556_v5, 0.0  ;;  %v1388_v5 = vmax.f32 %v1372_v62, 0.0  ;;  %v1562_v24 = vmax.f32 %v1544_v42, 0.0 }
 0x6b0   :  { %v1532_v62 = vadd.f32 %v1531_v63, %v4035_v39  ;;  %v1384_v29 = vmax.f32 %v1360_v19, 0.0  ;;  %v6526_v63 = vld [vmem:[#allocation39_spill] sm:$0xff] }
 0x6b1   :  { %1399 = vmatpush.msra.mxu3 %v1391_v13  ;;  %1574 = vmatpush.msrb.mxu2 %v1566_v56  ;;  %v1538_v56 = vadd.f32 %v1537_v38, %v4031_v31  ;;  %v1387_v13 = vmax.f32 %v1369_v28, 0.0 }
 0x6b2   :  { %v1558_v55 = vmax.f32 %v1532_v62, 0.0 }
 0x6b3   :  { %1400 = vmatpush.msra.mxu3 %v1390_v53  ;;  %1575 = vmatpush.msrb.mxu2 %v1565_v54  ;;  %v1535_v54 = vadd.f32 %v1534_v15, %v4029_v30  ;;  %v1386_v53 = vmax.f32 %v1366_v20, 0.0  ;;  %v1560_v35 = vmax.f32 %v1538_v56, 0.0  ;;  %v6527_v15 = vld [vmem:[#allocation40_spill] sm:$0xff] }
 0x6b5   :  { %1401 = vmatpush.msra.mxu3 %v1389_v57  ;;  %1576 = vmatpush.msrb.mxu2 %v1564_v21  ;;  %v1559_v38 = vmax.f32 %v1535_v54, 0.0 }
 0x6b7   :  { %1402 = vmatpush.msra.mxu3 %v1388_v5  ;;  %1577 = vmatpush.msrb.mxu2 %v1563_v1 }
 0x6b9   :  { %1403 = vmatpush.msra.mxu3 %v1387_v13  ;;  %1578 = vmatpush.msrb.mxu2 %v1562_v24 }
 0x6bb   :  { %1404 = vmatpush.msra.mxu3 %v1386_v53  ;;  %1579 = vmatpush.msrb.mxu2 %v1561_v37 }
 0x6bd   :  { %1405 = vmatpush.msra.mxu3 %v1385_v12  ;;  %1580 = vmatpush.msrb.mxu2 %v1560_v35 }
 0x6bf   :  { %1406 = vmatpush.msra.mxu3 %v1384_v29  ;;  %1581 = vmatpush.msrb.mxu2 %v1559_v38 }
 0x6c1   :  { %1407 = vmatpush.msra.mxu3 %v1383_v17  ;;  %1582 = vmatpush.msrb.mxu2 %v1558_v55 }
 0x6c2   :  { %3353 = vmatmul.msk.f32.vlgmr.msra.gmra.mxu3 %vm126_vm0, %v4668_v32  ;;  %3389 = vmatmul.msk.f32.vlgmr.msrb.gmra.mxu2 %vm126_vm0, %v4668_v32 }
 0x6ca   :  { %3354 = vmatmul.msk.f32.gmra.mxu3 %vm126_vm0, %v4677_v59  ;;  %3390 = vmatmul.msk.f32.gmra.mxu2 %vm126_vm0, %v4677_v59 }
 0x6d2   :  { %3355 = vmatmul.msk.f32.gmra.mxu3 %vm126_vm0, %v4686_v0  ;;  %3391 = vmatmul.msk.f32.gmra.mxu2 %vm126_vm0, %v4686_v0 }
 0x6da   :  { %3356 = vmatmul.msk.f32.gmra.mxu3 %vm126_vm0, %v4695_v44  ;;  %3392 = vmatmul.msk.f32.gmra.mxu2 %vm126_vm0, %v4695_v44 }
 0x6e2   :  { %3357 = vmatmul.msk.f32.gmra.mxu3 %vm126_vm0, %v4704_v50  ;;  %3393 = vmatmul.msk.f32.gmra.mxu2 %vm126_vm0, %v4704_v50 }
 0x6ea   :  { %3358 = vmatmul.msk.f32.gmra.mxu3 %vm126_vm0, %v6525_v7  ;;  %3394 = vmatmul.msk.f32.gmra.mxu2 %vm126_vm0, %v6525_v7 }
 0x6f2   :  { %3359 = vmatmul.msk.f32.gmra.mxu3 %vm126_vm0, %v6526_v63  ;;  %3395 = vmatmul.msk.f32.gmra.mxu2 %vm126_vm0, %v6526_v63 }
 0x6fa   :  { %3360 = vmatmul.msk.f32.gmra.mxu3 %vm126_vm0, %v6527_v15  ;;  %3396 = vmatmul.msk.f32.gmra.mxu2 %vm126_vm0, %v6527_v15 }
 0x702   :  { %3361 = vmatmul.msk.f32.gmra.mxu3 %vm126_vm0, %v6528_v25  ;;  %3397 = vmatmul.msk.f32.gmra.mxu2 %vm126_vm0, %v6528_v25 }
 0x745   :  { %v1409_v8 = vpop.f32.mrf.mxu3  ;;  %v1584_v47 = vpop.f32.mrf.mxu2 }
 0x74d   :  { %v1412_v28 = vpop.f32.mrf.mxu3  ;;  %v1587_v42 = vpop.f32.mrf.mxu2 }
 0x755   :  { %v1415_v57 = vpop.f32.mrf.mxu3  ;;  %v1590_v21 = vpop.f32.mrf.mxu2 }
 0x75d   :  { %v1418_v20 = vpop.f32.mrf.mxu3  ;;  %v1593_v18 = vpop.f32.mrf.mxu2 }
 0x765   :  { %v1421_v5 = vpop.f32.mrf.mxu3  ;;  %v1596_v1 = vpop.f32.mrf.mxu2 }
 0x76d   :  { %v1424_v16 = vpop.f32.mrf.mxu3  ;;  %v1599_v56 = vpop.f32.mrf.mxu2 }
 0x76e   :  { %v1425_v25 = vadd.f32 %v1424_v16, %v4137_v40  ;;  %v1600_v15 = vadd.f32 %v1599_v56, %v4137_v40  ;;  %v1416_v56 = vadd.f32 %v1415_v57, %v4152_v34 }
 0x770   :  { %v1616_v16 = vmax.f32 %v1600_v15, 0.0  ;;  %v1410_v15 = vadd.f32 %v1409_v8, %v4160_v48  ;;  %v3415_v8 = vld [vmem:[%s6423_s0 + $0x280] sm:$0xff] }
 0x775   :  { %v1427_v13 = vpop.f32.mrf.mxu3  ;;  %v1602_v24 = vpop.f32.mrf.mxu2 }
 0x776   :  { %v1428_v29 = vadd.f32 %v1427_v13, %v4135_v36  ;;  %v1603_v38 = vadd.f32 %v1602_v24, %v4135_v36  ;;  %v1419_v13 = vadd.f32 %v1418_v20, %v4144_v49  ;;  %v1594_v24 = vadd.f32 %v1593_v18, %v4144_v49 }
 0x777   :  { %v1438_v18 = vmax.f32 %v1416_v56, 0.0  ;;  %v3408_v56 = vld [vmem:[%s6423_s0 + $0x248] sm:$0xff] }
 0x778   :  { %v1614_v20 = vmax.f32 %v1594_v24, 0.0  ;;  %v3446_v24 = vld [vmem:[%s6423_s0 + $0x2a0] sm:$0xff] }
 0x77d   :  { %v1430_v19 = vpop.f32.mrf.mxu3  ;;  %v1605_v54 = vpop.f32.mrf.mxu2 }
 0x77e   :  { %v1431_v60 = vadd.f32 %v1430_v19, %v4133_v33  ;;  %v1606_v62 = vadd.f32 %v1605_v54, %v4133_v33  ;;  %v1422_v19 = vadd.f32 %v1421_v5, %v4141_v45  ;;  %v1597_v54 = vadd.f32 %v1596_v1, %v4141_v45 }
 0x77f   :  { %v1413_v1 = vadd.f32 %v1412_v28, %v4156_v43 }
 0x780   :  { %v1443_v63 = vmax.f32 %v1431_v60, 0.0  ;;  %v1618_v7 = vmax.f32 %v1606_v62, 0.0  ;;  %v1591_v60 = vadd.f32 %v1590_v21, %v4152_v34  ;;  %v1440_v62 = vmax.f32 %v1422_v19, 0.0  ;;  %v3412_v19 = vld [vmem:[%s6423_s0 + $0x268] sm:$0xff] }
 0x781   :  { %v1615_v5 = vmax.f32 %v1597_v54, 0.0  ;;  %v1437_v21 = vmax.f32 %v1413_v1, 0.0  ;;  %v3448_v54 = vld [vmem:[%s6423_s0 + $0x2b0] sm:$0xff]  ;;  %v5105_v1 = vld [vmem:[%s6425_s1 + $0xc0] sm:$0xff] }
 0x782   :  { %v1613_v57 = vmax.f32 %v1591_v60, 0.0  ;;  %v3444_v60 = vld [vmem:[%s6423_s0 + $0x290] sm:$0xff] }
 0x785   :  { %v1433_v53 = vpop.f32.mrf.mxu3  ;;  %v1608_v37 = vpop.f32.mrf.mxu2 }
 0x786   :  { %v1434_v12 = vadd.f32 %v1433_v53, %v4131_v27  ;;  %v1609_v35 = vadd.f32 %v1608_v37, %v4131_v27  ;;  %v1442_v53 = vmax.f32 %v1428_v29, 0.0  ;;  %v1617_v37 = vmax.f32 %v1603_v38, 0.0  ;;  %v3450_v38 = vld [vmem:[%s6423_s0 + $0x2c0] sm:$0xff] }
 0x787   :  { %v1436_v29 = vmax.f32 %v1410_v15, 0.0  ;;  %v6535_v15 = vld [vmem:[#allocation25_spill] sm:$0xff] }
 0x788   :  { %v1444_v17 = vmax.f32 %v1434_v12, 0.0  ;;  %v1619_v55 = vmax.f32 %v1609_v35, 0.0  ;;  %v1441_v12 = vmax.f32 %v1425_v25, 0.0  ;;  %v1585_v25 = vadd.f32 %v1584_v47, %v4160_v48  ;;  %v3451_v47 = vld [vmem:[%s6423_s0 + $0x2c8] sm:$0xff] }
 0x78a   :  { %1452 = vmatpush.msrb.mxu0 %v1444_v17  ;;  %1627 = vmatpush.msrb.mxu3 %v1619_v55  ;;  %v1611_v28 = vmax.f32 %v1585_v25, 0.0  ;;  %v3413_v17 = vld [vmem:[%s6423_s0 + $0x270] sm:$0xff]  ;;  %v3449_v55 = vld [vmem:[%s6423_s0 + $0x2b8] sm:$0xff] }
 0x78c   :  { %1453 = vmatpush.msrb.mxu0 %v1443_v63  ;;  %1628 = vmatpush.msrb.mxu3 %v1618_v7  ;;  %v1588_v7 = vadd.f32 %v1587_v42, %v4156_v43  ;;  %v1439_v63 = vmax.f32 %v1419_v13, 0.0  ;;  %v3414_v42 = vld [vmem:[%s6423_s0 + $0x278] sm:$0xff] }
 0x78d   :  { %v3410_v13 = vld [vmem:[%s6423_s0 + $0x258] sm:$0xff] }
 0x78e   :  { %1454 = vmatpush.msrb.mxu0 %v1442_v53  ;;  %1629 = vmatpush.msrb.mxu3 %v1617_v37  ;;  %v1612_v35 = vmax.f32 %v1588_v7, 0.0  ;;  %v3411_v53 = vld [vmem:[%s6423_s0 + $0x260] sm:$0xff]  ;;  %v3447_v37 = vld [vmem:[%s6423_s0 + $0x2a8] sm:$0xff] }
 0x78f   :  { %v5114_v7 = vld [vmem:[%s6425_s1 + $0xc8] sm:$0xff] }
 0x790   :  { %1455 = vmatpush.msrb.mxu0 %v1441_v12  ;;  %1630 = vmatpush.msrb.mxu3 %v1616_v16  ;;  %v3409_v12 = vld [vmem:[%s6423_s0 + $0x250] sm:$0xff]  ;;  %v3445_v16 = vld [vmem:[%s6423_s0 + $0x298] sm:$0xff] }
 0x792   :  { %1456 = vmatpush.msrb.mxu0 %v1440_v62  ;;  %1631 = vmatpush.msrb.mxu3 %v1615_v5  ;;  %v3407_v62 = vld [vmem:[%s6423_s0 + $0x240] sm:$0xff]  ;;  %v3443_v5 = vld [vmem:[%s6423_s0 + $0x288] sm:$0xff] }
 0x794   :  { %1457 = vmatpush.msrb.mxu0 %v1439_v63  ;;  %1632 = vmatpush.msrb.mxu3 %v1614_v20  ;;  %v5123_v63 = vld [vmem:[%s6425_s1 + $0xd0] sm:$0xff] }
 0x796   :  { %1458 = vmatpush.msrb.mxu0 %v1438_v18  ;;  %1633 = vmatpush.msrb.mxu3 %v1613_v57 }
 0x798   :  { %1459 = vmatpush.msrb.mxu0 %v1437_v21  ;;  %1634 = vmatpush.msrb.mxu3 %v1612_v35 }
 0x79a   :  { %1460 = vmatpush.msrb.mxu0 %v1436_v29  ;;  %1635 = vmatpush.msrb.mxu3 %v1611_v28 }
 0x79b   :  { %3362 = vmatmul.msk.f32.vlgmr.msrb.gmra.mxu0 %vm126_vm0, %v4767_v2  ;;  %3398 = vmatmul.msk.f32.vlgmr.msrb.gmra.mxu3 %vm126_vm0, %v4767_v2 }
 0x79c   :  { %1696 = vmatpush.msra.mxu0 %v3415_v8  ;;  %1871 = vmatpush.msra.mxu3 %v3451_v47 }
 0x79e   :  { %1697 = vmatpush.msra.mxu0 %v3414_v42  ;;  %1872 = vmatpush.msra.mxu3 %v3450_v38 }
 0x7a0   :  { %1698 = vmatpush.msra.mxu0 %v3413_v17  ;;  %1873 = vmatpush.msra.mxu3 %v3449_v55 }
 0x7a2   :  { %1699 = vmatpush.msra.mxu0 %v3412_v19  ;;  %1874 = vmatpush.msra.mxu3 %v3448_v54 }
 0x7a3   :  { %3363 = vmatmul.msk.f32.gmra.mxu0 %vm126_vm0, %v4776_v61  ;;  %3399 = vmatmul.msk.f32.gmra.mxu3 %vm126_vm0, %v4776_v61 }
 0x7a4   :  { %1700 = vmatpush.msra.mxu0 %v3411_v53  ;;  %1875 = vmatpush.msra.mxu3 %v3447_v37 }
 0x7a6   :  { %1701 = vmatpush.msra.mxu0 %v3410_v13  ;;  %1876 = vmatpush.msra.mxu3 %v3446_v24 }
 0x7a8   :  { %1702 = vmatpush.msra.mxu0 %v3409_v12  ;;  %1877 = vmatpush.msra.mxu3 %v3445_v16 }
 0x7aa   :  { %1703 = vmatpush.msra.mxu0 %v3408_v56  ;;  %1878 = vmatpush.msra.mxu3 %v3444_v60 }
 0x7ab   :  { %3364 = vmatmul.msk.f32.gmra.mxu0 %vm126_vm0, %v4785_v41  ;;  %3400 = vmatmul.msk.f32.gmra.mxu3 %vm126_vm0, %v4785_v41 }
 0x7ac   :  { %1704 = vmatpush.msra.mxu0 %v3407_v62  ;;  %1879 = vmatpush.msra.mxu3 %v3443_v5 }
 0x7b3   :  { %3365 = vmatmul.msk.f32.gmra.mxu0 %vm126_vm0, %v4797_v11  ;;  %3401 = vmatmul.msk.f32.gmra.mxu3 %vm126_vm0, %v4797_v11 }
 0x7bb   :  { %3366 = vmatmul.msk.f32.gmra.mxu0 %vm126_vm0, %v4824_v52  ;;  %3402 = vmatmul.msk.f32.gmra.mxu3 %vm126_vm0, %v4824_v52 }
 0x7c3   :  { %3367 = vmatmul.msk.f32.gmra.mxu0 %vm126_vm0, %v4857_v26  ;;  %3403 = vmatmul.msk.f32.gmra.mxu3 %vm126_vm0, %v4857_v26 }
 0x7cb   :  { %3368 = vmatmul.msk.f32.gmra.mxu0 %vm126_vm0, %v5105_v1  ;;  %3404 = vmatmul.msk.f32.gmra.mxu3 %vm126_vm0, %v5105_v1 }
 0x7d3   :  { %3369 = vmatmul.msk.f32.gmra.mxu0 %vm126_vm0, %v5114_v7  ;;  %3405 = vmatmul.msk.f32.gmra.mxu3 %vm126_vm0, %v5114_v7 }
 0x7db   :  { %3370 = vmatmul.msk.f32.gmra.mxu0 %vm126_vm0, %v5123_v63  ;;  %3406 = vmatmul.msk.f32.gmra.mxu3 %vm126_vm0, %v5123_v63 }
 0x7e3   :  { %3416 = vmatmul.msk.f32.vlgmr.msra.gmra.mxu0 %vm126_vm0, %v4537_v58  ;;  %3452 = vmatmul.msk.f32.vlgmr.msra.gmra.mxu3 %vm126_vm0, %v4537_v58  ;;  %v6529_v58 = vld [vmem:[#allocation3_spill] sm:$0xff] }
 0x7eb   :  { %3417 = vmatmul.msk.f32.gmra.mxu0 %vm126_vm0, %v4546_v23  ;;  %3453 = vmatmul.msk.f32.gmra.mxu3 %vm126_vm0, %v4546_v23  ;;  %v6530_v23 = vld [vmem:[#allocation20_spill] sm:$0xff] }
 0x7f3   :  { %3418 = vmatmul.msk.f32.gmra.mxu0 %vm126_vm0, %v4555_v22  ;;  %3454 = vmatmul.msk.f32.gmra.mxu3 %vm126_vm0, %v4555_v22 }
 0x7fb   :  { %3419 = vmatmul.msk.f32.gmra.mxu0 %vm126_vm0, %v4564_v46  ;;  %3455 = vmatmul.msk.f32.gmra.mxu3 %vm126_vm0, %v4564_v46  ;;  %v6532_v46 = vld [vmem:[#allocation22_spill] sm:$0xff] }
 0x803   :  { %3420 = vmatmul.msk.f32.gmra.mxu0 %vm126_vm0, %v4573_v10  ;;  %3456 = vmatmul.msk.f32.gmra.mxu3 %vm126_vm0, %v4573_v10 }
 0x80b   :  { %3421 = vmatmul.msk.f32.gmra.mxu0 %vm126_vm0, %v6529_v58  ;;  %3457 = vmatmul.msk.f32.gmra.mxu3 %vm126_vm0, %v6529_v58 }
 0x813   :  { %3422 = vmatmul.msk.f32.gmra.mxu0 %vm126_vm0, %v6530_v23  ;;  %3458 = vmatmul.msk.f32.gmra.mxu3 %vm126_vm0, %v6530_v23 }
 0x818   :  { %v5157_v22 = vpop.f32.mrf.mxu0 }
 0x819   :  { %6531 = vst [vmem:[#allocation3_spill] sm:$0xff] %v5157_v22 }
 0x81b   :  { %3423 = vmatmul.msk.f32.gmra.mxu0 %vm126_vm0, %v6532_v46  ;;  %3459 = vmatmul.msk.f32.gmra.mxu3 %vm126_vm0, %v6532_v46 }
 0x81e   :  { %v5163_v10 = vpop.f32.mrf.mxu3 }
 0x81f   :  { %6533 = vst [vmem:[#allocation20_spill] sm:$0xff] %v5163_v10 }
 0x820   :  { %v5165_v20 = vpop.f32.mrf.mxu0 }
 0x821   :  { %6534 = vst [vmem:[#allocation22_spill] sm:$0xff] %v5165_v20 }
 0x823   :  { %3424 = vmatmul.msk.f32.gmra.mxu0 %vm126_vm0, %v6535_v15  ;;  %3460 = vmatmul.msk.f32.gmra.mxu3 %vm126_vm0, %v6535_v15 }
 0x826   :  { %v5171_v25 = vpop.f32.mrf.mxu3 }
 0x827   :  { %6536 = vst [vmem:[#allocation25_spill] sm:$0xff] %v5171_v25 }
 0x828   :  { %v5173_v18 = vpop.f32.mrf.mxu0 }
 0x829   :  { %6537 = vst [vmem:[#allocation58_spill] sm:$0xff] %v5173_v18 }
 0x82e   :  { %v5175_v57 = vpop.f32.mrf.mxu3 }
 0x82f   :  { %6538 = vst [vmem:[#allocation59_spill] sm:$0xff] %v5175_v57 }
 0x830   :  { %v5177_v21 = vpop.f32.mrf.mxu0 }
 0x831   :  { %6539 = vst [vmem:[#allocation60_spill] sm:$0xff] %v5177_v21 }
 0x836   :  { %v5179_v35 = vpop.f32.mrf.mxu3 }
 0x837   :  { %6540 = vst [vmem:[#allocation61_spill] sm:$0xff] %v5179_v35 }
 0x838   :  { %v5181_v29 = vpop.f32.mrf.mxu0 }
 0x839   :  { %6541 = vst [vmem:[#allocation62_spill] sm:$0xff] %v5181_v29 }
 0x83e   :  { %v5183_v28 = vpop.f32.mrf.mxu3 }
 0x83f   :  { %6542 = vst [vmem:[#allocation63_spill] sm:$0xff] %v5183_v28 }
 0x840   :  { %v5185_v8 = vpop.f32.mrf.mxu0 }
 0x841   :  { %6543 = vst [vmem:[#allocation64_spill] sm:$0xff] %v5185_v8 }
 0x846   :  { %v5187_v47 = vpop.f32.mrf.mxu3 }
 0x847   :  { %6544 = vst [vmem:[#allocation65_spill] sm:$0xff] %v5187_v47 }
 0x848   :  { %v5189_v42 = vpop.f32.mrf.mxu0 }
 0x849   :  { %6545 = vst [vmem:[#allocation66_spill] sm:$0xff] %v5189_v42 }
 0x84e   :  { %v5191_v38 = vpop.f32.mrf.mxu3 }
 0x84f   :  { %6546 = vst [vmem:[#allocation67_spill] sm:$0xff] %v5191_v38 }
 0x850   :  { %v5193_v17 = vpop.f32.mrf.mxu0 }
 0x851   :  { %6547 = vst [vmem:[#allocation68_spill] sm:$0xff] %v5193_v17 }
 0x856   :  { %v5195_v55 = vpop.f32.mrf.mxu3 }
 0x857   :  { %6548 = vst [vmem:[#allocation69_spill] sm:$0xff] %v5195_v55 }
 0x858   :  { %v1486_v19 = vpop.f32.mrf.mxu0 }
 0x85e   :  { %v1661_v54 = vpop.f32.mrf.mxu3 }
 0x860   :  { %v1706_v53 = vpop.f32.mrf.mxu0 }
 0x866   :  { %v1881_v37 = vpop.f32.mrf.mxu3 }
 0x868   :  { %v1709_v13 = vpop.f32.mrf.mxu0 }
 0x86e   :  { %v1884_v24 = vpop.f32.mrf.mxu3 }
 0x870   :  { %v1712_v12 = vpop.f32.mrf.mxu0 }
 0x876   :  { %v1887_v16 = vpop.f32.mrf.mxu3 }
 0x878   :  { %v1715_v56 = vpop.f32.mrf.mxu0 }
 0x87e   :  { %v1890_v60 = vpop.f32.mrf.mxu3 }
 0x880   :  { %v1718_v62 = vpop.f32.mrf.mxu0 }
 0x881   :  { %v1719_v38 = vadd.f32 %v1718_v62, %v4012_v6 }
 0x886   :  { %v1893_v5 = vpop.f32.mrf.mxu3 }
 0x888   :  { %v1721_v58 = vpop.f32.mrf.mxu0 }
 0x889   :  { %v1722_v22 = vadd.f32 %v1721_v58, %v4014_v9  ;;  %v1713_v58 = vadd.f32 %v1712_v12, %v4031_v31 }
 0x88b   :  { %v1738_v28 = vmax.f32 %v1722_v22, 0.0  ;;  %v1707_v22 = vadd.f32 %v1706_v53, %v4035_v39  ;;  %v1882_v53 = vadd.f32 %v1881_v37, %v4035_v39 }
 0x88e   :  { %v1896_v23 = vpop.f32.mrf.mxu3 }
 0x890   :  { %v1724_v46 = vpop.f32.mrf.mxu0 }
 0x891   :  { %v1725_v20 = vadd.f32 %v1724_v46, %v4008_v3 }
 0x893   :  { %v1739_v42 = vmax.f32 %v1725_v20, 0.0  ;;  %v1710_v20 = vadd.f32 %v1709_v13, %v4029_v30  ;;  %v1733_v13 = vmax.f32 %v1707_v22, 0.0 }
 0x896   :  { %v1899_v15 = vpop.f32.mrf.mxu3 }
 0x898   :  { %v1727_v57 = vpop.f32.mrf.mxu0 }
 0x899   :  { %v1728_v19 = vadd.f32 %v1727_v57, %v6504_v51  ;;  %v1716_v57 = vadd.f32 %v1715_v56, %v4020_v14  ;;  %v1885_v56 = vadd.f32 %v1884_v24, %v4029_v30 }
 0x89b   :  { %v1740_v55 = vmax.f32 %v1728_v19, 0.0  ;;  %v1737_v19 = vmax.f32 %v1719_v38, 0.0  ;;  %v1734_v38 = vmax.f32 %v1710_v20, 0.0 }
 0x89e   :  { %v1902_v18 = vpop.f32.mrf.mxu3 }
 0x89f   :  { %v1903_v47 = vadd.f32 %v1902_v18, %v6504_v51  ;;  %v1736_v18 = vmax.f32 %v1716_v57, 0.0 }
 0x8a0   :  { %v1730_v25 = vpop.f32.mrf.mxu0 }
 0x8a1   :  { %v1731_v54 = vadd.f32 %v1730_v25, %v4010_v4  ;;  %v1900_v25 = vadd.f32 %v1899_v15, %v4008_v3 }
 0x8a3   :  { %v1741_v10 = vmax.f32 %v1731_v54, 0.0  ;;  %v1915_v54 = vmax.f32 %v1903_v47, 0.0 }
 0x8a5   :  { %1749 = vmatpush.msra.mxu1 %v1741_v10  ;;  %v1897_v10 = vadd.f32 %v1896_v23, %v4014_v9 }
 0x8a6   :  { %v1905_v17 = vpop.f32.mrf.mxu3 }
 0x8a7   :  { %v1906_v8 = vadd.f32 %v1905_v17, %v4010_v4  ;;  %1750 = vmatpush.msra.mxu1 %v1740_v55  ;;  %v1894_v17 = vadd.f32 %v1893_v5, %v4012_v6  ;;  %v1914_v55 = vmax.f32 %v1900_v25, 0.0  ;;  %v1913_v12 = vmax.f32 %v1897_v10, 0.0 }
 0x8a9   :  { %v1916_v46 = vmax.f32 %v1906_v8, 0.0  ;;  %1751 = vmatpush.msra.mxu1 %v1739_v42  ;;  %v1735_v8 = vmax.f32 %v1713_v58, 0.0  ;;  %v1891_v42 = vadd.f32 %v1890_v60, %v4020_v14  ;;  %v1912_v47 = vmax.f32 %v1894_v17, 0.0 }
 0x8aa   :  { %v1909_v60 = vmax.f32 %v1885_v56, 0.0 }
 0x8ab   :  { %1752 = vmatpush.msra.mxu1 %v1738_v28  ;;  %1924 = vmatpush.msrb.mxu0 %v1916_v46  ;;  %v1888_v28 = vadd.f32 %v1887_v16, %v4031_v31  ;;  %v1911_v62 = vmax.f32 %v1891_v42, 0.0  ;;  %v1908_v16 = vmax.f32 %v1882_v53, 0.0 }
 0x8ad   :  { %1753 = vmatpush.msra.mxu1 %v1737_v19  ;;  %1925 = vmatpush.msrb.mxu0 %v1915_v54  ;;  %v1910_v5 = vmax.f32 %v1888_v28, 0.0 }
 0x8af   :  { %1754 = vmatpush.msra.mxu1 %v1736_v18  ;;  %1926 = vmatpush.msrb.mxu0 %v1914_v55 }
 0x8b1   :  { %1755 = vmatpush.msra.mxu1 %v1735_v8  ;;  %1927 = vmatpush.msrb.mxu0 %v1913_v12 }
 0x8b3   :  { %1756 = vmatpush.msra.mxu1 %v1734_v38  ;;  %1928 = vmatpush.msrb.mxu0 %v1912_v47 }
 0x8b5   :  { %1757 = vmatpush.msra.mxu1 %v1733_v13  ;;  %1929 = vmatpush.msrb.mxu0 %v1911_v62 }
 0x8b6   :  { %3425 = vmatmul.msk.f32.vlgmr.msra.gmra.mxu1 %vm126_vm0, %v4668_v32 }
 0x8b7   :  { %1930 = vmatpush.msrb.mxu0 %v1910_v5 }
 0x8b9   :  { %1931 = vmatpush.msrb.mxu0 %v1909_v60 }
 0x8bb   :  { %1932 = vmatpush.msrb.mxu0 %v1908_v16 }
 0x8bc   :  { %3461 = vmatmul.msk.f32.vlgmr.msrb.gmra.mxu0 %vm126_vm0, %v4668_v32  ;;  %v6549_v32 = vld [vmem:[#allocation2_spill] sm:$0xff] }
 0x8be   :  { %3426 = vmatmul.msk.f32.gmra.mxu1 %vm126_vm0, %v4677_v59 }
 0x8c4   :  { %3462 = vmatmul.msk.f32.gmra.mxu0 %vm126_vm0, %v4677_v59  ;;  %v6550_v59 = vld [vmem:[#allocation39_spill] sm:$0xff] }
 0x8c6   :  { %3427 = vmatmul.msk.f32.gmra.mxu1 %vm126_vm0, %v4686_v0 }
 0x8cc   :  { %3463 = vmatmul.msk.f32.gmra.mxu0 %vm126_vm0, %v4686_v0  ;;  %v6551_v0 = vld [vmem:[#allocation40_spill] sm:$0xff] }
 0x8ce   :  { %3428 = vmatmul.msk.f32.gmra.mxu1 %vm126_vm0, %v4695_v44 }
 0x8d4   :  { %3464 = vmatmul.msk.f32.gmra.mxu0 %vm126_vm0, %v4695_v44  ;;  %v6552_v44 = vld [vmem:[#allocation41_spill] sm:$0xff] }
 0x8d6   :  { %3429 = vmatmul.msk.f32.gmra.mxu1 %vm126_vm0, %v4704_v50 }
 0x8dc   :  { %3465 = vmatmul.msk.f32.gmra.mxu0 %vm126_vm0, %v4704_v50 }
 0x8de   :  { %3430 = vmatmul.msk.f32.gmra.mxu1 %vm126_vm0, %v6549_v32 }
 0x8e4   :  { %3466 = vmatmul.msk.f32.gmra.mxu0 %vm126_vm0, %v6549_v32 }
 0x8e6   :  { %3431 = vmatmul.msk.f32.gmra.mxu1 %vm126_vm0, %v6550_v59 }
 0x8ec   :  { %3467 = vmatmul.msk.f32.gmra.mxu0 %vm126_vm0, %v6550_v59 }
 0x8ee   :  { %3432 = vmatmul.msk.f32.gmra.mxu1 %vm126_vm0, %v6551_v0 }
 0x8f4   :  { %3468 = vmatmul.msk.f32.gmra.mxu0 %vm126_vm0, %v6551_v0 }
 0x8f6   :  { %3433 = vmatmul.msk.f32.gmra.mxu1 %vm126_vm0, %v6552_v44 }
 0x8fc   :  { %3469 = vmatmul.msk.f32.gmra.mxu0 %vm126_vm0, %v6552_v44 }
 0x933   :  { %v1759_v50 = vpop.f32.mrf.mxu1 }
 0x939   :  { %v1934_v37 = vpop.f32.mrf.mxu0 }
 0x93b   :  { %v1762_v24 = vpop.f32.mrf.mxu1 }
 0x941   :  { %v1937_v23 = vpop.f32.mrf.mxu0 }
 0x943   :  { %v1765_v15 = vpop.f32.mrf.mxu1 }
 0x944   :  { %v1766_v0 = vadd.f32 %v1765_v15, %v4152_v34 }
 0x949   :  { %v1940_v57 = vpop.f32.mrf.mxu0 }
 0x94b   :  { %v1768_v25 = vpop.f32.mrf.mxu1 }
 0x94c   :  { %v1769_v60 = vadd.f32 %v1768_v25, %v4144_v49  ;;  %v1760_v25 = vadd.f32 %v1759_v50, %v4160_v48  ;;  %v1935_v50 = vadd.f32 %v1934_v37, %v4160_v48  ;;  %v3487_v37 = vld [vmem:[%s6423_s0 + $0x310] sm:$0xff] }
 0x951   :  { %v1943_v46 = vpop.f32.mrf.mxu0 }
 0x953   :  { %v1771_v58 = vpop.f32.mrf.mxu1 }
 0x954   :  { %v1772_v56 = vadd.f32 %v1771_v58, %v4141_v45  ;;  %v1763_v58 = vadd.f32 %v1762_v24, %v4156_v43  ;;  %v1786_v24 = vmax.f32 %v1760_v25, 0.0  ;;  %v5426_v25 = vld [vmem:[%s6425_s1 + $0x30] sm:$0xff] }
 0x956   :  { %v1790_v44 = vmax.f32 %v1772_v56, 0.0  ;;  %v3482_v56 = vld [vmem:[%s6423_s0 + $0x2e8] sm:$0xff] }
 0x959   :  { %v1946_v19 = vpop.f32.mrf.mxu0 }
 0x95b   :  { %v1774_v10 = vpop.f32.mrf.mxu1 }
 0x95c   :  { %v1775_v28 = vadd.f32 %v1774_v10, %v4137_v40 }
 0x95e   :  { %v1791_v16 = vmax.f32 %v1775_v28, 0.0 }
 0x961   :  { %v1949_v54 = vpop.f32.mrf.mxu0 }
 0x962   :  { %v1950_v10 = vadd.f32 %v1949_v54, %v4137_v40  ;;  %v1787_v54 = vmax.f32 %v1763_v58, 0.0  ;;  %v5390_v58 = vld [vmem:[%s6425_s1 + $0x10] sm:$0xff] }
 0x963   :  { %v1777_v20 = vpop.f32.mrf.mxu1 }
 0x964   :  { %v1778_v12 = vadd.f32 %v1777_v20, %v4135_v36  ;;  %v1966_v15 = vmax.f32 %v1950_v10, 0.0  ;;  %v3515_v10 = vld [vmem:[%s6423_s0 + $0x318] sm:$0xff] }
 0x966   :  { %v1792_v62 = vmax.f32 %v1778_v12, 0.0 }
 0x969   :  { %v1952_v18 = vpop.f32.mrf.mxu0 }
 0x96a   :  { %v1953_v32 = vadd.f32 %v1952_v18, %v4135_v36  ;;  %v1788_v18 = vmax.f32 %v1766_v0, 0.0  ;;  %v3517_v0 = vld [vmem:[%s6423_s0 + $0x328] sm:$0xff] }
 0x96b   :  { %v1780_v17 = vpop.f32.mrf.mxu1 }
 0x96c   :  { %v1781_v8 = vadd.f32 %v1780_v17, %v4133_v33  ;;  %v1789_v17 = vmax.f32 %v1769_v60, 0.0  ;;  %v3519_v60 = vld [vmem:[%s6423_s0 + $0x338] sm:$0xff] }
 0x96e   :  { %v1793_v47 = vmax.f32 %v1781_v8, 0.0  ;;  %v1944_v8 = vadd.f32 %v1943_v46, %v4144_v49 }
 0x971   :  { %v1955_v55 = vpop.f32.mrf.mxu0 }
 0x972   :  { %v1956_v53 = vadd.f32 %v1955_v55, %v4133_v33  ;;  %v1947_v55 = vadd.f32 %v1946_v19, %v4141_v45  ;;  %v1938_v19 = vadd.f32 %v1937_v23, %v4156_v43  ;;  %v3484_v23 = vld [vmem:[%s6423_s0 + $0x2f8] sm:$0xff] }
 0x973   :  { %v1783_v22 = vpop.f32.mrf.mxu1 }
 0x974   :  { %v1784_v42 = vadd.f32 %v1783_v22, %v4131_v27  ;;  %v1968_v20 = vmax.f32 %v1956_v53, 0.0  ;;  %v1967_v22 = vmax.f32 %v1953_v32, 0.0  ;;  %v1965_v12 = vmax.f32 %v1947_v55, 0.0  ;;  %v3481_v53 = vld [vmem:[%s6423_s0 + $0x2e0] sm:$0xff]  ;;  %v3479_v32 = vld [vmem:[%s6423_s0 + $0x2d0] sm:$0xff] }
 0x975   :  { %v1962_v46 = vmax.f32 %v1938_v19, 0.0  ;;  %v5408_v55 = vld [vmem:[%s6425_s1 + $0x20] sm:$0xff] }
 0x976   :  { %v1794_v38 = vmax.f32 %v1784_v42, 0.0  ;;  %v1941_v42 = vadd.f32 %v1940_v57, %v4152_v34  ;;  %v1961_v57 = vmax.f32 %v1935_v50, 0.0 }
 0x978   :  { %1802 = vmatpush.msra.mxu2 %v1794_v38  ;;  %v1964_v38 = vmax.f32 %v1944_v8, 0.0  ;;  %v1963_v28 = vmax.f32 %v1941_v42, 0.0 }
 0x979   :  { %v1958_v13 = vpop.f32.mrf.mxu0 }
 0x97a   :  { %v1959_v5 = vadd.f32 %v1958_v13, %v4131_v27  ;;  %1803 = vmatpush.msra.mxu2 %v1793_v47  ;;  %v3483_v47 = vld [vmem:[%s6423_s0 + $0x2f0] sm:$0xff] }
 0x97b   :  { %v3522_v13 = vld [vmem:[%s6423_s0 + $0x350] sm:$0xff] }
 0x97c   :  { %v1969_v59 = vmax.f32 %v1959_v5, 0.0  ;;  %1804 = vmatpush.msra.mxu2 %v1792_v62  ;;  %v3521_v62 = vld [vmem:[%s6423_s0 + $0x348] sm:$0xff]  ;;  %v3520_v5 = vld [vmem:[%s6423_s0 + $0x340] sm:$0xff] }
 0x97e   :  { %1805 = vmatpush.msra.mxu2 %v1791_v16  ;;  %1977 = vmatpush.msrb.mxu1 %v1969_v59  ;;  %v5334_v16 = vld [vmem:[%s6425_s1 + $0xb0] sm:$0xff] }
 0x97f   :  { %v3518_v59 = vld [vmem:[%s6423_s0 + $0x330] sm:$0xff] }
 0x980   :  { %1806 = vmatpush.msra.mxu2 %v1790_v44  ;;  %1978 = vmatpush.msrb.mxu1 %v1968_v20  ;;  %v3516_v44 = vld [vmem:[%s6423_s0 + $0x320] sm:$0xff]  ;;  %v5381_v20 = vld [vmem:[%s6425_s1 + $0x8] sm:$0xff] }
 0x982   :  { %1807 = vmatpush.msra.mxu2 %v1789_v17  ;;  %1979 = vmatpush.msrb.mxu1 %v1967_v22  ;;  %v5399_v17 = vld [vmem:[%s6425_s1 + $0x18] sm:$0xff]  ;;  %v5417_v22 = vld [vmem:[%s6425_s1 + $0x28] sm:$0xff] }
 0x984   :  { %1808 = vmatpush.msra.mxu2 %v1788_v18  ;;  %1980 = vmatpush.msrb.mxu1 %v1966_v15  ;;  %v5435_v18 = vld [vmem:[%s6425_s1 + $0x38] sm:$0xff] }
 0x986   :  { %1809 = vmatpush.msra.mxu2 %v1787_v54  ;;  %1981 = vmatpush.msrb.mxu1 %v1965_v12  ;;  %v5448_v54 = vld [vmem:[%s6425_s1 + $0x40] sm:$0xff] }
 0x988   :  { %1810 = vmatpush.msra.mxu2 %v1786_v24  ;;  %1982 = vmatpush.msrb.mxu1 %v1964_v38 }
 0x989   :  { %3434 = vmatmul.msk.f32.vlgmr.msra.gmra.mxu2 %vm126_vm0, %v4767_v2 }
 0x98a   :  { %1983 = vmatpush.msrb.mxu1 %v1963_v28  ;;  %2046 = vmatpush.msrb.mxu2 %v3487_v37 }
 0x98c   :  { %1984 = vmatpush.msrb.mxu1 %v1962_v46 }
 0x98e   :  { %1985 = vmatpush.msrb.mxu1 %v1961_v57 }
 0x98f   :  { %3470 = vmatmul.msk.f32.vlgmr.msrb.gmra.mxu1 %vm126_vm0, %v4767_v2  ;;  %v3486_v2 = vld [vmem:[%s6423_s0 + $0x308] sm:$0xff] }
 0x990   :  { %2047 = vmatpush.msrb.mxu2 %v3486_v2 }
 0x991   :  { %3435 = vmatmul.msk.f32.gmra.mxu2 %vm126_vm0, %v4776_v61 }
 0x997   :  { %3471 = vmatmul.msk.f32.gmra.mxu1 %vm126_vm0, %v4776_v61  ;;  %v3485_v61 = vld [vmem:[%s6423_s0 + $0x300] sm:$0xff] }
 0x998   :  { %2048 = vmatpush.msrb.mxu2 %v3485_v61 }
 0x999   :  { %3436 = vmatmul.msk.f32.gmra.mxu2 %vm126_vm0, %v4785_v41 }
 0x99a   :  { %2049 = vmatpush.msrb.mxu2 %v3484_v23 }
 0x99c   :  { %2050 = vmatpush.msrb.mxu2 %v3483_v47 }
 0x99e   :  { %2051 = vmatpush.msrb.mxu2 %v3482_v56 }
 0x99f   :  { %3472 = vmatmul.msk.f32.gmra.mxu1 %vm126_vm0, %v4785_v41  ;;  %v3523_v41 = vld [vmem:[%s6423_s0 + $0x358] sm:$0xff] }
 0x9a0   :  { %2221 = vmatpush.msra.mxu1 %v3523_v41  ;;  %2052 = vmatpush.msrb.mxu2 %v3481_v53 }
 0x9a1   :  { %3437 = vmatmul.msk.f32.gmra.mxu2 %vm126_vm0, %v4797_v11  ;;  %v5301_v11 = vld [vmem:[%s6425_s1 + $0xa8] sm:$0xff] }
 0x9a2   :  { %2222 = vmatpush.msra.mxu1 %v3522_v13 }
 0x9a4   :  { %2223 = vmatpush.msra.mxu1 %v3521_v62 }
 0x9a6   :  { %2224 = vmatpush.msra.mxu1 %v3520_v5 }
 0x9a7   :  { %3473 = vmatmul.msk.f32.gmra.mxu1 %vm126_vm0, %v5301_v11 }
 0x9a8   :  { %2225 = vmatpush.msra.mxu1 %v3519_v60 }
 0x9a9   :  { %3438 = vmatmul.msk.f32.gmra.mxu2 %vm126_vm0, %v4824_v52  ;;  %v3480_v52 = vld [vmem:[%s6423_s0 + $0x2d8] sm:$0xff] }
 0x9aa   :  { %2053 = vmatpush.msrb.mxu2 %v3480_v52  ;;  %2226 = vmatpush.msra.mxu1 %v3518_v59 }
 0x9ac   :  { %2054 = vmatpush.msrb.mxu2 %v3479_v32  ;;  %2227 = vmatpush.msra.mxu1 %v3517_v0 }
 0x9ae   :  { %2228 = vmatpush.msra.mxu1 %v3516_v44 }
 0x9af   :  { %3474 = vmatmul.msk.f32.gmra.mxu1 %vm126_vm0, %v5334_v16 }
 0x9b0   :  { %2229 = vmatpush.msra.mxu1 %v3515_v10 }
 0x9b1   :  { %3439 = vmatmul.msk.f32.gmra.mxu2 %vm126_vm0, %v4857_v26 }
 0x9b7   :  { %3475 = vmatmul.msk.f32.gmra.mxu1 %vm126_vm0, %v4857_v26  ;;  %v5372_v26 = vld [vmem:[%s6425_s1] sm:$0xff] }
 0x9b9   :  { %3440 = vmatmul.msk.f32.gmra.mxu2 %vm126_vm0, %v5105_v1 }
 0x9bf   :  { %3476 = vmatmul.msk.f32.gmra.mxu1 %vm126_vm0, %v5105_v1 }
 0x9c1   :  { %3441 = vmatmul.msk.f32.gmra.mxu2 %vm126_vm0, %v5114_v7 }
 0x9c7   :  { %3477 = vmatmul.msk.f32.gmra.mxu1 %vm126_vm0, %v5114_v7 }
 0x9c9   :  { %3442 = vmatmul.msk.f32.gmra.mxu2 %vm126_vm0, %v5123_v63 }
 0x9cf   :  { %3478 = vmatmul.msk.f32.gmra.mxu1 %vm126_vm0, %v5123_v63 }
 0x9d1   :  { %3488 = vmatmul.msk.f32.vlgmr.msrb.gmra.mxu2 %vm126_vm0, %v5372_v26 }
 0x9d7   :  { %3524 = vmatmul.msk.f32.vlgmr.msra.gmra.mxu1 %vm126_vm0, %v5372_v26 }
 0x9d9   :  { %3489 = vmatmul.msk.f32.gmra.mxu2 %vm126_vm0, %v5381_v20 }
 0x9df   :  { %3525 = vmatmul.msk.f32.gmra.mxu1 %vm126_vm0, %v5381_v20 }
 0x9e1   :  { %3490 = vmatmul.msk.f32.gmra.mxu2 %vm126_vm0, %v5390_v58 }
 0x9e7   :  { %3526 = vmatmul.msk.f32.gmra.mxu1 %vm126_vm0, %v5390_v58 }
 0x9e9   :  { %3491 = vmatmul.msk.f32.gmra.mxu2 %vm126_vm0, %v5399_v17 }
 0x9ef   :  { %3527 = vmatmul.msk.f32.gmra.mxu1 %vm126_vm0, %v5399_v17 }
 0x9f1   :  { %3492 = vmatmul.msk.f32.gmra.mxu2 %vm126_vm0, %v5408_v55 }
 0x9f7   :  { %3528 = vmatmul.msk.f32.gmra.mxu1 %vm126_vm0, %v5408_v55 }
 0x9f9   :  { %3493 = vmatmul.msk.f32.gmra.mxu2 %vm126_vm0, %v5417_v22 }
 0x9ff   :  { %3529 = vmatmul.msk.f32.gmra.mxu1 %vm126_vm0, %v5417_v22 }
 0xa01   :  { %3494 = vmatmul.msk.f32.gmra.mxu2 %vm126_vm0, %v5426_v25 }
 0xa07   :  { %3530 = vmatmul.msk.f32.gmra.mxu1 %vm126_vm0, %v5426_v25 }
 0xa09   :  { %3495 = vmatmul.msk.f32.gmra.mxu2 %vm126_vm0, %v5435_v18 }
 0xa0c   :  { %v5439_v8 = vpop.f32.mrf.mxu2  ;;  %v5441_v15 = vpop.f32.mrf.mxu1 }
 0xa0d   :  { %6553 = vst [vmem:[#allocation2_spill] sm:$0xff] %v5439_v8 }
 0xa0e   :  { %6554 = vst [vmem:[#allocation39_spill] sm:$0xff] %v5441_v15 }
 0xa0f   :  { %3531 = vmatmul.msk.f32.gmra.mxu1 %vm126_vm0, %v5435_v18 }
 0xa11   :  { %3496 = vmatmul.msk.f32.gmra.mxu2 %vm126_vm0, %v5448_v54 }
 0xa14   :  { %v5452_v42 = vpop.f32.mrf.mxu2  ;;  %v5454_v12 = vpop.f32.mrf.mxu1 }
 0xa15   :  { %6555 = vst [vmem:[#allocation40_spill] sm:$0xff] %v5452_v42 }
 0xa16   :  { %6556 = vst [vmem:[#allocation41_spill] sm:$0xff] %v5454_v12 }
 0xa17   :  { %3532 = vmatmul.msk.f32.gmra.mxu1 %vm126_vm0, %v5448_v54 }
 0xa1c   :  { %v5458_v24 = vpop.f32.mrf.mxu2  ;;  %v5460_v19 = vpop.f32.mrf.mxu1 }
 0xa1d   :  { %6557 = vst [vmem:[#allocation70_spill] sm:$0xff] %v5458_v24 }
 0xa1e   :  { %6558 = vst [vmem:[#allocation71_spill] sm:$0xff] %v5460_v19 }
 0xa24   :  { %v5462_v38 = vpop.f32.mrf.mxu2  ;;  %v5464_v50 = vpop.f32.mrf.mxu1 }
 0xa25   :  { %6559 = vst [vmem:[#allocation72_spill] sm:$0xff] %v5462_v38 }
 0xa26   :  { %6560 = vst [vmem:[#allocation73_spill] sm:$0xff] %v5464_v50 }
 0xa2c   :  { %v5466_v28 = vpop.f32.mrf.mxu2  ;;  %v5468_v46 = vpop.f32.mrf.mxu1 }
 0xa2d   :  { %6561 = vst [vmem:[#allocation74_spill] sm:$0xff] %v5466_v28 }
 0xa2e   :  { %6562 = vst [vmem:[#allocation75_spill] sm:$0xff] %v5468_v46 }
 0xa34   :  { %v5470_v57 = vpop.f32.mrf.mxu2  ;;  %v5472_v37 = vpop.f32.mrf.mxu1 }
 0xa35   :  { %6563 = vst [vmem:[#allocation76_spill] sm:$0xff] %v5470_v57 }
 0xa36   :  { %6564 = vst [vmem:[#allocation77_spill] sm:$0xff] %v5472_v37 }
 0xa3c   :  { %v5474_v2 = vpop.f32.mrf.mxu2  ;;  %v5476_v61 = vpop.f32.mrf.mxu1 }
 0xa3d   :  { %6565 = vst [vmem:[#allocation78_spill] sm:$0xff] %v5474_v2 }
 0xa3e   :  { %6566 = vst [vmem:[#allocation79_spill] sm:$0xff] %v5476_v61 }
 0xa44   :  { %v5478_v41 = vpop.f32.mrf.mxu2  ;;  %v5480_v23 = vpop.f32.mrf.mxu1 }
 0xa45   :  { %6567 = vst [vmem:[#allocation80_spill] sm:$0xff] %v5478_v41 }
 0xa46   :  { %6568 = vst [vmem:[#allocation81_spill] sm:$0xff] %v5480_v23 }
 0xa4c   :  { %v1836_v47 = vpop.f32.mrf.mxu2  ;;  %v2011_v13 = vpop.f32.mrf.mxu1 }
 0xa54   :  { %v2056_v56 = vpop.f32.mrf.mxu2  ;;  %v2231_v62 = vpop.f32.mrf.mxu1 }
 0xa5c   :  { %v2059_v53 = vpop.f32.mrf.mxu2  ;;  %v2234_v5 = vpop.f32.mrf.mxu1 }
 0xa64   :  { %v2062_v52 = vpop.f32.mrf.mxu2  ;;  %v2237_v60 = vpop.f32.mrf.mxu1 }
 0xa6c   :  { %v2065_v32 = vpop.f32.mrf.mxu2  ;;  %v2240_v59 = vpop.f32.mrf.mxu1 }
 0xa74   :  { %v2068_v0 = vpop.f32.mrf.mxu2  ;;  %v2243_v44 = vpop.f32.mrf.mxu1 }
 0xa7c   :  { %v2071_v10 = vpop.f32.mrf.mxu2  ;;  %v2246_v19 = vpop.f32.mrf.mxu1 }
 0xa7d   :  { %v2072_v28 = vadd.f32 %v2071_v10, %v4014_v9  ;;  %v2247_v50 = vadd.f32 %v2246_v19, %v4014_v9  ;;  %v2063_v19 = vadd.f32 %v2062_v52, %v4031_v31  ;;  %v5530_v10 = vld [vmem:[%s6425_s1 + $0x60] sm:$0xff] }
 0xa7e   :  { %6570 = vst [vmem:[#allocation83_spill] sm:$0xff] %v5530_v10 }
 0xa84   :  { %v2074_v24 = vpop.f32.mrf.mxu2  ;;  %v2249_v12 = vpop.f32.mrf.mxu1 }
 0xa85   :  { %v2075_v2 = vadd.f32 %v2074_v24, %v4008_v3  ;;  %v2250_v37 = vadd.f32 %v2249_v12, %v4008_v3  ;;  %v2066_v12 = vadd.f32 %v2065_v32, %v4020_v14  ;;  %v2241_v24 = vadd.f32 %v2240_v59, %v4020_v14 }
 0xa86   :  { %v2085_v32 = vmax.f32 %v2063_v19, 0.0 }
 0xa8c   :  { %v2077_v42 = vpop.f32.mrf.mxu2  ;;  %v2252_v15 = vpop.f32.mrf.mxu1 }
 0xa8d   :  { %v2078_v47 = vadd.f32 %v2077_v42, %v6504_v51  ;;  %v2253_v13 = vadd.f32 %v2252_v15, %v6504_v51  ;;  %v2069_v15 = vadd.f32 %v2068_v0, %v4012_v6  ;;  %v2089_v42 = vmax.f32 %v2075_v2, 0.0 }
 0xa8e   :  { %v2261_v2 = vmax.f32 %v2241_v24, 0.0 }
 0xa8f   :  { %v2090_v29 = vmax.f32 %v2078_v47, 0.0  ;;  %v2265_v38 = vmax.f32 %v2253_v13, 0.0  ;;  %v5539_v47 = vld [vmem:[%s6425_s1 + $0x68] sm:$0xff]  ;;  %v5548_v13 = vld [vmem:[%s6425_s1 + $0x70] sm:$0xff] }
 0xa90   :  { %6571 = vst [vmem:[#allocation84_spill] sm:$0xff] %v5539_v47 }
 0xa91   :  { %6572 = vst [vmem:[#allocation85_spill] sm:$0xff] %v5548_v13 }
 0xa94   :  { %v2080_v8 = vpop.f32.mrf.mxu2  ;;  %v2255_v23 = vpop.f32.mrf.mxu1 }
 0xa95   :  { %v2081_v41 = vadd.f32 %v2080_v8, %v4010_v4  ;;  %v2256_v61 = vadd.f32 %v2255_v23, %v4010_v4  ;;  %v2244_v8 = vadd.f32 %v2243_v44, %v4012_v6  ;;  %v2264_v23 = vmax.f32 %v2250_v37, 0.0 }
 0xa96   :  { %v2060_v37 = vadd.f32 %v2059_v53, %v4029_v30 }
 0xa97   :  { %v2091_v57 = vmax.f32 %v2081_v41, 0.0  ;;  %v2266_v46 = vmax.f32 %v2256_v61, 0.0  ;;  %v2088_v61 = vmax.f32 %v2072_v28, 0.0  ;;  %v2263_v41 = vmax.f32 %v2247_v50, 0.0 }
 0xa98   :  { %v2262_v0 = vmax.f32 %v2244_v8, 0.0  ;;  %v2057_v50 = vadd.f32 %v2056_v56, %v4035_v39  ;;  %v2232_v28 = vadd.f32 %v2231_v62, %v4035_v39  ;;  %v5503_v56 = vld [vmem:[%s6425_s1 + $0x48] sm:$0xff]  ;;  %v5512_v62 = vld [vmem:[%s6425_s1 + $0x50] sm:$0xff]  ;;  %v5566_v8 = vld [vmem:[%s6425_s1 + $0x80] sm:$0xff] }
 0xa99   :  { %2099 = vmatpush.msrb.mxu3 %v2091_v57  ;;  %2274 = vmatpush.msra.mxu2 %v2266_v46  ;;  %v2238_v46 = vadd.f32 %v2237_v60, %v4031_v31  ;;  %v2087_v57 = vmax.f32 %v2069_v15, 0.0  ;;  %v2084_v60 = vmax.f32 %v2060_v37, 0.0  ;;  %v5557_v15 = vld [vmem:[%s6425_s1 + $0x78] sm:$0xff]  ;;  %6574 = vst [vmem:[#allocation87_spill] sm:$0xff] %v5566_v8 }
 0xa9a   :  { %v2083_v44 = vmax.f32 %v2057_v50, 0.0  ;;  %v2258_v53 = vmax.f32 %v2232_v28, 0.0  ;;  %6573 = vst [vmem:[#allocation86_spill] sm:$0xff] %v5557_v15 }
 0xa9b   :  { %2100 = vmatpush.msrb.mxu3 %v2090_v29  ;;  %2275 = vmatpush.msra.mxu2 %v2265_v38  ;;  %v2235_v29 = vadd.f32 %v2234_v5, %v4029_v30  ;;  %v2086_v38 = vmax.f32 %v2066_v12, 0.0  ;;  %v2260_v52 = vmax.f32 %v2238_v46, 0.0  ;;  %v5521_v5 = vld [vmem:[%s6425_s1 + $0x58] sm:$0xff] }
 0xa9c   :  { %6569 = vst [vmem:[#allocation82_spill] sm:$0xff] %v5521_v5 }
 0xa9d   :  { %2101 = vmatpush.msrb.mxu3 %v2089_v42  ;;  %2276 = vmatpush.msra.mxu2 %v2264_v23  ;;  %v2259_v59 = vmax.f32 %v2235_v29, 0.0  ;;  %v5575_v42 = vld [vmem:[%s6425_s1 + $0x88] sm:$0xff] }
 0xa9e   :  { %6575 = vst [vmem:[#allocation88_spill] sm:$0xff] %v5575_v42 }
 0xa9f   :  { %2102 = vmatpush.msrb.mxu3 %v2088_v61  ;;  %2277 = vmatpush.msra.mxu2 %v2263_v41 }
 0xaa1   :  { %2103 = vmatpush.msrb.mxu3 %v2087_v57  ;;  %2278 = vmatpush.msra.mxu2 %v2262_v0 }
 0xaa3   :  { %2104 = vmatpush.msrb.mxu3 %v2086_v38  ;;  %2279 = vmatpush.msra.mxu2 %v2261_v2 }
 0xaa5   :  { %2105 = vmatpush.msrb.mxu3 %v2085_v32  ;;  %2280 = vmatpush.msra.mxu2 %v2260_v52 }
 0xaa7   :  { %2106 = vmatpush.msrb.mxu3 %v2084_v60  ;;  %2281 = vmatpush.msra.mxu2 %v2259_v59 }
 0xaa9   :  { %2107 = vmatpush.msrb.mxu3 %v2083_v44  ;;  %2282 = vmatpush.msra.mxu2 %v2258_v53 }
 0xaaa   :  { %3497 = vmatmul.msk.f32.vlgmr.msrb.gmra.mxu3 %vm126_vm0, %v5503_v56  ;;  %3533 = vmatmul.msk.f32.vlgmr.msra.gmra.mxu2 %vm126_vm0, %v5503_v56 }
 0xab2   :  { %3498 = vmatmul.msk.f32.gmra.mxu3 %vm126_vm0, %v5512_v62  ;;  %3534 = vmatmul.msk.f32.gmra.mxu2 %vm126_vm0, %v5512_v62 }
 0xaba   :  { %3499 = vmatmul.msk.f32.gmra.mxu3 %vm126_vm0, %v5521_v5  ;;  %3535 = vmatmul.msk.f32.gmra.mxu2 %vm126_vm0, %v5521_v5 }
 0xac2   :  { %3500 = vmatmul.msk.f32.gmra.mxu3 %vm126_vm0, %v5530_v10  ;;  %3536 = vmatmul.msk.f32.gmra.mxu2 %vm126_vm0, %v5530_v10 }
 0xaca   :  { %3501 = vmatmul.msk.f32.gmra.mxu3 %vm126_vm0, %v5539_v47  ;;  %3537 = vmatmul.msk.f32.gmra.mxu2 %vm126_vm0, %v5539_v47 }
 0xad2   :  { %3502 = vmatmul.msk.f32.gmra.mxu3 %vm126_vm0, %v5548_v13  ;;  %3538 = vmatmul.msk.f32.gmra.mxu2 %vm126_vm0, %v5548_v13 }
 0xada   :  { %3503 = vmatmul.msk.f32.gmra.mxu3 %vm126_vm0, %v5557_v15  ;;  %3539 = vmatmul.msk.f32.gmra.mxu2 %vm126_vm0, %v5557_v15 }
 0xae2   :  { %3504 = vmatmul.msk.f32.gmra.mxu3 %vm126_vm0, %v5566_v8  ;;  %3540 = vmatmul.msk.f32.gmra.mxu2 %vm126_vm0, %v5566_v8 }
 0xaea   :  { %3505 = vmatmul.msk.f32.gmra.mxu3 %vm126_vm0, %v5575_v42  ;;  %3541 = vmatmul.msk.f32.gmra.mxu2 %vm126_vm0, %v5575_v42 }
 0xb2d   :  { %v2109_v23 = vpop.f32.mrf.mxu3  ;;  %v2284_v12 = vpop.f32.mrf.mxu2 }
 0xb35   :  { %v2112_v24 = vpop.f32.mrf.mxu3  ;;  %v2287_v61 = vpop.f32.mrf.mxu2 }
 0xb3d   :  { %v2115_v41 = vpop.f32.mrf.mxu3  ;;  %v2290_v19 = vpop.f32.mrf.mxu2 }
 0xb45   :  { %v2118_v46 = vpop.f32.mrf.mxu3  ;;  %v2293_v57 = vpop.f32.mrf.mxu2 }
 0xb4d   :  { %v2121_v0 = vpop.f32.mrf.mxu3  ;;  %v2296_v37 = vpop.f32.mrf.mxu2 }
 0xb55   :  { %v2124_v29 = vpop.f32.mrf.mxu3  ;;  %v2299_v38 = vpop.f32.mrf.mxu2 }
 0xb56   :  { %v2125_v13 = vadd.f32 %v2124_v29, %v4137_v40  ;;  %v2300_v47 = vadd.f32 %v2299_v38, %v4137_v40  ;;  %v2116_v38 = vadd.f32 %v2115_v41, %v4152_v34 }
 0xb58   :  { %v2316_v29 = vmax.f32 %v2300_v47, 0.0  ;;  %v2110_v47 = vadd.f32 %v2109_v23, %v4160_v48  ;;  %v5602_v23 = vld [vmem:[%s6425_s1 + $0x90] sm:$0xff] }
 0xb5d   :  { %v2127_v2 = vpop.f32.mrf.mxu3  ;;  %v2302_v50 = vpop.f32.mrf.mxu2 }
 0xb5e   :  { %v2128_v21 = vadd.f32 %v2127_v2, %v4135_v36  ;;  %v2303_v42 = vadd.f32 %v2302_v50, %v4135_v36  ;;  %v2119_v2 = vadd.f32 %v2118_v46, %v4144_v49  ;;  %v2141_v50 = vmax.f32 %v2125_v13, 0.0 }
 0xb5f   :  { %v2285_v13 = vadd.f32 %v2284_v12, %v4160_v48  ;;  %v2138_v46 = vmax.f32 %v2116_v38, 0.0  ;;  %v5611_v12 = vld [vmem:[%s6425_s1 + $0x98] sm:$0xff]  ;;  %v3590_v38 = vld [vmem:[%s6423_s0 + $0x3c0] sm:$0xff] }
 0xb65   :  { %v2130_v28 = vpop.f32.mrf.mxu3  ;;  %v2305_v32 = vpop.f32.mrf.mxu2 }
 0xb66   :  { %v2131_v59 = vadd.f32 %v2130_v28, %v4133_v33  ;;  %v2306_v44 = vadd.f32 %v2305_v32, %v4133_v33  ;;  %v2122_v28 = vadd.f32 %v2121_v0, %v4141_v45  ;;  %v2297_v32 = vadd.f32 %v2296_v37, %v4141_v45 }
 0xb67   :  { %v2136_v37 = vmax.f32 %v2110_v47, 0.0 }
 0xb68   :  { %v2143_v10 = vmax.f32 %v2131_v59, 0.0  ;;  %v2318_v5 = vmax.f32 %v2306_v44, 0.0  ;;  %v2315_v0 = vmax.f32 %v2297_v32, 0.0  ;;  %v3559_v59 = vld [vmem:[%s6423_s0 + $0x3a0] sm:$0xff]  ;;  %v3595_v44 = vld [vmem:[%s6423_s0 + $0x3e8] sm:$0xff]  ;;  %v3557_v32 = vld [vmem:[%s6423_s0 + $0x390] sm:$0xff] }
 0xb6d   :  { %v2133_v52 = vpop.f32.mrf.mxu3  ;;  %v2308_v60 = vpop.f32.mrf.mxu2 }
 0xb6e   :  { %v2134_v53 = vadd.f32 %v2133_v52, %v4131_v27  ;;  %v2309_v35 = vadd.f32 %v2308_v60, %v4131_v27  ;;  %v2142_v52 = vmax.f32 %v2128_v21, 0.0  ;;  %v2317_v60 = vmax.f32 %v2303_v42, 0.0 }
 0xb6f   :  { %v2113_v21 = vadd.f32 %v2112_v24, %v4156_v43  ;;  %v2311_v24 = vmax.f32 %v2285_v13, 0.0 }
 0xb70   :  { %v2144_v8 = vmax.f32 %v2134_v53, 0.0  ;;  %v2319_v15 = vmax.f32 %v2309_v35, 0.0  ;;  %v2294_v35 = vadd.f32 %v2293_v57, %v4144_v49  ;;  %v3558_v53 = vld [vmem:[%s6423_s0 + $0x398] sm:$0xff] }
 0xb72   :  { %2152 = vmatpush.msra.mxu0 %v2144_v8  ;;  %2327 = vmatpush.msra.mxu3 %v2319_v15  ;;  %v2291_v15 = vadd.f32 %v2290_v19, %v4152_v34  ;;  %v2140_v8 = vmax.f32 %v2122_v28, 0.0  ;;  %v2314_v42 = vmax.f32 %v2294_v35, 0.0  ;;  %v2137_v19 = vmax.f32 %v2113_v21, 0.0  ;;  %v3594_v28 = vld [vmem:[%s6423_s0 + $0x3e0] sm:$0xff]  ;;  %v3588_v21 = vld [vmem:[%s6423_s0 + $0x3b0] sm:$0xff] }
 0xb73   :  { %v3555_v35 = vld [vmem:[%s6423_s0 + $0x380] sm:$0xff] }
 0xb74   :  { %2153 = vmatpush.msra.mxu0 %v2143_v10  ;;  %2328 = vmatpush.msra.mxu3 %v2318_v5  ;;  %v2288_v5 = vadd.f32 %v2287_v61, %v4156_v43  ;;  %v2139_v10 = vmax.f32 %v2119_v2, 0.0  ;;  %v2313_v41 = vmax.f32 %v2291_v15, 0.0  ;;  %v5620_v61 = vld [vmem:[%s6425_s1 + $0xa0] sm:$0xff]  ;;  %v3592_v2 = vld [vmem:[%s6423_s0 + $0x3d0] sm:$0xff] }
 0xb75   :  { %v3553_v15 = vld [vmem:[%s6423_s0 + $0x370] sm:$0xff] }
 0xb76   :  { %2154 = vmatpush.msra.mxu0 %v2142_v52  ;;  %2329 = vmatpush.msra.mxu3 %v2317_v60  ;;  %v2312_v57 = vmax.f32 %v2288_v5, 0.0  ;;  %v3593_v52 = vld [vmem:[%s6423_s0 + $0x3d8] sm:$0xff]  ;;  %v3556_v60 = vld [vmem:[%s6423_s0 + $0x388] sm:$0xff]  ;;  %v3551_v5 = vld [vmem:[%s6423_s0 + $0x360] sm:$0xff] }
 0xb78   :  { %2155 = vmatpush.msra.mxu0 %v2141_v50  ;;  %2330 = vmatpush.msra.mxu3 %v2316_v29  ;;  %v3591_v50 = vld [vmem:[%s6423_s0 + $0x3c8] sm:$0xff]  ;;  %v3554_v29 = vld [vmem:[%s6423_s0 + $0x378] sm:$0xff] }
 0xb7a   :  { %2156 = vmatpush.msra.mxu0 %v2140_v8  ;;  %2331 = vmatpush.msra.mxu3 %v2315_v0  ;;  %v3589_v8 = vld [vmem:[%s6423_s0 + $0x3b8] sm:$0xff]  ;;  %v3552_v0 = vld [vmem:[%s6423_s0 + $0x368] sm:$0xff] }
 0xb7c   :  { %2157 = vmatpush.msra.mxu0 %v2139_v10  ;;  %2332 = vmatpush.msra.mxu3 %v2314_v42  ;;  %v3587_v10 = vld [vmem:[%s6423_s0 + $0x3a8] sm:$0xff]  ;;  %v5691_v42 = vld [vmem:[%s6425_s1 + $0xb8] sm:$0xff] }
 0xb7e   :  { %2158 = vmatpush.msra.mxu0 %v2138_v46  ;;  %2333 = vmatpush.msra.mxu3 %v2313_v41 }
 0xb80   :  { %2159 = vmatpush.msra.mxu0 %v2137_v19  ;;  %2334 = vmatpush.msra.mxu3 %v2312_v57 }
 0xb82   :  { %2160 = vmatpush.msra.mxu0 %v2136_v37  ;;  %2335 = vmatpush.msra.mxu3 %v2311_v24 }
 0xb83   :  { %3506 = vmatmul.msk.f32.vlgmr.msra.gmra.mxu0 %vm126_vm0, %v5602_v23  ;;  %3542 = vmatmul.msk.f32.vlgmr.msra.gmra.mxu3 %vm126_vm0, %v5602_v23 }
 0xb84   :  { %2396 = vmatpush.msrb.mxu0 %v3559_v59  ;;  %2571 = vmatpush.msrb.mxu3 %v3595_v44 }
 0xb86   :  { %2397 = vmatpush.msrb.mxu0 %v3558_v53  ;;  %2572 = vmatpush.msrb.mxu3 %v3594_v28 }
 0xb88   :  { %2398 = vmatpush.msrb.mxu0 %v3557_v32  ;;  %2573 = vmatpush.msrb.mxu3 %v3593_v52 }
 0xb8a   :  { %2399 = vmatpush.msrb.mxu0 %v3556_v60  ;;  %2574 = vmatpush.msrb.mxu3 %v3592_v2 }
 0xb8b   :  { %3507 = vmatmul.msk.f32.gmra.mxu0 %vm126_vm0, %v5611_v12  ;;  %3543 = vmatmul.msk.f32.gmra.mxu3 %vm126_vm0, %v5611_v12 }
 0xb8c   :  { %2400 = vmatpush.msrb.mxu0 %v3555_v35  ;;  %2575 = vmatpush.msrb.mxu3 %v3591_v50 }
 0xb8e   :  { %2401 = vmatpush.msrb.mxu0 %v3554_v29  ;;  %2576 = vmatpush.msrb.mxu3 %v3590_v38 }
 0xb90   :  { %2402 = vmatpush.msrb.mxu0 %v3553_v15  ;;  %2577 = vmatpush.msrb.mxu3 %v3589_v8 }
 0xb92   :  { %2403 = vmatpush.msrb.mxu0 %v3552_v0  ;;  %2578 = vmatpush.msrb.mxu3 %v3588_v21 }
 0xb93   :  { %3508 = vmatmul.msk.f32.gmra.mxu0 %vm126_vm0, %v5620_v61  ;;  %3544 = vmatmul.msk.f32.gmra.mxu3 %vm126_vm0, %v5620_v61 }
 0xb94   :  { %2404 = vmatpush.msrb.mxu0 %v3551_v5  ;;  %2579 = vmatpush.msrb.mxu3 %v3587_v10 }
 0xb9b   :  { %3509 = vmatmul.msk.f32.gmra.mxu0 %vm126_vm0, %v5301_v11  ;;  %3545 = vmatmul.msk.f32.gmra.mxu3 %vm126_vm0, %v5301_v11 }
 0xba3   :  { %3510 = vmatmul.msk.f32.gmra.mxu0 %vm126_vm0, %v5334_v16  ;;  %3546 = vmatmul.msk.f32.gmra.mxu3 %vm126_vm0, %v5334_v16 }
 0xbab   :  { %3511 = vmatmul.msk.f32.gmra.mxu0 %vm126_vm0, %v5691_v42  ;;  %3547 = vmatmul.msk.f32.gmra.mxu3 %vm126_vm0, %v5691_v42 }
 0xbb3   :  { %3512 = vmatmul.msk.f32.gmra.mxu0 %vm126_vm0, %v5105_v1  ;;  %3548 = vmatmul.msk.f32.gmra.mxu3 %vm126_vm0, %v5105_v1 }
 0xbbb   :  { %3513 = vmatmul.msk.f32.gmra.mxu0 %vm126_vm0, %v5114_v7  ;;  %3549 = vmatmul.msk.f32.gmra.mxu3 %vm126_vm0, %v5114_v7 }
 0xbc3   :  { %3514 = vmatmul.msk.f32.gmra.mxu0 %vm126_vm0, %v5123_v63  ;;  %3550 = vmatmul.msk.f32.gmra.mxu3 %vm126_vm0, %v5123_v63 }
 0xbcb   :  { %3560 = vmatmul.msk.f32.vlgmr.msrb.gmra.mxu0 %vm126_vm0, %v5372_v26  ;;  %3596 = vmatmul.msk.f32.vlgmr.msrb.gmra.mxu3 %vm126_vm0, %v5372_v26 }
 0xbd3   :  { %3561 = vmatmul.msk.f32.gmra.mxu0 %vm126_vm0, %v5381_v20  ;;  %3597 = vmatmul.msk.f32.gmra.mxu3 %vm126_vm0, %v5381_v20 }
 0xbdb   :  { %3562 = vmatmul.msk.f32.gmra.mxu0 %vm126_vm0, %v5390_v58  ;;  %3598 = vmatmul.msk.f32.gmra.mxu3 %vm126_vm0, %v5390_v58 }
 0xbe3   :  { %3563 = vmatmul.msk.f32.gmra.mxu0 %vm126_vm0, %v5399_v17  ;;  %3599 = vmatmul.msk.f32.gmra.mxu3 %vm126_vm0, %v5399_v17 }
 0xbeb   :  { %3564 = vmatmul.msk.f32.gmra.mxu0 %vm126_vm0, %v5408_v55  ;;  %3600 = vmatmul.msk.f32.gmra.mxu3 %vm126_vm0, %v5408_v55 }
 0xbf3   :  { %3565 = vmatmul.msk.f32.gmra.mxu0 %vm126_vm0, %v5417_v22  ;;  %3601 = vmatmul.msk.f32.gmra.mxu3 %vm126_vm0, %v5417_v22 }
 0xbfb   :  { %3566 = vmatmul.msk.f32.gmra.mxu0 %vm126_vm0, %v5426_v25  ;;  %3602 = vmatmul.msk.f32.gmra.mxu3 %vm126_vm0, %v5426_v25 }
 0xc00   :  { %v5737_v1 = vpop.f32.mrf.mxu0 }
 0xc01   :  { %6576 = vst [vmem:[#allocation89_spill] sm:$0xff] %v5737_v1 }
 0xc03   :  { %3567 = vmatmul.msk.f32.gmra.mxu0 %vm126_vm0, %v5435_v18  ;;  %3603 = vmatmul.msk.f32.gmra.mxu3 %vm126_vm0, %v5435_v18 }
 0xc06   :  { %v5743_v7 = vpop.f32.mrf.mxu3 }
 0xc07   :  { %6577 = vst [vmem:[#allocation90_spill] sm:$0xff] %v5743_v7 }
 0xc08   :  { %v5745_v63 = vpop.f32.mrf.mxu0 }
 0xc09   :  { %6578 = vst [vmem:[#allocation91_spill] sm:$0xff] %v5745_v63 }
 0xc0b   :  { %3568 = vmatmul.msk.f32.gmra.mxu0 %vm126_vm0, %v5448_v54  ;;  %3604 = vmatmul.msk.f32.gmra.mxu3 %vm126_vm0, %v5448_v54 }
 0xc0e   :  { %v5751_v47 = vpop.f32.mrf.mxu3 }
 0xc0f   :  { %6579 = vst [vmem:[#allocation92_spill] sm:$0xff] %v5751_v47 }
 0xc10   :  { %v5753_v13 = vpop.f32.mrf.mxu0 }
 0xc11   :  { %6580 = vst [vmem:[#allocation93_spill] sm:$0xff] %v5753_v13 }
 0xc16   :  { %v5755_v46 = vpop.f32.mrf.mxu3 }
 0xc17   :  { %6581 = vst [vmem:[#allocation94_spill] sm:$0xff] %v5755_v46 }
 0xc18   :  { %v5757_v41 = vpop.f32.mrf.mxu0 }
 0xc1e   :  { %v5759_v19 = vpop.f32.mrf.mxu3 }
 0xc20   :  { %v5761_v18 = vpop.f32.mrf.mxu0 }
 0xc21   :  { %6582 = vst [vmem:[#allocation95_spill] sm:$0xff] %v5761_v18 }
 0xc26   :  { %v5763_v57 = vpop.f32.mrf.mxu3 }
 0xc27   :  { %6583 = vst [vmem:[#allocation96_spill] sm:$0xff] %v5763_v57 }
 0xc28   :  { %v5765_v37 = vpop.f32.mrf.mxu0 }
 0xc29   :  { %6584 = vst [vmem:[#allocation97_spill] sm:$0xff] %v5765_v37 }
 0xc2e   :  { %v5767_v24 = vpop.f32.mrf.mxu3 }
 0xc2f   :  { %6585 = vst [vmem:[#allocation98_spill] sm:$0xff] %v5767_v24 }
 0xc30   :  { %v5769_v59 = vpop.f32.mrf.mxu0 }
 0xc31   :  { %6586 = vst [vmem:[#allocation99_spill] sm:$0xff] %v5769_v59 }
 0xc36   :  { %v5771_v54 = vpop.f32.mrf.mxu3 }
 0xc37   :  { %6587 = vst [vmem:[#allocation100_spill] sm:$0xff] %v5771_v54 }
 0xc38   :  { %v5773_v44 = vpop.f32.mrf.mxu0 }
 0xc39   :  { %6588 = vst [vmem:[#allocation101_spill] sm:$0xff] %v5773_v44 }
 0xc3e   :  { %v5775_v53 = vpop.f32.mrf.mxu3 }
 0xc3f   :  { %6589 = vst [vmem:[#allocation102_spill] sm:$0xff] %v5775_v53 }
 0xc40   :  { %v2186_v28 = vpop.f32.mrf.mxu0 }
 0xc46   :  { %v2361_v32 = vpop.f32.mrf.mxu3 }
 0xc48   :  { %v2406_v52 = vpop.f32.mrf.mxu0 }
 0xc4e   :  { %v2581_v60 = vpop.f32.mrf.mxu3 }
 0xc50   :  { %v2409_v2 = vpop.f32.mrf.mxu0 }
 0xc56   :  { %v2584_v35 = vpop.f32.mrf.mxu3 }
 0xc58   :  { %v2412_v50 = vpop.f32.mrf.mxu0 }
 0xc5e   :  { %v2587_v29 = vpop.f32.mrf.mxu3 }
 0xc60   :  { %v2415_v38 = vpop.f32.mrf.mxu0 }
 0xc66   :  { %v2590_v15 = vpop.f32.mrf.mxu3 }
 0xc68   :  { %v2418_v8 = vpop.f32.mrf.mxu0 }
 0xc69   :  { %v2419_v59 = vadd.f32 %v2418_v8, %v4012_v6 }
 0xc6e   :  { %v2593_v0 = vpop.f32.mrf.mxu3 }
 0xc70   :  { %v2421_v21 = vpop.f32.mrf.mxu0 }
 0xc71   :  { %v2422_v53 = vadd.f32 %v2421_v21, %v4014_v9  ;;  %v2413_v21 = vadd.f32 %v2412_v50, %v4031_v31  ;;  %v2585_v50 = vadd.f32 %v2584_v35, %v4029_v30  ;;  %v6591_v35 = vld [vmem:[#allocation83_spill] sm:$0xff] }
 0xc73   :  { %v2438_v18 = vmax.f32 %v2422_v53, 0.0 }
 0xc76   :  { %v2596_v5 = vpop.f32.mrf.mxu3 }
 0xc78   :  { %v2424_v10 = vpop.f32.mrf.mxu0 }
 0xc79   :  { %v2425_v7 = vadd.f32 %v2424_v10, %v4008_v3 }
 0xc7b   :  { %v2439_v24 = vmax.f32 %v2425_v7, 0.0  ;;  %v2410_v7 = vadd.f32 %v2409_v2, %v4029_v30 }
 0xc7e   :  { %v2599_v46 = vpop.f32.mrf.mxu3 }
 0xc80   :  { %v2427_v13 = vpop.f32.mrf.mxu0 }
 0xc81   :  { %v2428_v28 = vadd.f32 %v2427_v13, %v6504_v51  ;;  %v2416_v13 = vadd.f32 %v2415_v38, %v4020_v14 }
 0xc83   :  { %v2440_v44 = vmax.f32 %v2428_v28, 0.0  ;;  %v2437_v28 = vmax.f32 %v2419_v59, 0.0  ;;  %v2434_v59 = vmax.f32 %v2410_v7, 0.0 }
 0xc86   :  { %v2602_v47 = vpop.f32.mrf.mxu3 }
 0xc87   :  { %v2603_v37 = vadd.f32 %v2602_v47, %v6504_v51  ;;  %v2436_v47 = vmax.f32 %v2416_v13, 0.0  ;;  %v6596_v13 = vld [vmem:[#allocation88_spill] sm:$0xff] }
 0xc88   :  { %v2430_v63 = vpop.f32.mrf.mxu0 }
 0xc89   :  { %v2431_v32 = vadd.f32 %v2430_v63, %v4010_v4  ;;  %v2600_v63 = vadd.f32 %v2599_v46, %v4008_v3  ;;  %v2407_v46 = vadd.f32 %v2406_v52, %v4035_v39  ;;  %v2582_v52 = vadd.f32 %v2581_v60, %v4035_v39  ;;  %v6590_v60 = vld [vmem:[#allocation82_spill] sm:$0xff] }
 0xc8b   :  { %v2441_v1 = vmax.f32 %v2431_v32, 0.0  ;;  %v2615_v32 = vmax.f32 %v2603_v37, 0.0  ;;  %v2433_v2 = vmax.f32 %v2407_v46, 0.0 }
 0xc8d   :  { %2449 = vmatpush.msrb.mxu1 %v2441_v1  ;;  %v2597_v1 = vadd.f32 %v2596_v5, %v4014_v9  ;;  %v6595_v5 = vld [vmem:[#allocation87_spill] sm:$0xff] }
 0xc8e   :  { %v2605_v54 = vpop.f32.mrf.mxu3 }
 0xc8f   :  { %v2606_v57 = vadd.f32 %v2605_v54, %v4010_v4  ;;  %2450 = vmatpush.msrb.mxu1 %v2440_v44  ;;  %v2594_v54 = vadd.f32 %v2593_v0, %v4012_v6  ;;  %v2614_v44 = vmax.f32 %v2600_v63, 0.0  ;;  %v2613_v53 = vmax.f32 %v2597_v1, 0.0  ;;  %v6592_v0 = vld [vmem:[#allocation84_spill] sm:$0xff] }
 0xc91   :  { %v2616_v10 = vmax.f32 %v2606_v57, 0.0  ;;  %2451 = vmatpush.msrb.mxu1 %v2439_v24  ;;  %v2435_v57 = vmax.f32 %v2413_v21, 0.0  ;;  %v2591_v24 = vadd.f32 %v2590_v15, %v4020_v14  ;;  %v2612_v37 = vmax.f32 %v2594_v54, 0.0 }
 0xc92   :  { %v2609_v15 = vmax.f32 %v2585_v50, 0.0 }
 0xc93   :  { %2452 = vmatpush.msrb.mxu1 %v2438_v18  ;;  %2624 = vmatpush.msra.mxu0 %v2616_v10  ;;  %v2588_v18 = vadd.f32 %v2587_v29, %v4031_v31  ;;  %v2611_v38 = vmax.f32 %v2591_v24, 0.0  ;;  %v2608_v29 = vmax.f32 %v2582_v52, 0.0 }
 0xc95   :  { %2453 = vmatpush.msrb.mxu1 %v2437_v28  ;;  %2625 = vmatpush.msra.mxu0 %v2615_v32  ;;  %v2610_v8 = vmax.f32 %v2588_v18, 0.0 }
 0xc97   :  { %2454 = vmatpush.msrb.mxu1 %v2436_v47  ;;  %2626 = vmatpush.msra.mxu0 %v2614_v44 }
 0xc99   :  { %2455 = vmatpush.msrb.mxu1 %v2435_v57  ;;  %2627 = vmatpush.msra.mxu0 %v2613_v53 }
 0xc9b   :  { %2456 = vmatpush.msrb.mxu1 %v2434_v59  ;;  %2628 = vmatpush.msra.mxu0 %v2612_v37 }
 0xc9d   :  { %2457 = vmatpush.msrb.mxu1 %v2433_v2  ;;  %2629 = vmatpush.msra.mxu0 %v2611_v38 }
 0xc9e   :  { %3569 = vmatmul.msk.f32.vlgmr.msrb.gmra.mxu1 %vm126_vm0, %v5503_v56 }
 0xc9f   :  { %2630 = vmatpush.msra.mxu0 %v2610_v8 }
 0xca1   :  { %2631 = vmatpush.msra.mxu0 %v2609_v15 }
 0xca3   :  { %2632 = vmatpush.msra.mxu0 %v2608_v29 }
 0xca4   :  { %3605 = vmatmul.msk.f32.vlgmr.msra.gmra.mxu0 %vm126_vm0, %v5503_v56  ;;  %v6593_v56 = vld [vmem:[#allocation85_spill] sm:$0xff] }
 0xca6   :  { %3570 = vmatmul.msk.f32.gmra.mxu1 %vm126_vm0, %v5512_v62 }
 0xcac   :  { %3606 = vmatmul.msk.f32.gmra.mxu0 %vm126_vm0, %v5512_v62  ;;  %v6594_v62 = vld [vmem:[#allocation86_spill] sm:$0xff] }
 0xcae   :  { %3571 = vmatmul.msk.f32.gmra.mxu1 %vm126_vm0, %v6590_v60 }
 0xcb4   :  { %3607 = vmatmul.msk.f32.gmra.mxu0 %vm126_vm0, %v6590_v60 }
 0xcb6   :  { %3572 = vmatmul.msk.f32.gmra.mxu1 %vm126_vm0, %v6591_v35 }
 0xcbc   :  { %3608 = vmatmul.msk.f32.gmra.mxu0 %vm126_vm0, %v6591_v35 }
 0xcbe   :  { %3573 = vmatmul.msk.f32.gmra.mxu1 %vm126_vm0, %v6592_v0 }
 0xcc4   :  { %3609 = vmatmul.msk.f32.gmra.mxu0 %vm126_vm0, %v6592_v0 }
 0xcc6   :  { %3574 = vmatmul.msk.f32.gmra.mxu1 %vm126_vm0, %v6593_v56 }
 0xccc   :  { %3610 = vmatmul.msk.f32.gmra.mxu0 %vm126_vm0, %v6593_v56 }
 0xcce   :  { %3575 = vmatmul.msk.f32.gmra.mxu1 %vm126_vm0, %v6594_v62 }
 0xcd4   :  { %3611 = vmatmul.msk.f32.gmra.mxu0 %vm126_vm0, %v6594_v62 }
 0xcd6   :  { %3576 = vmatmul.msk.f32.gmra.mxu1 %vm126_vm0, %v6595_v5 }
 0xcdc   :  { %3612 = vmatmul.msk.f32.gmra.mxu0 %vm126_vm0, %v6595_v5 }
 0xcde   :  { %3577 = vmatmul.msk.f32.gmra.mxu1 %vm126_vm0, %v6596_v13 }
 0xce4   :  { %3613 = vmatmul.msk.f32.gmra.mxu0 %vm126_vm0, %v6596_v13 }
 0xd1b   :  { %v2459_v63 = vpop.f32.mrf.mxu1 }
 0xd21   :  { %v2634_v10 = vpop.f32.mrf.mxu0 }
 0xd23   :  { %v2462_v21 = vpop.f32.mrf.mxu1 }
 0xd29   :  { %v2637_v28 = vpop.f32.mrf.mxu0 }
 0xd2b   :  { %v2465_v1 = vpop.f32.mrf.mxu1 }
 0xd31   :  { %v2640_v32 = vpop.f32.mrf.mxu0 }
 0xd33   :  { %v2468_v7 = vpop.f32.mrf.mxu1 }
 0xd34   :  { %v2469_v62 = vadd.f32 %v2468_v7, %v4144_v49  ;;  %v2460_v7 = vadd.f32 %v2459_v63, %v4160_v48  ;;  %v2635_v63 = vadd.f32 %v2634_v10, %v4160_v48  ;;  %v3631_v10 = vld [vmem:[%s6423_s0 + $0x430] sm:$0xff] }
 0xd39   :  { %v2643_v47 = vpop.f32.mrf.mxu0 }
 0xd3b   :  { %v2471_v54 = vpop.f32.mrf.mxu1 }
 0xd3c   :  { %v2472_v60 = vadd.f32 %v2471_v54, %v4141_v45  ;;  %v2463_v54 = vadd.f32 %v2462_v21, %v4156_v43  ;;  %v2486_v21 = vmax.f32 %v2460_v7, 0.0 }
 0xd41   :  { %v2646_v44 = vpop.f32.mrf.mxu0 }
 0xd43   :  { %v2474_v46 = vpop.f32.mrf.mxu1 }
 0xd44   :  { %v2475_v8 = vadd.f32 %v2474_v46, %v4137_v40  ;;  %v2466_v46 = vadd.f32 %v2465_v1, %v4152_v34 }
 0xd46   :  { %v2491_v5 = vmax.f32 %v2475_v8, 0.0  ;;  %v2641_v8 = vadd.f32 %v2640_v32, %v4152_v34  ;;  %v2661_v32 = vmax.f32 %v2635_v63, 0.0  ;;  %v6603_v63 = vld [vmem:[#allocation12_spill] sm:$0xff] }
 0xd49   :  { %v2649_v57 = vpop.f32.mrf.mxu0 }
 0xd4b   :  { %v2477_v24 = vpop.f32.mrf.mxu1 }
 0xd4c   :  { %v2478_v38 = vadd.f32 %v2477_v24, %v4135_v36 }
 0xd4e   :  { %v2492_v35 = vmax.f32 %v2478_v38, 0.0 }
 0xd51   :  { %v2652_v53 = vpop.f32.mrf.mxu0 }
 0xd52   :  { %v2653_v13 = vadd.f32 %v2652_v53, %v4135_v36  ;;  %v2488_v53 = vmax.f32 %v2466_v46, 0.0  ;;  %v3623_v46 = vld [vmem:[%s6423_s0 + $0x3f0] sm:$0xff] }
 0xd53   :  { %v2480_v59 = vpop.f32.mrf.mxu1 }
 0xd54   :  { %v2481_v2 = vadd.f32 %v2480_v59, %v4133_v33  ;;  %v2490_v59 = vmax.f32 %v2472_v60, 0.0  ;;  %v2667_v38 = vmax.f32 %v2653_v13, 0.0  ;;  %v2663_v60 = vmax.f32 %v2641_v8, 0.0  ;;  %v3624_v13 = vld [vmem:[%s6423_s0 + $0x3f8] sm:$0xff] }
 0xd56   :  { %v2493_v15 = vmax.f32 %v2481_v2, 0.0 }
 0xd59   :  { %v2655_v18 = vpop.f32.mrf.mxu0 }
 0xd5a   :  { %v2656_v0 = vadd.f32 %v2655_v18, %v4133_v33  ;;  %v2489_v18 = vmax.f32 %v2469_v62, 0.0  ;;  %v3625_v62 = vld [vmem:[%s6423_s0 + $0x400] sm:$0xff] }
 0xd5b   :  { %v2483_v37 = vpop.f32.mrf.mxu1 }
 0xd5c   :  { %v2484_v50 = vadd.f32 %v2483_v37, %v4131_v27  ;;  %v2650_v37 = vadd.f32 %v2649_v57, %v4137_v40  ;;  %v2668_v2 = vmax.f32 %v2656_v0, 0.0  ;;  %v2487_v57 = vmax.f32 %v2463_v54, 0.0  ;;  %v3666_v0 = vld [vmem:[%s6423_s0 + $0x470] sm:$0xff]  ;;  %v5930_v54 = vld [vmem:[%s6425_s1 + $0xc0] sm:$0xff] }
 0xd5e   :  { %v2494_v52 = vmax.f32 %v2484_v50, 0.0  ;;  %v2647_v50 = vadd.f32 %v2646_v44, %v4141_v45  ;;  %v2666_v1 = vmax.f32 %v2650_v37, 0.0  ;;  %v2638_v44 = vadd.f32 %v2637_v28, %v4156_v43  ;;  %v3628_v28 = vld [vmem:[%s6423_s0 + $0x418] sm:$0xff]  ;;  %v3661_v37 = vld [vmem:[%s6423_s0 + $0x448] sm:$0xff] }
 0xd60   :  { %2502 = vmatpush.msrb.mxu2 %v2494_v52  ;;  %v2644_v52 = vadd.f32 %v2643_v47, %v4144_v49  ;;  %v2662_v47 = vmax.f32 %v2638_v44, 0.0 }
 0xd61   :  { %v2658_v29 = vpop.f32.mrf.mxu0 }
 0xd62   :  { %v2659_v56 = vadd.f32 %v2658_v29, %v4131_v27  ;;  %2503 = vmatpush.msrb.mxu2 %v2493_v15  ;;  %v2665_v15 = vmax.f32 %v2647_v50, 0.0  ;;  %v2664_v29 = vmax.f32 %v2644_v52, 0.0  ;;  %v6597_v50 = vld [vmem:[#allocation10_spill] sm:$0xff] }
 0xd64   :  { %v2669_v24 = vmax.f32 %v2659_v56, 0.0  ;;  %2504 = vmatpush.msrb.mxu2 %v2492_v35  ;;  %v3627_v35 = vld [vmem:[%s6423_s0 + $0x410] sm:$0xff]  ;;  %v3626_v56 = vld [vmem:[%s6423_s0 + $0x408] sm:$0xff] }
 0xd66   :  { %2505 = vmatpush.msrb.mxu2 %v2491_v5  ;;  %2677 = vmatpush.msra.mxu1 %v2669_v24  ;;  %v3664_v5 = vld [vmem:[%s6423_s0 + $0x460] sm:$0xff]  ;;  %v3663_v24 = vld [vmem:[%s6423_s0 + $0x458] sm:$0xff] }
 0xd68   :  { %2506 = vmatpush.msrb.mxu2 %v2490_v59  ;;  %2678 = vmatpush.msra.mxu1 %v2668_v2  ;;  %v3662_v59 = vld [vmem:[%s6423_s0 + $0x450] sm:$0xff]  ;;  %v3659_v2 = vld [vmem:[%s6423_s0 + $0x438] sm:$0xff] }
 0xd6a   :  { %2507 = vmatpush.msrb.mxu2 %v2489_v18  ;;  %2679 = vmatpush.msra.mxu1 %v2667_v38  ;;  %v5939_v18 = vld [vmem:[%s6425_s1 + $0xc8] sm:$0xff]  ;;  %v6598_v38 = vld [vmem:[#allocation11_spill] sm:$0xff] }
 0xd6c   :  { %2508 = vmatpush.msrb.mxu2 %v2488_v53  ;;  %2680 = vmatpush.msra.mxu1 %v2666_v1  ;;  %v3753_v1 = vld [vmem:[%s6425_s1 + $0x38] sm:$0xff] }
 0xd6e   :  { %2509 = vmatpush.msrb.mxu2 %v2487_v57  ;;  %2681 = vmatpush.msra.mxu1 %v2665_v15  ;;  %v6600_v15 = vld [vmem:[#allocation30_spill] sm:$0xff] }
 0xd70   :  { %2510 = vmatpush.msrb.mxu2 %v2486_v21  ;;  %2682 = vmatpush.msra.mxu1 %v2664_v29 }
 0xd71   :  { %3578 = vmatmul.msk.f32.vlgmr.msrb.gmra.mxu2 %vm126_vm0, %v5602_v23 }
 0xd72   :  { %2683 = vmatpush.msra.mxu1 %v2663_v60  ;;  %2746 = vmatpush.msra.mxu2 %v3631_v10 }
 0xd74   :  { %2684 = vmatpush.msra.mxu1 %v2662_v47 }
 0xd76   :  { %2685 = vmatpush.msra.mxu1 %v2661_v32  ;;  %v6604_v32 = vld [vmem:[#allocation48_spill] sm:$0xff] }
 0xd77   :  { %3614 = vmatmul.msk.f32.vlgmr.msra.gmra.mxu1 %vm126_vm0, %v5602_v23  ;;  %v3630_v23 = vld [vmem:[%s6423_s0 + $0x428] sm:$0xff] }
 0xd78   :  { %2747 = vmatpush.msra.mxu2 %v3630_v23  ;;  %v6605_v23 = vld [vmem:[#allocation13_spill] sm:$0xff] }
 0xd79   :  { %3579 = vmatmul.msk.f32.gmra.mxu2 %vm126_vm0, %v5611_v12 }
 0xd7f   :  { %3615 = vmatmul.msk.f32.gmra.mxu1 %vm126_vm0, %v5611_v12  ;;  %v3629_v12 = vld [vmem:[%s6423_s0 + $0x420] sm:$0xff] }
 0xd80   :  { %2748 = vmatpush.msra.mxu2 %v3629_v12 }
 0xd81   :  { %3580 = vmatmul.msk.f32.gmra.mxu2 %vm126_vm0, %v5620_v61 }
 0xd82   :  { %2749 = vmatpush.msra.mxu2 %v3628_v28 }
 0xd84   :  { %2750 = vmatpush.msra.mxu2 %v3627_v35  ;;  %v6607_v35 = vld [vmem:[#allocation15_spill] sm:$0xff] }
 0xd86   :  { %2751 = vmatpush.msra.mxu2 %v3626_v56 }
 0xd87   :  { %3616 = vmatmul.msk.f32.gmra.mxu1 %vm126_vm0, %v5620_v61  ;;  %v3667_v61 = vld [vmem:[%s6423_s0 + $0x478] sm:$0xff] }
 0xd88   :  { %2921 = vmatpush.msrb.mxu1 %v3667_v61  ;;  %2752 = vmatpush.msra.mxu2 %v3625_v62  ;;  %v6606_v61 = vld [vmem:[#allocation14_spill] sm:$0xff] }
 0xd89   :  { %3581 = vmatmul.msk.f32.gmra.mxu2 %vm126_vm0, %v5301_v11 }
 0xd8a   :  { %2922 = vmatpush.msrb.mxu1 %v3666_v0  ;;  %2753 = vmatpush.msra.mxu2 %v3624_v13 }
 0xd8c   :  { %2754 = vmatpush.msra.mxu2 %v3623_v46 }
 0xd8f   :  { %3617 = vmatmul.msk.f32.gmra.mxu1 %vm126_vm0, %v5301_v11  ;;  %v3665_v11 = vld [vmem:[%s6423_s0 + $0x468] sm:$0xff] }
 0xd90   :  { %2923 = vmatpush.msrb.mxu1 %v3665_v11 }
 0xd91   :  { %3582 = vmatmul.msk.f32.gmra.mxu2 %vm126_vm0, %v5334_v16 }
 0xd92   :  { %2924 = vmatpush.msrb.mxu1 %v3664_v5  ;;  %v6608_v5 = vld [vmem:[#allocation16_spill] sm:$0xff] }
 0xd94   :  { %2925 = vmatpush.msrb.mxu1 %v3663_v24  ;;  %v6609_v24 = vld [vmem:[#allocation17_spill] sm:$0xff] }
 0xd96   :  { %2926 = vmatpush.msrb.mxu1 %v3662_v59  ;;  %v6610_v59 = vld [vmem:[#allocation31_spill] sm:$0xff] }
 0xd97   :  { %3618 = vmatmul.msk.f32.gmra.mxu1 %vm126_vm0, %v5334_v16  ;;  %v3660_v16 = vld [vmem:[%s6423_s0 + $0x440] sm:$0xff] }
 0xd98   :  { %2927 = vmatpush.msrb.mxu1 %v3661_v37 }
 0xd99   :  { %3583 = vmatmul.msk.f32.gmra.mxu2 %vm126_vm0, %v5691_v42 }
 0xd9a   :  { %2928 = vmatpush.msrb.mxu1 %v3660_v16 }
 0xd9c   :  { %2929 = vmatpush.msrb.mxu1 %v3659_v2 }
 0xd9f   :  { %3619 = vmatmul.msk.f32.gmra.mxu1 %vm126_vm0, %v5691_v42  ;;  %v5948_v42 = vld [vmem:[%s6425_s1 + $0xd0] sm:$0xff] }
 0xda1   :  { %3584 = vmatmul.msk.f32.gmra.mxu2 %vm126_vm0, %v5930_v54 }
 0xda7   :  { %3620 = vmatmul.msk.f32.gmra.mxu1 %vm126_vm0, %v5930_v54 }
 0xda9   :  { %3585 = vmatmul.msk.f32.gmra.mxu2 %vm126_vm0, %v5939_v18 }
 0xdaf   :  { %3621 = vmatmul.msk.f32.gmra.mxu1 %vm126_vm0, %v5939_v18 }
 0xdb1   :  { %3586 = vmatmul.msk.f32.gmra.mxu2 %vm126_vm0, %v5948_v42 }
 0xdb7   :  { %3622 = vmatmul.msk.f32.gmra.mxu1 %vm126_vm0, %v5948_v42 }
 0xdb9   :  { %3632 = vmatmul.msk.f32.vlgmr.msra.gmra.mxu2 %vm126_vm0, %v5372_v26 }
 0xdbf   :  { %3668 = vmatmul.msk.f32.vlgmr.msrb.gmra.mxu1 %vm126_vm0, %v5372_v26  ;;  %v5976_v26 = vpop.permute.xlu0 %334 }
 0xdc1   :  { %3633 = vmatmul.msk.f32.gmra.mxu2 %vm126_vm0, %v5381_v20 }
 0xdc7   :  { %3669 = vmatmul.msk.f32.gmra.mxu1 %vm126_vm0, %v5381_v20  ;;  %v5978_v20 = vpop.permute.xlu1 %339 }
 0xdc9   :  { %3634 = vmatmul.msk.f32.gmra.mxu2 %vm126_vm0, %v5390_v58 }
 0xdcf   :  { %3670 = vmatmul.msk.f32.gmra.mxu1 %vm126_vm0, %v5390_v58  ;;  %v5984_v58 = vpop.permute.xlu2 %344  ;;  %v5994_v53 = vpop.permute.xlu1 %354 }
 0xdd0   :  { %v433_v60 = vadd.f32 %v6603_v63, %v5994_v53  ;;  %v600_v12 = vadd.f32 %v6605_v23, %v5994_v53  ;;  %v775_v37 = vadd.f32 %v6610_v59, %v5994_v53  ;;  %v6613_v63 = vld [vmem:[#allocation60_spill] sm:$0xff]  ;;  %v6614_v23 = vld [vmem:[#allocation50_spill] sm:$0xff] }
 0xdd1   :  { %3635 = vmatmul.msk.f32.gmra.mxu2 %vm126_vm0, %v5399_v17 }
 0xdd2   :  { %v450_v16 = vmax.f32 %v433_v60, 0.0 }
 0xdd7   :  { %3671 = vmatmul.msk.f32.gmra.mxu1 %vm126_vm0, %v5399_v17  ;;  %v5986_v17 = vpop.permute.xlu0 %349 }
 0xdd8   :  { %v597_v7 = vadd.f32 %v6598_v38, %v5986_v17  ;;  %v947_v21 = vadd.f32 %v6600_v15, %v5986_v17  ;;  %v1122_v10 = vadd.f32 %v6604_v32, %v5986_v17  ;;  %v617_v38 = vmax.f32 %v600_v12, 0.0  ;;  %v6612_v15 = vld [vmem:[#allocation49_spill] sm:$0xff] }
 0xdd9   :  { %3636 = vmatmul.msk.f32.gmra.mxu2 %vm126_vm0, %v5408_v55  ;;  %v1472_v60 = vadd.f32 %v6613_v63, %v5986_v17  ;;  %v1125_v12 = vadd.f32 %v6614_v23, %v5994_v53 }
 0xdda   :  { %v616_v8 = vmax.f32 %v597_v7, 0.0  ;;  %v966_v62 = vmax.f32 %v947_v21, 0.0  ;;  %v1297_v21 = vadd.f32 %v6612_v15, %v5986_v17  ;;  %v6621_v15 = vld [vmem:[#allocation34_spill] sm:$0xff] }
 0xddc   :  { %v1316_v23 = vmax.f32 %v1297_v21, 0.0  ;;  %v6624_v21 = vld [vmem:[#allocation51_spill] sm:$0xff] }
 0xddf   :  { %3672 = vmatmul.msk.f32.gmra.mxu1 %vm126_vm0, %v5408_v55  ;;  %v430_v55 = vadd.f32 %v6597_v50, %v5986_v17  ;;  %v6020_v56 = vpop.permute.xlu0 %364  ;;  %v1141_v50 = vmax.f32 %v1122_v10, 0.0  ;;  %v792_v10 = vmax.f32 %v775_v37, 0.0  ;;  %v6620_v37 = vld [vmem:[#allocation19_spill] sm:$0xff] }
 0xde0   :  { %v439_v13 = vadd.f32 %v6608_v5, %v6020_v56  ;;  %v606_v46 = vadd.f32 %v6609_v24, %v6020_v56  ;;  %v6619_v24 = vld [vmem:[#allocation61_spill] sm:$0xff] }
 0xde1   :  { %3637 = vmatmul.msk.f32.gmra.mxu2 %vm126_vm0, %v5417_v22  ;;  %v449_v57 = vmax.f32 %v430_v55, 0.0  ;;  %v3754_v55 = vld [vmem:[%s6425_s1 + $0x40] sm:$0xff]  ;;  %v1647_v59 = vadd.f32 %v6619_v24, %v5986_v17 }
 0xde2   :  { %v619_v32 = vmax.f32 %v606_v46, 0.0 }
 0xde3   :  { %v624_v11 = vmax.f32 %v449_v57, %v616_v8  ;;  %v6035_v57 = vpop.permute.xlu1 %369 }
 0xde7   :  { %3673 = vmatmul.msk.f32.gmra.mxu1 %vm126_vm0, %v5417_v22  ;;  %v6599_v22 = vld [vmem:[#allocation29_spill] sm:$0xff] }
 0xde8   :  { %v772_v52 = vadd.f32 %v6599_v22, %v5986_v17 }
 0xde9   :  { %3638 = vmatmul.msk.f32.gmra.mxu2 %vm126_vm0, %v5426_v25 }
 0xdea   :  { %v791_v47 = vmax.f32 %v772_v52, 0.0  ;;  %v6611_v52 = vld [vmem:[#allocation32_spill] sm:$0xff] }
 0xdec   :  { %v799_v2 = vmax.f32 %v624_v11, %v791_v47  ;;  %v452_v47 = vmax.f32 %v439_v13, 0.0  ;;  %v6618_v11 = vld [vmem:[#allocation33_spill] sm:$0xff]  ;;  %v625_v13 = vmax.f32 %v450_v16, %v617_v38  ;;  %v1142_v38 = vmax.f32 %v1125_v12, 0.0 }
 0xdee   :  { %v974_v8 = vmax.f32 %v799_v2, %v966_v62  ;;  %v609_v2 = vadd.f32 %v6620_v37, %v6035_v57 }
 0xdef   :  { %3674 = vmatmul.msk.f32.gmra.mxu1 %vm126_vm0, %v5426_v25  ;;  %v6008_v25 = vpop.permute.xlu2 %359 }
 0xdf0   :  { %v436_v28 = vadd.f32 %v6606_v61, %v6008_v25  ;;  %v603_v0 = vadd.f32 %v6607_v35, %v6008_v25  ;;  %v6617_v35 = vld [vmem:[#allocation18_spill] sm:$0xff]  ;;  %v778_v62 = vadd.f32 %v6618_v11, %v6008_v25  ;;  %v1149_v5 = vmax.f32 %v974_v8, %v1141_v50  ;;  %v6623_v11 = vld [vmem:[#allocation35_spill] sm:$0xff] }
 0xdf1   :  { %3639 = vmatmul.msk.f32.gmra.mxu2 %vm126_vm0, %v3753_v1  ;;  %v953_v63 = vadd.f32 %v6621_v15, %v6008_v25  ;;  %v627_v50 = vmax.f32 %v452_v47, %v619_v32  ;;  %v800_v8 = vmax.f32 %v625_v13, %v792_v10  ;;  %v781_v16 = vadd.f32 %v6623_v11, %v6020_v56  ;;  %v6625_v15 = vld [vmem:[#allocation62_spill] sm:$0xff] }
 0xdf2   :  { %v451_v7 = vmax.f32 %v436_v28, 0.0  ;;  %v618_v22 = vmax.f32 %v603_v0, 0.0  ;;  %v442_v0 = vadd.f32 %v6617_v35, %v6035_v57  ;;  %v6622_v35 = vld [vmem:[#allocation72_spill] sm:$0xff]  ;;  %v1324_v24 = vmax.f32 %v1149_v5, %v1316_v23  ;;  %v6628_v5 = vld [vmem:[#allocation63_spill] sm:$0xff] }
 0xdf3   :  { %v620_v37 = vmax.f32 %v609_v2, 0.0  ;;  %v794_v13 = vmax.f32 %v781_v16, 0.0 }
 0xdf4   :  { %v6004_v44 = vpop.f32.mrf.mxu2  ;;  %v6006_v29 = vpop.f32.mrf.mxu1  ;;  %v626_v46 = vmax.f32 %v451_v7, %v618_v22  ;;  %v453_v7 = vmax.f32 %v442_v0, 0.0  ;;  %v793_v22 = vmax.f32 %v778_v62, 0.0  ;;  %v6627_v0 = vld [vmem:[#allocation52_spill] sm:$0xff] }
 0xdf5   :  { %6601 = vst [vmem:[#allocation82_spill] sm:$0xff] %v6004_v44  ;;  %v968_v44 = vmax.f32 %v953_v63, 0.0  ;;  %v1128_v62 = vadd.f32 %v6627_v0, %v6008_v25  ;;  %v6631_v63 = vld [vmem:[#allocation73_spill] sm:$0xff] }
 0xdf6   :  { %6602 = vst [vmem:[#allocation83_spill] sm:$0xff] %v6006_v29  ;;  %v801_v23 = vmax.f32 %v626_v46, %v793_v22  ;;  %v1997_v11 = vadd.f32 %v6631_v63, %v5986_v17  ;;  %v2347_v46 = vadd.f32 %v5759_v19, %v5986_v17  ;;  %v802_v22 = vmax.f32 %v627_v50, %v794_v13  ;;  %v6635_v63 = vld [vmem:[#allocation54_spill] sm:$0xff] }
 0xdf7   :  { %3675 = vmatmul.msk.f32.gmra.mxu1 %vm126_vm0, %v3753_v1  ;;  %v950_v1 = vadd.f32 %v6611_v52, %v5994_v53  ;;  %v6637_v13 = vld [vmem:[#allocation38_spill] sm:$0xff] }
 0xdf9   :  { %3640 = vmatmul.msk.f32.gmra.mxu2 %vm126_vm0, %v3754_v55  ;;  %v967_v52 = vmax.f32 %v950_v1, 0.0  ;;  %v1666_v1 = vmax.f32 %v1647_v59, 0.0  ;;  %v1650_v59 = vadd.f32 %v6628_v5, %v5994_v53  ;;  %v6633_v5 = vld [vmem:[#allocation37_spill] sm:$0xff] }
 0xdfb   :  { %v975_v29 = vmax.f32 %v800_v8, %v967_v52  ;;  %v1667_v0 = vmax.f32 %v1650_v59, 0.0  ;;  %v2366_v59 = vmax.f32 %v2347_v46, 0.0 }
 0xdfc   :  { %v6043_v61 = vpop.f32.mrf.mxu2  ;;  %v6045_v28 = vpop.f32.mrf.mxu1 }
 0xdfd   :  { %6615 = vst [vmem:[#allocation84_spill] sm:$0xff] %v6043_v61  ;;  %v1822_v61 = vadd.f32 %v6622_v35, %v5986_v17  ;;  %v1475_v35 = vadd.f32 %v6625_v15, %v5994_v53  ;;  %v1150_v12 = vmax.f32 %v975_v29, %v1142_v38  ;;  %v6632_v38 = vld [vmem:[#allocation74_spill] sm:$0xff] }
 0xdfe   :  { %6616 = vst [vmem:[#allocation85_spill] sm:$0xff] %v6045_v28  ;;  %v1491_v28 = vmax.f32 %v1472_v60, 0.0  ;;  %v1300_v60 = vadd.f32 %v6624_v21, %v5994_v53  ;;  %v976_v21 = vmax.f32 %v801_v23, %v968_v44  ;;  %v1131_v44 = vadd.f32 %v6635_v63, %v6020_v56  ;;  %v6640_v63 = vld [vmem:[#allocation95_spill] sm:$0xff] }
 0xdff   :  { %3676 = vmatmul.msk.f32.gmra.mxu1 %vm126_vm0, %v3754_v55  ;;  %v6626_v55 = vld [vmem:[#allocation36_spill] sm:$0xff]  ;;  %v1841_v10 = vmax.f32 %v1822_v61, 0.0  ;;  %v2172_v61 = vadd.f32 %v5757_v41, %v5986_v17  ;;  %v1492_v16 = vmax.f32 %v1475_v35, 0.0  ;;  %v784_v41 = vadd.f32 %v6633_v5, %v6035_v57 }
 0xe00   :  { %v956_v47 = vadd.f32 %v6626_v55, %v6020_v56  ;;  %v1499_v32 = vmax.f32 %v1324_v24, %v1491_v28  ;;  %v6080_v28 = vmax.f32 %v453_v7, %v620_v37  ;;  %v1317_v29 = vmax.f32 %v1300_v60, 0.0  ;;  %v6634_v7 = vld [vmem:[#allocation53_spill] sm:$0xff] }
 0xe01   :  { %v1825_v24 = vadd.f32 %v6632_v38, %v5994_v53  ;;  %v1303_v37 = vadd.f32 %v6634_v7, %v6008_v25  ;;  %v2016_v60 = vmax.f32 %v1997_v11, 0.0  ;;  %v2191_v35 = vmax.f32 %v2172_v61, 0.0  ;;  %v6638_v38 = vld [vmem:[#allocation65_spill] sm:$0xff]  ;;  %v6639_v61 = vld [vmem:[#allocation75_spill] sm:$0xff] }
 0xe02   :  { %v1674_v8 = vmax.f32 %v1499_v32, %v1666_v1  ;;  %v969_v15 = vmax.f32 %v956_v47, 0.0  ;;  %v1325_v1 = vmax.f32 %v1150_v12, %v1317_v29  ;;  %v1143_v32 = vmax.f32 %v1128_v62, 0.0 }
 0xe03   :  { %v1842_v19 = vmax.f32 %v1825_v24, 0.0  ;;  %v959_v12 = vadd.f32 %v6637_v13, %v6035_v57  ;;  %v1653_v11 = vadd.f32 %v6638_v38, %v6008_v25  ;;  %v2000_v5 = vadd.f32 %v6639_v61, %v5994_v53 }
 0xe04   :  { %v6072_v2 = vpop.f32.mrf.mxu2  ;;  %v6074_v52 = vpop.f32.mrf.mxu1  ;;  %v1849_v55 = vmax.f32 %v1674_v8, %v1841_v10  ;;  %v1500_v47 = vmax.f32 %v1325_v1, %v1492_v16  ;;  %v6636_v10 = vld [vmem:[#allocation64_spill] sm:$0xff]  ;;  %v977_v50 = vmax.f32 %v802_v22, %v969_v15  ;;  %v1151_v8 = vmax.f32 %v976_v21, %v1143_v32 }
 0xe05   :  { %6629 = vst [vmem:[#allocation86_spill] sm:$0xff] %v6072_v2  ;;  %v1478_v23 = vadd.f32 %v6636_v10, %v6008_v25  ;;  %v2175_v24 = vadd.f32 %v6640_v63, %v5994_v53  ;;  %v1144_v46 = vmax.f32 %v1131_v44, 0.0  ;;  %v6642_v10 = vld [vmem:[#allocation96_spill] sm:$0xff]  ;;  %v1668_v63 = vmax.f32 %v1653_v11, 0.0  ;;  %v6643_v44 = vld [vmem:[#allocation55_spill] sm:$0xff] }
 0xe06   :  { %6630 = vst [vmem:[#allocation87_spill] sm:$0xff] %v6074_v52  ;;  %v2024_v62 = vmax.f32 %v1849_v55, %v2016_v60  ;;  %v1675_v29 = vmax.f32 %v1500_v47, %v1667_v0  ;;  %v1318_v55 = vmax.f32 %v1303_v37, 0.0  ;;  %v6641_v0 = vld [vmem:[#allocation76_spill] sm:$0xff]  ;;  %v2350_v13 = vadd.f32 %v6642_v10, %v5994_v53  ;;  %v6646_v11 = vld [vmem:[#allocation67_spill] sm:$0xff] }
 0xe07   :  { %v1493_v21 = vmax.f32 %v1478_v23, 0.0  ;;  %v1828_v60 = vadd.f32 %v6641_v0, %v6008_v25  ;;  %v2017_v52 = vmax.f32 %v2000_v5, 0.0  ;;  %v1152_v37 = vmax.f32 %v977_v50, %v1144_v46  ;;  %v6647_v50 = vld [vmem:[#allocation77_spill] sm:$0xff] }
 0xe08   :  { %v2199_v1 = vmax.f32 %v2024_v62, %v2191_v35  ;;  %v1850_v32 = vmax.f32 %v1675_v29, %v1842_v19  ;;  %v795_v35 = vmax.f32 %v784_v41, 0.0  ;;  %v970_v62 = vmax.f32 %v959_v12, 0.0  ;;  %v6644_v29 = vld [vmem:[#allocation66_spill] sm:$0xff]  ;;  %v6645_v41 = vld [vmem:[#allocation56_spill] sm:$0xff] }
 0xe09   :  { %v1326_v61 = vmax.f32 %v1151_v8, %v1318_v55  ;;  %v1306_v23 = vadd.f32 %v6643_v44, %v6020_v56  ;;  %v1843_v0 = vmax.f32 %v1828_v60, 0.0  ;;  %v2367_v10 = vmax.f32 %v2350_v13, 0.0  ;;  %v6650_v44 = vld [vmem:[#allocation98_spill] sm:$0xff] }
 0xe0a   :  { %v2374_v47 = vmax.f32 %v2199_v1, %v2366_v59  ;;  %v1481_v59 = vadd.f32 %v6644_v29, %v6020_v56  ;;  %v2025_v1 = vmax.f32 %v1850_v32, %v2017_v52  ;;  %v1134_v12 = vadd.f32 %v6645_v41, %v6035_v57 }
 0xe0b   :  { %v1501_v19 = vmax.f32 %v1326_v61, %v1493_v21  ;;  %v1656_v5 = vadd.f32 %v6646_v11, %v6020_v56  ;;  %v6648_v21 = vld [vmem:[#allocation97_spill] sm:$0xff]  ;;  %v803_v60 = vmax.f32 %v6080_v28, %v795_v35 }
 0xe0c   :  { %v2521_v7 = vpop.f32.mrf.mxu2  ;;  %v2696_v16 = vpop.f32.mrf.mxu1  ;;  %v2178_v52 = vadd.f32 %v6648_v21, %v6008_v25  ;;  %v1494_v13 = vmax.f32 %v1481_v59, 0.0  ;;  %v1145_v41 = vmax.f32 %v1134_v12, 0.0  ;;  %v6651_v28 = vld [vmem:[#allocation57_spill] sm:$0xff]  ;;  %v6652_v59 = vld [vmem:[#allocation68_spill] sm:$0xff] }
 0xe0d   :  { %v2522_v15 = vadd.f32 %v2521_v7, %v5986_v17  ;;  %v2697_v22 = vadd.f32 %v2696_v16, %v5986_v17  ;;  %v2192_v7 = vmax.f32 %v2175_v24, 0.0  ;;  %v1676_v8 = vmax.f32 %v1501_v19, %v1668_v63  ;;  %v6653_v12 = vld [vmem:[#allocation69_spill] sm:$0xff] }
 0xe0e   :  { %v2003_v24 = vadd.f32 %v6647_v50, %v6008_v25  ;;  %v2353_v19 = vadd.f32 %v6650_v44, %v6008_v25  ;;  %v978_v29 = vmax.f32 %v803_v60, %v970_v62  ;;  %v1669_v11 = vmax.f32 %v1656_v5, 0.0 }
 0xe0f   :  { %v2541_v38 = vmax.f32 %v2522_v15, 0.0  ;;  %v2716_v16 = vmax.f32 %v2697_v22, 0.0  ;;  %v2200_v46 = vmax.f32 %v2025_v1, %v2192_v7  ;;  %v1851_v63 = vmax.f32 %v1676_v8, %v1843_v0 }
 0xe10   :  { %v2018_v50 = vmax.f32 %v2003_v24, 0.0  ;;  %v1309_v35 = vadd.f32 %v6651_v28, %v6035_v57  ;;  %v1484_v0 = vadd.f32 %v6652_v59, %v6035_v57  ;;  %v1153_v62 = vmax.f32 %v978_v29, %v1145_v41  ;;  %v6654_v24 = vld [vmem:[#allocation79_spill] sm:$0xff]  ;;  %v6657_v41 = vld [vmem:[#allocation100_spill] sm:$0xff] }
 0xe11   :  { %v2549_v2 = vmax.f32 %v2374_v47, %v2541_v38  ;;  %v1319_v47 = vmax.f32 %v1306_v23, 0.0  ;;  %v6649_v38 = vld [vmem:[#allocation78_spill] sm:$0xff]  ;;  %v1659_v5 = vadd.f32 %v6653_v12, %v6035_v57 }
 0xe12   :  { %v1831_v61 = vadd.f32 %v6649_v38, %v6020_v56  ;;  %v2026_v8 = vmax.f32 %v1851_v63, %v2018_v50  ;;  %v1495_v44 = vmax.f32 %v1484_v0, 0.0 }
 0xe13   :  { %v6112_v15 = vmax.f32 %v2549_v2, %v2716_v16  ;;  %v2375_v16 = vmax.f32 %v2200_v46, %v2367_v10  ;;  %v1327_v1 = vmax.f32 %v1152_v37, %v1319_v47  ;;  %v2368_v46 = vmax.f32 %v2353_v19, 0.0  ;;  %v6655_v47 = vld [vmem:[#allocation99_spill] sm:$0xff] }
 0xe14   :  { %v2524_v22 = vpop.f32.mrf.mxu2  ;;  %v2699_v55 = vpop.f32.mrf.mxu1  ;;  %v1844_v10 = vmax.f32 %v1831_v61, 0.0 }
 0xe15   :  { %v2525_v32 = vadd.f32 %v2524_v22, %v5994_v53  ;;  %v2700_v2 = vadd.f32 %v2699_v55, %v5994_v53  ;;  %v2193_v22 = vmax.f32 %v2178_v52, 0.0  ;;  %v1502_v23 = vmax.f32 %v1327_v1, %v1494_v13 }
 0xe16   :  { %v2006_v52 = vadd.f32 %v6654_v24, %v6020_v56  ;;  %v2181_v13 = vadd.f32 %v6655_v47, %v6020_v56 }
 0xe17   :  { %v2542_v7 = vmax.f32 %v2525_v32, 0.0  ;;  %v2717_v21 = vmax.f32 %v2700_v2, 0.0  ;;  %v1677_v37 = vmax.f32 %v1502_v23, %v1669_v11  ;;  %v2201_v60 = vmax.f32 %v2026_v8, %v2193_v22 }
 0xe18   :  { %v2356_v11 = vadd.f32 %v6657_v41, %v6020_v56  ;;  %v1670_v22 = vmax.f32 %v1659_v5, 0.0  ;;  %v2194_v28 = vmax.f32 %v2181_v13, 0.0 }
 0xe19   :  { %v2550_v55 = vmax.f32 %v2375_v16, %v2542_v7  ;;  %v1320_v16 = vmax.f32 %v1309_v35, 0.0  ;;  %v1852_v19 = vmax.f32 %v1677_v37, %v1844_v10  ;;  %v6656_v7 = vld [vmem:[#allocation80_spill] sm:$0xff]  ;;  %v2376_v1 = vmax.f32 %v2201_v60, %v2368_v46  ;;  %v6658_v37 = vld [vmem:[#allocation81_spill] sm:$0xff] }
 0xe1a   :  { %v1834_v29 = vadd.f32 %v6656_v7, %v6035_v57  ;;  %v2369_v35 = vmax.f32 %v2356_v11, 0.0  ;;  %v2009_v46 = vadd.f32 %v6658_v37, %v6035_v57 }
 0xe1b   :  { %v6133_v38 = vmax.f32 %v2550_v55, %v2717_v21  ;;  %v1328_v55 = vmax.f32 %v1153_v62, %v1320_v16  ;;  %v2019_v21 = vmax.f32 %v2006_v52, 0.0  ;;  %v6659_v62 = vld [vmem:[#allocation101_spill] sm:$0xff] }
 0xe1c   :  { %v2527_v32 = vpop.f32.mrf.mxu2  ;;  %v2702_v2 = vpop.f32.mrf.mxu1  ;;  %v1845_v24 = vmax.f32 %v1834_v29, 0.0  ;;  %v2184_v5 = vadd.f32 %v6659_v62, %v6035_v57 }
 0xe1d   :  { %v2528_v61 = vadd.f32 %v2527_v32, %v6008_v25  ;;  %v2703_v63 = vadd.f32 %v2702_v2, %v6008_v25  ;;  %v1503_v8 = vmax.f32 %v1328_v55, %v1495_v44  ;;  %v2027_v12 = vmax.f32 %v1852_v19, %v2019_v21 }
 0xe1e   :  { %v2020_v19 = vmax.f32 %v2009_v46, 0.0  ;;  %v2195_v7 = vmax.f32 %v2184_v5, 0.0 }
 0xe1f   :  { %v2543_v50 = vmax.f32 %v2528_v61, 0.0  ;;  %v2718_v59 = vmax.f32 %v2703_v63, 0.0  ;;  %v1678_v10 = vmax.f32 %v1503_v8, %v1670_v22  ;;  %v2202_v60 = vmax.f32 %v2027_v12, %v2194_v28  ;;  %v6660_v63 = vld [vmem:[#allocation102_spill] sm:$0xff] }
 0xe20   :  { %v2359_v16 = vadd.f32 %v6660_v63, %v6035_v57 }
 0xe21   :  { %v2551_v23 = vmax.f32 %v2376_v1, %v2543_v50  ;;  %v1853_v13 = vmax.f32 %v1678_v10, %v1845_v24  ;;  %v2377_v61 = vmax.f32 %v2202_v60, %v2369_v35 }
 0xe22   :  { %v2370_v11 = vmax.f32 %v2359_v16, 0.0 }
 0xe23   :  { %v6147_v0 = vmax.f32 %v2551_v23, %v2718_v59  ;;  %v2028_v41 = vmax.f32 %v1853_v13, %v2020_v19 }
 0xe24   :  { %v2530_v32 = vpop.f32.mrf.mxu2  ;;  %v2705_v2 = vpop.f32.mrf.mxu1 }
 0xe25   :  { %v2531_v52 = vadd.f32 %v2530_v32, %v6020_v56  ;;  %v2706_v47 = vadd.f32 %v2705_v2, %v6020_v56  ;;  %v2203_v21 = vmax.f32 %v2028_v41, %v2195_v7 }
 0xe27   :  { %v2544_v44 = vmax.f32 %v2531_v52, 0.0  ;;  %v2719_v1 = vmax.f32 %v2706_v47, 0.0  ;;  %v2378_v59 = vmax.f32 %v2203_v21, %v2370_v11 }
 0xe29   :  { %v2552_v29 = vmax.f32 %v2377_v61, %v2544_v44 }
 0xe2b   :  { %v6157_v50 = vmax.f32 %v2552_v29, %v2719_v1 }
 0xe2c   :  { %v2533_v55 = vpop.f32.mrf.mxu2  ;;  %v2708_v22 = vpop.f32.mrf.mxu1 }
 0xe2d   :  { %v2534_v28 = vadd.f32 %v2533_v55, %v6035_v57  ;;  %v2709_v23 = vadd.f32 %v2708_v22, %v6035_v57 }
 0xe2f   :  { %v2545_v8 = vmax.f32 %v2534_v28, 0.0  ;;  %v2720_v24 = vmax.f32 %v2709_v23, 0.0 }
 0xe31   :  { %v2553_v12 = vmax.f32 %v2378_v59, %v2545_v8 }
 0xe33   :  { %v6161_v35 = vmax.f32 %v2553_v12, %v2720_v24 }
 0xe34   :  { %v2536_v10 = vpop.f32.mrf.mxu2  ;;  %v2711_v37 = vpop.f32.mrf.mxu1 }
 0xe3c   :  { %v2756_v46 = vpop.f32.mrf.mxu2  ;;  %v2931_v32 = vpop.f32.mrf.mxu1 }
 0xe44   :  { %v2759_v2 = vpop.f32.mrf.mxu2  ;;  %v2934_v60 = vpop.f32.mrf.mxu1 }
 0xe4c   :  { %v2762_v62 = vpop.f32.mrf.mxu2  ;;  %v2937_v5 = vpop.f32.mrf.mxu1 }
 0xe54   :  { %v2765_v52 = vpop.f32.mrf.mxu2  ;;  %v2940_v47 = vpop.f32.mrf.mxu1 }
 0xe5c   :  { %v2768_v13 = vpop.f32.mrf.mxu2  ;;  %v2943_v61 = vpop.f32.mrf.mxu1 }
 0xe64   :  { %v2771_v63 = vpop.f32.mrf.mxu2  ;;  %v2946_v16 = vpop.f32.mrf.mxu1 }
 0xe65   :  { %v2772_v12 = vadd.f32 %v2771_v63, %v4014_v9  ;;  %v2947_v24 = vadd.f32 %v2946_v16, %v4014_v9  ;;  %v2763_v9 = vadd.f32 %v2762_v62, %v4031_v31  ;;  %v2938_v16 = vadd.f32 %v2937_v5, %v4031_v31 }
 0xe67   :  { %v2963_v63 = vmax.f32 %v2947_v24, 0.0  ;;  %v2960_v62 = vmax.f32 %v2938_v16, 0.0 }
 0xe6c   :  { %v2774_v44 = vpop.f32.mrf.mxu2  ;;  %v2949_v19 = vpop.f32.mrf.mxu1 }
 0xe6d   :  { %v2775_v28 = vadd.f32 %v2774_v44, %v4008_v3  ;;  %v2950_v23 = vadd.f32 %v2949_v19, %v4008_v3  ;;  %v2766_v3 = vadd.f32 %v2765_v52, %v4020_v14  ;;  %v2941_v44 = vadd.f32 %v2940_v47, %v4020_v14 }
 0xe6e   :  { %v2788_v19 = vmax.f32 %v2772_v12, 0.0  ;;  %v2757_v14 = vadd.f32 %v2756_v46, %v4035_v39  ;;  %v2932_v47 = vadd.f32 %v2931_v32, %v4035_v39  ;;  %v3756_v39 = vld [vmem:[%s6425_s1 + $0x50] sm:$0xff]  ;;  %v3757_v46 = vld [vmem:[%s6425_s1 + $0x58] sm:$0xff]  ;;  %v3758_v32 = vld [vmem:[%s6425_s1 + $0x60] sm:$0xff] }
 0xe6f   :  { %v2961_v52 = vmax.f32 %v2941_v44, 0.0 }
 0xe74   :  { %v2777_v7 = vpop.f32.mrf.mxu2  ;;  %v2952_v29 = vpop.f32.mrf.mxu1 }
 0xe75   :  { %v2778_v11 = vadd.f32 %v2777_v7, %v6504_v51  ;;  %v2953_v55 = vadd.f32 %v2952_v29, %v6504_v51  ;;  %v2769_v51 = vadd.f32 %v2768_v13, %v4012_v6  ;;  %v2944_v7 = vadd.f32 %v2943_v61, %v4012_v6 }
 0xe76   :  { %v2789_v29 = vmax.f32 %v2775_v28, 0.0  ;;  %v2760_v6 = vadd.f32 %v2759_v2, %v4029_v30  ;;  %v2935_v61 = vadd.f32 %v2934_v60, %v4029_v30  ;;  %v2958_v2 = vmax.f32 %v2932_v47, 0.0  ;;  %v3755_v30 = vld [vmem:[%s6425_s1 + $0x48] sm:$0xff]  ;;  %v3762_v28 = vld [vmem:[%s6425_s1 + $0x80] sm:$0xff] }
 0xe77   :  { %v2790_v10 = vmax.f32 %v2778_v11, 0.0  ;;  %v2965_v37 = vmax.f32 %v2953_v55, 0.0  ;;  %v2962_v13 = vmax.f32 %v2944_v7, 0.0  ;;  %v2785_v11 = vmax.f32 %v2763_v9, 0.0  ;;  %v3759_v60 = vld [vmem:[%s6425_s1 + $0x68] sm:$0xff] }
 0xe78   :  { %v2784_v31 = vmax.f32 %v2760_v6, 0.0  ;;  %v2959_v5 = vmax.f32 %v2935_v61, 0.0  ;;  %v2783_v55 = vmax.f32 %v2757_v14, 0.0 }
 0xe7c   :  { %v2780_v1 = vpop.f32.mrf.mxu2  ;;  %v2955_v41 = vpop.f32.mrf.mxu1 }
 0xe7d   :  { %v2781_v22 = vadd.f32 %v2780_v1, %v4010_v4  ;;  %v2956_v21 = vadd.f32 %v2955_v41, %v4010_v4  ;;  %v2964_v4 = vmax.f32 %v2950_v23, 0.0  ;;  %v2787_v1 = vmax.f32 %v2769_v51, 0.0  ;;  %v3763_v23 = vld [vmem:[%s6425_s1 + $0x88] sm:$0xff] }
 0xe7e   :  { %v2786_v41 = vmax.f32 %v2766_v3, 0.0 }
 0xe7f   :  { %v2791_v59 = vmax.f32 %v2781_v22, 0.0  ;;  %v2966_v8 = vmax.f32 %v2956_v21, 0.0  ;;  %v3760_v22 = vld [vmem:[%s6425_s1 + $0x70] sm:$0xff]  ;;  %v3761_v21 = vld [vmem:[%s6425_s1 + $0x78] sm:$0xff] }
 0xe81   :  { %2799 = vmatpush.msra.mxu3 %v2791_v59  ;;  %2974 = vmatpush.msrb.mxu2 %v2966_v8 }
 0xe83   :  { %2800 = vmatpush.msra.mxu3 %v2790_v10  ;;  %2975 = vmatpush.msrb.mxu2 %v2965_v37 }
 0xe85   :  { %2801 = vmatpush.msra.mxu3 %v2789_v29  ;;  %2976 = vmatpush.msrb.mxu2 %v2964_v4 }
 0xe87   :  { %2802 = vmatpush.msra.mxu3 %v2788_v19  ;;  %2977 = vmatpush.msrb.mxu2 %v2963_v63 }
 0xe89   :  { %2803 = vmatpush.msra.mxu3 %v2787_v1  ;;  %2978 = vmatpush.msrb.mxu2 %v2962_v13 }
 0xe8b   :  { %2804 = vmatpush.msra.mxu3 %v2786_v41  ;;  %2979 = vmatpush.msrb.mxu2 %v2961_v52 }
 0xe8d   :  { %2805 = vmatpush.msra.mxu3 %v2785_v11  ;;  %2980 = vmatpush.msrb.mxu2 %v2960_v62 }
 0xe8f   :  { %2806 = vmatpush.msra.mxu3 %v2784_v31  ;;  %2981 = vmatpush.msrb.mxu2 %v2959_v5 }
 0xe91   :  { %2807 = vmatpush.msra.mxu3 %v2783_v55  ;;  %2982 = vmatpush.msrb.mxu2 %v2958_v2 }
 0xe92   :  { %3641 = vmatmul.msk.f32.vlgmr.msra.gmra.mxu3 %vm126_vm0, %v3755_v30  ;;  %3677 = vmatmul.msk.f32.vlgmr.msrb.gmra.mxu2 %vm126_vm0, %v3755_v30 }
 0xe9a   :  { %3642 = vmatmul.msk.f32.gmra.mxu3 %vm126_vm0, %v3756_v39  ;;  %3678 = vmatmul.msk.f32.gmra.mxu2 %vm126_vm0, %v3756_v39 }
 0xea2   :  { %3643 = vmatmul.msk.f32.gmra.mxu3 %vm126_vm0, %v3757_v46  ;;  %3679 = vmatmul.msk.f32.gmra.mxu2 %vm126_vm0, %v3757_v46 }
 0xeaa   :  { %3644 = vmatmul.msk.f32.gmra.mxu3 %vm126_vm0, %v3758_v32  ;;  %3680 = vmatmul.msk.f32.gmra.mxu2 %vm126_vm0, %v3758_v32 }
 0xeb2   :  { %3645 = vmatmul.msk.f32.gmra.mxu3 %vm126_vm0, %v3759_v60  ;;  %3681 = vmatmul.msk.f32.gmra.mxu2 %vm126_vm0, %v3759_v60 }
 0xeba   :  { %3646 = vmatmul.msk.f32.gmra.mxu3 %vm126_vm0, %v3760_v22  ;;  %3682 = vmatmul.msk.f32.gmra.mxu2 %vm126_vm0, %v3760_v22 }
 0xec2   :  { %3647 = vmatmul.msk.f32.gmra.mxu3 %vm126_vm0, %v3761_v21  ;;  %3683 = vmatmul.msk.f32.gmra.mxu2 %vm126_vm0, %v3761_v21 }
 0xeca   :  { %3648 = vmatmul.msk.f32.gmra.mxu3 %vm126_vm0, %v3762_v28  ;;  %3684 = vmatmul.msk.f32.gmra.mxu2 %vm126_vm0, %v3762_v28 }
 0xed2   :  { %3649 = vmatmul.msk.f32.gmra.mxu3 %vm126_vm0, %v3763_v23  ;;  %3685 = vmatmul.msk.f32.gmra.mxu2 %vm126_vm0, %v3763_v23 }
 0xf15   :  { %v2809_v59 = vpop.f32.mrf.mxu3  ;;  %v2984_v8 = vpop.f32.mrf.mxu2 }
 0xf1d   :  { %v2812_v12 = vpop.f32.mrf.mxu3  ;;  %v2987_v24 = vpop.f32.mrf.mxu2 }
 0xf1e   :  { %v2988_v23 = vadd.f32 %v2987_v24, %v4156_v43  ;;  %v3768_v24 = vld [vmem:[%s6425_s1 + $0xb0] sm:$0xff] }
 0xf25   :  { %v2815_v10 = vpop.f32.mrf.mxu3  ;;  %v2990_v37 = vpop.f32.mrf.mxu2 }
 0xf26   :  { %v2991_v22 = vadd.f32 %v2990_v37, %v4152_v34  ;;  %v3012_v37 = vmax.f32 %v2988_v23, 0.0  ;;  %v6673_v23 = vld [vmem:[#allocation9_spill] sm:$0xff] }
 0xf2d   :  { %v2818_v51 = vpop.f32.mrf.mxu3  ;;  %v2993_v7 = vpop.f32.mrf.mxu2 }
 0xf2e   :  { %v2994_v46 = vadd.f32 %v2993_v7, %v4144_v49  ;;  %v2985_v7 = vadd.f32 %v2984_v8, %v4160_v48  ;;  %v3767_v8 = vld [vmem:[%s6425_s1 + $0xa8] sm:$0xff] }
 0xf35   :  { %v2821_v29 = vpop.f32.mrf.mxu3  ;;  %v2996_v4 = vpop.f32.mrf.mxu2 }
 0xf36   :  { %v2997_v30 = vadd.f32 %v2996_v4, %v4141_v45 }
 0xf38   :  { %v3015_v28 = vmax.f32 %v2997_v30, 0.0 }
 0xf3d   :  { %v2824_v3 = vpop.f32.mrf.mxu3  ;;  %v2999_v44 = vpop.f32.mrf.mxu2 }
 0xf3e   :  { %v2825_v31 = vadd.f32 %v2824_v3, %v4137_v40  ;;  %v3000_v5 = vadd.f32 %v2999_v44, %v4137_v40  ;;  %v2816_v40 = vadd.f32 %v2815_v10, %v4152_v34  ;;  %v3013_v10 = vmax.f32 %v2991_v22, 0.0  ;;  %v3769_v44 = vld [vmem:[%s6425_s1 + $0xb8] sm:$0xff] }
 0xf3f   :  { %v6671_v22 = vld [vmem:[#allocation43_spill] sm:$0xff] }
 0xf40   :  { %v2841_v32 = vmax.f32 %v2825_v31, 0.0  ;;  %v3016_v60 = vmax.f32 %v3000_v5, 0.0  ;;  %v2838_v4 = vmax.f32 %v2816_v40, 0.0 }
 0xf45   :  { %v2827_v19 = vpop.f32.mrf.mxu3  ;;  %v3002_v63 = vpop.f32.mrf.mxu2 }
 0xf46   :  { %v2828_v14 = vadd.f32 %v2827_v19, %v4135_v36  ;;  %v3003_v47 = vadd.f32 %v3002_v63, %v4135_v36  ;;  %v2819_v36 = vadd.f32 %v2818_v51, %v4144_v49  ;;  %v3014_v51 = vmax.f32 %v2994_v46, 0.0  ;;  %v6661_v19 = vld [vmem:[#allocation4_spill] sm:$0xff] }
 0xf47   :  { %v2810_v49 = vadd.f32 %v2809_v59, %v4160_v48  ;;  %v3765_v48 = vld [vmem:[%s6425_s1 + $0x98] sm:$0xff]  ;;  %v3766_v59 = vld [vmem:[%s6425_s1 + $0xa0] sm:$0xff]  ;;  %v421_v63 = vadd.f32 %v6661_v19, %v5976_v26 }
 0xf48   :  { %v2842_v39 = vmax.f32 %v2828_v14, 0.0 }
 0xf49   :  { %v2836_v3 = vmax.f32 %v2810_v49, 0.0  ;;  %v6674_v49 = vld [vmem:[#allocation44_spill] sm:$0xff] }
 0xf4d   :  { %v2830_v9 = vpop.f32.mrf.mxu3  ;;  %v3005_v16 = vpop.f32.mrf.mxu2 }
 0xf4e   :  { %v2831_v6 = vadd.f32 %v2830_v9, %v4133_v33  ;;  %v3006_v61 = vadd.f32 %v3005_v16, %v4133_v33  ;;  %v2822_v33 = vadd.f32 %v2821_v29, %v4141_v45  ;;  %v2813_v45 = vadd.f32 %v2812_v12, %v4156_v43  ;;  %v3764_v43 = vld [vmem:[%s6425_s1 + $0x90] sm:$0xff]  ;;  %v6662_v9 = vld [vmem:[#allocation5_spill] sm:$0xff] }
 0xf4f   :  { %v2839_v29 = vmax.f32 %v2819_v36, 0.0  ;;  %v3011_v12 = vmax.f32 %v2985_v7, 0.0  ;;  %v588_v16 = vadd.f32 %v6662_v9, %v5976_v26  ;;  %v6669_v36 = vld [vmem:[#allocation26_spill] sm:$0xff]  ;;  %v1116_v7 = vadd.f32 %v6674_v49, %v5978_v20  ;;  %v6678_v9 = vld [vmem:[#allocation28_spill] sm:$0xff] }
 0xf50   :  { %v2843_v55 = vmax.f32 %v2831_v6, 0.0  ;;  %v3018_v2 = vmax.f32 %v3006_v61, 0.0  ;;  %v2840_v21 = vmax.f32 %v2822_v33, 0.0  ;;  %v2837_v34 = vmax.f32 %v2813_v45, 0.0  ;;  %v6664_v61 = vld [vmem:[#allocation23_spill] sm:$0xff] }
 0xf51   :  { %v613_v6 = vmax.f32 %v588_v16, 0.0  ;;  %v941_v46 = vadd.f32 %v6669_v36, %v5978_v20  ;;  %v944_v16 = vadd.f32 %v6678_v9, %v5984_v58  ;;  %v6684_v36 = vld [vmem:[#allocation89_spill] sm:$0xff]  ;;  %v6690_v9 = vld [vmem:[#allocation59_spill] sm:$0xff] }
 0xf55   :  { %v2833_v1 = vpop.f32.mrf.mxu3  ;;  %v3008_v13 = vpop.f32.mrf.mxu2 }
 0xf56   :  { %v2834_v41 = vadd.f32 %v2833_v1, %v4131_v27  ;;  %v3009_v52 = vadd.f32 %v3008_v13, %v4131_v27  ;;  %v3017_v27 = vmax.f32 %v3003_v47, 0.0  ;;  %v446_v13 = vmax.f32 %v421_v63, 0.0 }
 0xf58   :  { %v2844_v11 = vmax.f32 %v2834_v41, 0.0  ;;  %v3019_v62 = vmax.f32 %v3009_v52, 0.0  ;;  %v6665_v52 = vld [vmem:[#allocation42_spill] sm:$0xff]  ;;  %v621_v31 = vmax.f32 %v446_v13, %v613_v6 }
 0xf59   :  { %v1113_v14 = vadd.f32 %v6665_v52, %v5976_v26  ;;  %v6680_v52 = vld [vmem:[#allocation22_spill] sm:$0xff] }
 0xf5a   :  { %2852 = vmatpush.msrb.mxu0 %v2844_v11  ;;  %3027 = vmatpush.msrb.mxu3 %v3019_v62  ;;  %v6667_v11 = vld [vmem:[#allocation7_spill] sm:$0xff] }
 0xf5b   :  { %v591_v62 = vadd.f32 %v6667_v11, %v5978_v20  ;;  %v1138_v30 = vmax.f32 %v1113_v14, 0.0  ;;  %v1466_v14 = vadd.f32 %v6680_v52, %v5978_v20 }
 0xf5c   :  { %2853 = vmatpush.msrb.mxu0 %v2843_v55  ;;  %3028 = vmatpush.msrb.mxu3 %v3018_v2  ;;  %v6668_v55 = vld [vmem:[#allocation24_spill] sm:$0xff] }
 0xf5d   :  { %v766_v2 = vadd.f32 %v6668_v55, %v5978_v20 }
 0xf5e   :  { %2854 = vmatpush.msrb.mxu0 %v2842_v39  ;;  %3029 = vmatpush.msrb.mxu3 %v3017_v27  ;;  %v614_v27 = vmax.f32 %v591_v62, 0.0 }
 0xf60   :  { %2855 = vmatpush.msrb.mxu0 %v2841_v32  ;;  %3030 = vmatpush.msrb.mxu3 %v3016_v60  ;;  %v6670_v32 = vld [vmem:[#allocation8_spill] sm:$0xff] }
 0xf61   :  { %v427_v60 = vadd.f32 %v6670_v32, %v5984_v58 }
 0xf62   :  { %2856 = vmatpush.msrb.mxu0 %v2840_v21  ;;  %3031 = vmatpush.msrb.mxu3 %v3015_v28  ;;  %v1288_v21 = vadd.f32 %v6671_v22, %v5976_v26  ;;  %v6672_v28 = vld [vmem:[#allocation3_spill] sm:$0xff]  ;;  %v6685_v22 = vld [vmem:[#allocation40_spill] sm:$0xff] }
 0xf63   :  { %v1463_v45 = vadd.f32 %v6672_v28, %v5976_v26 }
 0xf64   :  { %2857 = vmatpush.msrb.mxu0 %v2839_v29  ;;  %3032 = vmatpush.msrb.mxu3 %v3014_v51  ;;  %v594_v29 = vadd.f32 %v6673_v23, %v5984_v58  ;;  %v789_v51 = vmax.f32 %v766_v2, 0.0  ;;  %v6682_v2 = vld [vmem:[#allocation25_spill] sm:$0xff]  ;;  %v6686_v23 = vld [vmem:[#allocation90_spill] sm:$0xff] }
 0xf66   :  { %2858 = vmatpush.msrb.mxu0 %v2838_v4  ;;  %3033 = vmatpush.msrb.mxu3 %v3013_v10  ;;  %v6675_v10 = vld [vmem:[#allocation20_spill] sm:$0xff]  ;;  %v615_v19 = vmax.f32 %v594_v29, 0.0  ;;  %v2338_v29 = vadd.f32 %v6686_v23, %v5976_v26 }
 0xf68   :  { %2859 = vmatpush.msrb.mxu0 %v2837_v34  ;;  %3034 = vmatpush.msrb.mxu3 %v3012_v37  ;;  %v1638_v34 = vadd.f32 %v6675_v10, %v5976_v26 }
 0xf6a   :  { %2860 = vmatpush.msrb.mxu0 %v2836_v3  ;;  %3035 = vmatpush.msrb.mxu3 %v3011_v12  ;;  %v964_v3 = vmax.f32 %v941_v46, 0.0  ;;  %v6676_v12 = vld [vmem:[#allocation27_spill] sm:$0xff]  ;;  %v1663_v13 = vmax.f32 %v1638_v34, 0.0  ;;  %v2163_v46 = vadd.f32 %v6684_v36, %v5976_v26 }
 0xf6b   :  { %3650 = vmatmul.msk.f32.vlgmr.msrb.gmra.mxu0 %vm126_vm0, %v3764_v43  ;;  %3686 = vmatmul.msk.f32.vlgmr.msrb.gmra.mxu3 %vm126_vm0, %v3764_v43  ;;  %v769_v43 = vadd.f32 %v6676_v12, %v5984_v58 }
 0xf73   :  { %3651 = vmatmul.msk.f32.gmra.mxu0 %vm126_vm0, %v3765_v48  ;;  %3687 = vmatmul.msk.f32.gmra.mxu3 %vm126_vm0, %v3765_v48  ;;  %v448_v48 = vmax.f32 %v427_v60, 0.0 }
 0xf7b   :  { %3652 = vmatmul.msk.f32.gmra.mxu0 %vm126_vm0, %v3766_v59  ;;  %3688 = vmatmul.msk.f32.gmra.mxu3 %vm126_vm0, %v3766_v59  ;;  %v1313_v59 = vmax.f32 %v1288_v21, 0.0  ;;  %v1816_v21 = vadd.f32 %v6685_v22, %v5978_v20 }
 0xf83   :  { %3653 = vmatmul.msk.f32.gmra.mxu0 %vm126_vm0, %v3767_v8  ;;  %3689 = vmatmul.msk.f32.gmra.mxu3 %vm126_vm0, %v3767_v8  ;;  %v1488_v8 = vmax.f32 %v1463_v45, 0.0 }
 0xf8b   :  { %3654 = vmatmul.msk.f32.gmra.mxu0 %vm126_vm0, %v3768_v24  ;;  %3690 = vmatmul.msk.f32.gmra.mxu3 %vm126_vm0, %v3768_v24  ;;  %v6677_v24 = vld [vmem:[#allocation2_spill] sm:$0xff] }
 0xf93   :  { %3655 = vmatmul.msk.f32.gmra.mxu0 %vm126_vm0, %v3769_v44  ;;  %3691 = vmatmul.msk.f32.gmra.mxu3 %vm126_vm0, %v3769_v44  ;;  %v1813_v44 = vadd.f32 %v6677_v24, %v5976_v26 }
 0xf95   :  { %v1838_v62 = vmax.f32 %v1813_v44, 0.0 }
 0xf9b   :  { %3656 = vmatmul.msk.f32.gmra.mxu0 %vm126_vm0, %v5930_v54  ;;  %3692 = vmatmul.msk.f32.gmra.mxu3 %vm126_vm0, %v5930_v54  ;;  %v6663_v54 = vld [vmem:[#allocation21_spill] sm:$0xff] }
 0xf9c   :  { %v763_v1 = vadd.f32 %v6663_v54, %v5976_v26  ;;  %v1139_v54 = vmax.f32 %v1116_v7, 0.0 }
 0xf9e   :  { %v788_v41 = vmax.f32 %v763_v1, 0.0 }
 0xfa0   :  { %v796_v33 = vmax.f32 %v621_v31, %v788_v41  ;;  %v623_v31 = vmax.f32 %v448_v48, %v615_v19  ;;  %v6689_v48 = vld [vmem:[#allocation58_spill] sm:$0xff]  ;;  %v2363_v19 = vmax.f32 %v2338_v29, 0.0 }
 0xfa3   :  { %3657 = vmatmul.msk.f32.gmra.mxu0 %vm126_vm0, %v5939_v18  ;;  %3693 = vmatmul.msk.f32.gmra.mxu3 %vm126_vm0, %v5939_v18  ;;  %v938_v18 = vadd.f32 %v6664_v61, %v5976_v26  ;;  %v790_v61 = vmax.f32 %v769_v43, 0.0 }
 0xfa5   :  { %v963_v5 = vmax.f32 %v938_v18, 0.0  ;;  %v6679_v18 = vld [vmem:[#allocation45_spill] sm:$0xff]  ;;  %v798_v32 = vmax.f32 %v623_v31, %v790_v61 }
 0xfa6   :  { %v1291_v41 = vadd.f32 %v6679_v18, %v5978_v20 }
 0xfa7   :  { %v971_v40 = vmax.f32 %v796_v33, %v963_v5  ;;  %v965_v5 = vmax.f32 %v944_v16, 0.0  ;;  %v1641_v33 = vadd.f32 %v6682_v2, %v5978_v20  ;;  %v1644_v16 = vadd.f32 %v6690_v9, %v5984_v58 }
 0xfa8   :  { %v1314_v60 = vmax.f32 %v1291_v41, 0.0 }
 0xfa9   :  { %v1146_v4 = vmax.f32 %v971_v40, %v1138_v30  ;;  %v1489_v40 = vmax.f32 %v1466_v14, 0.0  ;;  %v1664_v7 = vmax.f32 %v1641_v33, 0.0 }
 0xfab   :  { %3694 = vmatmul.msk.f32.gmra.mxu3 %vm126_vm0, %v5948_v42  ;;  %3658 = vmatmul.msk.f32.gmra.mxu0 %vm126_vm0, %v5948_v42  ;;  %v6666_v42 = vld [vmem:[#allocation6_spill] sm:$0xff]  ;;  %v1321_v1 = vmax.f32 %v1146_v4, %v1313_v59  ;;  %v6687_v4 = vld [vmem:[#allocation47_spill] sm:$0xff]  ;;  %v1469_v59 = vadd.f32 %v6689_v48, %v5984_v58 }
 0xfac   :  { %v424_v47 = vadd.f32 %v6666_v42, %v5978_v20  ;;  %v6681_v42 = vld [vmem:[#allocation46_spill] sm:$0xff]  ;;  %v1294_v10 = vadd.f32 %v6687_v4, %v5984_v58  ;;  %v6698_v4 = vld [vmem:[#allocation93_spill] sm:$0xff] }
 0xfad   :  { %v1496_v11 = vmax.f32 %v1321_v1, %v1488_v8  ;;  %v1839_v8 = vmax.f32 %v1816_v21, 0.0  ;;  %v1490_v52 = vmax.f32 %v1469_v59, 0.0  ;;  %v6699_v59 = vld [vmem:[#allocation94_spill] sm:$0xff] }
 0xfae   :  { %v447_v39 = vmax.f32 %v424_v47, 0.0  ;;  %v1119_v47 = vadd.f32 %v6681_v42, %v5984_v58  ;;  %v1315_v61 = vmax.f32 %v1294_v10, 0.0  ;;  %v6693_v42 = vld [vmem:[#allocation70_spill] sm:$0xff]  ;;  %v2169_v10 = vadd.f32 %v6698_v4, %v5984_v58 }
 0xfaf   :  { %v1671_v30 = vmax.f32 %v1496_v11, %v1663_v13  ;;  %v6692_v13 = vld [vmem:[#allocation91_spill] sm:$0xff]  ;;  %v6694_v11 = vld [vmem:[#allocation92_spill] sm:$0xff] }
 0xfb0   :  { %v622_v37 = vmax.f32 %v447_v39, %v614_v27  ;;  %v6683_v39 = vld [vmem:[#allocation39_spill] sm:$0xff]  ;;  %v1140_v28 = vmax.f32 %v1119_v47, 0.0  ;;  %v1819_v47 = vadd.f32 %v6693_v42, %v5984_v58 }
 0xfb1   :  { %v1988_v27 = vadd.f32 %v6683_v39, %v5976_v26  ;;  %v1846_v45 = vmax.f32 %v1671_v30, %v1838_v62  ;;  %v2341_v62 = vadd.f32 %v6694_v11, %v5978_v20  ;;  %v1665_v39 = vmax.f32 %v1644_v16, 0.0 }
 0xfb2   :  { %v797_v63 = vmax.f32 %v622_v37, %v789_v51  ;;  %v973_v51 = vmax.f32 %v798_v32, %v965_v5  ;;  %v2188_v37 = vmax.f32 %v2163_v46, 0.0  ;;  %v6696_v32 = vld [vmem:[#allocation84_spill] sm:$0xff]  ;;  %v1840_v21 = vmax.f32 %v1819_v47, 0.0 }
 0xfb3   :  { %v2013_v34 = vmax.f32 %v1988_v27, 0.0 }
 0xfb4   :  { %v972_v6 = vmax.f32 %v797_v63, %v964_v3  ;;  %v6688_v3 = vld [vmem:[#allocation82_spill] sm:$0xff]  ;;  %v1148_v24 = vmax.f32 %v973_v51, %v1140_v28  ;;  %v2364_v28 = vmax.f32 %v2341_v62, 0.0  ;;  %v6697_v51 = vld [vmem:[#allocation71_spill] sm:$0xff] }
 0xfb5   :  { %v2513_v12 = vadd.f32 %v6688_v3, %v5976_v26  ;;  %v2021_v44 = vmax.f32 %v1846_v45, %v2013_v34 }
 0xfb6   :  { %v1147_v55 = vmax.f32 %v972_v6, %v1139_v54  ;;  %v6691_v54 = vld [vmem:[#allocation41_spill] sm:$0xff]  ;;  %v2166_v6 = vadd.f32 %v6692_v13, %v5978_v20  ;;  %v1323_v30 = vmax.f32 %v1148_v24, %v1315_v61 }
 0xfb7   :  { %v1991_v1 = vadd.f32 %v6691_v54, %v5978_v20  ;;  %v2196_v18 = vmax.f32 %v2021_v44, %v2188_v37  ;;  %v2538_v41 = vmax.f32 %v2513_v12, 0.0  ;;  %v6700_v44 = vld [vmem:[#allocation85_spill] sm:$0xff] }
 0xfb8   :  { %v1322_v49 = vmax.f32 %v1147_v55, %v1314_v60  ;;  %v6695_v55 = vld [vmem:[#allocation83_spill] sm:$0xff]  ;;  %v2189_v36 = vmax.f32 %v2166_v6, 0.0  ;;  %v2516_v60 = vadd.f32 %v6696_v32, %v5978_v20  ;;  %v6701_v6 = vld [vmem:[#allocation86_spill] sm:$0xff] }
 0xfb9   :  { %v2371_v5 = vmax.f32 %v2196_v18, %v2363_v19  ;;  %v2688_v2 = vadd.f32 %v6695_v55, %v5976_v26  ;;  %v2014_v27 = vmax.f32 %v1991_v1, 0.0  ;;  %v2691_v19 = vadd.f32 %v6700_v44, %v5978_v20 }
 0xfba   :  { %v1497_v43 = vmax.f32 %v1322_v49, %v1489_v40  ;;  %v1498_v40 = vmax.f32 %v1323_v30, %v1490_v52  ;;  %v1994_v49 = vadd.f32 %v6697_v51, %v5984_v58  ;;  %v2539_v3 = vmax.f32 %v2516_v60, 0.0 }
 0xfbb   :  { %v2546_v46 = vmax.f32 %v2371_v5, %v2538_v41  ;;  %v2713_v45 = vmax.f32 %v2688_v2, 0.0  ;;  %v2190_v1 = vmax.f32 %v2169_v10, 0.0  ;;  %v2714_v52 = vmax.f32 %v2691_v19, 0.0  ;;  %v6702_v2 = vld [vmem:[#allocation87_spill] sm:$0xff] }
 0xfbc   :  { %v1672_v63 = vmax.f32 %v1497_v43, %v1664_v7  ;;  %v1673_v29 = vmax.f32 %v1498_v40, %v1665_v39  ;;  %v2015_v54 = vmax.f32 %v1994_v49, 0.0 }
 0xfbd   :  { %v2721_v37 = vmax.f32 %v2546_v46, %v2713_v45 }
 0xfbe   :  { %v1847_v14 = vmax.f32 %v1672_v63, %v1839_v8  ;;  %v1848_v43 = vmax.f32 %v1673_v29, %v1840_v21  ;;  %v2344_v8 = vadd.f32 %v6699_v59, %v5984_v58 }
 0xfc0   :  { %v2022_v22 = vmax.f32 %v1847_v14, %v2014_v27  ;;  %v2023_v18 = vmax.f32 %v1848_v43, %v2015_v54  ;;  %v2365_v41 = vmax.f32 %v2344_v8, 0.0 }
 0xfc2   :  { %v2197_v7 = vmax.f32 %v2022_v22, %v2189_v36  ;;  %v2198_v42 = vmax.f32 %v2023_v18, %v2190_v1 }
 0xfc4   :  { %v2372_v48 = vmax.f32 %v2197_v7, %v2364_v28  ;;  %v2373_v5 = vmax.f32 %v2198_v42, %v2365_v41 }
 0xfc6   :  { %v2547_v13 = vmax.f32 %v2372_v48, %v2539_v3 }
 0xfc8   :  { %v2722_v11 = vmax.f32 %v2547_v13, %v2714_v52 }
 0xfe8   :  { %v2862_v31 = vpop.f32.mrf.mxu0 }
 0xfe9   :  { %v2863_v33 = vadd.f32 %v2862_v31, %v5976_v26 }
 0xfeb   :  { %v2888_v23 = vmax.f32 %v2863_v33, 0.0  ;;  %v2694_v33 = vadd.f32 %v6702_v2, %v5984_v58 }
 0xfed   :  { %v2896_v63 = vmax.f32 %v2721_v37, %v2888_v23  ;;  %v2715_v32 = vmax.f32 %v2694_v33, 0.0 }
 0xfee   :  { %v3037_v34 = vpop.f32.mrf.mxu3 }
 0xfef   :  { %v3038_v12 = vadd.f32 %v3037_v34, %v5976_v26  ;;  %v2519_v26 = vadd.f32 %v6701_v6, %v5984_v58 }
 0xff0   :  { %v2865_v24 = vpop.f32.mrf.mxu0 }
 0xff1   :  { %v3063_v9 = vmax.f32 %v3038_v12, 0.0  ;;  %v2866_v16 = vadd.f32 %v2865_v24, %v5978_v20  ;;  %v2540_v62 = vmax.f32 %v2519_v26, 0.0 }
 0xff3   :  { %v3071_v61 = vmax.f32 %v2896_v63, %v3063_v9  ;;  %v2889_v14 = vmax.f32 %v2866_v16, 0.0  ;;  %v2548_v36 = vmax.f32 %v2373_v5, %v2540_v62 }
 0xff5   :  { %3080 = vst.msk [vmem:[%s6426_s3] sm:$0xff] %vm3079_vm1, %v3071_v61  ;;  %v2897_v30 = vmax.f32 %v2722_v11, %v2889_v14 }
 0xff6   :  { %v3040_v47 = vpop.f32.mrf.mxu3 }
 0xff7   :  { %v3041_v31 = vadd.f32 %v3040_v47, %v5978_v20  ;;  %v2723_v20 = vmax.f32 %v2548_v36, %v2715_v32 }
 0xff8   :  { %v2868_v55 = vpop.f32.mrf.mxu0 }
 0xff9   :  { %v3064_v39 = vmax.f32 %v3041_v31, 0.0  ;;  %v2869_v27 = vadd.f32 %v2868_v55, %v5984_v58 }
 0xffb   :  { %v3072_v46 = vmax.f32 %v2897_v30, %v3064_v39  ;;  %v2890_v60 = vmax.f32 %v2869_v27, 0.0 }
 0xffd   :  { %3081 = vst.msk [vmem:[%s6426_s3 + $0x8] sm:$0xff] %vm3079_vm1, %v3072_v46  ;;  %v2898_v28 = vmax.f32 %v2723_v20, %v2890_v60 }
 0xffe   :  { %v3043_v40 = vpop.f32.mrf.mxu3 }
 0xfff   :  { %v3044_v22 = vadd.f32 %v3043_v40, %v5984_v58 }
0x1000   :  { %v2871_v21 = vpop.f32.mrf.mxu0 }
0x1001   :  { %v3065_v45 = vmax.f32 %v3044_v22, 0.0  ;;  %v2872_v23 = vadd.f32 %v2871_v21, %v5986_v17 }
0x1003   :  { %v3073_v29 = vmax.f32 %v2898_v28, %v3065_v45  ;;  %v2891_v51 = vmax.f32 %v2872_v23, 0.0 }
0x1005   :  { %3082 = vst.msk [vmem:[%s6426_s3 + $0x10] sm:$0xff] %vm3079_vm1, %v3073_v29  ;;  %v2899_v10 = vmax.f32 %v6112_v15, %v2891_v51 }
0x1006   :  { %v3046_v49 = vpop.f32.mrf.mxu3 }
0x1007   :  { %v3047_v7 = vadd.f32 %v3046_v49, %v5986_v17 }
0x1008   :  { %v2874_v4 = vpop.f32.mrf.mxu0 }
0x1009   :  { %v3066_v34 = vmax.f32 %v3047_v7, 0.0  ;;  %v2875_v58 = vadd.f32 %v2874_v4, %v5994_v53 }
0x100b   :  { %v3074_v37 = vmax.f32 %v2899_v10, %v3066_v34  ;;  %v2892_v3 = vmax.f32 %v2875_v58, 0.0 }
0x100d   :  { %3083 = vst.msk [vmem:[%s6426_s3 + $0x18] sm:$0xff] %vm3079_vm1, %v3074_v37  ;;  %v2900_v59 = vmax.f32 %v6133_v38, %v2892_v3 }
0x100e   :  { %v3049_v12 = vpop.f32.mrf.mxu3 }
0x100f   :  { %v3050_v43 = vadd.f32 %v3049_v12, %v5994_v53 }
0x1010   :  { %v2877_v48 = vpop.f32.mrf.mxu0 }
0x1011   :  { %v3067_v17 = vmax.f32 %v3050_v43, 0.0  ;;  %v2878_v8 = vadd.f32 %v2877_v48, %v6008_v25 }
0x1013   :  { %v3075_v15 = vmax.f32 %v2900_v59, %v3067_v17  ;;  %v2893_v24 = vmax.f32 %v2878_v8, 0.0 }
0x1015   :  { %3084 = vst.msk [vmem:[%s6426_s3 + $0x20] sm:$0xff] %vm3079_vm1, %v3075_v15  ;;  %v2901_v9 = vmax.f32 %v6147_v0, %v2893_v24 }
0x1016   :  { %v3052_v44 = vpop.f32.mrf.mxu3 }
0x1017   :  { %v3053_v19 = vadd.f32 %v3052_v44, %v6008_v25 }
0x1018   :  { %v2880_v63 = vpop.f32.mrf.mxu0 }
0x1019   :  { %v3068_v53 = vmax.f32 %v3053_v19, 0.0  ;;  %v2881_v16 = vadd.f32 %v2880_v63, %v6020_v56 }
0x101b   :  { %v3076_v38 = vmax.f32 %v2901_v9, %v3068_v53  ;;  %v2894_v54 = vmax.f32 %v2881_v16, 0.0 }
0x101d   :  { %3085 = vst.msk [vmem:[%s6426_s3 + $0x28] sm:$0xff] %vm3079_vm1, %v3076_v38  ;;  %v2902_v26 = vmax.f32 %v6157_v50, %v2894_v54 }
0x101e   :  { %v3055_v1 = vpop.f32.mrf.mxu3 }
0x101f   :  { %v3056_v13 = vadd.f32 %v3055_v1, %v6020_v56 }
0x1020   :  { %v2883_v6 = vpop.f32.mrf.mxu0 }
0x1021   :  { %v3069_v25 = vmax.f32 %v3056_v13, 0.0  ;;  %v2884_v61 = vadd.f32 %v2883_v6, %v6035_v57 }
0x1023   :  { %v3077_v0 = vmax.f32 %v2902_v26, %v3069_v25  ;;  %v2895_v18 = vmax.f32 %v2884_v61, 0.0 }
0x1025   :  { %3086 = vst.msk [vmem:[%s6426_s3 + $0x30] sm:$0xff] %vm3079_vm1, %v3077_v0  ;;  %v2903_v42 = vmax.f32 %v6161_v35, %v2895_v18 }
0x1026   :  { %v3058_v41 = vpop.f32.mrf.mxu3 }
0x1027   :  { %v3059_v52 = vadd.f32 %v3058_v41, %v6035_v57 }
0x1028   :  { %v2886_v14 = vpop.f32.mrf.mxu0 }
0x1029   :  { %v3070_v56 = vmax.f32 %v3059_v52, 0.0 }
0x102b   :  { %v3078_v47 = vmax.f32 %v2903_v42, %v3070_v56 }
0x102d   :  { %3087 = vst.msk [vmem:[%s6426_s3 + $0x38] sm:$0xff] %vm3079_vm1, %v3078_v47 }
0x102e   :  { %v3061_v50 = vpop.f32.mrf.mxu3 }

// kernel: forward.13
= control target key start
LH: loop header
LB: loop body
LE: loop exit
PB: predicated region body
PF: predicated region fallthrough
CT: control target
= control target key end

     0   :  { %v459_v3 = vmov 0   ;;  %vm110_vm0 = vcmask 785408   ;;  %s672_s0 = inlined_call_operand.vmem [shape: f32[96,128], index: 0, kind: input, shape index: {}]   ;;  %s673_s2 = inlined_call_operand.vmem [shape: f32[2,96,1], index: 2, kind: input, shape index: {}]   ;;  %s674_s1 = inlined_call_operand.vmem [shape: f32[2,96,96], index: 1, kind: input, shape index: {}]   ;;  %s675_s3 = inlined_call_operand.vmem [shape: f32[32,128], index: 3, kind: output, shape index: {}]  }
   0x1   :  { %v25_v0 = vld [vmem:[%s672_s0 + $0x58] sm:$0xff]  ;;  %v24_v1 = vld [vmem:[%s672_s0 + $0x50] sm:$0xff]  ;;  %v23_v2 = vld [vmem:[%s672_s0 + $0x48] sm:$0xff]  ;;  %456 = vset.pattern.permute.xlu0 %v459_v3  ;;  %457 = vset.pattern.permute.xlu1 %v459_v3 }
   0x2   :  { %151 = vmatpush.msra.mxu0 %v25_v0  ;;  %431 = vmatpush.msra.mxu2 %v25_v0  ;;  %v22_v4 = vld [vmem:[%s672_s0 + $0x40] sm:$0xff]  ;;  %v49_v5 = vld [vmem:[%s673_s2 + $0x58] sm:$0xff]  ;;  %v47_v6 = vld [vmem:[%s673_s2 + $0x48] sm:$0xff] }
   0x3   :  { %458 = vset.pattern.permute.xlu2 %v459_v3  ;;  %v21_v7 = vld [vmem:[%s672_s0 + $0x38] sm:$0xff]  ;;  %107 = vperm.xlu0 %456, %v49_v5   ;;  %v20_v8 = vld [vmem:[%s672_s0 + $0x30] sm:$0xff]  ;;  %v19_v9 = vld [vmem:[%s672_s0 + $0x28] sm:$0xff] }
   0x4   :  { %152 = vmatpush.msra.mxu0 %v24_v1  ;;  %432 = vmatpush.msra.mxu2 %v24_v1  ;;  %v48_v10 = vld [vmem:[%s673_s2 + $0x50] sm:$0xff]  ;;  %v46_v11 = vld [vmem:[%s673_s2 + $0x40] sm:$0xff]  ;;  %v17_v13 = vld [vmem:[%s672_s0 + $0x18] sm:$0xff] }
   0x5   :  { %97 = vperm.xlu1 %457, %v47_v6   ;;  %v18_v12 = vld [vmem:[%s672_s0 + $0x20] sm:$0xff]  ;;  %v16_v14 = vld [vmem:[%s672_s0 + $0x10] sm:$0xff]  ;;  %v45_v15 = vld [vmem:[%s673_s2 + $0x38] sm:$0xff] }
   0x6   :  { %153 = vmatpush.msra.mxu0 %v23_v2  ;;  %433 = vmatpush.msra.mxu2 %v23_v2  ;;  %v15_v16 = vld [vmem:[%s672_s0 + $0x8] sm:$0xff]  ;;  %v42_v18 = vld [vmem:[%s673_s2 + $0x20] sm:$0xff]  ;;  %v32_v21 = vld [vmem:[%s674_s1 + $0x30] sm:$0xff] }
   0x7   :  { %87 = vperm.xlu2 %458, %v45_v15   ;;  %v43_v17 = vld [vmem:[%s673_s2 + $0x28] sm:$0xff]  ;;  %v14_v19 = vld [vmem:[%s672_s0] sm:$0xff]  ;;  %v44_v22 = vld [vmem:[%s673_s2 + $0x30] sm:$0xff] }
   0x8   :  { %154 = vmatpush.msra.mxu0 %v22_v4  ;;  %434 = vmatpush.msra.mxu2 %v22_v4  ;;  %v26_v20 = vld [vmem:[%s674_s1] sm:$0xff]  ;;  %v40_v23 = vld [vmem:[%s673_s2 + $0x10] sm:$0xff]  ;;  %v39_v24 = vld [vmem:[%s673_s2 + $0x8] sm:$0xff] }
   0x9   :  { %v27_v25 = vld [vmem:[%s674_s1 + $0x8] sm:$0xff]  ;;  %v33_v26 = vld [vmem:[%s674_s1 + $0x38] sm:$0xff]  ;;  %v407_v28 = vld [vmem:[%s673_s2 + $0x60] sm:$0xff] }
   0xa   :  { %155 = vmatpush.msra.mxu0 %v21_v7  ;;  %435 = vmatpush.msra.mxu2 %v21_v7  ;;  %v41_v27 = vld [vmem:[%s673_s2 + $0x18] sm:$0xff]  ;;  %v408_v29 = vld [vmem:[%s673_s2 + $0x68] sm:$0xff]  ;;  %v28_v30 = vld [vmem:[%s674_s1 + $0x10] sm:$0xff] }
   0xb   :  { %102 = vperm.xlu0 %456, %v48_v10   ;;  %v34_v31 = vld [vmem:[%s674_s1 + $0x40] sm:$0xff]  ;;  %v410_v33 = vld [vmem:[%s673_s2 + $0x78] sm:$0xff]  ;;  %v35_v35 = vld [vmem:[%s674_s1 + $0x48] sm:$0xff] }
   0xc   :  { %156 = vmatpush.msra.mxu0 %v20_v8  ;;  %436 = vmatpush.msra.mxu2 %v20_v8  ;;  %v38_v32 = vld [vmem:[%s673_s2] sm:$0xff]  ;;  %v29_v34 = vld [vmem:[%s674_s1 + $0x18] sm:$0xff]  ;;  %v409_v36 = vld [vmem:[%s673_s2 + $0x70] sm:$0xff] }
   0xd   :  { %92 = vperm.xlu1 %457, %v46_v11   ;;  %v30_v37 = vld [vmem:[%s674_s1 + $0x20] sm:$0xff]  ;;  %v36_v38 = vld [vmem:[%s674_s1 + $0x50] sm:$0xff]  ;;  %v31_v39 = vld [vmem:[%s674_s1 + $0x28] sm:$0xff] }
   0xe   :  { %157 = vmatpush.msra.mxu0 %v19_v9  ;;  %437 = vmatpush.msra.mxu2 %v19_v9  ;;  %v37_v40 = vld [vmem:[%s674_s1 + $0x58] sm:$0xff] }
   0xf   :  { %82 = vperm.xlu2 %458, %v44_v22  }
  0x10   :  { %158 = vmatpush.msra.mxu0 %v18_v12  ;;  %438 = vmatpush.msra.mxu2 %v18_v12 }
  0x12   :  { %159 = vmatpush.msra.mxu0 %v17_v13  ;;  %439 = vmatpush.msra.mxu2 %v17_v13 }
  0x13   :  { %77 = vperm.xlu0 %456, %v43_v17  }
  0x14   :  { %160 = vmatpush.msra.mxu0 %v16_v14  ;;  %440 = vmatpush.msra.mxu2 %v16_v14 }
  0x15   :  { %72 = vperm.xlu1 %457, %v42_v18  }
  0x16   :  { %161 = vmatpush.msra.mxu0 %v15_v16  ;;  %441 = vmatpush.msra.mxu2 %v15_v16 }
  0x17   :  { %67 = vperm.xlu2 %458, %v41_v27   ;;  %v396_v27 = vld [vmem:[%s674_s1 + $0x68] sm:$0xff] }
  0x18   :  { %162 = vmatpush.msra.mxu0 %v14_v19  ;;  %442 = vmatpush.msra.mxu2 %v14_v19 }
  0x19   :  { %383 = vmatmul.msk.f32.vlgmr.msra.gmra.mxu0 %vm110_vm0, %v26_v20  ;;  %389 = vmatmul.msk.f32.vlgmr.msra.gmra.mxu2 %vm110_vm0, %v32_v21 }
  0x1b   :  { %62 = vperm.xlu0 %456, %v40_v23  }
  0x1d   :  { %57 = vperm.xlu1 %457, %v39_v24  }
  0x1f   :  { %52 = vperm.xlu2 %458, %v38_v32   ;;  %v404_v32 = vld [vmem:[%s674_s1 + $0xa8] sm:$0xff] }
  0x21   :  { %384 = vmatmul.msk.f32.gmra.mxu0 %vm110_vm0, %v27_v25  ;;  %390 = vmatmul.msk.f32.gmra.mxu2 %vm110_vm0, %v33_v26  ;;  %v395_v25 = vld [vmem:[%s674_s1 + $0x60] sm:$0xff]  ;;  %v401_v26 = vld [vmem:[%s674_s1 + $0x90] sm:$0xff] }
  0x23   :  { %240 = vperm.xlu0 %456, %v407_v28   ;;  %v402_v28 = vld [vmem:[%s674_s1 + $0x98] sm:$0xff] }
  0x25   :  { %245 = vperm.xlu1 %457, %v408_v29   ;;  %v397_v29 = vld [vmem:[%s674_s1 + $0x70] sm:$0xff] }
  0x27   :  { %250 = vperm.xlu2 %458, %v409_v36   ;;  %v400_v36 = vld [vmem:[%s674_s1 + $0x88] sm:$0xff] }
  0x29   :  { %385 = vmatmul.msk.f32.gmra.mxu0 %vm110_vm0, %v28_v30  ;;  %391 = vmatmul.msk.f32.gmra.mxu2 %vm110_vm0, %v34_v31  ;;  %v403_v30 = vld [vmem:[%s674_s1 + $0xa0] sm:$0xff]  ;;  %v398_v31 = vld [vmem:[%s674_s1 + $0x78] sm:$0xff] }
  0x2b   :  { %255 = vperm.xlu0 %456, %v410_v33   ;;  %v405_v33 = vld [vmem:[%s674_s1 + $0xb0] sm:$0xff] }
  0x31   :  { %386 = vmatmul.msk.f32.gmra.mxu0 %vm110_vm0, %v29_v34  ;;  %392 = vmatmul.msk.f32.gmra.mxu2 %vm110_vm0, %v35_v35  ;;  %v399_v34 = vld [vmem:[%s674_s1 + $0x80] sm:$0xff]  ;;  %v406_v35 = vld [vmem:[%s674_s1 + $0xb8] sm:$0xff] }
  0x39   :  { %387 = vmatmul.msk.f32.gmra.mxu0 %vm110_vm0, %v30_v37  ;;  %393 = vmatmul.msk.f32.gmra.mxu2 %vm110_vm0, %v36_v38 }
  0x41   :  { %388 = vmatmul.msk.f32.gmra.mxu0 %vm110_vm0, %v31_v39  ;;  %394 = vmatmul.msk.f32.gmra.mxu2 %vm110_vm0, %v37_v40 }
  0x61   :  { %v88_v50 = vpop.permute.xlu2 %87 }
  0x69   :  { %v83_v55 = vpop.permute.xlu2 %82 }
  0x71   :  { %v68_v4 = vpop.permute.xlu2 %67 }
  0x75   :  { %v108_v48 = vpop.permute.xlu0 %107 }
  0x77   :  { %v98_v49 = vpop.permute.xlu1 %97 }
  0x79   :  { %v53_v18 = vpop.permute.xlu2 %52 }
  0x7d   :  { %v103_v53 = vpop.permute.xlu0 %102 }
  0x7f   :  { %v93_v54 = vpop.permute.xlu1 %92 }
  0x85   :  { %v78_v0 = vpop.permute.xlu0 %77 }
  0x87   :  { %v73_v1 = vpop.permute.xlu1 %72 }
  0x8d   :  { %v63_v14 = vpop.permute.xlu0 %62 }
  0x8f   :  { %v58_v15 = vpop.permute.xlu1 %57 }
  0x95   :  { %v241_v37 = vpop.permute.xlu0 %240 }
  0x96   :  { %v164_v41 = vpop.f32.mrf.mxu0 }
  0x97   :  { %v165_v21 = vadd.f32 %v164_v41, %v53_v18 }
  0x99   :  { %v200_v24 = vmax.f32 %v165_v21, 0.0 }
  0x9c   :  { %v182_v42 = vpop.f32.mrf.mxu2 }
  0x9d   :  { %v183_v6 = vadd.f32 %v182_v42, %v83_v55  ;;  %v246_v42 = vpop.permute.xlu1 %245 }
  0x9e   :  { %v167_v43 = vpop.f32.mrf.mxu0 }
  0x9f   :  { %v206_v10 = vmax.f32 %v183_v6, 0.0  ;;  %v168_v20 = vadd.f32 %v167_v43, %v58_v15 }
  0xa1   :  { %v201_v23 = vmax.f32 %v168_v20, 0.0 }
  0xa4   :  { %v185_v44 = vpop.f32.mrf.mxu2 }
  0xa5   :  { %v186_v2 = vadd.f32 %v185_v44, %v88_v50 }
  0xa6   :  { %v170_v46 = vpop.f32.mrf.mxu0 }
  0xa7   :  { %v207_v8 = vmax.f32 %v186_v2, 0.0  ;;  %v171_v16 = vadd.f32 %v170_v46, %v63_v14 }
  0xa9   :  { %v202_v22 = vmax.f32 %v171_v16, 0.0 }
  0xac   :  { %v188_v45 = vpop.f32.mrf.mxu2 }
  0xad   :  { %v189_v62 = vadd.f32 %v188_v45, %v93_v54 }
  0xae   :  { %v173_v51 = vpop.f32.mrf.mxu0 }
  0xaf   :  { %v208_v7 = vmax.f32 %v189_v62, 0.0  ;;  %v174_v12 = vadd.f32 %v173_v51, %v68_v4 }
  0xb1   :  { %v203_v19 = vmax.f32 %v174_v12, 0.0 }
  0xb4   :  { %v191_v47 = vpop.f32.mrf.mxu2 }
  0xb5   :  { %v192_v60 = vadd.f32 %v191_v47, %v98_v49  ;;  %v251_v47 = vpop.permute.xlu2 %250 }
  0xb6   :  { %v176_v56 = vpop.f32.mrf.mxu0 }
  0xb7   :  { %v209_v3 = vmax.f32 %v192_v60, 0.0  ;;  %v177_v11 = vadd.f32 %v176_v56, %v73_v1 }
  0xb9   :  { %v204_v17 = vmax.f32 %v177_v11, 0.0 }
  0xbc   :  { %v194_v52 = vpop.f32.mrf.mxu2 }
  0xbd   :  { %v195_v58 = vadd.f32 %v194_v52, %v103_v53  ;;  %v256_v52 = vpop.permute.xlu0 %255 }
  0xbe   :  { %v179_v5 = vpop.f32.mrf.mxu0 }
  0xbf   :  { %v210_v63 = vmax.f32 %v195_v58, 0.0  ;;  %v180_v9 = vadd.f32 %v179_v5, %v78_v0 }
  0xc1   :  { %v205_v13 = vmax.f32 %v180_v9, 0.0 }
  0xc4   :  { %v197_v57 = vpop.f32.mrf.mxu2 }
  0xc5   :  { %v198_v59 = vadd.f32 %v197_v57, %v108_v48 }
  0xc7   :  { %v211_v61 = vmax.f32 %v198_v59, 0.0 }
  0xc9   :  { %330 = vmatpush.msra.mxu1 %v211_v61  ;;  %443 = vmatpush.msra.mxu3 %v211_v61 }
  0xcb   :  { %331 = vmatpush.msra.mxu1 %v210_v63  ;;  %444 = vmatpush.msra.mxu3 %v210_v63 }
  0xcd   :  { %332 = vmatpush.msra.mxu1 %v209_v3  ;;  %445 = vmatpush.msra.mxu3 %v209_v3 }
  0xcf   :  { %333 = vmatpush.msra.mxu1 %v208_v7  ;;  %446 = vmatpush.msra.mxu3 %v208_v7 }
  0xd1   :  { %334 = vmatpush.msra.mxu1 %v207_v8  ;;  %447 = vmatpush.msra.mxu3 %v207_v8 }
  0xd3   :  { %335 = vmatpush.msra.mxu1 %v206_v10  ;;  %448 = vmatpush.msra.mxu3 %v206_v10 }
  0xd5   :  { %336 = vmatpush.msra.mxu1 %v205_v13  ;;  %449 = vmatpush.msra.mxu3 %v205_v13 }
  0xd7   :  { %337 = vmatpush.msra.mxu1 %v204_v17  ;;  %450 = vmatpush.msra.mxu3 %v204_v17 }
  0xd9   :  { %338 = vmatpush.msra.mxu1 %v203_v19  ;;  %451 = vmatpush.msra.mxu3 %v203_v19 }
  0xdb   :  { %339 = vmatpush.msra.mxu1 %v202_v22  ;;  %452 = vmatpush.msra.mxu3 %v202_v22 }
  0xdd   :  { %340 = vmatpush.msra.mxu1 %v201_v23  ;;  %453 = vmatpush.msra.mxu3 %v201_v23 }
  0xdf   :  { %341 = vmatpush.msra.mxu1 %v200_v24  ;;  %454 = vmatpush.msra.mxu3 %v200_v24 }
  0xe0   :  { %419 = vmatmul.msk.f32.vlgmr.msra.gmra.mxu1 %vm110_vm0, %v395_v25  ;;  %425 = vmatmul.msk.f32.vlgmr.msra.gmra.mxu3 %vm110_vm0, %v401_v26 }
  0xe8   :  { %420 = vmatmul.msk.f32.gmra.mxu1 %vm110_vm0, %v396_v27  ;;  %426 = vmatmul.msk.f32.gmra.mxu3 %vm110_vm0, %v402_v28 }
  0xf0   :  { %421 = vmatmul.msk.f32.gmra.mxu1 %vm110_vm0, %v397_v29  ;;  %427 = vmatmul.msk.f32.gmra.mxu3 %vm110_vm0, %v403_v30 }
  0xf8   :  { %422 = vmatmul.msk.f32.gmra.mxu1 %vm110_vm0, %v398_v31  ;;  %428 = vmatmul.msk.f32.gmra.mxu3 %vm110_vm0, %v404_v32 }
 0x100   :  { %429 = vmatmul.msk.f32.gmra.mxu3 %vm110_vm0, %v405_v33  ;;  %423 = vmatmul.msk.f32.gmra.mxu1 %vm110_vm0, %v399_v34 }
 0x108   :  { %430 = vmatmul.msk.f32.gmra.mxu3 %vm110_vm0, %v406_v35  ;;  %424 = vmatmul.msk.f32.gmra.mxu1 %vm110_vm0, %v400_v36 }
 0x15d   :  { %v343_v38 = vpop.f32.mrf.mxu1 }
 0x15e   :  { %v344_v39 = vadd.f32 %v343_v38, %v241_v37 }
 0x160   :  { %v371_v40 = vmax.f32 %v344_v39, 0.0 }
 0x162   :  { %375 = vst [vmem:[%s675_s3] sm:$0xff] %v371_v40 }
 0x163   :  { %v359_v41 = vpop.f32.mrf.mxu3 }
 0x165   :  { %v346_v43 = vpop.f32.mrf.mxu1 }
 0x166   :  { %v347_v44 = vadd.f32 %v346_v43, %v246_v42 }
 0x168   :  { %v372_v45 = vmax.f32 %v347_v44, 0.0 }
 0x16a   :  { %376 = vst [vmem:[%s675_s3 + $0x8] sm:$0xff] %v372_v45 }
 0x16b   :  { %v361_v46 = vpop.f32.mrf.mxu3 }
 0x16d   :  { %v349_v48 = vpop.f32.mrf.mxu1 }
 0x16e   :  { %v350_v49 = vadd.f32 %v349_v48, %v251_v47 }
 0x170   :  { %v373_v50 = vmax.f32 %v350_v49, 0.0 }
 0x172   :  { %377 = vst [vmem:[%s675_s3 + $0x10] sm:$0xff] %v373_v50 }
 0x173   :  { %v363_v51 = vpop.f32.mrf.mxu3 }
 0x175   :  { %v352_v53 = vpop.f32.mrf.mxu1 }
 0x176   :  { %v353_v54 = vadd.f32 %v352_v53, %v256_v52 }
 0x178   :  { %v374_v55 = vmax.f32 %v353_v54, 0.0 }
 0x17a   :  { %378 = vst [vmem:[%s675_s3 + $0x18] sm:$0xff] %v374_v55 }
 0x17b   :  { %v365_v56 = vpop.f32.mrf.mxu3 }
 0x17d   :  { %v355_v57 = vpop.f32.mrf.mxu1 }
 0x183   :  { %v367_v58 = vpop.f32.mrf.mxu3 }
 0x185   :  { %v357_v59 = vpop.f32.mrf.mxu1 }
 0x18b   :  { %v369_v60 = vpop.f32.mrf.mxu3 }

// kernel: neg.6
= control target key start
LH: loop header
LB: loop body
LE: loop exit
PB: predicated region body
PF: predicated region fallthrough
CT: control target
= control target key end

     0   :  { %s1032_s0 = inlined_call_operand.vmem [shape: f32[2,256,64], index: 0, kind: input, shape index: {}]   ;;  %s1033_s1 = inlined_call_operand.vmem [shape: f32[2,256,64], index: 1, kind: output, shape index: {}]  }
   0x1   :  { %v2_v0 = vld [vmem:[%s1032_s0] sm:$0xff]  ;;  %v514_v2 = vld [vmem:[%s1032_s0 + $0x8] sm:$0xff]  ;;  %v518_v7 = vld [vmem:[%s1032_s0 + $0x10] sm:$0xff] }
   0x2   :  { %v512_v1 = vld [vmem:[%s1032_s0 + $0x100] sm:$0xff]  ;;  %v5_v3 = vxor.u32 2147483648, %v2_v0  ;;  %v20_v5 = vxor.u32 2147483648, %v514_v2  ;;  %v516_v6 = vld [vmem:[%s1032_s0 + $0x108] sm:$0xff]  ;;  %v520_v8 = vld [vmem:[%s1032_s0 + $0x110] sm:$0xff]  ;;  %v36_v11 = vxor.u32 2147483648, %v518_v7 }
   0x3   :  { %v12_v4 = vxor.u32 2147483648, %v512_v1  ;;  %v28_v9 = vxor.u32 2147483648, %v516_v6  ;;  %v522_v10 = vld [vmem:[%s1032_s0 + $0x18] sm:$0xff]  ;;  %v44_v13 = vxor.u32 2147483648, %v520_v8  ;;  %v526_v14 = vld [vmem:[%s1032_s0 + $0x20] sm:$0xff]  ;;  %v530_v18 = vld [vmem:[%s1032_s0 + $0x28] sm:$0xff] }
   0x4   :  { %7 = vst [vmem:[%s1033_s1] sm:$0xff] %v5_v3  ;;  %v524_v12 = vld [vmem:[%s1032_s0 + $0x118] sm:$0xff]  ;;  %v52_v15 = vxor.u32 2147483648, %v522_v10  ;;  %v528_v16 = vld [vmem:[%s1032_s0 + $0x120] sm:$0xff]  ;;  %v68_v19 = vxor.u32 2147483648, %v526_v14  ;;  %v532_v20 = vld [vmem:[%s1032_s0 + $0x128] sm:$0xff]  ;;  %v84_v23 = vxor.u32 2147483648, %v530_v18 }
   0x5   :  { %513 = vst [vmem:[%s1033_s1 + $0x100] sm:$0xff] %v12_v4  ;;  %v60_v17 = vxor.u32 2147483648, %v524_v12  ;;  %v76_v21 = vxor.u32 2147483648, %v528_v16  ;;  %v534_v22 = vld [vmem:[%s1032_s0 + $0x30] sm:$0xff]  ;;  %v92_v25 = vxor.u32 2147483648, %v532_v20  ;;  %v538_v26 = vld [vmem:[%s1032_s0 + $0x38] sm:$0xff] }
   0x6   :  { %515 = vst [vmem:[%s1033_s1 + $0x8] sm:$0xff] %v20_v5  ;;  %v536_v24 = vld [vmem:[%s1032_s0 + $0x130] sm:$0xff]  ;;  %v100_v27 = vxor.u32 2147483648, %v534_v22  ;;  %v540_v28 = vld [vmem:[%s1032_s0 + $0x138] sm:$0xff]  ;;  %v542_v30 = vld [vmem:[%s1032_s0 + $0x40] sm:$0xff]  ;;  %v116_v31 = vxor.u32 2147483648, %v538_v26 }
   0x7   :  { %517 = vst [vmem:[%s1033_s1 + $0x108] sm:$0xff] %v28_v9  ;;  %v108_v29 = vxor.u32 2147483648, %v536_v24  ;;  %v544_v32 = vld [vmem:[%s1032_s0 + $0x140] sm:$0xff]  ;;  %v124_v33 = vxor.u32 2147483648, %v540_v28  ;;  %v546_v34 = vld [vmem:[%s1032_s0 + $0x48] sm:$0xff]  ;;  %v132_v35 = vxor.u32 2147483648, %v542_v30 }
   0x8   :  { %519 = vst [vmem:[%s1033_s1 + $0x10] sm:$0xff] %v36_v11  ;;  %v548_v36 = vld [vmem:[%s1032_s0 + $0x148] sm:$0xff]  ;;  %v140_v37 = vxor.u32 2147483648, %v544_v32  ;;  %v550_v38 = vld [vmem:[%s1032_s0 + $0x50] sm:$0xff]  ;;  %v148_v39 = vxor.u32 2147483648, %v546_v34  ;;  %v554_v42 = vld [vmem:[%s1032_s0 + $0x58] sm:$0xff] }
   0x9   :  { %521 = vst [vmem:[%s1033_s1 + $0x110] sm:$0xff] %v44_v13  ;;  %v552_v40 = vld [vmem:[%s1032_s0 + $0x150] sm:$0xff]  ;;  %v156_v41 = vxor.u32 2147483648, %v548_v36  ;;  %v164_v43 = vxor.u32 2147483648, %v550_v38  ;;  %v556_v44 = vld [vmem:[%s1032_s0 + $0x158] sm:$0xff]  ;;  %v558_v46 = vld [vmem:[%s1032_s0 + $0x60] sm:$0xff] }
   0xa   :  { %523 = vst [vmem:[%s1033_s1 + $0x18] sm:$0xff] %v52_v15  ;;  %v172_v45 = vxor.u32 2147483648, %v552_v40  ;;  %v180_v47 = vxor.u32 2147483648, %v554_v42  ;;  %v560_v48 = vld [vmem:[%s1032_s0 + $0x160] sm:$0xff]  ;;  %v188_v49 = vxor.u32 2147483648, %v556_v44  ;;  %v562_v50 = vld [vmem:[%s1032_s0 + $0x68] sm:$0xff] }
   0xb   :  { %525 = vst [vmem:[%s1033_s1 + $0x118] sm:$0xff] %v60_v17  ;;  %v196_v51 = vxor.u32 2147483648, %v558_v46  ;;  %v564_v52 = vld [vmem:[%s1032_s0 + $0x168] sm:$0xff]  ;;  %v204_v53 = vxor.u32 2147483648, %v560_v48  ;;  %v566_v54 = vld [vmem:[%s1032_s0 + $0x70] sm:$0xff]  ;;  %v212_v55 = vxor.u32 2147483648, %v562_v50 }
   0xc   :  { %527 = vst [vmem:[%s1033_s1 + $0x20] sm:$0xff] %v68_v19  ;;  %v568_v56 = vld [vmem:[%s1032_s0 + $0x170] sm:$0xff]  ;;  %v220_v57 = vxor.u32 2147483648, %v564_v52  ;;  %v570_v58 = vld [vmem:[%s1032_s0 + $0x78] sm:$0xff]  ;;  %v228_v59 = vxor.u32 2147483648, %v566_v54  ;;  %v574_v62 = vld [vmem:[%s1032_s0 + $0x80] sm:$0xff] }
   0xd   :  { %529 = vst [vmem:[%s1033_s1 + $0x120] sm:$0xff] %v76_v21  ;;  %v572_v60 = vld [vmem:[%s1032_s0 + $0x178] sm:$0xff]  ;;  %v236_v61 = vxor.u32 2147483648, %v568_v56  ;;  %v244_v63 = vxor.u32 2147483648, %v570_v58  ;;  %v576_v0 = vld [vmem:[%s1032_s0 + $0x180] sm:$0xff]  ;;  %v578_v2 = vld [vmem:[%s1032_s0 + $0x88] sm:$0xff] }
   0xe   :  { %531 = vst [vmem:[%s1033_s1 + $0x28] sm:$0xff] %v84_v23  ;;  %v252_v1 = vxor.u32 2147483648, %v572_v60  ;;  %v260_v3 = vxor.u32 2147483648, %v574_v62  ;;  %v580_v4 = vld [vmem:[%s1032_s0 + $0x188] sm:$0xff]  ;;  %v268_v5 = vxor.u32 2147483648, %v576_v0  ;;  %v582_v6 = vld [vmem:[%s1032_s0 + $0x90] sm:$0xff] }
   0xf   :  { %533 = vst [vmem:[%s1033_s1 + $0x128] sm:$0xff] %v92_v25  ;;  %v276_v7 = vxor.u32 2147483648, %v578_v2  ;;  %v584_v8 = vld [vmem:[%s1032_s0 + $0x190] sm:$0xff]  ;;  %v284_v9 = vxor.u32 2147483648, %v580_v4  ;;  %v586_v10 = vld [vmem:[%s1032_s0 + $0x98] sm:$0xff]  ;;  %v292_v11 = vxor.u32 2147483648, %v582_v6 }
  0x10   :  { %535 = vst [vmem:[%s1033_s1 + $0x30] sm:$0xff] %v100_v27  ;;  %v588_v12 = vld [vmem:[%s1032_s0 + $0x198] sm:$0xff]  ;;  %v300_v13 = vxor.u32 2147483648, %v584_v8  ;;  %v590_v14 = vld [vmem:[%s1032_s0 + $0xa0] sm:$0xff]  ;;  %v308_v15 = vxor.u32 2147483648, %v586_v10  ;;  %v594_v18 = vld [vmem:[%s1032_s0 + $0xa8] sm:$0xff] }
  0x11   :  { %537 = vst [vmem:[%s1033_s1 + $0x130] sm:$0xff] %v108_v29  ;;  %v592_v16 = vld [vmem:[%s1032_s0 + $0x1a0] sm:$0xff]  ;;  %v316_v17 = vxor.u32 2147483648, %v588_v12  ;;  %v324_v19 = vxor.u32 2147483648, %v590_v14  ;;  %v596_v20 = vld [vmem:[%s1032_s0 + $0x1a8] sm:$0xff]  ;;  %v598_v22 = vld [vmem:[%s1032_s0 + $0xb0] sm:$0xff] }
  0x12   :  { %539 = vst [vmem:[%s1033_s1 + $0x38] sm:$0xff] %v116_v31  ;;  %v332_v21 = vxor.u32 2147483648, %v592_v16  ;;  %v340_v23 = vxor.u32 2147483648, %v594_v18  ;;  %v600_v24 = vld [vmem:[%s1032_s0 + $0x1b0] sm:$0xff]  ;;  %v348_v25 = vxor.u32 2147483648, %v596_v20  ;;  %v602_v26 = vld [vmem:[%s1032_s0 + $0xb8] sm:$0xff] }
  0x13   :  { %541 = vst [vmem:[%s1033_s1 + $0x138] sm:$0xff] %v124_v33  ;;  %v356_v27 = vxor.u32 2147483648, %v598_v22  ;;  %v604_v28 = vld [vmem:[%s1032_s0 + $0x1b8] sm:$0xff]  ;;  %v364_v29 = vxor.u32 2147483648, %v600_v24  ;;  %v606_v30 = vld [vmem:[%s1032_s0 + $0xc0] sm:$0xff]  ;;  %v372_v31 = vxor.u32 2147483648, %v602_v26 }
  0x14   :  { %543 = vst [vmem:[%s1033_s1 + $0x40] sm:$0xff] %v132_v35  ;;  %v608_v32 = vld [vmem:[%s1032_s0 + $0x1c0] sm:$0xff]  ;;  %v380_v33 = vxor.u32 2147483648, %v604_v28  ;;  %v610_v34 = vld [vmem:[%s1032_s0 + $0xc8] sm:$0xff]  ;;  %v388_v35 = vxor.u32 2147483648, %v606_v30  ;;  %v614_v38 = vld [vmem:[%s1032_s0 + $0xd0] sm:$0xff] }
  0x15   :  { %545 = vst [vmem:[%s1033_s1 + $0x140] sm:$0xff] %v140_v37  ;;  %v612_v36 = vld [vmem:[%s1032_s0 + $0x1c8] sm:$0xff]  ;;  %v396_v37 = vxor.u32 2147483648, %v608_v32  ;;  %v616_v40 = vld [vmem:[%s1032_s0 + $0x1d0] sm:$0xff]  ;;  %v618_v42 = vld [vmem:[%s1032_s0 + $0xd8] sm:$0xff] }
  0x16   :  { %547 = vst [vmem:[%s1033_s1 + $0x48] sm:$0xff] %v148_v39  ;;  %v404_v39 = vxor.u32 2147483648, %v610_v34  ;;  %v620_v44 = vld [vmem:[%s1032_s0 + $0x1d8] sm:$0xff]  ;;  %v622_v46 = vld [vmem:[%s1032_s0 + $0xe0] sm:$0xff]  ;;  %v626_v50 = vld [vmem:[%s1032_s0 + $0xe8] sm:$0xff] }
  0x17   :  { %549 = vst [vmem:[%s1033_s1 + $0x148] sm:$0xff] %v156_v41  ;;  %v412_v41 = vxor.u32 2147483648, %v612_v36  ;;  %v624_v48 = vld [vmem:[%s1032_s0 + $0x1e0] sm:$0xff]  ;;  %v628_v52 = vld [vmem:[%s1032_s0 + $0x1e8] sm:$0xff]  ;;  %v630_v54 = vld [vmem:[%s1032_s0 + $0xf0] sm:$0xff] }
  0x18   :  { %551 = vst [vmem:[%s1033_s1 + $0x50] sm:$0xff] %v164_v43  ;;  %v420_v43 = vxor.u32 2147483648, %v614_v38  ;;  %v632_v56 = vld [vmem:[%s1032_s0 + $0x1f0] sm:$0xff]  ;;  %v634_v58 = vld [vmem:[%s1032_s0 + $0xf8] sm:$0xff] }
  0x19   :  { %553 = vst [vmem:[%s1033_s1 + $0x150] sm:$0xff] %v172_v45  ;;  %v428_v45 = vxor.u32 2147483648, %v616_v40  ;;  %v636_v60 = vld [vmem:[%s1032_s0 + $0x1f8] sm:$0xff]  ;;  %v500_v62 = vxor.u32 2147483648, %v634_v58 }
  0x1a   :  { %555 = vst [vmem:[%s1033_s1 + $0x58] sm:$0xff] %v180_v47  ;;  %v436_v47 = vxor.u32 2147483648, %v618_v42 }
  0x1b   :  { %557 = vst [vmem:[%s1033_s1 + $0x158] sm:$0xff] %v188_v49  ;;  %v444_v49 = vxor.u32 2147483648, %v620_v44 }
  0x1c   :  { %559 = vst [vmem:[%s1033_s1 + $0x60] sm:$0xff] %v196_v51  ;;  %v452_v51 = vxor.u32 2147483648, %v622_v46 }
  0x1d   :  { %561 = vst [vmem:[%s1033_s1 + $0x160] sm:$0xff] %v204_v53  ;;  %v460_v53 = vxor.u32 2147483648, %v624_v48 }
  0x1e   :  { %563 = vst [vmem:[%s1033_s1 + $0x68] sm:$0xff] %v212_v55  ;;  %v468_v55 = vxor.u32 2147483648, %v626_v50 }
  0x1f   :  { %565 = vst [vmem:[%s1033_s1 + $0x168] sm:$0xff] %v220_v57  ;;  %v476_v57 = vxor.u32 2147483648, %v628_v52 }
  0x20   :  { %567 = vst [vmem:[%s1033_s1 + $0x70] sm:$0xff] %v228_v59  ;;  %v484_v59 = vxor.u32 2147483648, %v630_v54 }
  0x21   :  { %569 = vst [vmem:[%s1033_s1 + $0x170] sm:$0xff] %v236_v61  ;;  %v492_v61 = vxor.u32 2147483648, %v632_v56 }
  0x22   :  { %571 = vst [vmem:[%s1033_s1 + $0x78] sm:$0xff] %v244_v63  ;;  %v508_v63 = vxor.u32 2147483648, %v636_v60 }
  0x23   :  { %573 = vst [vmem:[%s1033_s1 + $0x178] sm:$0xff] %v252_v1 }
  0x24   :  { %575 = vst [vmem:[%s1033_s1 + $0x80] sm:$0xff] %v260_v3 }
  0x25   :  { %577 = vst [vmem:[%s1033_s1 + $0x180] sm:$0xff] %v268_v5 }
  0x26   :  { %579 = vst [vmem:[%s1033_s1 + $0x88] sm:$0xff] %v276_v7 }
  0x27   :  { %581 = vst [vmem:[%s1033_s1 + $0x188] sm:$0xff] %v284_v9 }
  0x28   :  { %583 = vst [vmem:[%s1033_s1 + $0x90] sm:$0xff] %v292_v11 }
  0x29   :  { %585 = vst [vmem:[%s1033_s1 + $0x190] sm:$0xff] %v300_v13 }
  0x2a   :  { %587 = vst [vmem:[%s1033_s1 + $0x98] sm:$0xff] %v308_v15 }
  0x2b   :  { %589 = vst [vmem:[%s1033_s1 + $0x198] sm:$0xff] %v316_v17 }
  0x2c   :  { %591 = vst [vmem:[%s1033_s1 + $0xa0] sm:$0xff] %v324_v19 }
  0x2d   :  { %593 = vst [vmem:[%s1033_s1 + $0x1a0] sm:$0xff] %v332_v21 }
  0x2e   :  { %595 = vst [vmem:[%s1033_s1 + $0xa8] sm:$0xff] %v340_v23 }
  0x2f   :  { %597 = vst [vmem:[%s1033_s1 + $0x1a8] sm:$0xff] %v348_v25 }
  0x30   :  { %599 = vst [vmem:[%s1033_s1 + $0xb0] sm:$0xff] %v356_v27 }
  0x31   :  { %601 = vst [vmem:[%s1033_s1 + $0x1b0] sm:$0xff] %v364_v29 }
  0x32   :  { %603 = vst [vmem:[%s1033_s1 + $0xb8] sm:$0xff] %v372_v31 }
  0x33   :  { %605 = vst [vmem:[%s1033_s1 + $0x1b8] sm:$0xff] %v380_v33 }
  0x34   :  { %607 = vst [vmem:[%s1033_s1 + $0xc0] sm:$0xff] %v388_v35 }
  0x35   :  { %609 = vst [vmem:[%s1033_s1 + $0x1c0] sm:$0xff] %v396_v37 }
  0x36   :  { %611 = vst [vmem:[%s1033_s1 + $0xc8] sm:$0xff] %v404_v39 }
  0x37   :  { %613 = vst [vmem:[%s1033_s1 + $0x1c8] sm:$0xff] %v412_v41 }
  0x38   :  { %615 = vst [vmem:[%s1033_s1 + $0xd0] sm:$0xff] %v420_v43 }
  0x39   :  { %617 = vst [vmem:[%s1033_s1 + $0x1d0] sm:$0xff] %v428_v45 }
  0x3a   :  { %619 = vst [vmem:[%s1033_s1 + $0xd8] sm:$0xff] %v436_v47 }
  0x3b   :  { %621 = vst [vmem:[%s1033_s1 + $0x1d8] sm:$0xff] %v444_v49 }
  0x3c   :  { %623 = vst [vmem:[%s1033_s1 + $0xe0] sm:$0xff] %v452_v51 }
  0x3d   :  { %625 = vst [vmem:[%s1033_s1 + $0x1e0] sm:$0xff] %v460_v53 }
  0x3e   :  { %627 = vst [vmem:[%s1033_s1 + $0xe8] sm:$0xff] %v468_v55 }
  0x3f   :  { %629 = vst [vmem:[%s1033_s1 + $0x1e8] sm:$0xff] %v476_v57 }
  0x40   :  { %631 = vst [vmem:[%s1033_s1 + $0xf0] sm:$0xff] %v484_v59 }
  0x41   :  { %633 = vst [vmem:[%s1033_s1 + $0x1f0] sm:$0xff] %v492_v61 }
  0x42   :  { %635 = vst [vmem:[%s1033_s1 + $0xf8] sm:$0xff] %v500_v62 }
  0x43   :  { %637 = vst [vmem:[%s1033_s1 + $0x1f8] sm:$0xff] %v508_v63 }

// kernel: forward.14
= control target key start
LH: loop header
LB: loop body
LE: loop exit
PB: predicated region body
PF: predicated region fallthrough
CT: control target
= control target key end

     0   :  { %s834_s9 = smov 0   ;;  %s836_s10 = smov 0   ;;  %s1052_s0 = inlined_call_operand.vmem [shape: f32[2,256,5], index: 0, kind: input, shape index: {}]   ;;  %s1053_s1 = inlined_call_operand.vmem [shape: f32[2,64,5], index: 1, kind: input, shape index: {}]   ;;  %s1054_s2 = inlined_call_operand.vmem [shape: f32[2,256,64], index: 2, kind: output, shape index: {}]  }
   0x1   :  { %s838_s11 = smov 0  }
   0x2 LB: > { %s31_s12 = sadd.s32 1, %s813_s10  ;;  %p695_p0 = scmp.ge.s32.totalorder %s817_s11, 1  ;;  %s817_s11 = sphi %s838_s11, %s12_s11   ;;  %s813_s10 = sphi %s836_s10, %s1056_s10   ;;  %s809_s9 = sphi %s834_s9, %s1055_s9  }
   0x3   : > { %p33_p1 = scmp.ge.s32.totalorder %s31_s12, 2  ;;  %p159_p2 = scmp.lt.s32.totalorder %s817_s11, 3 }
   0x5   : > { %s1058_s12 = smov (%p33_p1, %s31_s12), 0  ;;  %p160_p3 = pnand %p695_p0, %p159_p2 }
   0x6   : > { %p202_p4 = scmp.lt.s32.totalorder (!%p160_p3), %s809_s9, 1 }
   0x7   : > { %163 = sbr.rel (%p160_p3) target bundleno = 239 (0xef), region = 28 }
   0xc   : > { %s1060_s9 = smov (!%p202_p4, %s809_s9), 1  ;;  %vm274_vm0 = vcmask 39936   ;;  %vm540_vm1 = vcmask 523264  }
   0xd   : > { %s745_s13 = sshll.u32 %s1060_s9, 6  ;;  %s744_s17 = sshll.u32 %s1060_s9, 8 }
   0xe   : > { %s858_s16 = scalar_lea.vmem %s1053_s1, %s745_s13  ;;  %s899_s20 = scalar_lea.vmem %s1052_s0, %s744_s17 }
   0xf   : > { %v273_v0 = vld [vmem:[%s858_s16 + $0x38] sm:$0xff]  ;;  %v272_v1 = vld [vmem:[%s858_s16 + $0x30] sm:$0xff]  ;;  %v271_v2 = vld [vmem:[%s858_s16 + $0x28] sm:$0xff]  ;;  %s977_s23 = scalar_lea.vmem %s1054_s2, %s744_s17 }
  0x10   : > { %748 = vmatpush.xpose.msk.msra.mxu2 %vm274_vm0, %v273_v0  ;;  %749 = vmatpush.xpose.msk.msra.mxu3 %vm274_vm0, %v273_v0  ;;  %v270_v3 = vld [vmem:[%s858_s16 + $0x20] sm:$0xff]  ;;  %v269_v4 = vld [vmem:[%s858_s16 + $0x18] sm:$0xff]  ;;  %v268_v5 = vld [vmem:[%s858_s16 + $0x10] sm:$0xff] }
  0x11   : > { %702 = vmatpush.xpose.msk.msra.mxu0 %vm274_vm0, %v273_v0  ;;  %747 = vmatpush.xpose.msk.msra.mxu1 %vm274_vm0, %v273_v0  ;;  %v267_v6 = vld [vmem:[%s858_s16 + $0x8] sm:$0xff]  ;;  %v266_v7 = vld [vmem:[%s858_s16] sm:$0xff]  ;;  %v252_v16 = vld [vmem:[%s899_s20 + $0x90] sm:$0xff] }
  0x12   : > { %v250_v8 = vld [vmem:[%s899_s20 + $0x80] sm:$0xff]  ;;  %v251_v12 = vld [vmem:[%s899_s20 + $0x88] sm:$0xff]  ;;  %v260_v17 = vld [vmem:[%s899_s20 + $0xd0] sm:$0xff] }
  0x13   : > { %v258_v9 = vld [vmem:[%s899_s20 + $0xc0] sm:$0xff]  ;;  %v259_v13 = vld [vmem:[%s899_s20 + $0xc8] sm:$0xff]  ;;  %v236_v18 = vld [vmem:[%s899_s20 + $0x10] sm:$0xff] }
  0x14   : > { %751 = vmatpush.xpose.msk.msra.mxu2 %vm274_vm0, %v272_v1  ;;  %752 = vmatpush.xpose.msk.msra.mxu3 %vm274_vm0, %v272_v1  ;;  %v234_v10 = vld [vmem:[%s899_s20] sm:$0xff]  ;;  %v235_v14 = vld [vmem:[%s899_s20 + $0x8] sm:$0xff]  ;;  %v244_v19 = vld [vmem:[%s899_s20 + $0x50] sm:$0xff] }
  0x15   : > { %703 = vmatpush.xpose.msk.msra.mxu0 %vm274_vm0, %v272_v1  ;;  %750 = vmatpush.xpose.msk.msra.mxu1 %vm274_vm0, %v272_v1  ;;  %v242_v11 = vld [vmem:[%s899_s20 + $0x40] sm:$0xff]  ;;  %v243_v15 = vld [vmem:[%s899_s20 + $0x48] sm:$0xff]  ;;  %v253_v20 = vld [vmem:[%s899_s20 + $0x98] sm:$0xff] }
  0x16   : > { %v261_v21 = vld [vmem:[%s899_s20 + $0xd8] sm:$0xff]  ;;  %v254_v24 = vld [vmem:[%s899_s20 + $0xa0] sm:$0xff]  ;;  %v255_v28 = vld [vmem:[%s899_s20 + $0xa8] sm:$0xff] }
  0x17   : > { %v237_v22 = vld [vmem:[%s899_s20 + $0x18] sm:$0xff]  ;;  %v262_v25 = vld [vmem:[%s899_s20 + $0xe0] sm:$0xff]  ;;  %v263_v29 = vld [vmem:[%s899_s20 + $0xe8] sm:$0xff] }
  0x18   : > { %754 = vmatpush.xpose.msk.msra.mxu2 %vm274_vm0, %v271_v2  ;;  %755 = vmatpush.xpose.msk.msra.mxu3 %vm274_vm0, %v271_v2  ;;  %v245_v23 = vld [vmem:[%s899_s20 + $0x58] sm:$0xff]  ;;  %v238_v26 = vld [vmem:[%s899_s20 + $0x20] sm:$0xff]  ;;  %v239_v30 = vld [vmem:[%s899_s20 + $0x28] sm:$0xff] }
  0x19   : > { %704 = vmatpush.xpose.msk.msra.mxu0 %vm274_vm0, %v271_v2  ;;  %753 = vmatpush.xpose.msk.msra.mxu1 %vm274_vm0, %v271_v2  ;;  %v246_v27 = vld [vmem:[%s899_s20 + $0x60] sm:$0xff]  ;;  %v247_v31 = vld [vmem:[%s899_s20 + $0x68] sm:$0xff]  ;;  %v256_v32 = vld [vmem:[%s899_s20 + $0xb0] sm:$0xff] }
  0x1a   : > { %v264_v33 = vld [vmem:[%s899_s20 + $0xf0] sm:$0xff]  ;;  %v257_v36 = vld [vmem:[%s899_s20 + $0xb8] sm:$0xff] }
  0x1b   : > { %v240_v34 = vld [vmem:[%s899_s20 + $0x30] sm:$0xff]  ;;  %v265_v37 = vld [vmem:[%s899_s20 + $0xf8] sm:$0xff] }
  0x1c   : > { %757 = vmatpush.xpose.msk.msra.mxu2 %vm274_vm0, %v270_v3  ;;  %758 = vmatpush.xpose.msk.msra.mxu3 %vm274_vm0, %v270_v3  ;;  %v248_v35 = vld [vmem:[%s899_s20 + $0x70] sm:$0xff]  ;;  %v241_v38 = vld [vmem:[%s899_s20 + $0x38] sm:$0xff] }
  0x1d   : > { %705 = vmatpush.xpose.msk.msra.mxu0 %vm274_vm0, %v270_v3  ;;  %756 = vmatpush.xpose.msk.msra.mxu1 %vm274_vm0, %v270_v3  ;;  %v249_v39 = vld [vmem:[%s899_s20 + $0x78] sm:$0xff] }
  0x20   : > { %760 = vmatpush.xpose.msk.msra.mxu2 %vm274_vm0, %v269_v4  ;;  %761 = vmatpush.xpose.msk.msra.mxu3 %vm274_vm0, %v269_v4 }
  0x21   : > { %706 = vmatpush.xpose.msk.msra.mxu0 %vm274_vm0, %v269_v4  ;;  %759 = vmatpush.xpose.msk.msra.mxu1 %vm274_vm0, %v269_v4 }
  0x24   : > { %763 = vmatpush.xpose.msk.msra.mxu2 %vm274_vm0, %v268_v5  ;;  %764 = vmatpush.xpose.msk.msra.mxu3 %vm274_vm0, %v268_v5 }
  0x25   : > { %707 = vmatpush.xpose.msk.msra.mxu0 %vm274_vm0, %v268_v5  ;;  %762 = vmatpush.xpose.msk.msra.mxu1 %vm274_vm0, %v268_v5 }
  0x28   : > { %766 = vmatpush.xpose.msk.msra.mxu2 %vm274_vm0, %v267_v6  ;;  %767 = vmatpush.xpose.msk.msra.mxu3 %vm274_vm0, %v267_v6 }
  0x29   : > { %708 = vmatpush.xpose.msk.msra.mxu0 %vm274_vm0, %v267_v6  ;;  %765 = vmatpush.xpose.msk.msra.mxu1 %vm274_vm0, %v267_v6 }
  0x2c   : > { %769 = vmatpush.xpose.msk.msra.mxu2 %vm274_vm0, %v266_v7  ;;  %770 = vmatpush.xpose.msk.msra.mxu3 %vm274_vm0, %v266_v7 }
  0x2d   : > { %709 = vmatpush.xpose.msk.msra.mxu0 %vm274_vm0, %v266_v7  ;;  %768 = vmatpush.xpose.msk.msra.mxu1 %vm274_vm0, %v266_v7 }
  0x2f   : > { %726 = vmatmul.msk.f32.vlgmr.msra.gmra.mxu2 %vm274_vm0, %v250_v8  ;;  %734 = vmatmul.msk.f32.vlgmr.msra.gmra.mxu3 %vm274_vm0, %v258_v9 }
  0x30   : > { %710 = vmatmul.msk.f32.vlgmr.msra.gmra.mxu0 %vm274_vm0, %v234_v10  ;;  %718 = vmatmul.msk.f32.vlgmr.msra.gmra.mxu1 %vm274_vm0, %v242_v11 }
  0x37   : > { %727 = vmatmul.msk.f32.gmra.mxu2 %vm274_vm0, %v251_v12  ;;  %735 = vmatmul.msk.f32.gmra.mxu3 %vm274_vm0, %v259_v13 }
  0x38   : > { %711 = vmatmul.msk.f32.gmra.mxu0 %vm274_vm0, %v235_v14  ;;  %719 = vmatmul.msk.f32.gmra.mxu1 %vm274_vm0, %v243_v15 }
  0x3f   : > { %728 = vmatmul.msk.f32.gmra.mxu2 %vm274_vm0, %v252_v16  ;;  %736 = vmatmul.msk.f32.gmra.mxu3 %vm274_vm0, %v260_v17 }
  0x40   : > { %712 = vmatmul.msk.f32.gmra.mxu0 %vm274_vm0, %v236_v18  ;;  %720 = vmatmul.msk.f32.gmra.mxu1 %vm274_vm0, %v244_v19 }
  0x47   : > { %729 = vmatmul.msk.f32.gmra.mxu2 %vm274_vm0, %v253_v20  ;;  %737 = vmatmul.msk.f32.gmra.mxu3 %vm274_vm0, %v261_v21 }
  0x48   : > { %713 = vmatmul.msk.f32.gmra.mxu0 %vm274_vm0, %v237_v22  ;;  %721 = vmatmul.msk.f32.gmra.mxu1 %vm274_vm0, %v245_v23 }
  0x4f   : > { %730 = vmatmul.msk.f32.gmra.mxu2 %vm274_vm0, %v254_v24  ;;  %738 = vmatmul.msk.f32.gmra.mxu3 %vm274_vm0, %v262_v25 }
  0x50   : > { %714 = vmatmul.msk.f32.gmra.mxu0 %vm274_vm0, %v238_v26  ;;  %722 = vmatmul.msk.f32.gmra.mxu1 %vm274_vm0, %v246_v27 }
  0x57   : > { %731 = vmatmul.msk.f32.gmra.mxu2 %vm274_vm0, %v255_v28  ;;  %739 = vmatmul.msk.f32.gmra.mxu3 %vm274_vm0, %v263_v29 }
  0x58   : > { %715 = vmatmul.msk.f32.gmra.mxu0 %vm274_vm0, %v239_v30  ;;  %723 = vmatmul.msk.f32.gmra.mxu1 %vm274_vm0, %v247_v31 }
  0x5f   : > { %732 = vmatmul.msk.f32.gmra.mxu2 %vm274_vm0, %v256_v32  ;;  %740 = vmatmul.msk.f32.gmra.mxu3 %vm274_vm0, %v264_v33 }
  0x60   : > { %716 = vmatmul.msk.f32.gmra.mxu0 %vm274_vm0, %v240_v34  ;;  %724 = vmatmul.msk.f32.gmra.mxu1 %vm274_vm0, %v248_v35 }
  0x67   : > { %733 = vmatmul.msk.f32.gmra.mxu2 %vm274_vm0, %v257_v36  ;;  %741 = vmatmul.msk.f32.gmra.mxu3 %vm274_vm0, %v265_v37 }
  0x68   : > { %717 = vmatmul.msk.f32.gmra.mxu0 %vm274_vm0, %v241_v38  ;;  %725 = vmatmul.msk.f32.gmra.mxu1 %vm274_vm0, %v249_v39 }
  0xad   : > { %v412_v40 = vpop.f32.mrf.mxu0  ;;  %v436_v41 = vpop.f32.mrf.mxu1 }
  0xae   : > { %v508_v42 = vmax.f32 %v412_v40, 0.0  ;;  %v516_v43 = vmax.f32 %v436_v41, 0.0 }
  0xb0   : > { %541 = vst.msk [vmem:[%s977_s23] sm:$0xff] %vm540_vm1, %v508_v42 }
  0xb1   : > { %549 = vst.msk [vmem:[%s977_s23 + $0x40] sm:$0xff] %vm540_vm1, %v516_v43 }
  0xb2   : > { %v460_v44 = vpop.f32.mrf.mxu2  ;;  %v484_v45 = vpop.f32.mrf.mxu3 }
  0xb3   : > { %v524_v46 = vmax.f32 %v460_v44, 0.0  ;;  %v532_v47 = vmax.f32 %v484_v45, 0.0 }
  0xb5   : > { %557 = vst.msk [vmem:[%s977_s23 + $0x80] sm:$0xff] %vm540_vm1, %v524_v46  ;;  %v415_v48 = vpop.f32.mrf.mxu0  ;;  %v439_v49 = vpop.f32.mrf.mxu1 }
  0xb6   : > { %565 = vst.msk [vmem:[%s977_s23 + $0xc0] sm:$0xff] %vm540_vm1, %v532_v47  ;;  %v509_v50 = vmax.f32 %v415_v48, 0.0  ;;  %v517_v51 = vmax.f32 %v439_v49, 0.0 }
  0xb8   : > { %542 = vst.msk [vmem:[%s977_s23 + $0x8] sm:$0xff] %vm540_vm1, %v509_v50 }
  0xb9   : > { %550 = vst.msk [vmem:[%s977_s23 + $0x48] sm:$0xff] %vm540_vm1, %v517_v51 }
  0xba   : > { %v463_v52 = vpop.f32.mrf.mxu2  ;;  %v487_v53 = vpop.f32.mrf.mxu3 }
  0xbb   : > { %v525_v54 = vmax.f32 %v463_v52, 0.0  ;;  %v533_v55 = vmax.f32 %v487_v53, 0.0 }
  0xbd   : > { %558 = vst.msk [vmem:[%s977_s23 + $0x88] sm:$0xff] %vm540_vm1, %v525_v54  ;;  %v418_v56 = vpop.f32.mrf.mxu0  ;;  %v442_v57 = vpop.f32.mrf.mxu1 }
  0xbe   : > { %566 = vst.msk [vmem:[%s977_s23 + $0xc8] sm:$0xff] %vm540_vm1, %v533_v55  ;;  %v510_v58 = vmax.f32 %v418_v56, 0.0  ;;  %v518_v59 = vmax.f32 %v442_v57, 0.0 }
  0xc0   : > { %543 = vst.msk [vmem:[%s977_s23 + $0x10] sm:$0xff] %vm540_vm1, %v510_v58 }
  0xc1   : > { %551 = vst.msk [vmem:[%s977_s23 + $0x50] sm:$0xff] %vm540_vm1, %v518_v59 }
  0xc2   : > { %v466_v60 = vpop.f32.mrf.mxu2  ;;  %v490_v61 = vpop.f32.mrf.mxu3 }
  0xc3   : > { %v526_v62 = vmax.f32 %v466_v60, 0.0  ;;  %v534_v63 = vmax.f32 %v490_v61, 0.0 }
  0xc5   : > { %559 = vst.msk [vmem:[%s977_s23 + $0x90] sm:$0xff] %vm540_vm1, %v526_v62  ;;  %v421_v0 = vpop.f32.mrf.mxu0  ;;  %v445_v1 = vpop.f32.mrf.mxu1 }
  0xc6   : > { %567 = vst.msk [vmem:[%s977_s23 + $0xd0] sm:$0xff] %vm540_vm1, %v534_v63  ;;  %v511_v2 = vmax.f32 %v421_v0, 0.0  ;;  %v519_v3 = vmax.f32 %v445_v1, 0.0 }
  0xc8   : > { %544 = vst.msk [vmem:[%s977_s23 + $0x18] sm:$0xff] %vm540_vm1, %v511_v2 }
  0xc9   : > { %552 = vst.msk [vmem:[%s977_s23 + $0x58] sm:$0xff] %vm540_vm1, %v519_v3 }
  0xca   : > { %v469_v4 = vpop.f32.mrf.mxu2  ;;  %v493_v5 = vpop.f32.mrf.mxu3 }
  0xcb   : > { %v527_v6 = vmax.f32 %v469_v4, 0.0  ;;  %v535_v7 = vmax.f32 %v493_v5, 0.0 }
  0xcd   : > { %560 = vst.msk [vmem:[%s977_s23 + $0x98] sm:$0xff] %vm540_vm1, %v527_v6  ;;  %v424_v8 = vpop.f32.mrf.mxu0  ;;  %v448_v9 = vpop.f32.mrf.mxu1 }
  0xce   : > { %568 = vst.msk [vmem:[%s977_s23 + $0xd8] sm:$0xff] %vm540_vm1, %v535_v7  ;;  %v512_v10 = vmax.f32 %v424_v8, 0.0  ;;  %v520_v11 = vmax.f32 %v448_v9, 0.0 }
  0xd0   : > { %545 = vst.msk [vmem:[%s977_s23 + $0x20] sm:$0xff] %vm540_vm1, %v512_v10 }
  0xd1   : > { %553 = vst.msk [vmem:[%s977_s23 + $0x60] sm:$0xff] %vm540_vm1, %v520_v11 }
  0xd2   : > { %v472_v12 = vpop.f32.mrf.mxu2  ;;  %v496_v13 = vpop.f32.mrf.mxu3 }
  0xd3   : > { %v528_v14 = vmax.f32 %v472_v12, 0.0  ;;  %v536_v15 = vmax.f32 %v496_v13, 0.0 }
  0xd5   : > { %561 = vst.msk [vmem:[%s977_s23 + $0xa0] sm:$0xff] %vm540_vm1, %v528_v14  ;;  %v427_v16 = vpop.f32.mrf.mxu0  ;;  %v451_v17 = vpop.f32.mrf.mxu1 }
  0xd6   : > { %569 = vst.msk [vmem:[%s977_s23 + $0xe0] sm:$0xff] %vm540_vm1, %v536_v15  ;;  %v513_v18 = vmax.f32 %v427_v16, 0.0  ;;  %v521_v19 = vmax.f32 %v451_v17, 0.0 }
  0xd8   : > { %546 = vst.msk [vmem:[%s977_s23 + $0x28] sm:$0xff] %vm540_vm1, %v513_v18 }
  0xd9   : > { %554 = vst.msk [vmem:[%s977_s23 + $0x68] sm:$0xff] %vm540_vm1, %v521_v19 }
  0xda   : > { %v475_v20 = vpop.f32.mrf.mxu2  ;;  %v499_v21 = vpop.f32.mrf.mxu3 }
  0xdb   : > { %v529_v22 = vmax.f32 %v475_v20, 0.0  ;;  %v537_v23 = vmax.f32 %v499_v21, 0.0 }
  0xdd   : > { %562 = vst.msk [vmem:[%s977_s23 + $0xa8] sm:$0xff] %vm540_vm1, %v529_v22  ;;  %v430_v24 = vpop.f32.mrf.mxu0  ;;  %v454_v25 = vpop.f32.mrf.mxu1 }
  0xde   : > { %570 = vst.msk [vmem:[%s977_s23 + $0xe8] sm:$0xff] %vm540_vm1, %v537_v23  ;;  %v514_v26 = vmax.f32 %v430_v24, 0.0  ;;  %v522_v27 = vmax.f32 %v454_v25, 0.0 }
  0xe0   : > { %547 = vst.msk [vmem:[%s977_s23 + $0x30] sm:$0xff] %vm540_vm1, %v514_v26 }
  0xe1   : > { %555 = vst.msk [vmem:[%s977_s23 + $0x70] sm:$0xff] %vm540_vm1, %v522_v27 }
  0xe2   : > { %v478_v28 = vpop.f32.mrf.mxu2  ;;  %v502_v29 = vpop.f32.mrf.mxu3 }
  0xe3   : > { %v530_v30 = vmax.f32 %v478_v28, 0.0  ;;  %v538_v31 = vmax.f32 %v502_v29, 0.0 }
  0xe5   : > { %563 = vst.msk [vmem:[%s977_s23 + $0xb0] sm:$0xff] %vm540_vm1, %v530_v30  ;;  %v433_v32 = vpop.f32.mrf.mxu0  ;;  %v457_v33 = vpop.f32.mrf.mxu1 }
  0xe6   : > { %571 = vst.msk [vmem:[%s977_s23 + $0xf0] sm:$0xff] %vm540_vm1, %v538_v31  ;;  %v515_v34 = vmax.f32 %v433_v32, 0.0  ;;  %v523_v35 = vmax.f32 %v457_v33, 0.0 }
  0xe8   : > { %548 = vst.msk [vmem:[%s977_s23 + $0x38] sm:$0xff] %vm540_vm1, %v515_v34 }
  0xe9   : > { %556 = vst.msk [vmem:[%s977_s23 + $0x78] sm:$0xff] %vm540_vm1, %v523_v35 }
  0xea   : > { %v481_v36 = vpop.f32.mrf.mxu2  ;;  %v505_v37 = vpop.f32.mrf.mxu3 }
  0xeb   : > { %v531_v38 = vmax.f32 %v481_v36, 0.0  ;;  %v539_v39 = vmax.f32 %v505_v37, 0.0 }
  0xed   : > { %564 = vst.msk [vmem:[%s977_s23 + $0xb8] sm:$0xff] %vm540_vm1, %v531_v38 }
  0xee   : > { %572 = vst.msk [vmem:[%s977_s23 + $0xf8] sm:$0xff] %vm540_vm1, %v539_v39 }
  0xef PF: > { %s12_s11 = sadd.s32 1, %s817_s11   ;;  %s1055_s9 = smov %s813_s10 }
  0xf0   : > { %p9_p5 = scmp.ge.s32.totalorder %s12_s11, 4   ;;  %s1056_s10 = smov %s1058_s12 }
  0xf2   :  { %11 = sbr.rel (!%p9_p5) target bundleno = 2 (0x2), region = 61 }

// kernel: forward.15
= control target key start
LH: loop header
LB: loop body
LE: loop exit
PB: predicated region body
PF: predicated region fallthrough
CT: control target
= control target key end

     0   :  { %s686_s12 = smov 0   ;;  %s688_s13 = smov 0   ;;  %s845_s0 = inlined_call_operand.vmem [shape: f32[40,512], index: 0, kind: input, shape index: {}]   ;;  %s846_s1 = inlined_call_operand.vmem [shape: f32[2,40,40], index: 1, kind: input, shape index: {}]   ;;  %s847_s2 = inlined_call_operand.vmem [shape: f32[2,40,1], index: 2, kind: input, shape index: {}]   ;;  %s848_s3 = inlined_call_operand.vmem [shape: f32[32,512], index: 3, kind: output, shape index: {}]  }
   0x1   :  { %s690_s14 = smov 0  }
   0x2 LB: > { %s566_s15 = sadd.s32 4294967295, %s663_s14   ;;  %s703_s16 = sadd.s32 1, %s663_s14   ;;  %s663_s14 = sphi %s690_s14, %s852_s14   ;;  %s659_s13 = sphi %s688_s13, %s851_s13   ;;  %s655_s12 = sphi %s686_s12, %s850_s12  }
   0x3   : > { %s17_s17 = ssub.s32 %s663_s14, %s703_s16  ;;  %s20_s18 = sadd.s32 1, %s659_s13 }
   0x4   : > { %p18_p0 = scmp.eq.s32.totalorder %s17_s17, 0  ;;  %p27_p1 = scmp.ne.s32.totalorder %s659_s13, %s655_s12 }
   0x5   : > { %p28_p2 = scmp.eq.s32.totalorder %s663_s14, 0  ;;  %p99_p3 = scmp.eq.s32.totalorder %s566_s15, 1 }
   0x6   : > { %s714_s19 = scalar_select %p18_p0, %s659_s13, %s20_s18  }
   0x7   : > { %p29_p4 = por %p28_p2, %p27_p1  ;;  %p716_p5 = por %p99_p3, %p27_p1 }
   0x8   : > { %p569_p6 = scmp.ge.s32.totalorder %s663_s14, 2 }
   0xa   : > { %127 = sbr.rel (%p569_p6) target bundleno = 29 (0x1d), region = 24 }
   0xf   : > { %130 = sbr.rel (!%p29_p4) target bundleno = 29 (0x1d), region = 28  ;;  %s132_s21 = sand.u32 (%p29_p4), 1, %s659_s13  }
  0x10   : > { %s609_s22 = sshll.u32 (%p29_p4), %s663_s14, 4  ;;  %s611_s23 = smul.u32 (%p29_p4), 80, %s132_s21 }
  0x11   : > { %s137_s26 = scalar_lea.vmem (%p29_p4), %s845_s0, %s609_s22 }
  0x12   : > { %v150_v0 = vld [vmem:[%s137_s26] sm:$0xff] (%p29_p4)  ;;  %v152_v1 = vld [vmem:[%s137_s26 + $0x8] sm:$0xff] (%p29_p4)  ;;  %s134_s27 = scalar_lea.vmem (%p29_p4), [#allocation2], %s611_s23 }
  0x13   : > { %v154_v2 = vld [vmem:[%s137_s26 + $0x20] sm:$0xff] (%p29_p4)  ;;  %151 = vst [vmem:[%s134_s27] sm:$0xff] (%p29_p4), %v150_v0  ;;  %v156_v3 = vld [vmem:[%s137_s26 + $0x28] sm:$0xff] (%p29_p4) }
  0x14   : > { %153 = vst [vmem:[%s134_s27 + $0x8] sm:$0xff] %v152_v1  ;;  %v158_v4 = vld [vmem:[%s137_s26 + $0x40] sm:$0xff]  ;;  %v160_v5 = vld [vmem:[%s137_s26 + $0x48] sm:$0xff] }
  0x15   : > { %155 = vst [vmem:[%s134_s27 + $0x10] sm:$0xff] %v154_v2  ;;  %v162_v6 = vld [vmem:[%s137_s26 + $0x60] sm:$0xff]  ;;  %v164_v7 = vld [vmem:[%s137_s26 + $0x68] sm:$0xff] }
  0x16   : > { %157 = vst [vmem:[%s134_s27 + $0x18] sm:$0xff] %v156_v3  ;;  %v166_v8 = vld [vmem:[%s137_s26 + $0x80] sm:$0xff]  ;;  %v168_v9 = vld [vmem:[%s137_s26 + $0x88] sm:$0xff] }
  0x17   : > { %159 = vst [vmem:[%s134_s27 + $0x20] sm:$0xff] %v158_v4 }
  0x18   : > { %161 = vst [vmem:[%s134_s27 + $0x28] sm:$0xff] %v160_v5 }
  0x19   : > { %163 = vst [vmem:[%s134_s27 + $0x30] sm:$0xff] %v162_v6 }
  0x1a   : > { %165 = vst [vmem:[%s134_s27 + $0x38] sm:$0xff] %v164_v7 }
  0x1b   : > { %167 = vst [vmem:[%s134_s27 + $0x40] sm:$0xff] %v166_v8 }
  0x1c   : > { %169 = vst [vmem:[%s134_s27 + $0x48] sm:$0xff] %v168_v9 }
  0x1d PF: > { %p572_p7 = scmp.ge.s32.totalorder %s663_s14, 1  ;;  %p174_p8 = scmp.lt.s32.totalorder %s663_s14, 3 }
  0x1f   : > { %p175_p9 = pnand %p572_p7, %p174_p8 }
  0x20   : > { %s181_s28 = sand.u32 (!%p175_p9), 1, %s655_s12  }
  0x21   : > { %178 = sbr.rel (%p175_p9) target bundleno = 392 (0x188), region = 51 }
  0x22   : > { %s612_s4 = smul.u32 (!%p175_p9), 80, %s181_s28 }
  0x24   : > { %s183_s7 = scalar_lea.vmem (!%p175_p9), [#allocation2], %s612_s4  ;;  %s573_s4 = sshll.u32 (!%p175_p9), %s181_s28, 6 }
  0x25   : > { %s810_s5 = scalar_lea.vmem (!%p175_p9), [#allocation3], %s573_s4 }
  0x26   : > { %v222_v10 = vld [vmem:[%s847_s2 + $0x10] sm:$0xff]  ;;  %v665_v11 = vmov 0   ;;  %v224_v12 = vld [vmem:[%s847_s2 + $0x20] sm:$0xff]  ;;  %v214_v14 = vld [vmem:[%s183_s7 + $0x48] sm:$0xff]  ;;  %vm250_vm0 = vcmask 326656   ;;  %s610_s12 = sshll.u32 (%p716_p5), %s566_s15, 4 }
  0x27   : > { %639 = vset.pattern.permute.xlu1 %v665_v11  ;;  %638 = vset.pattern.permute.xlu0 %v665_v11  ;;  %v213_v13 = vld [vmem:[%s183_s7 + $0x40] sm:$0xff]  ;;  %v211_v15 = vld [vmem:[%s183_s7 + $0x30] sm:$0xff]  ;;  %v212_v16 = vld [vmem:[%s183_s7 + $0x38] sm:$0xff] }
  0x28   : > { %237 = vperm.xlu1 %639, %v222_v10   ;;  %247 = vperm.xlu0 %638, %v224_v12   ;;  %v209_v17 = vld [vmem:[%s183_s7 + $0x20] sm:$0xff]  ;;  %v210_v18 = vld [vmem:[%s183_s7 + $0x28] sm:$0xff]  ;;  %v207_v21 = vld [vmem:[%s183_s7 + $0x10] sm:$0xff] }
  0x29   : > { %640 = vset.pattern.permute.xlu2 %v665_v11  ;;  %277 = vmatpush.msra.mxu0 %v213_v13  ;;  %v221_v19 = vld [vmem:[%s847_s2 + $0x8] sm:$0xff]  ;;  %v223_v20 = vld [vmem:[%s847_s2 + $0x18] sm:$0xff]  ;;  %v205_v23 = vld [vmem:[%s183_s7] sm:$0xff] }
  0x2a   : > { %309 = vmatpush.msra.mxu1 %v214_v14  ;;  %v208_v22 = vld [vmem:[%s183_s7 + $0x18] sm:$0xff]  ;;  %v206_v24 = vld [vmem:[%s183_s7 + $0x8] sm:$0xff]  ;;  %v215_v25 = vld [vmem:[%s846_s1] sm:$0xff]  ;;  %s478_s7 = scalar_lea.vmem (%p716_p5), %s848_s3, %s610_s12 }
  0x2b   : > { %278 = vmatpush.msra.mxu0 %v211_v15  ;;  %v220_v26 = vld [vmem:[%s847_s2] sm:$0xff]  ;;  %v590_v27 = vld [vmem:[%s847_s2 + $0x30] sm:$0xff]  ;;  %v591_v28 = vld [vmem:[%s847_s2 + $0x38] sm:$0xff] }
  0x2c   : > { %310 = vmatpush.msra.mxu1 %v212_v16  ;;  %227 = vperm.xlu2 %640, %v220_v26   ;;  %v216_v29 = vld [vmem:[%s846_s1 + $0x8] sm:$0xff]  ;;  %v217_v31 = vld [vmem:[%s846_s1 + $0x10] sm:$0xff]  ;;  %v592_v32 = vld [vmem:[%s847_s2 + $0x40] sm:$0xff] }
  0x2d   : > { %279 = vmatpush.msra.mxu0 %v209_v17  ;;  %v589_v30 = vld [vmem:[%s847_s2 + $0x28] sm:$0xff]  ;;  %v218_v33 = vld [vmem:[%s846_s1 + $0x18] sm:$0xff]  ;;  %v219_v34 = vld [vmem:[%s846_s1 + $0x20] sm:$0xff] }
  0x2e   : > { %311 = vmatpush.msra.mxu1 %v210_v18  ;;  %v584_v6 = vld [vmem:[%s846_s1 + $0x28] sm:$0xff]  ;;  %v585_v7 = vld [vmem:[%s846_s1 + $0x30] sm:$0xff]  ;;  %v586_v8 = vld [vmem:[%s846_s1 + $0x38] sm:$0xff] }
  0x2f   : > { %280 = vmatpush.msra.mxu0 %v207_v21  ;;  %v587_v9 = vld [vmem:[%s846_s1 + $0x40] sm:$0xff]  ;;  %v588_v10 = vld [vmem:[%s846_s1 + $0x48] sm:$0xff] }
  0x30   : > { %232 = vperm.xlu1 %639, %v221_v19   ;;  %242 = vperm.xlu0 %638, %v223_v20  }
  0x31   : > { %312 = vmatpush.msra.mxu1 %v208_v22  ;;  %281 = vmatpush.msra.mxu0 %v205_v23 }
  0x32   : > { %574 = vmatmul.msk.f32.vlgmr.msra.gmra.mxu0 %vm250_vm0, %v215_v25 }
  0x33   : > { %313 = vmatpush.msra.mxu1 %v206_v24 }
  0x34   : > { %579 = vmatmul.msk.f32.vlgmr.msra.gmra.mxu1 %vm250_vm0, %v215_v25  ;;  %354 = vperm.xlu2 %640, %v589_v30  }
  0x38   : > { %359 = vperm.xlu0 %638, %v590_v27   ;;  %364 = vperm.xlu1 %639, %v591_v28  }
  0x3a   : > { %575 = vmatmul.msk.f32.gmra.mxu0 %vm250_vm0, %v216_v29 }
  0x3c   : > { %580 = vmatmul.msk.f32.gmra.mxu1 %vm250_vm0, %v216_v29  ;;  %369 = vperm.xlu2 %640, %v592_v32  }
  0x42   : > { %576 = vmatmul.msk.f32.gmra.mxu0 %vm250_vm0, %v217_v31 }
  0x44   : > { %581 = vmatmul.msk.f32.gmra.mxu1 %vm250_vm0, %v217_v31 }
  0x4a   : > { %577 = vmatmul.msk.f32.gmra.mxu0 %vm250_vm0, %v218_v33 }
  0x4c   : > { %582 = vmatmul.msk.f32.gmra.mxu1 %vm250_vm0, %v218_v33 }
  0x52   : > { %578 = vmatmul.msk.f32.gmra.mxu0 %vm250_vm0, %v219_v34 }
  0x54   : > { %583 = vmatmul.msk.f32.gmra.mxu1 %vm250_vm0, %v219_v34 }
  0x86   : > { %v228_v57 = vpop.permute.xlu2 %227 }
  0x8e   : > { %v355_v11 = vpop.permute.xlu2 %354 }
  0x96   : > { %v370_v32 = vpop.permute.xlu2 %369 }
  0x9a   : > { %v248_v41 = vpop.permute.xlu0 %247  ;;  %v238_v42 = vpop.permute.xlu1 %237 }
  0xa2   : > { %v243_v45 = vpop.permute.xlu0 %242  ;;  %v233_v52 = vpop.permute.xlu1 %232 }
  0xaa   : > { %v360_v18 = vpop.permute.xlu0 %359  ;;  %v365_v25 = vpop.permute.xlu1 %364 }
  0xaf   : > { %v283_v35 = vpop.f32.mrf.mxu0 }
  0xb0   : > { %v284_v62 = vadd.f32 %v283_v35, %v228_v57 }
  0xb1   : > { %v315_v36 = vpop.f32.mrf.mxu1 }
  0xb2   : > { %v316_v63 = vadd.f32 %v315_v36, %v228_v57  ;;  %v330_v4 = vmax.f32 %v284_v62, 0.0 }
  0xb4   : > { %v331_v5 = vmax.f32 %v316_v63, 0.0 }
  0xb7   : > { %v286_v37 = vpop.f32.mrf.mxu0 }
  0xb8   : > { %v287_v58 = vadd.f32 %v286_v37, %v233_v52 }
  0xb9   : > { %v318_v38 = vpop.f32.mrf.mxu1 }
  0xba   : > { %v319_v59 = vadd.f32 %v318_v38, %v233_v52  ;;  %v332_v2 = vmax.f32 %v287_v58, 0.0 }
  0xbc   : > { %v333_v3 = vmax.f32 %v319_v59, 0.0 }
  0xbf   : > { %v289_v39 = vpop.f32.mrf.mxu0 }
  0xc0   : > { %v290_v53 = vadd.f32 %v289_v39, %v238_v42 }
  0xc1   : > { %v321_v40 = vpop.f32.mrf.mxu1 }
  0xc2   : > { %v322_v54 = vadd.f32 %v321_v40, %v238_v42  ;;  %v334_v0 = vmax.f32 %v290_v53, 0.0 }
  0xc4   : > { %v335_v1 = vmax.f32 %v322_v54, 0.0 }
  0xc7   : > { %v292_v43 = vpop.f32.mrf.mxu0 }
  0xc8   : > { %v293_v48 = vadd.f32 %v292_v43, %v243_v45 }
  0xc9   : > { %v324_v44 = vpop.f32.mrf.mxu1 }
  0xca   : > { %v325_v49 = vadd.f32 %v324_v44, %v243_v45  ;;  %v336_v60 = vmax.f32 %v293_v48, 0.0 }
  0xcc   : > { %v337_v61 = vmax.f32 %v325_v49, 0.0 }
  0xcf   : > { %v295_v46 = vpop.f32.mrf.mxu0 }
  0xd0   : > { %v296_v50 = vadd.f32 %v295_v46, %v248_v41 }
  0xd1   : > { %v327_v47 = vpop.f32.mrf.mxu1 }
  0xd2   : > { %v328_v51 = vadd.f32 %v327_v47, %v248_v41  ;;  %v338_v55 = vmax.f32 %v296_v50, 0.0 }
  0xd4   : > { %v339_v56 = vmax.f32 %v328_v51, 0.0  ;;  %402 = vmatpush.msra.mxu2 %v338_v55 }
  0xd6   : > { %433 = vmatpush.msra.mxu3 %v339_v56  ;;  %403 = vmatpush.msra.mxu2 %v336_v60 }
  0xd8   : > { %434 = vmatpush.msra.mxu3 %v337_v61  ;;  %404 = vmatpush.msra.mxu2 %v334_v0 }
  0xda   : > { %435 = vmatpush.msra.mxu3 %v335_v1  ;;  %405 = vmatpush.msra.mxu2 %v332_v2 }
  0xdc   : > { %436 = vmatpush.msra.mxu3 %v333_v3  ;;  %406 = vmatpush.msra.mxu2 %v330_v4 }
  0xdd   : > { %594 = vmatmul.msk.f32.vlgmr.msra.gmra.mxu2 %vm250_vm0, %v584_v6 }
  0xde   : > { %437 = vmatpush.msra.mxu3 %v331_v5 }
  0xdf   : > { %599 = vmatmul.msk.f32.vlgmr.msra.gmra.mxu3 %vm250_vm0, %v584_v6 }
  0xe5   : > { %595 = vmatmul.msk.f32.gmra.mxu2 %vm250_vm0, %v585_v7 }
  0xe7   : > { %600 = vmatmul.msk.f32.gmra.mxu3 %vm250_vm0, %v585_v7 }
  0xed   : > { %596 = vmatmul.msk.f32.gmra.mxu2 %vm250_vm0, %v586_v8 }
  0xef   : > { %601 = vmatmul.msk.f32.gmra.mxu3 %vm250_vm0, %v586_v8 }
  0xf5   : > { %597 = vmatmul.msk.f32.gmra.mxu2 %vm250_vm0, %v587_v9 }
  0xf7   : > { %602 = vmatmul.msk.f32.gmra.mxu3 %vm250_vm0, %v587_v9 }
  0xfd   : > { %598 = vmatmul.msk.f32.gmra.mxu2 %vm250_vm0, %v588_v10 }
  0xff   : > { %603 = vmatmul.msk.f32.gmra.mxu3 %vm250_vm0, %v588_v10 }
 0x160   : > { %v408_v12 = vpop.f32.mrf.mxu2 }
 0x161   : > { %v409_v14 = vadd.f32 %v408_v12, %v355_v11 }
 0x162   : > { %v439_v13 = vpop.f32.mrf.mxu3 }
 0x163   : > { %v440_v15 = vadd.f32 %v439_v13, %v355_v11  ;;  %v453_v16 = vmax.f32 %v409_v14, 0.0 }
 0x165   : > { %v454_v17 = vmax.f32 %v440_v15, 0.0  ;;  %461 = vst [vmem:[%s810_s5] sm:$0xff] %v453_v16 }
 0x167   : > { %462 = vst [vmem:[%s810_s5 + $0x8] sm:$0xff] %v454_v17 }
 0x168   : > { %v411_v19 = vpop.f32.mrf.mxu2 }
 0x169   : > { %v412_v21 = vadd.f32 %v411_v19, %v360_v18 }
 0x16a   : > { %v442_v20 = vpop.f32.mrf.mxu3 }
 0x16b   : > { %v443_v22 = vadd.f32 %v442_v20, %v360_v18  ;;  %v455_v23 = vmax.f32 %v412_v21, 0.0 }
 0x16c   : > { %v491_v41 = vld [vmem:[%s810_s5] sm:$0xff] (%p716_p5) }
 0x16d   : > { %v456_v24 = vmax.f32 %v443_v22, 0.0  ;;  %463 = vst [vmem:[%s810_s5 + $0x10] sm:$0xff] %v455_v23 }
 0x16e   : > { %v493_v42 = vld [vmem:[%s810_s5 + $0x8] sm:$0xff] (%p716_p5)  ;;  %492 = vst [vmem:[%s478_s7] sm:$0xff] (%p716_p5), %v491_v41 }
 0x16f   : > { %464 = vst [vmem:[%s810_s5 + $0x18] sm:$0xff] %v456_v24 }
 0x170   : > { %v414_v26 = vpop.f32.mrf.mxu2  ;;  %494 = vst [vmem:[%s478_s7 + $0x8] sm:$0xff] (%p716_p5), %v493_v42 }
 0x171   : > { %v415_v28 = vadd.f32 %v414_v26, %v365_v25 }
 0x172   : > { %v445_v27 = vpop.f32.mrf.mxu3 }
 0x173   : > { %v446_v29 = vadd.f32 %v445_v27, %v365_v25  ;;  %v457_v30 = vmax.f32 %v415_v28, 0.0 }
 0x174   : > { %v495_v43 = vld [vmem:[%s810_s5 + $0x10] sm:$0xff] (%p716_p5) }
 0x175   : > { %v458_v31 = vmax.f32 %v446_v29, 0.0  ;;  %465 = vst [vmem:[%s810_s5 + $0x20] sm:$0xff] %v457_v30 }
 0x176   : > { %v497_v44 = vld [vmem:[%s810_s5 + $0x18] sm:$0xff] (%p716_p5)  ;;  %496 = vst [vmem:[%s478_s7 + $0x20] sm:$0xff] (%p716_p5), %v495_v43 }
 0x177   : > { %466 = vst [vmem:[%s810_s5 + $0x28] sm:$0xff] %v458_v31 }
 0x178   : > { %v417_v33 = vpop.f32.mrf.mxu2  ;;  %498 = vst [vmem:[%s478_s7 + $0x28] sm:$0xff] (%p716_p5), %v497_v44 }
 0x179   : > { %v418_v35 = vadd.f32 %v417_v33, %v370_v32 }
 0x17a   : > { %v448_v34 = vpop.f32.mrf.mxu3 }
 0x17b   : > { %v449_v36 = vadd.f32 %v448_v34, %v370_v32  ;;  %v459_v37 = vmax.f32 %v418_v35, 0.0 }
 0x17c   : > { %v499_v45 = vld [vmem:[%s810_s5 + $0x20] sm:$0xff] (%p716_p5) }
 0x17d   : > { %v460_v38 = vmax.f32 %v449_v36, 0.0  ;;  %467 = vst [vmem:[%s810_s5 + $0x30] sm:$0xff] %v459_v37 }
 0x17e   : > { %475 = sbr.rel (!%p716_p5) target bundleno = 392 (0x188), region = 59  ;;  %v501_v46 = vld [vmem:[%s810_s5 + $0x28] sm:$0xff] (%p716_p5)  ;;  %500 = vst [vmem:[%s478_s7 + $0x40] sm:$0xff] (%p716_p5), %v499_v45 }
 0x17f   : > { %468 = vst [vmem:[%s810_s5 + $0x38] sm:$0xff] %v460_v38 }
 0x180   : > { %v420_v39 = vpop.f32.mrf.mxu2  ;;  %502 = vst [vmem:[%s478_s7 + $0x48] sm:$0xff] (%p716_p5), %v501_v46 }
 0x182   : > { %v451_v40 = vpop.f32.mrf.mxu3 }
 0x184   : > { %v503_v47 = vld [vmem:[%s810_s5 + $0x30] sm:$0xff] }
 0x185   : > { %504 = vst [vmem:[%s478_s7 + $0x60] sm:$0xff] %v503_v47 }
 0x186   : > { %v505_v48 = vld [vmem:[%s810_s5 + $0x38] sm:$0xff] }
 0x187   : > { %506 = vst [vmem:[%s478_s7 + $0x68] sm:$0xff] %v505_v48 }
 0x188 PF: > { %p10_p10 = scmp.ge.s32.totalorder %s703_s16, 4   ;;  %s850_s12 = smov %s659_s13 }
 0x189   : > { %s851_s13 = smov %s714_s19  ;;  %s852_s14 = smov %s703_s16 }
 0x18a   :  { %12 = sbr.rel (!%p10_p10) target bundleno = 2 (0x2), region = 115 }

</bundles_post_ra>
